<compile_context>
chip_gen: v5e
topology: v5e:2x2
jax: 0.10.0
libtpu: 0.0.40
codegen_flags: <defaults>
</compile_context>

<pallas_src>
import functools

import jax
import jax.numpy as jnp
from jax.experimental import pallas as pl
from jax.experimental.pallas import tpu as pltpu


# ----------------------------------------------------------------------------
# Fused Pallas kernel: conv3x3 + ReLU + global-avg-pool + 3-layer VICReg head
# ----------------------------------------------------------------------------
def _vicsgaze_kernel(xp_ref, cw_ref, cb_ref,
                     w1_ref, g1_ref, b1_ref,
                     w2_ref, g2_ref, b2_ref,
                     w3_ref, b3_ref,
                     z_ref, f_ref,
                     pat_ref):
    """xp_ref: (B, H+2, W+2, Cin) bf16 (spatially pre-padded NHWC)
       cw_ref: (Kpad, NFpad) bf16 conv weight (rows beyond 9*Cin are zero)
       cb_ref: (1, NFpad) f32 conv bias
       w*/g*/b*: padded projection-head params (matmul weights bf16, rest f32)
       z_ref: (B, ODpad) f32, f_ref: (B, NFpad) f32
       pat_ref: (B*H*W, Kpad) bf16 VMEM scratch for the im2col patch matrix."""
    B, Hp, Wp, Cin = xp_ref.shape
    H, W = Hp - 2, Wp - 2
    M = B * H * W
    nf_pad = cw_ref.shape[1]
    eps = jnp.float32(1e-5)

    # ---------------- backbone: 3x3 conv as one flat MXU matmul --------------
    # Assemble the im2col patch matrix in VMEM (zero the padded K lanes first).
    pat_ref[...] = jnp.zeros_like(pat_ref)
    for k in range(9):
        dh, dw = divmod(k, 3)
        tap = xp_ref[:, dh:dh + H, dw:dw + W, :]          # (B, H, W, Cin) bf16
        pat_ref[:, k * Cin:(k + 1) * Cin] = tap.reshape(M, Cin)

    conv = jnp.dot(pat_ref[...], cw_ref[...],
                   preferred_element_type=jnp.float32)     # (M, NFpad) f32
    act = jnp.maximum(conv + cb_ref[...], 0.0)             # bias + ReLU
    # AdaptiveAvgPool2d(1) + flatten(1): mean over the H*W rows of each image.
    f = jnp.mean(act.reshape(B, H * W, nf_pad), axis=1)    # (B, NFpad) f32
    f_ref[...] = f

    # ---------------- VICRegProjectionHead (training-mode BatchNorm1d) -------
    def bn_relu(h, gamma, beta):
        # single-pass batch statistics (biased variance), f32
        n = jnp.float32(h.shape[0])
        s1 = jnp.sum(h, axis=0, keepdims=True)
        s2 = jnp.sum(h * h, axis=0, keepdims=True)
        mu = s1 / n
        var = jnp.maximum(s2 / n - mu * mu, 0.0)
        hn = (h - mu) * jax.lax.rsqrt(var + eps)
        return jnp.maximum(hn * gamma + beta, 0.0).astype(jnp.bfloat16)

    h = jnp.dot(f.astype(jnp.bfloat16), w1_ref[...],
                preferred_element_type=jnp.float32)
    h = bn_relu(h, g1_ref[...], b1_ref[...])
    h = jnp.dot(h, w2_ref[...], preferred_element_type=jnp.float32)
    h = bn_relu(h, g2_ref[...], b2_ref[...])
    z = jnp.dot(h, w3_ref[...], preferred_element_type=jnp.float32) + b3_ref[...]
    z_ref[...] = z


# ----------------------------------------------------------------------------
# Wrapper / parameters
# ----------------------------------------------------------------------------
_LANES = 128
_VMEM = pl.BlockSpec(memory_space=pltpu.MemorySpace.VMEM)


def _round_up(x, m):
    return (x + m - 1) // m * m


def _pad2(a, rows, cols):
    return jnp.pad(a, ((0, rows - a.shape[0]), (0, cols - a.shape[1])))


def init_params(key, in_ch, num_ftrs, hidden_dim, out_dim):
    """Parameters with feature dims zero-padded to 128 lanes (MXU/lane dense)."""
    ks = jax.random.split(key, 6)
    s = 0.05
    kc = 9 * in_ch
    kc_p = _round_up(kc, _LANES)
    nf_p = _round_up(num_ftrs, _LANES)
    hd_p = _round_up(hidden_dim, _LANES)
    od_p = _round_up(out_dim, _LANES)

    conv_w = _pad2(s * jax.random.normal(ks[0], (kc, num_ftrs), jnp.float32), kc_p, nf_p)
    conv_b = _pad2(s * jax.random.normal(ks[1], (1, num_ftrs), jnp.float32), 1, nf_p)
    w1 = _pad2(s * jax.random.normal(ks[2], (num_ftrs, hidden_dim), jnp.float32), nf_p, hd_p)
    w2 = _pad2(s * jax.random.normal(ks[3], (hidden_dim, hidden_dim), jnp.float32), hd_p, hd_p)
    w3 = _pad2(s * jax.random.normal(ks[4], (hidden_dim, out_dim), jnp.float32), hd_p, od_p)
    bias3 = _pad2(s * jax.random.normal(ks[5], (1, out_dim), jnp.float32), 1, od_p)
    g1 = _pad2(jnp.ones((1, hidden_dim), jnp.float32), 1, hd_p)   # pad gamma -> 0
    b1 = jnp.zeros((1, hd_p), jnp.float32)                        # pad beta  -> 0
    g2 = _pad2(jnp.ones((1, hidden_dim), jnp.float32), 1, hd_p)
    b2 = jnp.zeros((1, hd_p), jnp.float32)

    return {
        "conv_w": conv_w.astype(jnp.bfloat16), "conv_b": conv_b,
        "w1": w1.astype(jnp.bfloat16), "g1": g1, "b1": b1,
        "w2": w2.astype(jnp.bfloat16), "g2": g2, "b2": b2,
        "w3": w3.astype(jnp.bfloat16), "bias3": bias3,
    }


def _fused_forward(xp_bf16, p):
    """One fused pallas_call: backbone + projection head."""
    B, Hp, Wp, _ = xp_bf16.shape
    H, W = Hp - 2, Wp - 2
    kc_p, nf_p = p["conv_w"].shape
    od_p = p["w3"].shape[1]
    z_pad, f_pad = pl.pallas_call(
        _vicsgaze_kernel,
        out_shape=(jax.ShapeDtypeStruct((B, od_p), jnp.float32),
                   jax.ShapeDtypeStruct((B, nf_p), jnp.float32)),
        in_specs=[_VMEM] * 11,
        out_specs=(_VMEM, _VMEM),
        scratch_shapes=[pltpu.VMEM((B * H * W, kc_p), jnp.bfloat16)],
    )(xp_bf16, p["conv_w"], p["conv_b"],
      p["w1"], p["g1"], p["b1"],
      p["w2"], p["g2"], p["b2"],
      p["w3"], p["bias3"])
    return z_pad, f_pad


def _single_view_forward(params, x_nchw, num_ftrs, out_dim):
    # NCHW -> NHWC, spatial pad for the 3x3/pad=1 conv, bf16 for halved DMA.
    x = jnp.transpose(x_nchw, (0, 2, 3, 1)).astype(jnp.bfloat16)
    xp = jnp.pad(x, ((0, 0), (1, 1), (1, 1), (0, 0)))
    z_pad, f_pad = _fused_forward(xp, params)
    return z_pad[:, :out_dim], f_pad[:, :num_ftrs]


@functools.partial(jax.jit,
                   static_argnames=("num_ftrs", "out_dim", "return_features"))
def vicsgaze_forward(params, x0, x1=None, *, num_ftrs, out_dim,
                     return_features=False):
    """Mirrors VicsGaze.forward(x0, x1=None, return_features=False)."""
    z0, f0 = _single_view_forward(params, x0, num_ftrs, out_dim)
    out0 = (z0, f0) if return_features else z0
    if x1 is None:
        return out0
    z1, f1 = _single_view_forward(params, x1, num_ftrs, out_dim)
    out1 = (z1, f1) if return_features else z1
    return out0, out1


if __name__ == "__main__":
    # Small shapes consistent with the module: batch=2, channels=4, spatial=16,
    # num_ftrs=32, hidden_dim=64, out_dim=32, num_layer=3.
    B, CIN, H, W = 2, 4, 16, 16
    NUM_FTRS, HIDDEN, OUT = 32, 64, 32

    key = jax.random.PRNGKey(0)
    kp, kx0, kx1 = jax.random.split(key, 3)
    params = init_params(kp, CIN, NUM_FTRS, HIDDEN, OUT)
    x0 = jax.random.normal(kx0, (B, CIN, H, W), jnp.float32)
    x1 = jax.random.normal(kx1, (B, CIN, H, W), jnp.float32)

    z0, z1 = vicsgaze_forward(params, x0, x1, num_ftrs=NUM_FTRS, out_dim=OUT)
    jax.block_until_ready((z0, z1))
    assert z0.shape == (B, OUT) and z1.shape == (B, OUT)
    assert bool(jnp.isfinite(z0).all()) and bool(jnp.isfinite(z1).all())

    # Also exercise the x1=None / return_features branch.
    out0, f0 = vicsgaze_forward(params, x0, None, num_ftrs=NUM_FTRS,
                                out_dim=OUT, return_features=True)
    jax.block_until_ready((out0, f0))
    assert out0.shape == (B, OUT) and f0.shape == (B, NUM_FTRS)
    assert bool(jnp.isfinite(f0).all())

    print("KERNEL_OK")
</pallas_src>

<mosaic_0001>
module attributes {stable_mosaic.version = 11 : i64} {
  func.func @_vicsgaze_kernel(%arg0: memref<2x18x18x4xbf16, #tpu.memory_space<vmem>>, %arg1: memref<128x128xbf16, #tpu.memory_space<vmem>>, %arg2: memref<1x128xf32, #tpu.memory_space<vmem>>, %arg3: memref<128x128xbf16, #tpu.memory_space<vmem>>, %arg4: memref<1x128xf32, #tpu.memory_space<vmem>>, %arg5: memref<1x128xf32, #tpu.memory_space<vmem>>, %arg6: memref<128x128xbf16, #tpu.memory_space<vmem>>, %arg7: memref<1x128xf32, #tpu.memory_space<vmem>>, %arg8: memref<1x128xf32, #tpu.memory_space<vmem>>, %arg9: memref<128x128xbf16, #tpu.memory_space<vmem>>, %arg10: memref<1x128xf32, #tpu.memory_space<vmem>>, %arg11: memref<2x128xf32, #tpu.memory_space<vmem>>, %arg12: memref<2x128xf32, #tpu.memory_space<vmem>>, %arg13: memref<512x128xbf16, #tpu.memory_space<vmem>>) attributes {dimension_semantics = [], scalar_prefetch = 0 : i64, scratch_operands = 1 : i64, tpu.core_type = #tpu.core_type<tc>} {
    %cst = arith.constant 0.000000e+00 : bf16
    %0 = vector.broadcast %cst : bf16 to vector<512x128xbf16>
    %c0 = arith.constant 0 : index
    %c0_0 = arith.constant 0 : index
    %1 = vector.load %arg13[%c0, %c0_0] : memref<512x128xbf16, #tpu.memory_space<vmem>>, vector<512x128xbf16>
    tpu.vector_store %arg13[%c0, %c0_0], %0 {strides = array<i32>} : memref<512x128xbf16, #tpu.memory_space<vmem>>, vector<512x128xbf16>,
    %c0_1 = arith.constant 0 : index
    %c0_2 = arith.constant 0 : index
    %c0_3 = arith.constant 0 : index
    %c0_4 = arith.constant 0 : index
    %2 = vector.load %arg0[%c0_1, %c0_2, %c0_3, %c0_4] : memref<2x18x18x4xbf16, #tpu.memory_space<vmem>>, vector<2x16x16x4xbf16>
    %3 = vector.shape_cast %2 : vector<2x16x16x4xbf16> to vector<512x4xbf16>
    %c0_5 = arith.constant 0 : index
    %c0_6 = arith.constant 0 : index
    %4 = vector.load %arg13[%c0_5, %c0_6] : memref<512x128xbf16, #tpu.memory_space<vmem>>, vector<512x4xbf16>
    tpu.vector_store %arg13[%c0_5, %c0_6], %3 {strides = array<i32>} : memref<512x128xbf16, #tpu.memory_space<vmem>>, vector<512x4xbf16>,
    %c0_7 = arith.constant 0 : index
    %c0_8 = arith.constant 0 : index
    %c1 = arith.constant 1 : index
    %c0_9 = arith.constant 0 : index
    %5 = vector.load %arg0[%c0_7, %c0_8, %c1, %c0_9] : memref<2x18x18x4xbf16, #tpu.memory_space<vmem>>, vector<2x16x16x4xbf16>
    %6 = vector.shape_cast %5 : vector<2x16x16x4xbf16> to vector<512x4xbf16>
    %c0_10 = arith.constant 0 : index
    %c4 = arith.constant 4 : index
    %7 = vector.load %arg13[%c0_10, %c4] : memref<512x128xbf16, #tpu.memory_space<vmem>>, vector<512x4xbf16>
    tpu.vector_store %arg13[%c0_10, %c4], %6 {strides = array<i32>} : memref<512x128xbf16, #tpu.memory_space<vmem>>, vector<512x4xbf16>,
    %c0_11 = arith.constant 0 : index
    %c0_12 = arith.constant 0 : index
    %c2 = arith.constant 2 : index
    %c0_13 = arith.constant 0 : index
    %8 = vector.load %arg0[%c0_11, %c0_12, %c2, %c0_13] : memref<2x18x18x4xbf16, #tpu.memory_space<vmem>>, vector<2x16x16x4xbf16>
    %9 = vector.shape_cast %8 : vector<2x16x16x4xbf16> to vector<512x4xbf16>
    %c0_14 = arith.constant 0 : index
    %c8 = arith.constant 8 : index
    %10 = vector.load %arg13[%c0_14, %c8] : memref<512x128xbf16, #tpu.memory_space<vmem>>, vector<512x4xbf16>
    tpu.vector_store %arg13[%c0_14, %c8], %9 {strides = array<i32>} : memref<512x128xbf16, #tpu.memory_space<vmem>>, vector<512x4xbf16>,
    %c0_15 = arith.constant 0 : index
    %c1_16 = arith.constant 1 : index
    %c0_17 = arith.constant 0 : index
    %c0_18 = arith.constant 0 : index
    %11 = vector.load %arg0[%c0_15, %c1_16, %c0_17, %c0_18] : memref<2x18x18x4xbf16, #tpu.memory_space<vmem>>, vector<2x16x16x4xbf16>
    %12 = vector.shape_cast %11 : vector<2x16x16x4xbf16> to vector<512x4xbf16>
    %c0_19 = arith.constant 0 : index
    %c12 = arith.constant 12 : index
    %13 = vector.load %arg13[%c0_19, %c12] : memref<512x128xbf16, #tpu.memory_space<vmem>>, vector<512x4xbf16>
    tpu.vector_store %arg13[%c0_19, %c12], %12 {strides = array<i32>} : memref<512x128xbf16, #tpu.memory_space<vmem>>, vector<512x4xbf16>,
    %c0_20 = arith.constant 0 : index
    %c1_21 = arith.constant 1 : index
    %c1_22 = arith.constant 1 : index
    %c0_23 = arith.constant 0 : index
    %14 = vector.load %arg0[%c0_20, %c1_21, %c1_22, %c0_23] : memref<2x18x18x4xbf16, #tpu.memory_space<vmem>>, vector<2x16x16x4xbf16>
    %15 = vector.shape_cast %14 : vector<2x16x16x4xbf16> to vector<512x4xbf16>
    %c0_24 = arith.constant 0 : index
    %c16 = arith.constant 16 : index
    %16 = vector.load %arg13[%c0_24, %c16] : memref<512x128xbf16, #tpu.memory_space<vmem>>, vector<512x4xbf16>
    tpu.vector_store %arg13[%c0_24, %c16], %15 {strides = array<i32>} : memref<512x128xbf16, #tpu.memory_space<vmem>>, vector<512x4xbf16>,
    %c0_25 = arith.constant 0 : index
    %c1_26 = arith.constant 1 : index
    %c2_27 = arith.constant 2 : index
    %c0_28 = arith.constant 0 : index
    %17 = vector.load %arg0[%c0_25, %c1_26, %c2_27, %c0_28] : memref<2x18x18x4xbf16, #tpu.memory_space<vmem>>, vector<2x16x16x4xbf16>
    %18 = vector.shape_cast %17 : vector<2x16x16x4xbf16> to vector<512x4xbf16>
    %c0_29 = arith.constant 0 : index
    %c20 = arith.constant 20 : index
    %19 = vector.load %arg13[%c0_29, %c20] : memref<512x128xbf16, #tpu.memory_space<vmem>>, vector<512x4xbf16>
    tpu.vector_store %arg13[%c0_29, %c20], %18 {strides = array<i32>} : memref<512x128xbf16, #tpu.memory_space<vmem>>, vector<512x4xbf16>,
    %c0_30 = arith.constant 0 : index
    %c2_31 = arith.constant 2 : index
    %c0_32 = arith.constant 0 : index
    %c0_33 = arith.constant 0 : index
    %20 = vector.load %arg0[%c0_30, %c2_31, %c0_32, %c0_33] : memref<2x18x18x4xbf16, #tpu.memory_space<vmem>>, vector<2x16x16x4xbf16>
    %21 = vector.shape_cast %20 : vector<2x16x16x4xbf16> to vector<512x4xbf16>
    %c0_34 = arith.constant 0 : index
    %c24 = arith.constant 24 : index
    %22 = vector.load %arg13[%c0_34, %c24] : memref<512x128xbf16, #tpu.memory_space<vmem>>, vector<512x4xbf16>
    tpu.vector_store %arg13[%c0_34, %c24], %21 {strides = array<i32>} : memref<512x128xbf16, #tpu.memory_space<vmem>>, vector<512x4xbf16>,
    %c0_35 = arith.constant 0 : index
    %c2_36 = arith.constant 2 : index
    %c1_37 = arith.constant 1 : index
    %c0_38 = arith.constant 0 : index
    %23 = vector.load %arg0[%c0_35, %c2_36, %c1_37, %c0_38] : memref<2x18x18x4xbf16, #tpu.memory_space<vmem>>, vector<2x16x16x4xbf16>
    %24 = vector.shape_cast %23 : vector<2x16x16x4xbf16> to vector<512x4xbf16>
    %c0_39 = arith.constant 0 : index
    %c28 = arith.constant 28 : index
    %25 = vector.load %arg13[%c0_39, %c28] : memref<512x128xbf16, #tpu.memory_space<vmem>>, vector<512x4xbf16>
    tpu.vector_store %arg13[%c0_39, %c28], %24 {strides = array<i32>} : memref<512x128xbf16, #tpu.memory_space<vmem>>, vector<512x4xbf16>,
    %c0_40 = arith.constant 0 : index
    %c2_41 = arith.constant 2 : index
    %c2_42 = arith.constant 2 : index
    %c0_43 = arith.constant 0 : index
    %26 = vector.load %arg0[%c0_40, %c2_41, %c2_42, %c0_43] : memref<2x18x18x4xbf16, #tpu.memory_space<vmem>>, vector<2x16x16x4xbf16>
    %27 = vector.shape_cast %26 : vector<2x16x16x4xbf16> to vector<512x4xbf16>
    %c0_44 = arith.constant 0 : index
    %c32 = arith.constant 32 : index
    %28 = vector.load %arg13[%c0_44, %c32] : memref<512x128xbf16, #tpu.memory_space<vmem>>, vector<512x4xbf16>
    tpu.vector_store %arg13[%c0_44, %c32], %27 {strides = array<i32>} : memref<512x128xbf16, #tpu.memory_space<vmem>>, vector<512x4xbf16>,
    %c0_45 = arith.constant 0 : index
    %c0_46 = arith.constant 0 : index
    %29 = vector.load %arg13[%c0_45, %c0_46] : memref<512x128xbf16, #tpu.memory_space<vmem>>, vector<512x128xbf16>
    %c0_47 = arith.constant 0 : index
    %c0_48 = arith.constant 0 : index
    %30 = vector.load %arg1[%c0_47, %c0_48] : memref<128x128xbf16, #tpu.memory_space<vmem>>, vector<128x128xbf16>
    %cst_49 = arith.constant dense<0.000000e+00> : vector<512x128xf32>
    %31 = tpu.matmul %29, %30, %cst_49 {dimension_numbers = #tpu.dot_dimension_numbers<[1], [0], [0], [1], [0, 0, 1, 1], [], []>} : vector<512x128xbf16>, vector<128x128xbf16>, vector<512x128xf32> -> vector<512x128xf32>
    %c0_50 = arith.constant 0 : index
    %c0_51 = arith.constant 0 : index
    %32 = vector.load %arg2[%c0_50, %c0_51] : memref<1x128xf32, #tpu.memory_space<vmem>>, vector<1x128xf32>
    %33 = vector.broadcast %32 : vector<1x128xf32> to vector<512x128xf32>
    %34 = arith.addf %31, %33 : vector<512x128xf32>
    %cst_52 = arith.constant 0.000000e+00 : f32
    %35 = vector.broadcast %cst_52 : f32 to vector<512x128xf32>
    %36 = arith.maximumf %34, %35 : vector<512x128xf32>
    %37 = vector.shape_cast %36 : vector<512x128xf32> to vector<2x256x128xf32>
    %cst_53 = arith.constant dense<0.000000e+00> : vector<2x128xf32>
    %38 = vector.multi_reduction <add>, %37, %cst_53 [1] : vector<2x256x128xf32> to vector<2x128xf32>
    %cst_54 = arith.constant 2.560000e+02 : f32
    %39 = vector.broadcast %cst_54 : f32 to vector<2x128xf32>
    %40 = arith.divf %38, %39 : vector<2x128xf32>
    %c0_55 = arith.constant 0 : index
    %c0_56 = arith.constant 0 : index
    %41 = vector.load %arg12[%c0_55, %c0_56] : memref<2x128xf32, #tpu.memory_space<vmem>>, vector<2x128xf32>
    tpu.vector_store %arg12[%c0_55, %c0_56], %40 {strides = array<i32>} : memref<2x128xf32, #tpu.memory_space<vmem>>, vector<2x128xf32>,
    %42 = arith.truncf %40 : vector<2x128xf32> to vector<2x128xbf16>
    %c0_57 = arith.constant 0 : index
    %c0_58 = arith.constant 0 : index
    %43 = vector.load %arg3[%c0_57, %c0_58] : memref<128x128xbf16, #tpu.memory_space<vmem>>, vector<128x128xbf16>
    %cst_59 = arith.constant dense<0.000000e+00> : vector<2x128xf32>
    %44 = tpu.matmul %42, %43, %cst_59 {dimension_numbers = #tpu.dot_dimension_numbers<[1], [0], [0], [1], [0, 0, 1, 1], [], []>} : vector<2x128xbf16>, vector<128x128xbf16>, vector<2x128xf32> -> vector<2x128xf32>
    %c0_60 = arith.constant 0 : index
    %c0_61 = arith.constant 0 : index
    %45 = vector.load %arg4[%c0_60, %c0_61] : memref<1x128xf32, #tpu.memory_space<vmem>>, vector<1x128xf32>
    %c0_62 = arith.constant 0 : index
    %c0_63 = arith.constant 0 : index
    %46 = vector.load %arg5[%c0_62, %c0_63] : memref<1x128xf32, #tpu.memory_space<vmem>>, vector<1x128xf32>
    %cst_64 = arith.constant dense<0.000000e+00> : vector<128xf32>
    %47 = vector.multi_reduction <add>, %44, %cst_64 [0] : vector<2x128xf32> to vector<128xf32>
    %48 = vector.shape_cast %47 : vector<128xf32> to vector<1x128xf32>
    %49 = arith.mulf %44, %44 : vector<2x128xf32>
    %cst_65 = arith.constant dense<0.000000e+00> : vector<128xf32>
    %50 = vector.multi_reduction <add>, %49, %cst_65 [0] : vector<2x128xf32> to vector<128xf32>
    %51 = vector.shape_cast %50 : vector<128xf32> to vector<1x128xf32>
    %cst_66 = arith.constant 2.000000e+00 : f32
    %52 = vector.broadcast %cst_66 : f32 to vector<1x128xf32>
    %53 = arith.divf %48, %52 : vector<1x128xf32>
    %cst_67 = arith.constant 2.000000e+00 : f32
    %54 = vector.broadcast %cst_67 : f32 to vector<1x128xf32>
    %55 = arith.divf %51, %54 : vector<1x128xf32>
    %56 = arith.mulf %53, %53 : vector<1x128xf32>
    %57 = arith.subf %55, %56 : vector<1x128xf32>
    %cst_68 = arith.constant 0.000000e+00 : f32
    %58 = vector.broadcast %cst_68 : f32 to vector<1x128xf32>
    %59 = arith.maximumf %57, %58 : vector<1x128xf32>
    %60 = vector.broadcast %53 : vector<1x128xf32> to vector<2x128xf32>
    %61 = arith.subf %44, %60 : vector<2x128xf32>
    %cst_69 = arith.constant 9.99999974E-6 : f32
    %62 = vector.broadcast %cst_69 : f32 to vector<1x128xf32>
    %63 = arith.addf %59, %62 : vector<1x128xf32>
    %64 = math.rsqrt %63 : vector<1x128xf32>
    %65 = vector.broadcast %64 : vector<1x128xf32> to vector<2x128xf32>
    %66 = arith.mulf %61, %65 : vector<2x128xf32>
    %67 = vector.broadcast %45 : vector<1x128xf32> to vector<2x128xf32>
    %68 = arith.mulf %66, %67 : vector<2x128xf32>
    %69 = vector.broadcast %46 : vector<1x128xf32> to vector<2x128xf32>
    %70 = arith.addf %68, %69 : vector<2x128xf32>
    %cst_70 = arith.constant 0.000000e+00 : f32
    %71 = vector.broadcast %cst_70 : f32 to vector<2x128xf32>
    %72 = arith.maximumf %70, %71 : vector<2x128xf32>
    %73 = arith.truncf %72 : vector<2x128xf32> to vector<2x128xbf16>
    %c0_71 = arith.constant 0 : index
    %c0_72 = arith.constant 0 : index
    %74 = vector.load %arg6[%c0_71, %c0_72] : memref<128x128xbf16, #tpu.memory_space<vmem>>, vector<128x128xbf16>
    %cst_73 = arith.constant dense<0.000000e+00> : vector<2x128xf32>
    %75 = tpu.matmul %73, %74, %cst_73 {dimension_numbers = #tpu.dot_dimension_numbers<[1], [0], [0], [1], [0, 0, 1, 1], [], []>} : vector<2x128xbf16>, vector<128x128xbf16>, vector<2x128xf32> -> vector<2x128xf32>
    %c0_74 = arith.constant 0 : index
    %c0_75 = arith.constant 0 : index
    %76 = vector.load %arg7[%c0_74, %c0_75] : memref<1x128xf32, #tpu.memory_space<vmem>>, vector<1x128xf32>
    %c0_76 = arith.constant 0 : index
    %c0_77 = arith.constant 0 : index
    %77 = vector.load %arg8[%c0_76, %c0_77] : memref<1x128xf32, #tpu.memory_space<vmem>>, vector<1x128xf32>
    %cst_78 = arith.constant dense<0.000000e+00> : vector<128xf32>
    %78 = vector.multi_reduction <add>, %75, %cst_78 [0] : vector<2x128xf32> to vector<128xf32>
    %79 = vector.shape_cast %78 : vector<128xf32> to vector<1x128xf32>
    %80 = arith.mulf %75, %75 : vector<2x128xf32>
    %cst_79 = arith.constant dense<0.000000e+00> : vector<128xf32>
    %81 = vector.multi_reduction <add>, %80, %cst_79 [0] : vector<2x128xf32> to vector<128xf32>
    %82 = vector.shape_cast %81 : vector<128xf32> to vector<1x128xf32>
    %cst_80 = arith.constant 2.000000e+00 : f32
    %83 = vector.broadcast %cst_80 : f32 to vector<1x128xf32>
    %84 = arith.divf %79, %83 : vector<1x128xf32>
    %cst_81 = arith.constant 2.000000e+00 : f32
    %85 = vector.broadcast %cst_81 : f32 to vector<1x128xf32>
    %86 = arith.divf %82, %85 : vector<1x128xf32>
    %87 = arith.mulf %84, %84 : vector<1x128xf32>
    %88 = arith.subf %86, %87 : vector<1x128xf32>
    %cst_82 = arith.constant 0.000000e+00 : f32
    %89 = vector.broadcast %cst_82 : f32 to vector<1x128xf32>
    %90 = arith.maximumf %88, %89 : vector<1x128xf32>
    %91 = vector.broadcast %84 : vector<1x128xf32> to vector<2x128xf32>
    %92 = arith.subf %75, %91 : vector<2x128xf32>
    %cst_83 = arith.constant 9.99999974E-6 : f32
    %93 = vector.broadcast %cst_83 : f32 to vector<1x128xf32>
    %94 = arith.addf %90, %93 : vector<1x128xf32>
    %95 = math.rsqrt %94 : vector<1x128xf32>
    %96 = vector.broadcast %95 : vector<1x128xf32> to vector<2x128xf32>
    %97 = arith.mulf %92, %96 : vector<2x128xf32>
    %98 = vector.broadcast %76 : vector<1x128xf32> to vector<2x128xf32>
    %99 = arith.mulf %97, %98 : vector<2x128xf32>
    %100 = vector.broadcast %77 : vector<1x128xf32> to vector<2x128xf32>
    %101 = arith.addf %99, %100 : vector<2x128xf32>
    %cst_84 = arith.constant 0.000000e+00 : f32
    %102 = vector.broadcast %cst_84 : f32 to vector<2x128xf32>
    %103 = arith.maximumf %101, %102 : vector<2x128xf32>
    %104 = arith.truncf %103 : vector<2x128xf32> to vector<2x128xbf16>
    %c0_85 = arith.constant 0 : index
    %c0_86 = arith.constant 0 : index
    %105 = vector.load %arg9[%c0_85, %c0_86] : memref<128x128xbf16, #tpu.memory_space<vmem>>, vector<128x128xbf16>
    %cst_87 = arith.constant dense<0.000000e+00> : vector<2x128xf32>
    %106 = tpu.matmul %104, %105, %cst_87 {dimension_numbers = #tpu.dot_dimension_numbers<[1], [0], [0], [1], [0, 0, 1, 1], [], []>} : vector<2x128xbf16>, vector<128x128xbf16>, vector<2x128xf32> -> vector<2x128xf32>
    %c0_88 = arith.constant 0 : index
    %c0_89 = arith.constant 0 : index
    %107 = vector.load %arg10[%c0_88, %c0_89] : memref<1x128xf32, #tpu.memory_space<vmem>>, vector<1x128xf32>
    %108 = vector.broadcast %107 : vector<1x128xf32> to vector<2x128xf32>
    %109 = arith.addf %106, %108 : vector<2x128xf32>
    %c0_90 = arith.constant 0 : index
    %c0_91 = arith.constant 0 : index
    %110 = vector.load %arg11[%c0_90, %c0_91] : memref<2x128xf32, #tpu.memory_space<vmem>>, vector<2x128xf32>
    tpu.vector_store %arg11[%c0_90, %c0_91], %109 {strides = array<i32>} : memref<2x128xf32, #tpu.memory_space<vmem>>, vector<2x128xf32>,
    return
  }
}

</mosaic_0001>

<bundles_post_ra>
// kernel: vicsgaze_forward.2
= control target key start
LH: loop header
LB: loop body
LE: loop exit
PB: predicated region body
PF: predicated region fallthrough
CT: control target
= control target key end

     0   :  { %18 = vsyncpa [#allocation4], 0  ;;  %vm332_vm0 = vsmask.f32 3328  ;;  %vm333_vm1 = vsmask.f32 7440  ;;  %s13887_s0 = inlined_call_operand.vmem [shape: bf16[2,18,18,4], index: 0, kind: input, shape index: {}]   ;;  %s13888_s1 = inlined_call_operand.vmem [shape: bf16[128,128], index: 1, kind: input, shape index: {}]   ;;  %s13889_s2 = inlined_call_operand.vmem [shape: f32[1,128], index: 2, kind: input, shape index: {}]   ;;  %s13890_s3 = inlined_call_operand.vmem [shape: bf16[128,128], index: 3, kind: input, shape index: {}]   ;;  %s13891_s4 = inlined_call_operand.vmem [shape: f32[1,128], index: 4, kind: input, shape index: {}]   ;;  %s13892_s5 = inlined_call_operand.vmem [shape: f32[1,128], index: 5, kind: input, shape index: {}]   ;;  %s13893_s6 = inlined_call_operand.vmem [shape: bf16[128,128], index: 6, kind: input, shape index: {}]   ;;  %s13894_s7 = inlined_call_operand.vmem [shape: f32[1,128], index: 7, kind: input, shape index: {}]   ;;  %s13895_s8 = inlined_call_operand.vmem [shape: f32[1,128], index: 8, kind: input, shape index: {}]   ;;  %s13896_s9 = inlined_call_operand.vmem [shape: bf16[128,128], index: 9, kind: input, shape index: {}]   ;;  %s13897_s10 = inlined_call_operand.vmem [shape: f32[1,128], index: 10, kind: input, shape index: {}]   ;;  %s13898_s11 = inlined_call_operand.hbm [shape: f32[2,128], index: 11, kind: output, shape index: {0}]   ;;  %s13899_s12 = inlined_call_operand.hbm [shape: f32[2,128], index: 12, kind: output, shape index: {1}]  }
   0x1   :  { %v239_v0 = vld [vmem:[%s13887_s0 + $0xc] sm:$0xf]  ;;  %v240_v1 = vld [vmem:[%s13887_s0 + $0x10] sm:$0xf]  ;;  %v236_v6 = vld [vmem:[%s13887_s0] sm:$0xf] }
   0x2   :  { %v360_v2 = vshrl.u32 %v239_v0, 16  ;;  %v363_v3 = vshll.u32 %v239_v0, 16  ;;  %v369_v4 = vshll.u32 %v240_v1, 16  ;;  %v373_v5 = vshrl.u32 %v240_v1, 16  ;;  %v237_v7 = vld [vmem:[%s13887_s0 + $0x4] sm:$0xf]  ;;  %vm8551_vm2 = vmor %vm332_vm0, %vm333_vm1 }
   0x3   :  { %v336_v11 = vshrl.u32 %v236_v6, 16  ;;  %v241_v12 = vld [vmem:[%s13887_s0 + $0x14] sm:$0x1]  ;;  %v339_v14 = vshll.u32 %v236_v6, 16  ;;  %v345_v15 = vshll.u32 %v237_v7, 16  ;;  %v349_v16 = vshrl.u32 %v237_v7, 16 }
   0x4   :  { %v362_v8 = vrot.slane %v360_v2, 4  ;;  %v365_v9 = vrot.slane %v363_v3, 5  ;;  %v371_v10 = vrot.slane %v369_v4, 5  ;;  %v375_v13 = vrot.slane %v373_v5, 4  ;;  %v238_v19 = vld [vmem:[%s13887_s0 + $0x8] sm:$0x1] }
   0x5   :  { %v338_v18 = vrot.slane %v336_v11, 4  ;;  %v246_v20 = vld [vmem:[%s13887_s0 + $0x28] sm:$0xf]  ;;  %v341_v22 = vrot.slane %v339_v14, 5  ;;  %v351_v23 = vrot.slane %v349_v16, 4  ;;  %v379_v25 = vshll.u32 %v241_v12, 16 }
   0x6   :  { %v366_v17 = vor.u32 %v365_v9, %v362_v8  ;;  %v376_v24 = vor.u32 %v375_v13, %v371_v10  ;;  %v417_v27 = vshll.u32 %v246_v20, 16  ;;  %v245_v28 = vld [vmem:[%s13887_s0 + $0x24] sm:$0xf]  ;;  %v347_v30 = vrot.slane %v345_v15, 5  ;;  %v242_v33 = vld [vmem:[%s13887_s0 + $0x18] sm:$0xf] }
   0x7   :  { %v342_v29 = vor.u32 %v341_v22, %v338_v18  ;;  %v355_v31 = vshll.u32 %v238_v19, 16  ;;  %v421_v32 = vshrl.u32 %v246_v20, 16  ;;  %v408_v35 = vshrl.u32 %v245_v28, 16  ;;  %s8450_s21 = smov 4   ;;  %v243_v40 = vld [vmem:[%s13887_s0 + $0x1c] sm:$0xf] }
   0x8   :  { %v367_v26 = vrot.slane %v366_v17, 4  ;;  %v377_v37 = vrot.slane %v376_v24, 4  ;;  %v381_v38 = vrot.slane %v379_v25, 5  ;;  %v352_v39 = vor.u32 %v351_v23, %v347_v30  ;;  %v251_v45 = vld [vmem:[%s13887_s0 + $0x3c] sm:$0xf] }
   0x9   :  { %v343_v36 = vrot.slane %v342_v29, 4  ;;  %v8567_v41 = vrot.slane %v417_v27, 5  ;;  %v423_v42 = vrot.slane %v421_v32, 4  ;;  %v411_v43 = vshll.u32 %v245_v28, 16  ;;  %v247_v48 = vld [vmem:[%s13887_s0 + $0x2c] sm:$0x1] }
   0xa   :  { %v372_v34 = vsel %vm8551_vm2, %v367_v26, %v371_v10  ;;  %v384_v44 = vshrl.u32 %v242_v33, 16  ;;  %v357_v47 = vrot.slane %v355_v31, 5  ;;  %v410_v49 = vrot.slane %v408_v35, 4  ;;  %v249_v63 = vld [vmem:[%s13887_s0 + $0x34] sm:$0xf] }
   0xb   :  { %1107 = vrot.lane.b32.xlu1 %v372_v34, %s8450_s21  ;;  %v348_v46 = vsel %vm8551_vm2, %v343_v36, %v347_v30  ;;  %v387_v50 = vshll.u32 %v242_v33, 16  ;;  %v413_v51 = vrot.slane %v411_v43, 5  ;;  %v393_v53 = vshll.u32 %v243_v40, 16  ;;  %v244_v2 = vld [vmem:[%s13887_s0 + $0x20] sm:$0x1] }
   0xc   :  { %1103 = vrot.lane.b32.xlu0 %v348_v46, %s8450_s21  ;;  %v386_v52 = vrot.slane %v384_v44, 4  ;;  %v397_v54 = vshrl.u32 %v243_v40, 16  ;;  %v353_v55 = vrot.slane %v352_v39, 4  ;;  %v456_v57 = vshrl.u32 %v251_v45, 16  ;;  %v252_v4 = vld [vmem:[%s13887_s0 + $0x40] sm:$0xf] }
   0xd   :  { %v389_v56 = vrot.slane %v387_v50, 5  ;;  %v459_v58 = vshll.u32 %v251_v45, 16  ;;  %v382_v59 = vsel %vm8551_vm2, %v377_v37, %v381_v38  ;;  %v424_v60 = vor.u32 %v423_v42, %v8567_v41  ;;  %v250_v17 = vld [vmem:[%s13887_s0 + $0x38] sm:$0x1]  ;;  %v255_v18 = vld [vmem:[%s13887_s0 + $0x4c] sm:$0xf] }
   0xe   :  { %v427_v61 = vshll.u32 %v247_v48, 16  ;;  %v399_v62 = vrot.slane %v397_v54, 4  ;;  %v395_v1 = vrot.slane %v393_v53, 5  ;;  %v414_v3 = vor.u32 %v413_v51, %v410_v49  ;;  %v254_v22 = vld [vmem:[%s13887_s0 + $0x48] sm:$0xf] }
   0xf   :  { %v390_v0 = vor.u32 %v389_v56, %v386_v52  ;;  %v458_v5 = vrot.slane %v456_v57, 4  ;;  %v461_v6 = vrot.slane %v459_v58, 5  ;;  %v358_v7 = vsel %vm8551_vm2, %v353_v55, %v357_v47  ;;  %v248_v23 = vld [vmem:[%s13887_s0 + $0x30] sm:$0xf]  ;;  %v260_v47 = vld [vmem:[%s13887_s0 + $0x60] sm:$0xf] }
  0x10   :  { %v441_v9 = vshll.u32 %v249_v63, 16  ;;  %v445_v10 = vshrl.u32 %v249_v63, 16  ;;  %v425_v11 = vrot.slane %v424_v60, 4  ;;  %v429_v12 = vrot.slane %v427_v61, 5  ;;  %v256_v44 = vld [vmem:[%s13887_s0 + $0x50] sm:$0x1] }
  0x11   :  { %v391_v8 = vrot.slane %v390_v0, 4  ;;  %v400_v13 = vor.u32 %v399_v62, %v395_v1  ;;  %v403_v14 = vshll.u32 %v244_v2, 16  ;;  %v465_v16 = vshll.u32 %v252_v4, 16  ;;  %v258_v52 = vld [vmem:[%s13887_s0 + $0x58] sm:$0xf] }
  0x12   :  { %v415_v19 = vrot.slane %v414_v3, 4  ;;  %v462_v20 = vor.u32 %v461_v6, %v458_v5  ;;  %v8609_v24 = vrot.slane %v441_v9, 5  ;;  %v447_v25 = vrot.slane %v445_v10, 4  ;;  %v253_v61 = vld [vmem:[%s13887_s0 + $0x44] sm:$0x1] }
  0x13   :  { %1109 = vrot.lane.b32.xlu1 %v382_v59, %s8450_s21  ;;  %v396_v15 = vsel %vm8551_vm2, %v391_v8, %v395_v1  ;;  %v401_v26 = vrot.slane %v400_v13, 4  ;;  %v405_v27 = vrot.slane %v403_v14, 5  ;;  %v430_v28 = vsel %vm8551_vm2, %v425_v11, %v429_v12 }
  0x14   :  { %1105 = vrot.lane.b32.xlu0 %v358_v7, %s8450_s21  ;;  %1111 = vrot.lane.b32.xlu2 %v396_v15, %s8450_s21  ;;  %v489_v29 = vshll.u32 %v255_v18, 16  ;;  %v493_v30 = vshrl.u32 %v255_v18, 16  ;;  %v467_v31 = vrot.slane %v465_v16, 5  ;;  %v469_v32 = vshrl.u32 %v252_v4, 16 }
  0x15   :  { %v451_v33 = vshll.u32 %v250_v17, 16  ;;  %v432_v34 = vshrl.u32 %v248_v23, 16  ;;  %v420_v35 = vsel %vm8551_vm2, %v415_v19, %v8567_v41  ;;  %v480_v36 = vshrl.u32 %v254_v22, 16 }
  0x16   :  { %v483_v37 = vshll.u32 %v254_v22, 16  ;;  %v435_v38 = vshll.u32 %v248_v23, 16  ;;  %v463_v39 = vrot.slane %v462_v20, 4  ;;  %v448_v40 = vor.u32 %v447_v25, %v8609_v24 }
  0x17   :  { %v406_v42 = vsel %vm8551_vm2, %v401_v26, %v405_v27  ;;  %v434_v43 = vrot.slane %v432_v34, 4  ;;  %v8623_v45 = vrot.slane %v489_v29, 5  ;;  %v495_v46 = vrot.slane %v493_v30, 4 }
  0x18   :  { %v437_v41 = vrot.slane %v435_v38, 5  ;;  %v453_v48 = vrot.slane %v451_v33, 5  ;;  %v482_v49 = vrot.slane %v480_v36, 4  ;;  %v485_v50 = vrot.slane %v483_v37, 5 }
  0x19   :  { %v468_v53 = vsel %vm8551_vm2, %v463_v39, %v467_v31  ;;  %v449_v54 = vrot.slane %v448_v40, 4  ;;  %v499_v55 = vshll.u32 %v256_v44, 16  ;;  %v471_v56 = vrot.slane %v469_v32, 4 }
  0x1a   :  { %v438_v51 = vor.u32 %v437_v41, %v434_v43  ;;  %v496_v57 = vor.u32 %v495_v46, %v8623_v45  ;;  %v528_v59 = vshrl.u32 %v260_v47, 16  ;;  %v531_v60 = vshll.u32 %v260_v47, 16 }
  0x1b   :  { %1117 = vrot.lane.b32.xlu1 %v430_v28, %s8450_s21  ;;  %v513_v62 = vshll.u32 %v258_v52, 16  ;;  %v517_v63 = vshrl.u32 %v258_v52, 16 }
  0x1c   :  { %1115 = vrot.lane.b32.xlu0 %v420_v35, %s8450_s21  ;;  %1113 = vrot.lane.b32.xlu2 %v406_v42, %s8450_s21  ;;  %v439_v58 = vrot.slane %v438_v51, 4 }
  0x1d   :  { %19 = vsyncpa [#allocation6], 0  ;;  %v486_v0 = vor.u32 %v485_v50, %v482_v49  ;;  %v257_v1 = vld [vmem:[%s13887_s0 + $0x54] sm:$0xf]  ;;  %v454_v2 = vsel %vm8551_vm2, %v449_v54, %v453_v48  ;;  %v261_v4 = vld [vmem:[%s13887_s0 + $0x64] sm:$0xf]  ;;  %v472_v5 = vor.u32 %v471_v56, %v467_v31 }
  0x1e   :  { %v444_v3 = vsel %vm8551_vm2, %v439_v58, %v8609_v24  ;;  %v475_v6 = vshll.u32 %v253_v61, 16  ;;  %v497_v7 = vrot.slane %v496_v57, 4  ;;  %v501_v8 = vrot.slane %v499_v55, 5  ;;  %v264_v13 = vld [vmem:[%s13887_s0 + $0x70] sm:$0xf]  ;;  %s8452_s18 = smov 8  }
  0x1f   :  { %v530_v9 = vrot.slane %v528_v59, 4  ;;  %v533_v10 = vrot.slane %v531_v60, 5  ;;  %v8651_v11 = vrot.slane %v513_v62, 5  ;;  %v519_v12 = vrot.slane %v517_v63, 4  ;;  %v259_v18 = vld [vmem:[%s13887_s0 + $0x5c] sm:$0x1] }
  0x20   :  { %v504_v14 = vshrl.u32 %v257_v1, 16  ;;  %v507_v15 = vshll.u32 %v257_v1, 16  ;;  %v487_v16 = vrot.slane %v486_v0, 4  ;;  %v537_v17 = vshll.u32 %v261_v4, 16  ;;  %v263_v22 = vld [vmem:[%s13887_s0 + $0x6c] sm:$0xf] }
  0x21   :  { %v473_v19 = vrot.slane %v472_v5, 4  ;;  %v477_v20 = vrot.slane %v475_v6, 5  ;;  %v502_v25 = vsel %vm8551_vm2, %v497_v7, %v501_v8  ;;  %v534_v26 = vor.u32 %v533_v10, %v530_v9  ;;  %v269_v37 = vld [vmem:[%s13887_s0 + $0x84] sm:$0xf]  ;;  %v267_v49 = vld [vmem:[%s13887_s0 + $0x7c] sm:$0xf] }
  0x22   :  { %v506_v23 = vrot.slane %v504_v14, 4  ;;  %v509_v24 = vrot.slane %v507_v15, 5  ;;  %v561_v27 = vshll.u32 %v264_v13, 16  ;;  %v565_v28 = vshrl.u32 %v264_v13, 16  ;;  %v262_v51 = vld [vmem:[%s13887_s0 + $0x68] sm:$0x1] }
  0x23   :  { %1123 = vrot.lane.b32.xlu1 %v468_v53, %s8450_s21  ;;  %v520_v29 = vor.u32 %v519_v12, %v8651_v11  ;;  %v523_v30 = vshll.u32 %v259_v18, 16  ;;  %v552_v31 = vshrl.u32 %v263_v22, 16  ;;  %v555_v32 = vshll.u32 %v263_v22, 16  ;;  %v266_v56 = vld [vmem:[%s13887_s0 + $0x78] sm:$0xf]  ;;  %s8453_s27 = smov 12  }
  0x24   :  { %1121 = vrot.lane.b32.xlu0 %v454_v2, %s8450_s21  ;;  %1119 = vrot.lane.b32.xlu2 %v444_v3, %s8450_s21  ;;  %v492_v33 = vsel %vm8551_vm2, %v487_v16, %v8623_v45  ;;  %v541_v34 = vshrl.u32 %v261_v4, 16  ;;  %v478_v35 = vsel %vm8551_vm2, %v473_v19, %v477_v20  ;;  %v510_v36 = vor.u32 %v509_v24, %v506_v23  ;;  %v265_v45 = vld [vmem:[%s13887_s0 + $0x74] sm:$0x1]  ;;  %v270_v1 = vld [vmem:[%s13887_s0 + $0x88] sm:$0xf]  ;;  %s8454_s14 = smov 16  }
  0x25   :  { %v535_v38 = vrot.slane %v534_v26, 4  ;;  %v539_v39 = vrot.slane %v537_v17, 5  ;;  %v8676_v40 = vrot.slane %v561_v27, 5  ;;  %v567_v42 = vrot.slane %v565_v28, 4  ;;  %v273_v9 = vld [vmem:[%s13887_s0 + $0x94] sm:$0xf] }
  0x26   :  { %v521_v43 = vrot.slane %v520_v29, 4  ;;  %v525_v44 = vrot.slane %v523_v30, 5  ;;  %v554_v46 = vrot.slane %v552_v31, 4  ;;  %v557_v41 = vrot.slane %v555_v32, 5  ;;  %v268_v13 = vld [vmem:[%s13887_s0 + $0x80] sm:$0x1] }
  0x27   :  { %v600_v47 = vshrl.u32 %v269_v37, 16  ;;  %v603_v48 = vshll.u32 %v269_v37, 16  ;;  %v511_v50 = vrot.slane %v510_v36, 4  ;;  %v543_v52 = vrot.slane %v541_v34, 4  ;;  %v272_v22 = vld [vmem:[%s13887_s0 + $0x90] sm:$0xf] }
  0x28   :  { %v540_v53 = vsel %vm8551_vm2, %v535_v38, %v539_v39  ;;  %v568_v54 = vor.u32 %v567_v42, %v8676_v40  ;;  %v571_v55 = vshll.u32 %v265_v45, 16  ;;  %v526_v57 = vsel %vm8551_vm2, %v521_v43, %v525_v44  ;;  %v274_v37 = vld [vmem:[%s13887_s0 + $0x98] sm:$0x1]  ;;  %v278_v38 = vld [vmem:[%s13887_s0 + $0xa8] sm:$0xf]  ;;  %s8455_s24 = smov 24  }
  0x29   :  { %v585_v58 = vshll.u32 %v267_v49, 16  ;;  %v589_v59 = vshrl.u32 %v267_v49, 16  ;;  %v558_v60 = vor.u32 %v557_v41, %v554_v46  ;;  %v602_v61 = vrot.slane %v600_v47, 4  ;;  %v275_v46 = vld [vmem:[%s13887_s0 + $0x9c] sm:$0xf]  ;;  %s8457_s17 = smov 28  }
  0x2a   :  { %v605_v62 = vrot.slane %v603_v48, 5  ;;  %v547_v63 = vshll.u32 %v262_v51, 16  ;;  %v516_v0 = vsel %vm8551_vm2, %v511_v50, %v8651_v11  ;;  %v544_v2 = vor.u32 %v543_v52, %v539_v39  ;;  %v271_v50 = vld [vmem:[%s13887_s0 + $0x8c] sm:$0x1]  ;;  %s8458_s30 = smov 32   ;;  %s8461_s22 = smov [#allocation5]  }
  0x2b   :  { %1129 = vrot.lane.b32.xlu1 %v502_v25, %s8450_s21  ;;  %v576_v3 = vshrl.u32 %v266_v56, 16  ;;  %v579_v4 = vshll.u32 %v266_v56, 16  ;;  %v569_v5 = vrot.slane %v568_v54, 4  ;;  %v573_v6 = vrot.slane %v571_v55, 5  ;;  %s7401_s23 = sshll.u32 %s8461_s22, 4  ;;  %s8462_s28 = smov [#allocation3]   ;;  %s7402_s23 = int_to_ptr.vmem [resolvable:$true] %s7401_s23 }
  0x2c   :  { %1127 = vrot.lane.b32.xlu0 %v492_v33, %s8450_s21  ;;  %1125 = vrot.lane.b32.xlu2 %v478_v35, %s8450_s21  ;;  %v8704_v7 = vrot.slane %v585_v58, 5  ;;  %v591_v8 = vrot.slane %v589_v59, 4  ;;  %v559_v10 = vrot.slane %v558_v60, 4  ;;  %v606_v11 = vor.u32 %v605_v62, %v602_v61  ;;  %v279_v62 = vld [vmem:[%s13887_s0 + $0xac] sm:$0xf] }
  0x2d   :  { %v609_v12 = vshll.u32 %v270_v1, 16  ;;  %v545_v14 = vrot.slane %v544_v2, 4  ;;  %v549_v15 = vrot.slane %v547_v63, 5  ;;  %v578_v16 = vrot.slane %v576_v3, 4  ;;  %v277_v2 = vld [vmem:[%s13887_s0 + $0xa4] sm:$0x1] }
  0x2e   :  { %v581_v17 = vrot.slane %v579_v4, 5  ;;  %v574_v18 = vsel %vm8551_vm2, %v569_v5, %v573_v6  ;;  %v633_v19 = vshll.u32 %v273_v9, 16  ;;  %v637_v20 = vshrl.u32 %v273_v9, 16 }
  0x2f   :  { %v592_v23 = vor.u32 %v591_v8, %v8704_v7  ;;  %v595_v24 = vshll.u32 %v268_v13, 16  ;;  %v564_v25 = vsel %vm8551_vm2, %v559_v10, %v8676_v40  ;;  %v607_v26 = vrot.slane %v606_v11, 4  ;;  %v276_v40 = vld [vmem:[%s13887_s0 + $0xa0] sm:$0xf]  ;;  %v281_v11 = vld [vmem:[%s13887_s0 + $0xb4] sm:$0xf] }
  0x30   :  { %v611_v27 = vrot.slane %v609_v12, 5  ;;  %v613_v28 = vshrl.u32 %v270_v1, 16  ;;  %v550_v29 = vsel %vm8551_vm2, %v545_v14, %v549_v15  ;;  %v624_v30 = vshrl.u32 %v272_v22, 16  ;;  %v282_v1 = vld [vmem:[%s13887_s0 + $0xb8] sm:$0xf] }
  0x31   :  { %v627_v31 = vshll.u32 %v272_v22, 16  ;;  %v582_v32 = vor.u32 %v581_v17, %v578_v16  ;;  %v8726_v33 = vrot.slane %v633_v19, 5  ;;  %v639_v34 = vrot.slane %v637_v20, 4 }
  0x32   :  { %v593_v35 = vrot.slane %v592_v23, 4  ;;  %v597_v36 = vrot.slane %v595_v24, 5  ;;  %v612_v39 = vsel %vm8551_vm2, %v607_v26, %v611_v27  ;;  %v626_v42 = vrot.slane %v624_v30, 4 }
  0x33   :  { %1135 = vrot.lane.b32.xlu1 %v540_v53, %s8450_s21  ;;  %v629_v43 = vrot.slane %v627_v31, 5  ;;  %v583_v44 = vrot.slane %v582_v32, 4  ;;  %v615_v45 = vrot.slane %v613_v28, 4  ;;  %v640_v41 = vor.u32 %v639_v34, %v8726_v33  ;;  %v287_v31 = vld [vmem:[%s13887_s0 + $0xe4] sm:$0xf] }
  0x34   :  { %1133 = vrot.lane.b32.xlu0 %v526_v57, %s8450_s21  ;;  %1131 = vrot.lane.b32.xlu2 %v516_v0, %s8450_s21  ;;  %v643_v47 = vshll.u32 %v274_v37, 16  ;;  %v672_v48 = vshrl.u32 %v278_v38, 16  ;;  %v675_v49 = vshll.u32 %v278_v38, 16  ;;  %v598_v51 = vsel %vm8551_vm2, %v593_v35, %v597_v36  ;;  %v285_v36 = vld [vmem:[%s13887_s0 + $0xdc] sm:$0xf] }
  0x35   :  { %v657_v52 = vshll.u32 %v276_v40, 16  ;;  %v661_v53 = vshrl.u32 %v276_v40, 16  ;;  %v648_v54 = vshrl.u32 %v275_v46, 16  ;;  %v651_v55 = vshll.u32 %v275_v46, 16 }
  0x36   :  { %v630_v56 = vor.u32 %v629_v43, %v626_v42  ;;  %v588_v57 = vsel %vm8551_vm2, %v583_v44, %v8704_v7  ;;  %v616_v58 = vor.u32 %v615_v45, %v611_v27  ;;  %v619_v59 = vshll.u32 %v271_v50, 16  ;;  %v283_v27 = vld [vmem:[%s13887_s0 + $0xbc] sm:$0x1]  ;;  %v280_v44 = vld [vmem:[%s13887_s0 + $0xb0] sm:$0x1] }
  0x37   :  { %v641_v60 = vrot.slane %v640_v41, 4  ;;  %v645_v61 = vrot.slane %v643_v47, 5  ;;  %v674_v63 = vrot.slane %v672_v48, 4  ;;  %v677_v0 = vrot.slane %v675_v49, 5  ;;  %v284_v45 = vld [vmem:[%s13887_s0 + $0xd8] sm:$0xf] }
  0x38   :  { %v8765_v3 = vrot.slane %v657_v52, 5  ;;  %v663_v4 = vrot.slane %v661_v53, 4  ;;  %v650_v5 = vrot.slane %v648_v54, 4  ;;  %v653_v6 = vrot.slane %v651_v55, 5  ;;  %v288_v50 = vld [vmem:[%s13887_s0 + $0xe8] sm:$0xf] }
  0x39   :  { %v631_v7 = vrot.slane %v630_v56, 4  ;;  %v681_v8 = vshll.u32 %v279_v62, 16  ;;  %v617_v9 = vrot.slane %v616_v58, 4  ;;  %v621_v10 = vrot.slane %v619_v59, 5 }
  0x3a   :  { %v646_v12 = vsel %vm8551_vm2, %v641_v60, %v645_v61  ;;  %v678_v13 = vor.u32 %v677_v0, %v674_v63  ;;  %v705_v14 = vshll.u32 %v282_v1, 16  ;;  %v709_v15 = vshrl.u32 %v282_v1, 16  ;;  %v291_v61 = vld [vmem:[%s13887_s0 + $0xf4] sm:$0xf]  ;;  %v286_v0 = vld [vmem:[%s13887_s0 + $0xe0] sm:$0x1] }
  0x3b   :  { %1141 = vrot.lane.b32.xlu1 %v574_v18, %s8450_s21  ;;  %v667_v16 = vshll.u32 %v277_v2, 16  ;;  %v664_v17 = vor.u32 %v663_v4, %v8765_v3  ;;  %v696_v18 = vshrl.u32 %v281_v11, 16  ;;  %v699_v19 = vshll.u32 %v281_v11, 16  ;;  %v290_v1 = vld [vmem:[%s13887_s0 + $0xf0] sm:$0xf] }
  0x3c   :  { %1139 = vrot.lane.b32.xlu0 %v564_v25, %s8450_s21  ;;  %1137 = vrot.lane.b32.xlu2 %v550_v29, %s8450_s21  ;;  %v654_v20 = vor.u32 %v653_v6, %v650_v5  ;;  %v636_v22 = vsel %vm8551_vm2, %v631_v7, %v8726_v33  ;;  %v685_v23 = vshrl.u32 %v279_v62, 16  ;;  %v622_v24 = vsel %vm8551_vm2, %v617_v9, %v621_v10 }
  0x3d   :  { %v679_v25 = vrot.slane %v678_v13, 4  ;;  %v683_v26 = vrot.slane %v681_v8, 5  ;;  %v8782_v28 = vrot.slane %v705_v14, 5  ;;  %v711_v29 = vrot.slane %v709_v15, 4 }
  0x3e   :  { %v669_v30 = vrot.slane %v667_v16, 5  ;;  %v665_v32 = vrot.slane %v664_v17, 4  ;;  %v698_v33 = vrot.slane %v696_v18, 4  ;;  %v701_v34 = vrot.slane %v699_v19, 5 }
  0x3f   :  { %v655_v35 = vrot.slane %v654_v20, 4  ;;  %v715_v37 = vshll.u32 %v283_v27, 16  ;;  %v687_v38 = vrot.slane %v685_v23, 4  ;;  %v712_v40 = vor.u32 %v711_v29, %v8782_v28  ;;  %v292_v20 = vld [vmem:[%s13887_s0 + $0xf8] sm:$0x1] }
  0x40   :  { %v744_v42 = vshrl.u32 %v287_v31, 16  ;;  %v747_v43 = vshll.u32 %v287_v31, 16  ;;  %v729_v46 = vshll.u32 %v285_v36, 16  ;;  %v733_v41 = vshrl.u32 %v285_v36, 16  ;;  %v296_v27 = vld [vmem:[%s13887_s0 + $0x108] sm:$0xf] }
  0x41   :  { %v670_v47 = vsel %vm8551_vm2, %v665_v32, %v669_v30  ;;  %v702_v48 = vor.u32 %v701_v34, %v698_v33  ;;  %v660_v49 = vsel %vm8551_vm2, %v655_v35, %v8765_v3  ;;  %v691_v52 = vshll.u32 %v280_v44, 16  ;;  %v294_v29 = vld [vmem:[%s13887_s0 + $0x100] sm:$0xf]  ;;  %v111_v30 = vld [vmem:[%s13887_s0 + $0x18] sm:$0xf] }
  0x42   :  { %v720_v53 = vshrl.u32 %v284_v45, 16  ;;  %v723_v54 = vshll.u32 %v284_v45, 16  ;;  %v713_v55 = vrot.slane %v712_v40, 4  ;;  %v717_v56 = vrot.slane %v715_v37, 5  ;;  %v8867_v45 = vld [vmem:[%s13887_s0 + $0x10c] sm:$0xf] }
  0x43   :  { %1147 = vrot.lane.b32.xlu1 %v612_v39, %s8450_s21  ;;  %v684_v39 = vsel %vm8551_vm2, %v679_v25, %v683_v26  ;;  %v749_v58 = vrot.slane %v747_v43, 5  ;;  %v8810_v59 = vrot.slane %v729_v46, 5  ;;  %v735_v60 = vrot.slane %v733_v41, 4 }
  0x44   :  { %1145 = vrot.lane.b32.xlu0 %v598_v51, %s8450_s21  ;;  %1143 = vrot.lane.b32.xlu2 %v588_v57, %s8450_s21  ;;  %v688_v51 = vor.u32 %v687_v38, %v683_v26  ;;  %v746_v57 = vrot.slane %v744_v42, 4  ;;  %v703_v62 = vrot.slane %v702_v48, 4  ;;  %v753_v63 = vshll.u32 %v288_v50, 16 }
  0x45   :  { %v693_v3 = vrot.slane %v691_v52, 5  ;;  %v722_v4 = vrot.slane %v720_v53, 4  ;;  %v725_v5 = vrot.slane %v723_v54, 5  ;;  %v718_v6 = vsel %vm8551_vm2, %v713_v55, %v717_v56  ;;  %v300_v52 = vld [vmem:[%s13887_s0 + $0x118] sm:$0xf] }
  0x46   :  { %v689_v2 = vrot.slane %v688_v51, 4  ;;  %v750_v7 = vor.u32 %v749_v58, %v746_v57  ;;  %v777_v8 = vshll.u32 %v291_v61, 16  ;;  %v781_v9 = vshrl.u32 %v291_v61, 16  ;;  %v295_v55 = vld [vmem:[%s13887_s0 + $0x104] sm:$0x1] }
  0x47   :  { %v736_v10 = vor.u32 %v735_v60, %v8810_v59  ;;  %v739_v11 = vshll.u32 %v286_v0, 16  ;;  %v771_v13 = vshll.u32 %v290_v1, 16  ;;  %v708_v14 = vsel %vm8551_vm2, %v703_v62, %v8782_v28  ;;  %v299_v0 = vld [vmem:[%s13887_s0 + $0x114] sm:$0xf] }
  0x48   :  { %v757_v15 = vshrl.u32 %v288_v50, 16  ;;  %v694_v16 = vsel %vm8551_vm2, %v689_v2, %v693_v3  ;;  %v726_v17 = vor.u32 %v725_v5, %v722_v4  ;;  %v751_v18 = vrot.slane %v750_v7, 4 }
  0x49   :  { %v755_v19 = vrot.slane %v753_v63, 5  ;;  %v783_v23 = vrot.slane %v781_v9, 4  ;;  %v741_v25 = vrot.slane %v739_v11, 5  ;;  %v773_v28 = vrot.slane %v771_v13, 5  ;;  %v301_v11 = vld [vmem:[%s13887_s0 + $0x11c] sm:$0x1] }
  0x4a   :  { %v787_v31 = vshll.u32 %v292_v20, 16  ;;  %v727_v32 = vrot.slane %v726_v17, 4  ;;  %v759_v33 = vrot.slane %v757_v15, 4  ;;  %v8451_v34 = vmov 0  }
  0x4b   :  { %1153 = vrot.lane.b32.xlu1 %v646_v12, %s8450_s21  ;;  %v768_v12 = vshrl.u32 %v290_v1, 16  ;;  %47 = vst [vmem:[#allocation2 + $0x10] sm:$0xf] %v8451_v34  ;;  %vm171_vm3 = vcmask 27648   ;;  %v756_v35 = vsel %vm8551_vm2, %v751_v18, %v755_v19  ;;  %v816_v37 = vshrl.u32 %v296_v27, 16 }
  0x4c   :  { %1151 = vrot.lane.b32.xlu0 %v636_v22, %s8450_s21  ;;  %1149 = vrot.lane.b32.xlu2 %v622_v24, %s8450_s21  ;;  %v8835_v22 = vrot.slane %v777_v8, 5  ;;  %v737_v24 = vrot.slane %v736_v10, 4  ;;  %v819_v38 = vshll.u32 %v296_v27, 16  ;;  %176 = vst.msk [vmem:[#allocation2 + $0x10] sm:$0xf] %vm171_vm3, %v111_v30  ;;  %v801_v43 = vshll.u32 %v294_v29, 16 }
  0x4d   :  { %v770_v26 = vrot.slane %v768_v12, 4  ;;  %43 = vst [vmem:[#allocation2] sm:$0xf] %v8451_v34  ;;  %v732_v44 = vsel %vm8551_vm2, %v727_v32, %v8810_v59  ;;  %v805_v46 = vshrl.u32 %v294_v29, 16  ;;  %v760_v41 = vor.u32 %v759_v33, %v755_v19  ;;  %v293_v29 = vld [vmem:[%s13887_s0 + $0xfc] sm:$0xf] }
  0x4e   :  { %v784_v36 = vor.u32 %v783_v23, %v8835_v22  ;;  %v742_v40 = vsel %vm8551_vm2, %v737_v24, %v741_v25  ;;  %44 = vst [vmem:[#allocation2 + $0x4] sm:$0xf] %v8451_v34  ;;  %v818_v50 = vrot.slane %v816_v37, 4  ;;  %v821_v51 = vrot.slane %v819_v38, 5  ;;  %v305_v30 = vld [vmem:[%s13887_s0 + $0x12c] sm:$0xf] }
  0x4f   :  { %v774_v42 = vor.u32 %v773_v28, %v770_v26  ;;  %45 = vst [vmem:[#allocation2 + $0x8] sm:$0xf] %v8451_v34  ;;  %v825_v54 = vshll.u32 %v8867_v45, 16  ;;  %v8882_v56 = vrot.slane %v801_v43, 5  ;;  %v807_v57 = vrot.slane %v805_v46, 4 }
  0x50   :  { %v785_v48 = vrot.slane %v784_v36, 4  ;;  %46 = vst [vmem:[#allocation2 + $0xc] sm:$0xf] %v8451_v34  ;;  %v761_v58 = vrot.slane %v760_v41, 4  ;;  %v822_v61 = vor.u32 %v821_v51, %v818_v50  ;;  %v849_v62 = vshll.u32 %v300_v52, 16 }
  0x51   :  { %48 = vst [vmem:[#allocation2 + $0x14] sm:$0xf] %v8451_v34  ;;  %v775_v53 = vrot.slane %v774_v42, 4  ;;  %v853_v63 = vshrl.u32 %v300_v52, 16  ;;  %v811_v2 = vshll.u32 %v295_v55, 16  ;;  %v808_v3 = vor.u32 %v807_v57, %v8882_v56 }
  0x52   :  { %49 = vst [vmem:[#allocation2 + $0x18] sm:$0xf] %v8451_v34  ;;  %v840_v5 = vshrl.u32 %v299_v0, 16  ;;  %v823_v7 = vrot.slane %v822_v61, 4  ;;  %v8901_v8 = vrot.slane %v825_v54, 5  ;;  %v851_v9 = vrot.slane %v849_v62, 5 }
  0x53   :  { %1159 = vrot.lane.b32.xlu1 %v684_v39, %s8450_s21  ;;  %v289_v39 = vld [vmem:[%s13887_s0 + $0xec] sm:$0x1]  ;;  %50 = vst [vmem:[#allocation2 + $0x1c] sm:$0xf] %v8451_v34  ;;  %v780_v1 = vsel %vm8551_vm2, %v775_v53, %v8835_v22  ;;  %v855_v10 = vrot.slane %v853_v63, 4  ;;  %v809_v12 = vrot.slane %v808_v3, 4 }
  0x54   :  { %1157 = vrot.lane.b32.xlu0 %v670_v47, %s8450_s21  ;;  %1155 = vrot.lane.b32.xlu2 %v660_v49, %s8450_s21  ;;  %v763_v47 = vshll.u32 %v289_v39, 16  ;;  %v789_v49 = vrot.slane %v787_v31, 5  ;;  %51 = vst [vmem:[#allocation2 + $0x20] sm:$0xf] %v8451_v34  ;;  %v813_v13 = vrot.slane %v811_v2, 5  ;;  %v859_v18 = vshll.u32 %v301_v11, 16 }
  0x55   :  { %52 = vst [vmem:[#allocation2 + $0x24] sm:$0xf] %v8451_v34  ;;  %v856_v17 = vor.u32 %v855_v10, %v851_v9  ;;  %vm1295_vm4 = vcmask 60448   ;;  %v792_v31 = vshrl.u32 %v293_v29, 16  ;;  %v795_v32 = vshll.u32 %v293_v29, 16 }
  0x56   :  { %v765_v59 = vrot.slane %v763_v47, 5  ;;  %v790_v60 = vsel %vm8551_vm2, %v785_v48, %v789_v49  ;;  %53 = vst [vmem:[#allocation2 + $0x28] sm:$0xf] %v8451_v34  ;;  %v814_v20 = vsel %vm8551_vm2, %v809_v12, %v813_v13  ;;  %v861_v24 = vrot.slane %v859_v18, 5  ;;  %v303_v37 = vld [vmem:[%s13887_s0 + $0x124] sm:$0xf] }
  0x57   :  { %54 = vst [vmem:[#allocation2 + $0x2c] sm:$0xf] %v8451_v34  ;;  %v857_v23 = vrot.slane %v856_v17, 4  ;;  %v891_v36 = vshll.u32 %v305_v30, 16  ;;  %v794_v38 = vrot.slane %v792_v31, 4  ;;  %v797_v39 = vrot.slane %v795_v32, 5 }
  0x58   :  { %v766_v4 = vsel %vm8551_vm2, %v761_v58, %v765_v59  ;;  %55 = vst [vmem:[#allocation2 + $0x30] sm:$0xf] %v8451_v34  ;;  %v877_v42 = vshrl.u32 %v303_v37, 16  ;;  %v8961_v43 = vld [vmem:[%s13887_s0 + $0x130] sm:$0xf]  ;;  %v829_v54 = vshrl.u32 %v8867_v45, 16 }
  0x59   :  { %56 = vst [vmem:[#allocation2 + $0x34] sm:$0xf] %v8451_v34  ;;  %v862_v26 = vsel %vm8551_vm2, %v857_v23, %v861_v24  ;;  %v893_v46 = vrot.slane %v891_v36, 5  ;;  %v798_v41 = vor.u32 %v797_v39, %v794_v38  ;;  %v897_v47 = vshll.u32 %v8961_v43, 16  ;;  %v304_v48 = vld [vmem:[%s13887_s0 + $0x128] sm:$0x1] }
  0x5a   :  { %57 = vst [vmem:[#allocation2 + $0x38] sm:$0xf] %v8451_v34  ;;  %v879_v52 = vrot.slane %v877_v42, 4  ;;  %v883_v53 = vshll.u32 %v304_v48, 16  ;;  %v309_v45 = vld [vmem:[%s13887_s0 + $0x13c] sm:$0xf] }
  0x5b   :  { %1165 = vrot.lane.b32.xlu1 %v718_v6, %s8450_s21  ;;  %v843_v6 = vshll.u32 %v299_v0, 16  ;;  %58 = vst [vmem:[#allocation2 + $0x3c] sm:$0xf] %v8451_v34  ;;  %v799_v55 = vrot.slane %v798_v41, 4  ;;  %v8975_v57 = vrot.slane %v897_v47, 5  ;;  %v921_v2 = vshll.u32 %v309_v45, 16 }
  0x5c   :  { %1163 = vrot.lane.b32.xlu0 %v708_v14, %s8450_s21  ;;  %1161 = vrot.lane.b32.xlu2 %v694_v16, %s8450_s21  ;;  %v842_v14 = vrot.slane %v840_v5, 4  ;;  %v828_v16 = vsel %vm8551_vm2, %v823_v7, %v8901_v8  ;;  %59 = vst [vmem:[#allocation2 + $0x40] sm:$0xf] %v8451_v34  ;;  %v885_v61 = vrot.slane %v883_v53, 5  ;;  %v925_v3 = vshrl.u32 %v309_v45, 16 }
  0x5d   :  { %v845_v15 = vrot.slane %v843_v6, 5  ;;  %60 = vst [vmem:[#allocation2 + $0x44] sm:$0xf] %v8451_v34  ;;  %v804_v62 = vsel %vm8551_vm2, %v799_v55, %v8882_v56  ;;  %v298_v56 = vld [vmem:[%s13887_s0 + $0x110] sm:$0x1]  ;;  %v901_v42 = vshrl.u32 %v8961_v43, 16 }
  0x5e   :  { %61 = vst [vmem:[#allocation2 + $0x48] sm:$0xf] %v8451_v34  ;;  %v835_v6 = vshll.u32 %v298_v56, 16  ;;  %v310_v7 = vld [vmem:[%s13887_s0 + $0x140] sm:$0x1]  ;;  %v927_v11 = vrot.slane %v925_v3, 4 }
  0x5f   :  { %v846_v22 = vor.u32 %v845_v15, %v842_v14  ;;  %62 = vst [vmem:[#allocation2 + $0x4c] sm:$0xf] %v8451_v34  ;;  %v931_v12 = vshll.u32 %v310_v7, 16  ;;  %v308_v13 = vld [vmem:[%s13887_s0 + $0x138] sm:$0xf]  ;;  %vm1552_vm5 = vcmask 1042432  }
  0x60   :  { %63 = vst [vmem:[#allocation2 + $0x50] sm:$0xf] %v8451_v34  ;;  %v837_v15 = vrot.slane %v835_v6, 5  ;;  %v915_v17 = vshll.u32 %v308_v13, 16  ;;  %v302_v29 = vld [vmem:[%s13887_s0 + $0x120] sm:$0xf] }
  0x61   :  { %64 = vst [vmem:[#allocation2 + $0x54] sm:$0xf] %v8451_v34  ;;  %v847_v25 = vrot.slane %v846_v22, 4  ;;  %v864_v32 = vshrl.u32 %v302_v29, 16  ;;  %v9038_v36 = vld [vmem:[%s13887_s0 + $0x154] sm:$0xf] }
  0x62   :  { %65 = vst [vmem:[#allocation2 + $0x58] sm:$0xf] %v8451_v34  ;;  %v917_v23 = vrot.slane %v915_v17, 5  ;;  %v312_v43 = vld [vmem:[%s13887_s0 + $0x148] sm:$0xf]  ;;  %vm1553_vm6 = vcmask 1046532  }
  0x63   :  { %1171 = vrot.lane.b32.xlu1 %v756_v35, %s8450_s21  ;;  %66 = vst [vmem:[#allocation2 + $0x5c] sm:$0xf] %v8451_v34  ;;  %v852_v27 = vsel %vm8551_vm2, %v847_v25, %v851_v9  ;;  %v888_v35 = vshrl.u32 %v305_v30, 16  ;;  %v923_v9 = vrot.slane %v921_v2, 5  ;;  %v314_v30 = vld [vmem:[%s13887_s0 + $0x150] sm:$0xf]  ;;  %vm9295_vm7 = vmor %vm1552_vm5, %vm1553_vm6 }
  0x64   :  { %1169 = vrot.lane.b32.xlu0 %v742_v40, %s8450_s21  ;;  %1167 = vrot.lane.b32.xlu2 %v732_v44, %s8450_s21  ;;  %67 = vst [vmem:[#allocation2 + $0x60] sm:$0xf] %v8451_v34  ;;  %v873_v40 = vshll.u32 %v303_v37, 16  ;;  %v960_v38 = vshrl.u32 %v314_v30, 16  ;;  %v963_v39 = vshll.u32 %v314_v30, 16  ;;  %vm1971_vm8 = vcmask 93248  }
  0x65   :  { %68 = vst [vmem:[#allocation2 + $0x64] sm:$0xf] %v8451_v34  ;;  %v890_v44 = vrot.slane %v888_v35, 4  ;;  %v867_v35 = vshll.u32 %v302_v29, 16  ;;  %v107_v30 = vld [vmem:[%s13887_s0] sm:$0xf] }
  0x66   :  { %69 = vst [vmem:[#allocation2 + $0x68] sm:$0xf] %v8451_v34  ;;  %v8971_v51 = vrot.slane %v873_v40, 5  ;;  %v969_v40 = vshll.u32 %v9038_v36, 16  ;;  %v962_v48 = vrot.slane %v960_v38, 4  ;;  %vm2357_vm9 = vcmask 126048  }
  0x67   :  { %70 = vst [vmem:[#allocation2 + $0x6c] sm:$0xf] %v8451_v34  ;;  %v894_v50 = vor.u32 %v893_v46, %v890_v44  ;;  %v866_v44 = vrot.slane %v864_v32, 4  ;;  %v869_v46 = vrot.slane %v867_v35, 5  ;;  %vm3478_vm10 = vcmask 158848  }
  0x68   :  { %71 = vst [vmem:[#allocation2 + $0x70] sm:$0xf] %v8451_v34  ;;  %vm4151_vm11 = vcmask 191648   ;;  %vm4537_vm12 = vcmask 224448   ;;  %vm5658_vm13 = vcmask 257248   ;;  %vm6331_vm14 = vcmask 290048  }
  0x69   :  { %72 = vst [vmem:[#allocation2 + $0x74] sm:$0xf] %v8451_v34  ;;  %v895_v59 = vrot.slane %v894_v50, 4  ;;  %v965_v50 = vrot.slane %v963_v39, 5  ;;  %v870_v53 = vor.u32 %v869_v46, %v866_v44  ;;  %v110_v39 = vld [vmem:[%s13887_s0 + $0x10] sm:$0xf] }
  0x6a   :  { %73 = vst [vmem:[#allocation2 + $0x78] sm:$0xf] %v8451_v34  ;;  %v311_v44 = vld [vmem:[%s13887_s0 + $0x144] sm:$0xf]  ;;  %vm7038_vm0 = vcmask 1041409   ;;  %vm7130_vm1 = vcmask 1041408  }
  0x6b   :  { %1177 = vrot.lane.b32.xlu1 %v790_v60, %s8450_s21  ;;  %74 = vst [vmem:[#allocation2 + $0x7c] sm:$0xf] %v8451_v34  ;;  %v880_v60 = vor.u32 %v879_v52, %v8971_v51  ;;  %v900_v63 = vsel %vm8551_vm2, %v895_v59, %v8975_v57  ;;  %v9050_v52 = vrot.slane %v969_v40, 5  ;;  %v966_v59 = vor.u32 %v965_v50, %v962_v48 }
  0x6c   :  { %1175 = vrot.lane.b32.xlu0 %v780_v1, %s8450_s21  ;;  %1173 = vrot.lane.b32.xlu2 %v766_v4, %s8450_s21  ;;  %75 = vst [vmem:[#allocation2 + $0x80] sm:$0xf] %v8451_v34  ;;  %v831_v4 = vrot.slane %v829_v54, 4  ;;  %v313_v54 = vld [vmem:[%s13887_s0 + $0x14c] sm:$0x1]  ;;  %v871_v45 = vrot.slane %v870_v53, 4 }
  0x6d   :  { %76 = vst [vmem:[#allocation2 + $0x84] sm:$0xf] %v8451_v34  ;;  %v881_v0 = vrot.slane %v880_v60, 4  ;;  %v945_v60 = vshll.u32 %v312_v43, 16  ;;  %v939_v48 = vshll.u32 %v311_v44, 16 }
  0x6e   :  { %v1112_v19 = vpop.permute.xlu2 %1111  ;;  %77 = vst [vmem:[#allocation2 + $0x88] sm:$0xf] %v8451_v34  ;;  %v832_v10 = vor.u32 %v831_v4, %v8901_v8  ;;  %v876_v4 = vsel %vm8551_vm2, %v871_v45, %v8971_v51  ;;  %v318_v51 = vld [vmem:[%s13887_s0 + $0x160] sm:$0xf]  ;;  %v115_v45 = vld [vmem:[%s13887_s0 + $0x30] sm:$0xf] }
  0x6f   :  { %1300 = vst.msk [vmem:[#allocation2 + $0x10] sm:$0xf] %vm1295_vm4, %v1112_v19  ;;  %v886_v5 = vsel %vm8551_vm2, %v881_v0, %v885_v61  ;;  %v928_v19 = vor.u32 %v927_v11, %v923_v9  ;;  %v949_v61 = vshrl.u32 %v312_v43, 16  ;;  %v967_v0 = vrot.slane %v966_v59, 4  ;;  %v323_v43 = vld [vmem:[%s13887_s0 + $0x174] sm:$0xf] }
  0x70   :  { %78 = vst [vmem:[#allocation2 + $0x8c] sm:$0xf] %v8451_v34  ;;  %v833_v18 = vrot.slane %v832_v10, 4  ;;  %v9065_v2 = vrot.slane %v945_v60, 5  ;;  %v307_v10 = vld [vmem:[%s13887_s0 + $0x134] sm:$0x1] }
  0x71   :  { %79 = vst [vmem:[#allocation2 + $0x90] sm:$0xf] %v8451_v34  ;;  %v929_v25 = vrot.slane %v928_v19, 4  ;;  %v951_v3 = vrot.slane %v949_v61, 4  ;;  %v972_v7 = vsel %vm8551_vm2, %v967_v0, %v9050_v52  ;;  %v993_v17 = vshll.u32 %v318_v51, 16 }
  0x72   :  { %80 = vst [vmem:[#allocation2 + $0x94] sm:$0xf] %v8451_v34  ;;  %v838_v24 = vsel %vm8551_vm2, %v833_v18, %v837_v15  ;;  %v997_v18 = vshrl.u32 %v318_v51, 16  ;;  %v941_v61 = vrot.slane %v939_v48, 5  ;;  %v1035_v0 = vshll.u32 %v323_v43, 16 }
  0x73   :  { %1183 = vrot.lane.b32.xlu1 %v828_v16, %s8450_s21  ;;  %81 = vst [vmem:[#allocation2 + $0x98] sm:$0xf] %v8451_v34  ;;  %v912_v16 = vshrl.u32 %v308_v13, 16  ;;  %v319_v13 = vld [vmem:[%s13887_s0 + $0x164] sm:$0x1] }
  0x74   :  { %1181 = vrot.lane.b32.xlu0 %v814_v20, %s8450_s21  ;;  %82 = vst [vmem:[#allocation2 + $0x9c] sm:$0xf] %v8451_v34  ;;  %1179 = vrot.lane.b32.xlu2 %v804_v62, %s8450_s21  ;;  %v933_v20 = vrot.slane %v931_v12, 5  ;;  %v955_v62 = vshll.u32 %v313_v54, 16  ;;  %v907_v12 = vshll.u32 %v307_v10, 16  ;;  %v1003_v19 = vshll.u32 %v319_v13, 16 }
  0x75   :  { %83 = vst [vmem:[#allocation2 + $0xa0] sm:$0xf] %v8451_v34  ;;  %v914_v8 = vrot.slane %v912_v16, 4  ;;  %v999_v29 = vrot.slane %v997_v18, 4  ;;  %v9141_v54 = vld [vmem:[%s13887_s0 + $0x178] sm:$0xf] }
  0x76   :  { %v8968_v49 = vpop.permute.xlu2 %1113  ;;  %84 = vst [vmem:[#allocation2 + $0xa4] sm:$0xf] %v8451_v34  ;;  %v934_v31 = vsel %vm8551_vm2, %v929_v25, %v933_v20  ;;  %v909_v20 = vrot.slane %v907_v12, 5  ;;  %v1005_v38 = vrot.slane %v1003_v19, 5  ;;  %v322_v10 = vld [vmem:[%s13887_s0 + $0x170] sm:$0x1] }
  0x77   :  { %85 = vst [vmem:[#allocation2 + $0xa8] sm:$0xf] %v8451_v34  ;;  %v1027_v13 = vshll.u32 %v322_v10, 16 }
  0x78   :  { %86 = vst [vmem:[#allocation2 + $0xac] sm:$0xf] %v8451_v34 }
  0x79   :  { %87 = vst [vmem:[#allocation2 + $0xb0] sm:$0xf] %v8451_v34 }
  0x7a   :  { %88 = vst [vmem:[#allocation2 + $0xb4] sm:$0xf] %v8451_v34 }
  0x7b   :  { %1189 = vrot.lane.b32.xlu1 %v862_v26, %s8450_s21  ;;  %89 = vst [vmem:[#allocation2 + $0xb8] sm:$0xf] %v8451_v34  ;;  %v918_v26 = vor.u32 %v917_v23, %v914_v8  ;;  %v317_v8 = vld [vmem:[%s13887_s0 + $0x15c] sm:$0xf] }
  0x7c   :  { %1187 = vrot.lane.b32.xlu0 %v852_v27, %s8450_s21  ;;  %90 = vst [vmem:[#allocation2 + $0xbc] sm:$0xf] %v8451_v34  ;;  %1185 = vrot.lane.b32.xlu2 %v838_v24, %s8450_s21  ;;  %v973_v24 = vshrl.u32 %v9038_v36, 16  ;;  %v984_v32 = vshrl.u32 %v317_v8, 16  ;;  %v987_v35 = vshll.u32 %v317_v8, 16 }
  0x7d   :  { %v8938_v28 = vpop.permute.xlu1 %1107  ;;  %91 = vst [vmem:[#allocation2 + $0xc0] sm:$0xf] %v8451_v34  ;;  %v919_v37 = vrot.slane %v918_v26, 4  ;;  %v995_v26 = vrot.slane %v993_v17, 5  ;;  %v112_v36 = vld [vmem:[%s13887_s0 + $0x1c] sm:$0xf] }
  0x7e   :  { %v8951_v33 = vpop.permute.xlu0 %1103  ;;  %v9012_v14 = vpop.permute.xlu2 %1119  ;;  %92 = vst [vmem:[#allocation2 + $0xc4] sm:$0xf] %v8451_v34  ;;  %v986_v40 = vrot.slane %v984_v32, 4  ;;  %v975_v50 = vrot.slane %v973_v24, 4  ;;  %v118_v8 = vld [vmem:[%s13887_s0 + $0x40] sm:$0xf] }
  0x7f   :  { %93 = vst [vmem:[#allocation2 + $0xc8] sm:$0xf] %v8451_v34  ;;  %v924_v47 = vsel %vm8551_vm2, %v919_v37, %v923_v9  ;;  %v952_v9 = vor.u32 %v951_v3, %v9065_v2  ;;  %v1000_v37 = vor.u32 %v999_v29, %v995_v26  ;;  %v1041_v3 = vshll.u32 %v9141_v54, 16 }
  0x80   :  { %94 = vst [vmem:[#allocation2 + $0xcc] sm:$0xf] %v8451_v34  ;;  %v976_v51 = vor.u32 %v975_v50, %v9050_v52  ;;  %v113_v52 = vld [vmem:[%s13887_s0 + $0x24] sm:$0xf] }
  0x81   :  { %95 = vst [vmem:[#allocation2 + $0xd0] sm:$0xf] %v8451_v34  ;;  %v953_v16 = vrot.slane %v952_v9, 4  ;;  %v1001_v46 = vrot.slane %v1000_v37, 4  ;;  %v1037_v9 = vrot.slane %v1035_v0, 5  ;;  %v9178_v18 = vrot.slane %v1041_v3, 5 }
  0x82   :  { %96 = vst [vmem:[#allocation2 + $0xd4] sm:$0xf] %v8451_v34 }
  0x83   :  { %1195 = vrot.lane.b32.xlu1 %v900_v63, %s8450_s21  ;;  %97 = vst [vmem:[#allocation2 + $0xd8] sm:$0xf] %v8451_v34  ;;  %v903_v63 = vrot.slane %v901_v42, 4  ;;  %v989_v42 = vrot.slane %v987_v35, 5 }
  0x84   :  { %1193 = vrot.lane.b32.xlu0 %v886_v5, %s8450_s21  ;;  %98 = vst [vmem:[#allocation2 + $0xdc] sm:$0xf] %v8451_v34  ;;  %v957_v5 = vrot.slane %v955_v62, 5  ;;  %1191 = vrot.lane.b32.xlu2 %v876_v4, %s8450_s21  ;;  %v1032_v62 = vshrl.u32 %v323_v43, 16 }
  0x85   :  { %v8977_v58 = vpop.permute.xlu1 %1109  ;;  %99 = vst [vmem:[#allocation2 + $0xe0] sm:$0xf] %v8451_v34  ;;  %v904_v6 = vor.u32 %v903_v63, %v8975_v57  ;;  %v109_v57 = vld [vmem:[%s13887_s0 + $0xc] sm:$0xf]  ;;  %v990_v53 = vor.u32 %v989_v42, %v986_v40 }
  0x86   :  { %v8993_v1 = vpop.permute.xlu0 %1105  ;;  %v9045_v41 = vpop.permute.xlu2 %1125  ;;  %100 = vst [vmem:[#allocation2 + $0xe4] sm:$0xf] %v8451_v34  ;;  %v958_v25 = vsel %vm8551_vm2, %v953_v16, %v957_v5 }
  0x87   :  { %101 = vst [vmem:[#allocation2 + $0xe8] sm:$0xf] %v8451_v34  ;;  %v905_v11 = vrot.slane %v904_v6, 4  ;;  %v991_v63 = vrot.slane %v990_v53, 4  ;;  %v1034_v6 = vrot.slane %v1032_v62, 4 }
  0x88   :  { %102 = vst [vmem:[#allocation2 + $0xec] sm:$0xf] %v8451_v34 }
  0x89   :  { %103 = vst [vmem:[#allocation2 + $0xf0] sm:$0xf] %v8451_v34  ;;  %v1038_v17 = vor.u32 %v1037_v9, %v1034_v6 }
  0x8a   :  { %104 = vst [vmem:[#allocation2 + $0xf4] sm:$0xf] %v8451_v34 }
  0x8b   :  { %1201 = vrot.lane.b32.xlu1 %v934_v31, %s8450_s21  ;;  %105 = vst [vmem:[#allocation2 + $0xf8] sm:$0xf] %v8451_v34  ;;  %v910_v31 = vsel %vm8551_vm2, %v905_v11, %v909_v20  ;;  %v1039_v24 = vrot.slane %v1038_v17, 4  ;;  %v330_v17 = vld [vmem:[%s13887_s0 + $0x190] sm:$0xf] }
  0x8c   :  { %1199 = vrot.lane.b32.xlu0 %v924_v47, %s8450_s21  ;;  %106 = vst [vmem:[#allocation2 + $0xfc] sm:$0xf] %v8451_v34  ;;  %1197 = vrot.lane.b32.xlu2 %v910_v31, %s8450_s21  ;;  %v936_v47 = vshrl.u32 %v311_v44, 16  ;;  %v117_v31 = vld [vmem:[%s13887_s0 + $0x3c] sm:$0xf] }
  0x8d   :  { %v9016_v22 = vpop.permute.xlu1 %1117  ;;  %174 = vst.msk [vmem:[#allocation2 + $0x8] sm:$0xf] %vm171_vm3, %v109_v57  ;;  %v1044_v32 = vsel %vm8551_vm2, %v1039_v24, %v9178_v18 }
  0x8e   :  { %v9024_v27 = vpop.permute.xlu0 %1115  ;;  %v9094_v15 = vpop.permute.xlu2 %1131  ;;  %1298 = vst.msk [vmem:[#allocation2 + $0x8] sm:$0xf] %vm1295_vm4, %v8938_v28  ;;  %v108_v28 = vld [vmem:[%s13887_s0 + $0x4] sm:$0xf]  ;;  %v938_v60 = vrot.slane %v936_v47, 4 }
  0x8f   :  { %172 = vst.msk [vmem:[#allocation2] sm:$0xf] %vm171_vm3, %v107_v30  ;;  %v316_v30 = vld [vmem:[%s13887_s0 + $0x158] sm:$0x1]  ;;  %v116_v47 = vld [vmem:[%s13887_s0 + $0x34] sm:$0xf] }
  0x90   :  { %1296 = vst.msk [vmem:[#allocation2] sm:$0xf] %vm1295_vm4, %v8951_v33  ;;  %v1006_v33 = vsel %vm8551_vm2, %v1001_v46, %v1005_v38  ;;  %v942_v5 = vor.u32 %v941_v61, %v938_v60  ;;  %v979_v35 = vshll.u32 %v316_v30, 16  ;;  %v326_v46 = vld [vmem:[%s13887_s0 + $0x180] sm:$0xf]  ;;  %v1045_v60 = vshrl.u32 %v9141_v54, 16 }
  0x91   :  { %177 = vst.msk [vmem:[#allocation2 + $0x14] sm:$0xf] %vm171_vm3, %v112_v36  ;;  %v328_v36 = vld [vmem:[%s13887_s0 + $0x188] sm:$0x1]  ;;  %v122_v30 = vld [vmem:[%s13887_s0 + $0x58] sm:$0xf] }
  0x92   :  { %1301 = vst.msk [vmem:[#allocation2 + $0x14] sm:$0xf] %vm1295_vm4, %v8968_v49  ;;  %v321_v49 = vld [vmem:[%s13887_s0 + $0x16c] sm:$0xf]  ;;  %v943_v57 = vrot.slane %v942_v5, 4  ;;  %v1075_v40 = vshll.u32 %v328_v36, 16 }
  0x93   :  { %1207 = vrot.lane.b32.xlu1 %v972_v7, %s8450_s21  ;;  %175 = vst.msk [vmem:[#allocation2 + $0xc] sm:$0xf] %vm171_vm3, %v110_v39  ;;  %v996_v7 = vsel %vm8551_vm2, %v991_v63, %v995_v26  ;;  %v1017_v11 = vshll.u32 %v321_v49, 16  ;;  %v1021_v12 = vshrl.u32 %v321_v49, 16  ;;  %v977_v26 = vrot.slane %v976_v51, 4 }
  0x94   :  { %1205 = vrot.lane.b32.xlu0 %v958_v25, %s8450_s21  ;;  %1299 = vst.msk [vmem:[#allocation2 + $0xc] sm:$0xf] %vm1295_vm4, %v8977_v58  ;;  %v114_v58 = vld [vmem:[%s13887_s0 + $0x28] sm:$0xf]  ;;  %v948_v19 = vsel %vm8551_vm2, %v943_v57, %v9065_v2  ;;  %v1029_v25 = vrot.slane %v1027_v13, 5  ;;  %v981_v42 = vrot.slane %v979_v35, 5 }
  0x95   :  { %v9060_v55 = vpop.permute.xlu1 %1123  ;;  %173 = vst.msk [vmem:[#allocation2 + $0x4] sm:$0xf] %vm171_vm3, %v108_v28  ;;  %v9187_v20 = vrot.slane %v1017_v11, 5  ;;  %1203 = vrot.lane.b32.xlu2 %v948_v19, %s8450_s21  ;;  %v1056_v28 = vshrl.u32 %v326_v46, 16  ;;  %v1077_v62 = vrot.slane %v1075_v40, 5  ;;  %v1047_v57 = vrot.slane %v1045_v60, 4 }
  0x96   :  { %v9067_v56 = vpop.permute.xlu0 %1121  ;;  %v9143_v59 = vpop.permute.xlu2 %1137  ;;  %1297 = vst.msk [vmem:[#allocation2 + $0x4] sm:$0xf] %vm1295_vm4, %v8993_v1  ;;  %v1023_v1 = vrot.slane %v1021_v12, 4  ;;  %v982_v43 = vsel %vm8551_vm2, %v977_v26, %v981_v42  ;;  %v320_v54 = vld [vmem:[%s13887_s0 + $0x168] sm:$0xf]  ;;  %v1093_v26 = vshrl.u32 %v330_v17, 16 }
  0x97   :  { %180 = vst.msk [vmem:[#allocation2 + $0x20] sm:$0xf] %vm171_vm3, %v115_v45  ;;  %v1058_v45 = vrot.slane %v1056_v28, 4  ;;  %v1008_v6 = vshrl.u32 %v320_v54, 16  ;;  %v1011_v49 = vshll.u32 %v320_v54, 16 }
  0x98   :  { %1304 = vst.msk [vmem:[#allocation2 + $0x20] sm:$0xf] %vm1295_vm4, %v9012_v14  ;;  %v1024_v2 = vor.u32 %v1023_v1, %v9187_v20  ;;  %v327_v14 = vld [vmem:[%s13887_s0 + $0x184] sm:$0xf]  ;;  %v125_v60 = vld [vmem:[%s13887_s0 + $0x6c] sm:$0xf] }
  0x99   :  { %179 = vst.msk [vmem:[#allocation2 + $0x1c] sm:$0xf] %vm171_vm3, %v114_v58  ;;  %v1065_v37 = vshll.u32 %v327_v14, 16  ;;  %v1069_v39 = vshrl.u32 %v327_v14, 16  ;;  %v1010_v12 = vrot.slane %v1008_v6, 4  ;;  %v1013_v13 = vrot.slane %v1011_v49, 5 }
  0x9a   :  { %1303 = vst.msk [vmem:[#allocation2 + $0x1c] sm:$0xf] %vm1295_vm4, %v9016_v22  ;;  %v1025_v22 = vrot.slane %v1024_v2, 4  ;;  %v9385_v49 = vld [vmem:[%s13887_s0 + $0x28] sm:$0xf] }
  0x9b   :  { %1213 = vrot.lane.b32.xlu1 %v1006_v33, %s8450_s21  ;;  %178 = vst.msk [vmem:[#allocation2 + $0x18] sm:$0xf] %vm171_vm3, %v113_v52  ;;  %v1067_v44 = vrot.slane %v1065_v37, 5  ;;  %v1071_v50 = vrot.slane %v1069_v39, 4  ;;  %v1059_v33 = vshll.u32 %v326_v46, 16  ;;  %v1095_v37 = vrot.slane %v1093_v26, 4 }
  0x9c   :  { %1211 = vrot.lane.b32.xlu0 %v996_v7, %s8450_s21  ;;  %1302 = vst.msk [vmem:[#allocation2 + $0x18] sm:$0xf] %vm1295_vm4, %v9024_v27  ;;  %v1030_v48 = vsel %vm8551_vm2, %v1025_v22, %v1029_v25  ;;  %v121_v27 = vld [vmem:[%s13887_s0 + $0x54] sm:$0xf]  ;;  %v1360_v7 = vld [vmem:[%s13887_s0] sm:$0xe] }
  0x9d   :  { %v9101_v23 = vpop.permute.xlu1 %1129  ;;  %183 = vst.msk [vmem:[#allocation2 + $0x2c] sm:$0xf] %vm171_vm3, %v118_v8  ;;  %v1072_v61 = vor.u32 %v1071_v50, %v1067_v44  ;;  %1209 = vrot.lane.b32.xlu2 %v982_v43, %s8450_s21  ;;  %v1061_v63 = vrot.slane %v1059_v33, 5  ;;  %v7417_v51 = vrot.slane %v1360_v7, 9  ;;  %v331_v52 = vld [vmem:[%s13887_s0 + $0x194] sm:$0x1]  ;;  %v1014_v8 = vor.u32 %v1013_v13, %v1010_v12 }
  0x9e   :  { %v9118_v34 = vpop.permute.xlu0 %1127  ;;  %v9195_v29 = vpop.permute.xlu2 %1143  ;;  %1307 = vst.msk [vmem:[#allocation2 + $0x2c] sm:$0xf] %vm1295_vm4, %v9045_v41  ;;  %v120_v41 = vld [vmem:[%s13887_s0 + $0x4c] sm:$0xf]  ;;  %v1089_v25 = vshll.u32 %v330_v17, 16  ;;  %v1099_v2 = vshll.u32 %v331_v52, 16 }
  0x9f   :  { %182 = vst.msk [vmem:[#allocation2 + $0x28] sm:$0xf] %vm171_vm3, %v117_v31  ;;  %v1073_v3 = vrot.slane %v1072_v61, 4  ;;  %v1062_v5 = vor.u32 %v1061_v63, %v1058_v45  ;;  %v1015_v14 = vrot.slane %v1014_v8, 4  ;;  %v1364_v39 = vld [vmem:[%s13887_s0 + $0x10] sm:$0xf] }
  0xa0   :  { %1306 = vst.msk [vmem:[#allocation2 + $0x28] sm:$0xf] %vm1295_vm4, %v9060_v55  ;;  %v119_v55 = vld [vmem:[%s13887_s0 + $0x48] sm:$0xf]  ;;  %v9309_v31 = vrot.slane %v1089_v25, 5  ;;  %v1564_v46 = vrot.slane %v1364_v39, 5 }
  0xa1   :  { %181 = vst.msk [vmem:[#allocation2 + $0x24] sm:$0xf] %vm171_vm3, %v116_v47  ;;  %v1078_v10 = vsel %vm8551_vm2, %v1073_v3, %v1077_v62  ;;  %v1063_v11 = vrot.slane %v1062_v5, 4  ;;  %v1363_v33 = vld [vmem:[%s13887_s0 + $0xc] sm:$0xe]  ;;  %v1578_v12 = vrot.slane %v9385_v49, 5 }
  0xa2   :  { %1305 = vst.msk [vmem:[#allocation2 + $0x24] sm:$0xf] %vm1295_vm4, %v9067_v56  ;;  %v9271_v56 = vld [vmem:[%s13887_s0 + $0x4] sm:$0xf]  ;;  %v1096_v42 = vor.u32 %v1095_v37, %v9309_v31  ;;  %v1566_v28 = vrot.slane %v1564_v46, 4  ;;  %v7418_v54 = vrot.slane %v1363_v33, 9 }
  0xa3   :  { %1219 = vrot.lane.b32.xlu1 %v1044_v32, %s8450_s21  ;;  %186 = vst.msk [vmem:[#allocation2 + $0x38] sm:$0xf] %vm171_vm3, %v121_v27  ;;  %v1557_v58 = vrot.slane %v9271_v56, 5  ;;  %v1068_v1 = vsel %vm8551_vm2, %v1063_v11, %v1067_v44  ;;  %v1048_v32 = vor.u32 %v1047_v57, %v9178_v18  ;;  %v1020_v18 = vsel %vm8551_vm2, %v1015_v14, %v9187_v20  ;;  %v127_v20 = vld [vmem:[%s13887_s0 + $0x78] sm:$0xf] }
  0xa4   :  { %1217 = vrot.lane.b32.xlu0 %v1030_v48, %s8450_s21  ;;  %1310 = vst.msk [vmem:[#allocation2 + $0x38] sm:$0xf] %vm1295_vm4, %v9094_v15  ;;  %v124_v15 = vld [vmem:[%s13887_s0 + $0x64] sm:$0xf]  ;;  %v1101_v44 = vrot.slane %v1099_v2, 5  ;;  %v1097_v50 = vrot.slane %v1096_v42, 4  ;;  %v1565_v11 = vsel %vm9295_vm7, %v7418_v54, %v1564_v46 }
  0xa5   :  { %v9155_v4 = vpop.permute.xlu1 %1135  ;;  %185 = vst.msk [vmem:[#allocation2 + $0x34] sm:$0xf] %vm171_vm3, %v120_v41  ;;  %v1558_v36 = vsel %vm9295_vm7, %v7417_v51, %v1557_v58  ;;  %1215 = vrot.lane.b32.xlu2 %v1020_v18, %s8450_s21  ;;  %v1049_v47 = vrot.slane %v1048_v32, 4  ;;  %v130_v62 = vld [vmem:[%s13887_s0 + $0x88] sm:$0xf] }
  0xa6   :  { %v9171_v16 = vpop.permute.xlu0 %1133  ;;  %v9249_v0 = vpop.permute.xlu2 %1149  ;;  %1309 = vst.msk [vmem:[#allocation2 + $0x34] sm:$0xf] %vm1295_vm4, %v9101_v23  ;;  %v123_v23 = vld [vmem:[%s13887_s0 + $0x60] sm:$0xf]  ;;  %v1102_v61 = vsel %vm8551_vm2, %v1097_v50, %v1101_v44  ;;  %v128_v52 = vld [vmem:[%s13887_s0 + $0x7c] sm:$0xf] }
  0xa7   :  { %184 = vst.msk [vmem:[#allocation2 + $0x30] sm:$0xf] %vm171_vm3, %v119_v55  ;;  %v1368_v13 = vld [vmem:[%s13887_s0 + $0x20] sm:$0x1]  ;;  %v1362_v26 = vld [vmem:[%s13887_s0 + $0x8] sm:$0x1] }
  0xa8   :  { %1308 = vst.msk [vmem:[#allocation2 + $0x30] sm:$0xf] %vm1295_vm4, %v9118_v34  ;;  %v325_v34 = vld [vmem:[%s13887_s0 + $0x17c] sm:$0x1]  ;;  %v1574_v25 = vrot.slane %v1368_v13, 5  ;;  %v1560_v37 = vrot.slane %v1362_v26, 5 }
  0xa9   :  { %189 = vst.msk [vmem:[#allocation2 + $0x44] sm:$0xf] %vm171_vm3, %v124_v15  ;;  %v1051_v22 = vshll.u32 %v325_v34, 16  ;;  %v1374_v14 = vld [vmem:[%s13887_s0 + $0x38] sm:$0x1] }
  0xaa   :  { %1313 = vst.msk [vmem:[#allocation2 + $0x44] sm:$0xf] %vm1295_vm4, %v9143_v59  ;;  %v1365_v59 = vld [vmem:[%s13887_s0 + $0x14] sm:$0x1]  ;;  %v136_v56 = vld [vmem:[%s13887_s0 + $0xac] sm:$0xf] }
  0xab   :  { %1225 = vrot.lane.b32.xlu1 %v1078_v10, %s8450_s21  ;;  %188 = vst.msk [vmem:[#allocation2 + $0x40] sm:$0xf] %vm171_vm3, %v123_v23  ;;  %v1053_v48 = vrot.slane %v1051_v22, 5  ;;  %v1567_v27 = vrot.slane %v1365_v59, 5  ;;  %v9394_v10 = vld [vmem:[%s13887_s0 + $0x1c] sm:$0xf] }
  0xac   :  { %1223 = vrot.lane.b32.xlu0 %v1068_v1, %s8450_s21  ;;  %1312 = vst.msk [vmem:[#allocation2 + $0x40] sm:$0xf] %vm1295_vm4, %v9155_v4  ;;  %v126_v4 = vld [vmem:[%s13887_s0 + $0x70] sm:$0xf]  ;;  %v1373_v1 = vld [vmem:[%s13887_s0 + $0x34] sm:$0xf] }
  0xad   :  { %v9216_v38 = vpop.permute.xlu1 %1141  ;;  %187 = vst.msk [vmem:[#allocation2 + $0x3c] sm:$0xf] %vm171_vm3, %v122_v30  ;;  %v1054_v45 = vsel %vm8551_vm2, %v1049_v47, %v1053_v48  ;;  %v1568_v3 = vsel %vm9295_vm7, %v1566_v28, %v1567_v27  ;;  %v1585_v2 = vrot.slane %v1373_v1, 5  ;;  %v132_v30 = vld [vmem:[%s13887_s0 + $0x94] sm:$0xf]  ;;  %v1588_v22 = vrot.slane %v1374_v14, 5 }
  0xae   :  { %v9231_v53 = vpop.permute.xlu0 %1139  ;;  %v9312_v35 = vpop.permute.xlu2 %1155  ;;  %1311 = vst.msk [vmem:[#allocation2 + $0x3c] sm:$0xf] %vm1295_vm4, %v9171_v16  ;;  %v329_v16 = vld [vmem:[%s13887_s0 + $0x18c] sm:$0xf]  ;;  %1221 = vrot.lane.b32.xlu2 %v1054_v45, %s8450_s21  ;;  %v134_v42 = vld [vmem:[%s13887_s0 + $0xa0] sm:$0xf] }
  0xaf   :  { %192 = vst.msk [vmem:[#allocation2 + $0x50] sm:$0xf] %vm171_vm3, %v127_v20  ;;  %v1080_v41 = vshrl.u32 %v329_v16, 16  ;;  %v1083_v63 = vshll.u32 %v329_v16, 16  ;;  %v1587_v18 = vrot.slane %v1585_v2, 4 }
  0xb0   :  { %1316 = vst.msk [vmem:[#allocation2 + $0x50] sm:$0xf] %vm1295_vm4, %v9195_v29  ;;  %v1369_v29 = vld [vmem:[%s13887_s0 + $0x24] sm:$0xe]  ;;  %v1366_v46 = vld [vmem:[%s13887_s0 + $0x18] sm:$0xe] }
  0xb1   :  { %191 = vst.msk [vmem:[#allocation2 + $0x4c] sm:$0xf] %vm171_vm3, %v126_v4  ;;  %v1082_v5 = vrot.slane %v1080_v41, 4  ;;  %v1085_v6 = vrot.slane %v1083_v63, 5  ;;  %v7420_v57 = vrot.slane %v1369_v29, 9  ;;  %v1589_v59 = vsel %vm9295_vm7, %v1587_v18, %v1588_v22 }
  0xb2   :  { %1315 = vst.msk [vmem:[#allocation2 + $0x4c] sm:$0xf] %vm1295_vm4, %v9216_v38  ;;  %v129_v38 = vld [vmem:[%s13887_s0 + $0x84] sm:$0xf]  ;;  %v1378_v20 = vld [vmem:[%s13887_s0 + $0x48] sm:$0xe] }
  0xb3   :  { %1779 = vrot.lane.b32.xlu1 %v1558_v36, %s8452_s18  ;;  %190 = vst.msk [vmem:[#allocation2 + $0x48] sm:$0xf] %vm171_vm3, %v125_v60  ;;  %v1086_v51 = vor.u32 %v1085_v6, %v1082_v5  ;;  %v1579_v23 = vsel %vm9295_vm7, %v7420_v57, %v1578_v12  ;;  %v1559_v36 = vrot.slane %v1557_v58, 4  ;;  %v135_v58 = vld [vmem:[%s13887_s0 + $0xa8] sm:$0xf]  ;;  %v7419_v27 = vrot.slane %v1366_v46, 9 }
  0xb4   :  { %1229 = vrot.lane.b32.xlu0 %v1102_v61, %s8450_s21  ;;  %1314 = vst.msk [vmem:[#allocation2 + $0x48] sm:$0xf] %vm1295_vm4, %v9231_v53  ;;  %v1571_v53 = vrot.slane %v9394_v10, 5  ;;  %v9495_v47 = vld [vmem:[%s13887_s0 + $0x4c] sm:$0xf]  ;;  %v1580_v57 = vrot.slane %v1578_v12, 4 }
  0xb5   :  { %v9263_v9 = vpop.permute.xlu1 %1147  ;;  %195 = vst.msk [vmem:[#allocation2 + $0x5c] sm:$0xf] %vm171_vm3, %v130_v62  ;;  %v1087_v15 = vrot.slane %v1086_v51, 4  ;;  %v9500_v48 = vld [vmem:[%s13887_s0 + $0x40] sm:$0xf]  ;;  %v1599_v33 = vrot.slane %v9495_v47, 5 }
  0xb6   :  { %v9284_v19 = vpop.permute.xlu0 %1145  ;;  %v9378_v55 = vpop.permute.xlu2 %1161  ;;  %1319 = vst.msk [vmem:[#allocation2 + $0x5c] sm:$0xf] %vm1295_vm4, %v9249_v0  ;;  %v133_v0 = vld [vmem:[%s13887_s0 + $0x9c] sm:$0xf]  ;;  %v139_v28 = vld [vmem:[%s13887_s0 + $0xd8] sm:$0xf] }
  0xb7   :  { %194 = vst.msk [vmem:[#allocation2 + $0x58] sm:$0xf] %vm171_vm3, %v129_v38  ;;  %v1092_v8 = vsel %vm8551_vm2, %v1087_v15, %v9309_v31  ;;  %v1377_v60 = vld [vmem:[%s13887_s0 + $0x44] sm:$0x1]  ;;  %v1592_v61 = vrot.slane %v9500_v48, 5 }
  0xb8   :  { %1318 = vst.msk [vmem:[#allocation2 + $0x58] sm:$0xf] %vm1295_vm4, %v9263_v9  ;;  %v1573_v9 = vrot.slane %v1571_v53, 4  ;;  %1227 = vrot.lane.b32.xlu2 %v1092_v8, %s8450_s21  ;;  %v138_v45 = vld [vmem:[%s13887_s0 + $0xb8] sm:$0xf]  ;;  %v1595_v54 = vrot.slane %v1377_v60, 5 }
  0xb9   :  { %193 = vst.msk [vmem:[#allocation2 + $0x54] sm:$0xf] %vm171_vm3, %v128_v52  ;;  %v1382_v41 = vld [vmem:[%s13887_s0 + $0x58] sm:$0xf]  ;;  %v137_v63 = vld [vmem:[%s13887_s0 + $0xb4] sm:$0xf] }
  0xba   :  { %1317 = vst.msk [vmem:[#allocation2 + $0x54] sm:$0xf] %vm1295_vm4, %v9284_v19  ;;  %v131_v19 = vld [vmem:[%s13887_s0 + $0x90] sm:$0xf]  ;;  %v1575_v34 = vsel %vm9295_vm7, %v1573_v9, %v1574_v25  ;;  %v1371_v5 = vld [vmem:[%s13887_s0 + $0x2c] sm:$0x1] }
  0xbb   :  { %1785 = vrot.lane.b32.xlu1 %v1568_v3, %s8452_s18  ;;  %198 = vst.msk [vmem:[#allocation2 + $0x68] sm:$0xf] %vm171_vm3, %v133_v0  ;;  %v1572_v3 = vsel %vm9295_vm7, %v7419_v27, %v1571_v53  ;;  %v1606_v6 = vrot.slane %v1382_v41, 5  ;;  %v1383_v10 = vld [vmem:[%s13887_s0 + $0x5c] sm:$0x1] }
  0xbc   :  { %1783 = vrot.lane.b32.xlu0 %v1565_v11, %s8452_s18  ;;  %1322 = vst.msk [vmem:[#allocation2 + $0x68] sm:$0xf] %vm1295_vm4, %v9312_v35  ;;  %v1372_v35 = vld [vmem:[%s13887_s0 + $0x30] sm:$0xe]  ;;  %v141_v51 = vld [vmem:[%s13887_s0 + $0xe4] sm:$0xf] }
  0xbd   :  { %v9330_v40 = vpop.permute.xlu1 %1153  ;;  %197 = vst.msk [vmem:[#allocation2 + $0x64] sm:$0xf] %vm171_vm3, %v132_v30  ;;  %v7421_v44 = vrot.slane %v1372_v35, 9  ;;  %v1581_v11 = vrot.slane %v1371_v5, 5  ;;  %v1381_v13 = vld [vmem:[%s13887_s0 + $0x54] sm:$0xe] }
  0xbe   :  { %v9345_v43 = vpop.permute.xlu0 %1151  ;;  %v1168_v32 = vpop.permute.xlu2 %1167  ;;  %1321 = vst.msk [vmem:[#allocation2 + $0x64] sm:$0xf] %vm1295_vm4, %v9330_v40  ;;  %v1561_v40 = vsel %vm9295_vm7, %v1559_v36, %v1560_v37  ;;  %v1609_v52 = vrot.slane %v1383_v10, 5  ;;  %v140_v49 = vld [vmem:[%s13887_s0 + $0xdc] sm:$0xf]  ;;  %v7424_v12 = vrot.slane %v1381_v13, 9 }
  0xbf   :  { %196 = vst.msk [vmem:[#allocation2 + $0x60] sm:$0xf] %vm171_vm3, %v131_v19  ;;  %v1586_v4 = vsel %vm9295_vm7, %v7421_v44, %v1585_v2  ;;  %v1582_v0 = vsel %vm9295_vm7, %v1580_v57, %v1581_v11  ;;  %v145_v8 = vld [vmem:[%s13887_s0 + $0xfc] sm:$0xf]  ;;  %v144_v25 = vld [vmem:[%s13887_s0 + $0xf4] sm:$0xf] }
  0xc0   :  { %1320 = vst.msk [vmem:[#allocation2 + $0x60] sm:$0xf] %vm1295_vm4, %v9345_v43  ;;  %1781 = vrot.lane.b32.xlu2 %v1561_v40, %s8452_s18  ;;  %v7423_v43 = vrot.slane %v1378_v20, 9  ;;  %v1375_v9 = vld [vmem:[%s13887_s0 + $0x3c] sm:$0xe]  ;;  %v1607_v36 = vsel %vm9295_vm7, %v7424_v12, %v1606_v6 }
  0xc1   :  { %201 = vst.msk [vmem:[#allocation2 + $0x74] sm:$0xf] %vm171_vm3, %v136_v56  ;;  %v1387_v26 = vld [vmem:[%s13887_s0 + $0x6c] sm:$0xe]  ;;  %v9596_v2 = vld [vmem:[%s13887_s0 + $0x70] sm:$0xf] }
  0xc2   :  { %1325 = vst.msk [vmem:[#allocation2 + $0x74] sm:$0xf] %vm1295_vm4, %v9378_v55  ;;  %v1600_v29 = vsel %vm9295_vm7, %v7423_v43, %v1599_v33  ;;  %v1594_v55 = vrot.slane %v1592_v61, 4  ;;  %v9601_v30 = vld [vmem:[%s13887_s0 + $0x64] sm:$0xf]  ;;  %v1620_v37 = vrot.slane %v9596_v2, 5 }
  0xc3   :  { %1791 = vrot.lane.b32.xlu1 %v1579_v23, %s8452_s18  ;;  %200 = vst.msk [vmem:[#allocation2 + $0x70] sm:$0xf] %vm171_vm3, %v135_v58  ;;  %v143_v14 = vld [vmem:[%s13887_s0 + $0xf0] sm:$0xf]  ;;  %v1613_v18 = vrot.slane %v9601_v30, 5 }
  0xc4   :  { %1789 = vrot.lane.b32.xlu0 %v1575_v34, %s8452_s18  ;;  %199 = vst.msk [vmem:[#allocation2 + $0x6c] sm:$0xf] %vm171_vm3, %v134_v42  ;;  %v1596_v53 = vsel %vm9295_vm7, %v1594_v55, %v1595_v54  ;;  %v1386_v34 = vld [vmem:[%s13887_s0 + $0x68] sm:$0x1]  ;;  %v148_v22 = vld [vmem:[%s13887_s0 + $0x10c] sm:$0xf] }
  0xc5   :  { %v9387_v7 = vpop.permute.xlu1 %1159  ;;  %204 = vst.msk [vmem:[#allocation2 + $0x80] sm:$0xf] %vm171_vm3, %v139_v28  ;;  %v1616_v42 = vrot.slane %v1386_v34, 5  ;;  %v147_v40 = vld [vmem:[%s13887_s0 + $0x108] sm:$0xf]  ;;  %v1601_v28 = vrot.slane %v1599_v33, 4 }
  0xc6   :  { %v9410_v17 = vpop.permute.xlu0 %1157  ;;  %1324 = vst.msk [vmem:[#allocation2 + $0x70] sm:$0xf] %vm1295_vm4, %v9387_v7  ;;  %v1174_v16 = vpop.permute.xlu2 %1173  ;;  %v142_v7 = vld [vmem:[%s13887_s0 + $0xe8] sm:$0xf]  ;;  %v1380_v46 = vld [vmem:[%s13887_s0 + $0x50] sm:$0x1] }
  0xc7   :  { %1323 = vst.msk [vmem:[#allocation2 + $0x6c] sm:$0xf] %vm1295_vm4, %v9410_v17  ;;  %v1608_v17 = vrot.slane %v1606_v6, 4  ;;  %v146_v48 = vld [vmem:[%s13887_s0 + $0x100] sm:$0xf]  ;;  %v1602_v27 = vrot.slane %v1380_v46, 5 }
  0xc8   :  { %1328 = vst.msk [vmem:[#allocation2 + $0x80] sm:$0xf] %vm1295_vm4, %v1168_v32  ;;  %1787 = vrot.lane.b32.xlu2 %v1572_v3, %s8452_s18  ;;  %v7426_v32 = vrot.slane %v1387_v26, 9  ;;  %v151_v43 = vld [vmem:[%s13887_s0 + $0x120] sm:$0xf] }
  0xc9   :  { %203 = vst.msk [vmem:[#allocation2 + $0x7c] sm:$0xf] %vm171_vm3, %v138_v45  ;;  %v1610_v23 = vsel %vm9295_vm7, %v1608_v17, %v1609_v52  ;;  %v1390_v47 = vld [vmem:[%s13887_s0 + $0x78] sm:$0xe]  ;;  %v1603_v45 = vsel %vm9295_vm7, %v1601_v28, %v1602_v27  ;;  %v1396_v3 = vld [vmem:[%s13887_s0 + $0x90] sm:$0xe] }
  0xca   :  { %202 = vst.msk [vmem:[#allocation2 + $0x78] sm:$0xf] %vm171_vm3, %v137_v63  ;;  %v1621_v44 = vsel %vm9295_vm7, %v7426_v32, %v1620_v37  ;;  %v1384_v63 = vld [vmem:[%s13887_s0 + $0x60] sm:$0xe]  ;;  %v9691_v5 = vld [vmem:[%s13887_s0 + $0x94] sm:$0xf] }
  0xcb   :  { %1797 = vrot.lane.b32.xlu1 %v1589_v59, %s8452_s18  ;;  %207 = vst.msk [vmem:[#allocation2 + $0x8c] sm:$0xf] %vm171_vm3, %v142_v7  ;;  %v1615_v59 = vrot.slane %v1613_v18, 4  ;;  %v9697_v6 = vld [vmem:[%s13887_s0 + $0x88] sm:$0xf]  ;;  %v7425_v10 = vrot.slane %v1384_v63, 9 }
  0xcc   :  { %1795 = vrot.lane.b32.xlu0 %v1586_v4, %s8452_s18  ;;  %1331 = vst.msk [vmem:[#allocation2 + $0x8c] sm:$0xf] %vm1295_vm4, %v1174_v16  ;;  %v150_v16 = vld [vmem:[%s13887_s0 + $0x118] sm:$0xf]  ;;  %v154_v7 = vld [vmem:[%s13887_s0 + $0x130] sm:$0xf] }
  0xcd   :  { %v1166_v31 = vpop.permute.xlu1 %1165  ;;  %206 = vst.msk [vmem:[#allocation2 + $0x88] sm:$0xf] %vm171_vm3, %v141_v51  ;;  %v1617_v4 = vsel %vm9295_vm7, %v1615_v59, %v1616_v42  ;;  %v153_v51 = vld [vmem:[%s13887_s0 + $0x12c] sm:$0xf]  ;;  %v152_v11 = vld [vmem:[%s13887_s0 + $0x124] sm:$0xf] }
  0xce   :  { %v1164_v39 = vpop.permute.xlu0 %1163  ;;  %1327 = vst.msk [vmem:[#allocation2 + $0x7c] sm:$0xf] %vm1295_vm4, %v1166_v31  ;;  %v1180_v1 = vpop.permute.xlu2 %1179  ;;  %v7422_v31 = vrot.slane %v1375_v9, 9  ;;  %v1395_v57 = vld [vmem:[%s13887_s0 + $0x8c] sm:$0x1]  ;;  %v1634_v17 = vrot.slane %v9697_v6, 5 }
  0xcf   :  { %1326 = vst.msk [vmem:[#allocation2 + $0x78] sm:$0xf] %vm1295_vm4, %v1164_v39  ;;  %v1391_v39 = vld [vmem:[%s13887_s0 + $0x7c] sm:$0xf]  ;;  %v157_v52 = vld [vmem:[%s13887_s0 + $0x144] sm:$0xf] }
  0xd0   :  { %205 = vst.msk [vmem:[#allocation2 + $0x84] sm:$0xf] %vm171_vm3, %v140_v49  ;;  %1793 = vrot.lane.b32.xlu2 %v1582_v0, %s8452_s18  ;;  %v1593_v58 = vsel %vm9295_vm7, %v7422_v31, %v1592_v61  ;;  %v1627_v20 = vrot.slane %v1391_v39, 5  ;;  %v1614_v49 = vsel %vm9295_vm7, %v7425_v10, %v1613_v18  ;;  %v1637_v12 = vrot.slane %v1395_v57, 5  ;;  %v1389_v0 = vld [vmem:[%s13887_s0 + $0x74] sm:$0x1] }
  0xd1   :  { %210 = vst.msk [vmem:[#allocation2 + $0x98] sm:$0xf] %vm171_vm3, %v145_v8  ;;  %v156_v26 = vld [vmem:[%s13887_s0 + $0x13c] sm:$0xf]  ;;  %v155_v31 = vld [vmem:[%s13887_s0 + $0x138] sm:$0xf] }
  0xd2   :  { %1334 = vst.msk [vmem:[#allocation2 + $0x98] sm:$0xf] %vm1295_vm4, %v1180_v1  ;;  %v1629_v60 = vrot.slane %v1627_v20, 4  ;;  %v160_v32 = vld [vmem:[%s13887_s0 + $0x154] sm:$0xf] }
  0xd3   :  { %1803 = vrot.lane.b32.xlu1 %v1600_v29, %s8452_s18  ;;  %209 = vst.msk [vmem:[#allocation2 + $0x94] sm:$0xf] %vm171_vm3, %v144_v25  ;;  %v7427_v29 = vrot.slane %v1390_v47, 9  ;;  %v1636_v25 = vrot.slane %v1634_v17, 4  ;;  %v159_v34 = vld [vmem:[%s13887_s0 + $0x150] sm:$0xf] }
  0xd4   :  { %1801 = vrot.lane.b32.xlu0 %v1596_v53, %s8452_s18  ;;  %208 = vst.msk [vmem:[#allocation2 + $0x90] sm:$0xf] %vm171_vm3, %v143_v14  ;;  %v1641_v53 = vrot.slane %v9691_v5, 5  ;;  %v1401_v14 = vld [vmem:[%s13887_s0 + $0xa4] sm:$0x1] }
  0xd5   :  { %v1172_v50 = vpop.permute.xlu1 %1171  ;;  %213 = vst.msk [vmem:[#allocation2 + $0xa4] sm:$0xf] %vm171_vm3, %v148_v22  ;;  %v1628_v13 = vsel %vm9295_vm7, %v7427_v29, %v1627_v20  ;;  %v1638_v18 = vsel %vm9295_vm7, %v1636_v25, %v1637_v12  ;;  %v158_v39 = vld [vmem:[%s13887_s0 + $0x148] sm:$0xf]  ;;  %v1399_v2 = vld [vmem:[%s13887_s0 + $0x9c] sm:$0xe] }
  0xd6   :  { %v1170_v62 = vpop.permute.xlu0 %1169  ;;  %1330 = vst.msk [vmem:[#allocation2 + $0x88] sm:$0xf] %vm1295_vm4, %v1172_v50  ;;  %v1186_v56 = vpop.permute.xlu2 %1185  ;;  %v1392_v50 = vld [vmem:[%s13887_s0 + $0x80] sm:$0x1]  ;;  %v1405_v42 = vld [vmem:[%s13887_s0 + $0xb4] sm:$0xe] }
  0xd7   :  { %1329 = vst.msk [vmem:[#allocation2 + $0x84] sm:$0xf] %vm1295_vm4, %v1170_v62  ;;  %v1630_v61 = vrot.slane %v1392_v50, 5  ;;  %v149_v62 = vld [vmem:[%s13887_s0 + $0x114] sm:$0xf]  ;;  %v7432_v27 = vrot.slane %v1405_v42, 9 }
  0xd8   :  { %1337 = vst.msk [vmem:[#allocation2 + $0xa4] sm:$0xf] %vm1295_vm4, %v1186_v56  ;;  %1799 = vrot.lane.b32.xlu2 %v1593_v58, %s8452_s18  ;;  %v1393_v58 = vld [vmem:[%s13887_s0 + $0x84] sm:$0xe]  ;;  %v162_v46 = vld [vmem:[%s13887_s0 + $0x160] sm:$0xf] }
  0xd9   :  { %212 = vst.msk [vmem:[#allocation2 + $0xa0] sm:$0xf] %vm171_vm3, %v147_v40  ;;  %v1631_v54 = vsel %vm9295_vm7, %v1629_v60, %v1630_v61  ;;  %v9805_v50 = vld [vmem:[%s13887_s0 + $0xac] sm:$0xf]  ;;  %v7428_v28 = vrot.slane %v1393_v58, 9 }
  0xda   :  { %211 = vst.msk [vmem:[#allocation2 + $0x9c] sm:$0xf] %vm171_vm3, %v146_v48  ;;  %v9800_v48 = vld [vmem:[%s13887_s0 + $0xb8] sm:$0xf]  ;;  %v1404_v60 = vld [vmem:[%s13887_s0 + $0xb0] sm:$0x1] }
  0xdb   :  { %1809 = vrot.lane.b32.xlu1 %v1610_v23, %s8452_s18  ;;  %216 = vst.msk [vmem:[#allocation2 + $0xb0] sm:$0xf] %vm171_vm3, %v151_v43  ;;  %v161_v43 = vld [vmem:[%s13887_s0 + $0x15c] sm:$0xf]  ;;  %v166_v61 = vld [vmem:[%s13887_s0 + $0x178] sm:$0xf]  ;;  %v1635_v63 = vsel %vm9295_vm7, %v7428_v28, %v1634_v17 }
  0xdc   :  { %1807 = vrot.lane.b32.xlu0 %v1607_v36, %s8452_s18  ;;  %215 = vst.msk [vmem:[#allocation2 + $0xac] sm:$0xf] %vm171_vm3, %v150_v16  ;;  %v1623_v36 = vrot.slane %v1389_v0, 5  ;;  %v1662_v47 = vrot.slane %v9800_v48, 5  ;;  %v1398_v6 = vld [vmem:[%s13887_s0 + $0x98] sm:$0x1] }
  0xdd   :  { %v1178_v38 = vpop.permute.xlu1 %1177  ;;  %214 = vst.msk [vmem:[#allocation2 + $0xa8] sm:$0xf] %vm171_vm3, %v149_v62  ;;  %v165_v62 = vld [vmem:[%s13887_s0 + $0x174] sm:$0xf]  ;;  %v168_v57 = vld [vmem:[%s13887_s0 + $0x184] sm:$0xf] }
  0xde   :  { %v1176_v15 = vpop.permute.xlu0 %1175  ;;  %1333 = vst.msk [vmem:[#allocation2 + $0x94] sm:$0xf] %vm1295_vm4, %v1178_v38  ;;  %v1192_v55 = vpop.permute.xlu2 %1191  ;;  %v7429_v38 = vrot.slane %v1396_v3, 9  ;;  %v1658_v3 = vrot.slane %v1404_v60, 5  ;;  %v1663_v29 = vsel %vm9295_vm7, %v7432_v27, %v1662_v47  ;;  %v1644_v17 = vrot.slane %v1398_v6, 5 }
  0xdf   :  { %1332 = vst.msk [vmem:[#allocation2 + $0x90] sm:$0xf] %vm1295_vm4, %v1176_v15  ;;  %v1400_v15 = vld [vmem:[%s13887_s0 + $0xa0] sm:$0xf]  ;;  %v1414_v25 = vld [vmem:[%s13887_s0 + $0xf0] sm:$0xe] }
  0xe0   :  { %1340 = vst.msk [vmem:[#allocation2 + $0xb0] sm:$0xf] %vm1295_vm4, %v1192_v55  ;;  %1805 = vrot.lane.b32.xlu2 %v1603_v45, %s8452_s18  ;;  %v1642_v8 = vsel %vm9295_vm7, %v7429_v38, %v1641_v53  ;;  %v1648_v9 = vrot.slane %v1400_v15, 5  ;;  %v1409_v45 = vld [vmem:[%s13887_s0 + $0xdc] sm:$0xf] }
  0xe1   :  { %219 = vst.msk [vmem:[#allocation2 + $0xbc] sm:$0xf] %vm171_vm3, %v154_v7  ;;  %v1669_v7 = vrot.slane %v1409_v45, 5  ;;  %v1407_v58 = vld [vmem:[%s13887_s0 + $0xbc] sm:$0x1] }
  0xe2   :  { %218 = vst.msk [vmem:[#allocation2 + $0xb8] sm:$0xf] %vm171_vm3, %v153_v51  ;;  %v1650_v22 = vrot.slane %v1648_v9, 4  ;;  %v1410_v51 = vld [vmem:[%s13887_s0 + $0xe0] sm:$0x1] }
  0xe3   :  { %1815 = vrot.lane.b32.xlu1 %v1621_v44, %s8452_s18  ;;  %217 = vst.msk [vmem:[#allocation2 + $0xb4] sm:$0xf] %vm171_vm3, %v152_v11  ;;  %v7430_v44 = vrot.slane %v1399_v2, 9  ;;  %v167_v11 = vld [vmem:[%s13887_s0 + $0x180] sm:$0xf]  ;;  %v1671_v15 = vrot.slane %v1669_v7, 4 }
  0xe4   :  { %1813 = vrot.lane.b32.xlu0 %v1617_v4, %s8452_s18  ;;  %222 = vst.msk [vmem:[#allocation2 + $0xc8] sm:$0xf] %vm171_vm3, %v157_v52  ;;  %v1422_v6 = vld [vmem:[%s13887_s0 + $0x110] sm:$0x1] }
  0xe5   :  { %v1184_v19 = vpop.permute.xlu1 %1183  ;;  %221 = vst.msk [vmem:[#allocation2 + $0xc4] sm:$0xf] %vm171_vm3, %v156_v26  ;;  %v1649_v16 = vsel %vm9295_vm7, %v7430_v44, %v1648_v9  ;;  %v9898_v9 = vld [vmem:[%s13887_s0 + $0xe8] sm:$0xf]  ;;  %v170_v26 = vld [vmem:[%s13887_s0 + $0x190] sm:$0xf] }
  0xe6   :  { %v1182_v35 = vpop.permute.xlu0 %1181  ;;  %1336 = vst.msk [vmem:[#allocation2 + $0xa0] sm:$0xf] %vm1295_vm4, %v1184_v19  ;;  %v1198_v23 = vpop.permute.xlu2 %1197  ;;  %v1622_v19 = vrot.slane %v1620_v37, 4  ;;  %v163_v37 = vld [vmem:[%s13887_s0 + $0x168] sm:$0xf]  ;;  %v1664_v44 = vrot.slane %v1662_v47, 4 }
  0xe7   :  { %1335 = vst.msk [vmem:[#allocation2 + $0x9c] sm:$0xf] %vm1295_vm4, %v1182_v35  ;;  %v1651_v35 = vrot.slane %v1401_v14, 5  ;;  %v1423_v47 = vld [vmem:[%s13887_s0 + $0x114] sm:$0xe] }
  0xe8   :  { %1343 = vst.msk [vmem:[#allocation2 + $0xbc] sm:$0xf] %vm1295_vm4, %v1198_v23  ;;  %1811 = vrot.lane.b32.xlu2 %v1614_v49, %s8452_s18  ;;  %v1624_v56 = vsel %vm9295_vm7, %v1622_v19, %v1623_v36  ;;  %v1672_v49 = vrot.slane %v1410_v51, 5  ;;  %v9893_v23 = vld [vmem:[%s13887_s0 + $0xf4] sm:$0xf]  ;;  %v7435_v19 = vrot.slane %v1414_v25, 9 }
  0xe9   :  { %220 = vst.msk [vmem:[#allocation2 + $0xc0] sm:$0xf] %vm171_vm3, %v155_v31  ;;  %v1652_v40 = vsel %vm9295_vm7, %v1650_v22, %v1651_v35  ;;  %v1683_v36 = vrot.slane %v9893_v23, 5  ;;  %v1418_v22 = vld [vmem:[%s13887_s0 + $0x100] sm:$0xf] }
  0xea   :  { %225 = vst.msk [vmem:[#allocation2 + $0xd4] sm:$0xf] %vm171_vm3, %v160_v32  ;;  %v1690_v42 = vrot.slane %v1418_v22, 5 }
  0xeb   :  { %1821 = vrot.lane.b32.xlu1 %v1631_v54, %s8452_s18  ;;  %224 = vst.msk [vmem:[#allocation2 + $0xd0] sm:$0xf] %vm171_vm3, %v159_v34  ;;  %v169_v54 = vld [vmem:[%s13887_s0 + $0x18c] sm:$0xf]  ;;  %v1676_v34 = vrot.slane %v9898_v9, 5  ;;  %v1684_v2 = vsel %vm9295_vm7, %v7435_v19, %v1683_v36 }
  0xec   :  { %1819 = vrot.lane.b32.xlu0 %v1628_v13, %s8452_s18  ;;  %223 = vst.msk [vmem:[#allocation2 + $0xcc] sm:$0xf] %vm171_vm3, %v158_v39  ;;  %v1643_v13 = vrot.slane %v1641_v53, 4  ;;  %v1673_v53 = vsel %vm9295_vm7, %v1671_v15, %v1672_v49  ;;  %v1692_v28 = vrot.slane %v1690_v42, 4  ;;  %v1685_v15 = vrot.slane %v1683_v36, 4 }
  0xed   :  { %v1190_v33 = vpop.permute.xlu1 %1189  ;;  %228 = vst.msk [vmem:[#allocation2 + $0xe0] sm:$0xf] %vm171_vm3, %v163_v37  ;;  %v1678_v37 = vrot.slane %v1676_v34, 4 }
  0xee   :  { %v1188_v41 = vpop.permute.xlu0 %1187  ;;  %1339 = vst.msk [vmem:[#allocation2 + $0xac] sm:$0xf] %vm1295_vm4, %v1190_v33  ;;  %v1655_v33 = vrot.slane %v9805_v50, 5  ;;  %v1645_v5 = vsel %vm9295_vm7, %v1643_v13, %v1644_v17  ;;  %v1416_v13 = vld [vmem:[%s13887_s0 + $0xf8] sm:$0x1] }
  0xef   :  { %1338 = vst.msk [vmem:[#allocation2 + $0xa8] sm:$0xf] %vm1295_vm4, %v1188_v41  ;;  %v1204_v20 = vpop.permute.xlu2 %1203  ;;  %v164_v41 = vld [vmem:[%s13887_s0 + $0x16c] sm:$0xf]  ;;  %v1686_v49 = vrot.slane %v1416_v13, 5 }
  0xf0   :  { %1817 = vrot.lane.b32.xlu2 %v1624_v56, %s8452_s18  ;;  %1346 = vst.msk [vmem:[#allocation2 + $0xc8] sm:$0xf] %vm1295_vm4, %v1204_v20  ;;  %v1657_v55 = vrot.slane %v1655_v33, 4 }
  0xf1   :  { %227 = vst.msk [vmem:[#allocation2 + $0xdc] sm:$0xf] %vm171_vm3, %v162_v46  ;;  %v1687_v25 = vsel %vm9295_vm7, %v1685_v15, %v1686_v49  ;;  %v1434_v15 = vld [vmem:[%s13887_s0 + $0x140] sm:$0x1] }
  0xf2   :  { %226 = vst.msk [vmem:[#allocation2 + $0xd8] sm:$0xf] %vm171_vm3, %v161_v43  ;;  %v1659_v52 = vsel %vm9295_vm7, %v1657_v55, %v1658_v3  ;;  %v1417_v43 = vld [vmem:[%s13887_s0 + $0xfc] sm:$0xe]  ;;  %v7438_v3 = vrot.slane %v1423_v47, 9 }
  0xf3   :  { %1827 = vrot.lane.b32.xlu1 %v1642_v8, %s8452_s18  ;;  %231 = vst.msk [vmem:[#allocation2 + $0xec] sm:$0xf] %vm171_vm3, %v166_v61  ;;  %v1402_v8 = vld [vmem:[%s13887_s0 + $0xa8] sm:$0xe]  ;;  %v7436_v61 = vrot.slane %v1417_v43, 9 }
  0xf4   :  { %1825 = vrot.lane.b32.xlu0 %v1638_v18, %s8452_s18  ;;  %230 = vst.msk [vmem:[#allocation2 + $0xe8] sm:$0xf] %vm171_vm3, %v165_v62  ;;  %v7431_v14 = vrot.slane %v1402_v8, 9  ;;  %v1413_v18 = vld [vmem:[%s13887_s0 + $0xec] sm:$0x1] }
  0xf5   :  { %v1196_v1 = vpop.permute.xlu1 %1195  ;;  %229 = vst.msk [vmem:[#allocation2 + $0xe4] sm:$0xf] %vm171_vm3, %v164_v41  ;;  %v1679_v56 = vrot.slane %v1413_v18, 5  ;;  %v9963_v62 = vld [vmem:[%s13887_s0 + $0x10c] sm:$0xf]  ;;  %v1691_v41 = vsel %vm9295_vm7, %v7436_v61, %v1690_v42 }
  0xf6   :  { %1342 = vst.msk [vmem:[#allocation2 + $0xb8] sm:$0xf] %vm1295_vm4, %v1196_v1  ;;  %v1194_v30 = vpop.permute.xlu0 %1193  ;;  %v1408_v1 = vld [vmem:[%s13887_s0 + $0xd8] sm:$0xe]  ;;  %v1656_v39 = vsel %vm9295_vm7, %v7431_v14, %v1655_v33  ;;  %v1426_v8 = vld [vmem:[%s13887_s0 + $0x120] sm:$0xe] }
  0xf7   :  { %1341 = vst.msk [vmem:[#allocation2 + $0xb4] sm:$0xf] %vm1295_vm4, %v1194_v30  ;;  %v1210_v10 = vpop.permute.xlu2 %1209  ;;  %v7433_v0 = vrot.slane %v1408_v1, 9  ;;  %v1680_v46 = vsel %vm9295_vm7, %v1678_v37, %v1679_v56  ;;  %v9958_v33 = vld [vmem:[%s13887_s0 + $0x118] sm:$0xf]  ;;  %v7439_v9 = vrot.slane %v1426_v8, 9 }
  0xf8   :  { %234 = vst.msk [vmem:[#allocation2 + $0xf8] sm:$0xf] %vm171_vm3, %v169_v54  ;;  %1823 = vrot.lane.b32.xlu2 %v1635_v63, %s8452_s18  ;;  %v1704_v54 = vrot.slane %v9958_v33, 5  ;;  %v1432_v14 = vld [vmem:[%s13887_s0 + $0x138] sm:$0xe] }
  0xf9   :  { %1349 = vst.msk [vmem:[#allocation2 + $0xd4] sm:$0xf] %vm1295_vm4, %v1210_v10  ;;  %v1670_v31 = vsel %vm9295_vm7, %v7433_v0, %v1669_v7  ;;  %v1427_v7 = vld [vmem:[%s13887_s0 + $0x124] sm:$0xf]  ;;  %v7441_v18 = vrot.slane %v1432_v14, 9 }
  0xfa   :  { %233 = vst.msk [vmem:[#allocation2 + $0xf4] sm:$0xf] %vm171_vm3, %v168_v57  ;;  %v1705_v51 = vsel %vm9295_vm7, %v7438_v3, %v1704_v54  ;;  %v1711_v17 = vrot.slane %v1427_v7, 5  ;;  %v1436_v37 = vld [vmem:[%s13887_s0 + $0x148] sm:$0xf] }
  0xfb   :  { %1833 = vrot.lane.b32.xlu1 %v1652_v40, %s8452_s18  ;;  %232 = vst.msk [vmem:[#allocation2 + $0xf0] sm:$0xf] %vm171_vm3, %v167_v11  ;;  %v1419_v40 = vld [vmem:[%s13887_s0 + $0x104] sm:$0x1]  ;;  %v1700_v11 = vrot.slane %v1422_v6, 5 }
  0xfc   :  { %1831 = vrot.lane.b32.xlu0 %v1649_v16, %s8452_s18  ;;  %235 = vst.msk [vmem:[#allocation2 + $0xfc] sm:$0xf] %vm171_vm3, %v170_v26  ;;  %v1693_v27 = vrot.slane %v1419_v40, 5  ;;  %v1411_v16 = vld [vmem:[%s13887_s0 + $0xe4] sm:$0xe]  ;;  %v1712_v36 = vsel %vm9295_vm7, %v7439_v9, %v1711_v17 }
  0xfd   :  { %v1202_v59 = vpop.permute.xlu1 %1201  ;;  %v7434_v45 = vrot.slane %v1411_v16, 9  ;;  %v1420_v26 = vld [vmem:[%s13887_s0 + $0x108] sm:$0xe]  ;;  %v1435_v61 = vld [vmem:[%s13887_s0 + $0x144] sm:$0xe] }
  0xfe   :  { %1345 = vst.msk [vmem:[#allocation2 + $0xc4] sm:$0xf] %vm1295_vm4, %v1202_v59  ;;  %v1200_v4 = vpop.permute.xlu0 %1199  ;;  %v1665_v59 = vrot.slane %v1407_v58, 5  ;;  %v1694_v60 = vsel %vm9295_vm7, %v1692_v28, %v1693_v27  ;;  %v7437_v19 = vrot.slane %v1420_v26, 9  ;;  %v7442_v33 = vrot.slane %v1435_v61, 9 }
  0xff   :  { %1344 = vst.msk [vmem:[#allocation2 + $0xc0] sm:$0xf] %vm1295_vm4, %v1200_v4  ;;  %v1216_v32 = vpop.permute.xlu2 %1215  ;;  %v1677_v10 = vsel %vm9295_vm7, %v7434_v45, %v1676_v34  ;;  %v10082_v3 = vld [vmem:[%s13887_s0 + $0x154] sm:$0xf]  ;;  %v1444_v26 = vld [vmem:[%s13887_s0 + $0x168] sm:$0xe] }
 0x100   :  { %1829 = vrot.lane.b32.xlu2 %v1645_v5, %s8452_s18  ;;  %1352 = vst.msk [vmem:[#allocation2 + $0xe0] sm:$0xf] %vm1295_vm4, %v1216_v32  ;;  %v1666_v4 = vsel %vm9295_vm7, %v1664_v44, %v1665_v59  ;;  %v1713_v5 = vrot.slane %v1711_v17, 4  ;;  %v10021_v32 = vld [vmem:[%s13887_s0 + $0x130] sm:$0xf]  ;;  %v1732_v59 = vrot.slane %v1436_v37, 5 }
 0x101   :  { %v1425_v44 = vld [vmem:[%s13887_s0 + $0x11c] sm:$0x1] }
 0x102   :  { %v1707_v28 = vrot.slane %v1425_v44, 5 }
 0x103   :  { %1839 = vrot.lane.b32.xlu1 %v1663_v29, %s8452_s18  ;;  %v1697_v29 = vrot.slane %v9963_v62, 5  ;;  %v1429_v62 = vld [vmem:[%s13887_s0 + $0x12c] sm:$0xe] }
 0x104   :  { %1837 = vrot.lane.b32.xlu0 %v1659_v52, %s8452_s18  ;;  %v1428_v52 = vld [vmem:[%s13887_s0 + $0x128] sm:$0x1] }
 0x105   :  { %v1208_v38 = vpop.permute.xlu1 %1207  ;;  %v1699_v57 = vrot.slane %v1697_v29, 4  ;;  %v1698_v56 = vsel %vm9295_vm7, %v7437_v19, %v1697_v29  ;;  %v1733_v29 = vsel %vm9295_vm7, %v7442_v33, %v1732_v59 }
 0x106   :  { %1348 = vst.msk [vmem:[#allocation2 + $0xd0] sm:$0xf] %vm1295_vm4, %v1208_v38  ;;  %v1206_v12 = vpop.permute.xlu0 %1205 }
 0x107   :  { %1347 = vst.msk [vmem:[#allocation2 + $0xcc] sm:$0xf] %vm1295_vm4, %v1206_v12  ;;  %v1701_v12 = vsel %vm9295_vm7, %v1699_v57, %v1700_v11  ;;  %v1445_v57 = vld [vmem:[%s13887_s0 + $0x16c] sm:$0xf] }
 0x108   :  { %1835 = vrot.lane.b32.xlu2 %v1656_v39, %s8452_s18  ;;  %v1222_v20 = vpop.permute.xlu2 %1221  ;;  %v1753_v49 = vrot.slane %v1445_v57, 5 }
 0x109   :  { %1355 = vst.msk [vmem:[#allocation2 + $0xec] sm:$0xf] %vm1295_vm4, %v1222_v20  ;;  %v1437_v20 = vld [vmem:[%s13887_s0 + $0x14c] sm:$0x1] }
 0x10b   :  { %1845 = vrot.lane.b32.xlu1 %v1673_v53, %s8452_s18  ;;  %v1714_v53 = vrot.slane %v1428_v52, 5 }
 0x10c   :  { %1843 = vrot.lane.b32.xlu0 %v1670_v31, %s8452_s18  ;;  %v10016_v31 = vld [vmem:[%s13887_s0 + $0x13c] sm:$0xf] }
 0x10d   :  { %v1214_v30 = vpop.permute.xlu1 %1213  ;;  %v1715_v23 = vsel %vm9295_vm7, %v1713_v5, %v1714_v53  ;;  %v1725_v22 = vrot.slane %v10016_v31, 5  ;;  %v1728_v53 = vrot.slane %v1434_v15, 5  ;;  %v7445_v31 = vrot.slane %v1444_v26, 9 }
 0x10e   :  { %1351 = vst.msk [vmem:[#allocation2 + $0xdc] sm:$0xf] %vm1295_vm4, %v1214_v30  ;;  %v1212_v35 = vpop.permute.xlu0 %1211 }
 0x10f   :  { %1350 = vst.msk [vmem:[#allocation2 + $0xd8] sm:$0xf] %vm1295_vm4, %v1212_v35  ;;  %v1718_v35 = vrot.slane %v10021_v32, 5  ;;  %v1726_v58 = vsel %vm9295_vm7, %v7441_v18, %v1725_v22  ;;  %v1727_v5 = vrot.slane %v1725_v22, 4  ;;  %v1438_v32 = vld [vmem:[%s13887_s0 + $0x150] sm:$0xe] }
 0x110   :  { %1841 = vrot.lane.b32.xlu2 %v1666_v4, %s8452_s18  ;;  %v1735_v4 = vrot.slane %v1437_v20, 5  ;;  %v1448_v18 = vld [vmem:[%s13887_s0 + $0x178] sm:$0xf]  ;;  %v7443_v22 = vrot.slane %v1438_v32, 9 }
 0x111   :  { %v1720_v42 = vrot.slane %v1718_v35, 4 }
 0x112   :  { %v1228_v63 = vpop.permute.xlu2 %1227 }
 0x113   :  { %1851 = vrot.lane.b32.xlu1 %v1684_v2, %s8452_s18  ;;  %1358 = vst.msk [vmem:[#allocation2 + $0xf8] sm:$0xf] %vm1295_vm4, %v1228_v63  ;;  %v1431_v2 = vld [vmem:[%s13887_s0 + $0x134] sm:$0x1]  ;;  %v10077_v63 = vld [vmem:[%s13887_s0 + $0x160] sm:$0xf] }
 0x114   :  { %1849 = vrot.lane.b32.xlu0 %v1680_v46, %s8452_s18  ;;  %v1721_v40 = vrot.slane %v1431_v2, 5  ;;  %v1746_v7 = vrot.slane %v10077_v63, 5 }
 0x115   :  { %v1220_v50 = vpop.permute.xlu1 %1219 }
 0x116   :  { %1354 = vst.msk [vmem:[#allocation2 + $0xe8] sm:$0xf] %vm1295_vm4, %v1220_v50  ;;  %v1218_v48 = vpop.permute.xlu0 %1217  ;;  %v1706_v50 = vrot.slane %v1704_v54, 4  ;;  %v1722_v27 = vsel %vm9295_vm7, %v1720_v42, %v1721_v40  ;;  %v7440_v54 = vrot.slane %v1429_v62, 9  ;;  %v1449_v42 = vld [vmem:[%s13887_s0 + $0x17c] sm:$0x1] }
 0x117   :  { %1353 = vst.msk [vmem:[#allocation2 + $0xe4] sm:$0xf] %vm1295_vm4, %v1218_v48  ;;  %v1734_v48 = vrot.slane %v1732_v59, 4  ;;  %v1454_v40 = vld [vmem:[%s13887_s0 + $0x190] sm:$0xf]  ;;  %v1763_v20 = vrot.slane %v1449_v42, 5 }
 0x118   :  { %1847 = vrot.lane.b32.xlu2 %v1677_v10, %s8452_s18  ;;  %v1708_v16 = vsel %vm9295_vm7, %v1706_v50, %v1707_v28  ;;  %v1739_v10 = vrot.slane %v10082_v3, 5  ;;  %v1719_v11 = vsel %vm9295_vm7, %v7440_v54, %v1718_v35  ;;  %v1754_v35 = vsel %vm9295_vm7, %v7445_v31, %v1753_v49  ;;  %v1443_v50 = vld [vmem:[%s13887_s0 + $0x164] sm:$0x1]  ;;  %v1453_v62 = vld [vmem:[%s13887_s0 + $0x18c] sm:$0xe] }
 0x119   :  { %v1736_v47 = vsel %vm9295_vm7, %v1734_v48, %v1735_v4  ;;  %v1774_v28 = vrot.slane %v1454_v40, 5  ;;  %v1748_v48 = vrot.slane %v1746_v7, 4  ;;  %v1749_v4 = vrot.slane %v1443_v50, 5  ;;  %v1447_v3 = vld [vmem:[%s13887_s0 + $0x174] sm:$0xe] }
 0x11a   :  { %v1782_v1 = vpop.permute.xlu2 %1781  ;;  %v1741_v17 = vrot.slane %v1739_v10, 4  ;;  %v1740_v44 = vsel %vm9295_vm7, %v7443_v22, %v1739_v10  ;;  %v7448_v63 = vrot.slane %v1453_v62, 9  ;;  %v7460_v31 = vld [vmem:[%s13887_s0 + $0x4c] sm:$0xf]  ;;  %v7463_v22 = vld [vmem:[%s13887_s0 + $0x60] sm:$0xf] }
 0x11b   :  { %1857 = vrot.lane.b32.xlu1 %v1694_v60, %s8452_s18  ;;  %1973 = vst.msk [vmem:[#allocation2 + $0x4] sm:$0xf] %vm1971_vm8, %v1782_v1  ;;  %v1446_v1 = vld [vmem:[%s13887_s0 + $0x170] sm:$0x1]  ;;  %v7465_v40 = vld [vmem:[%s13887_s0 + $0x6c] sm:$0xf] }
 0x11c   :  { %1855 = vrot.lane.b32.xlu0 %v1691_v41, %s8452_s18  ;;  %v1441_v41 = vld [vmem:[%s13887_s0 + $0x15c] sm:$0xe]  ;;  %v7475_v62 = vld [vmem:[%s13887_s0 + $0xa8] sm:$0xf] }
 0x11d   :  { %v1226_v55 = vpop.permute.xlu1 %1225  ;;  %v7444_v6 = vrot.slane %v1441_v41, 9 }
 0x11e   :  { %1357 = vst.msk [vmem:[#allocation2 + $0xf4] sm:$0xf] %vm1295_vm4, %v1226_v55  ;;  %v1224_v38 = vpop.permute.xlu0 %1223 }
 0x11f   :  { %1356 = vst.msk [vmem:[#allocation2 + $0xf0] sm:$0xf] %vm1295_vm4, %v1224_v38  ;;  %v1747_v13 = vsel %vm9295_vm7, %v7444_v6, %v1746_v7 }
 0x120   :  { %1853 = vrot.lane.b32.xlu2 %v1687_v25, %s8452_s18  ;;  %v1755_v25 = vrot.slane %v1753_v49, 4 }
 0x122   :  { %v1788_v34 = vpop.permute.xlu2 %1787 }
 0x123   :  { %1863 = vrot.lane.b32.xlu1 %v1705_v51, %s8452_s18  ;;  %1976 = vst.msk [vmem:[#allocation2 + $0x10] sm:$0xf] %vm1971_vm8, %v1788_v34  ;;  %v1440_v51 = vld [vmem:[%s13887_s0 + $0x158] sm:$0x1]  ;;  %v1451_v34 = vld [vmem:[%s13887_s0 + $0x184] sm:$0xf] }
 0x124   :  { %1861 = vrot.lane.b32.xlu0 %v1701_v12, %s8452_s18  ;;  %v1742_v52 = vrot.slane %v1440_v51, 5  ;;  %v1767_v37 = vrot.slane %v1451_v34, 5  ;;  %v1452_v51 = vld [vmem:[%s13887_s0 + $0x188] sm:$0x1] }
 0x125   :  { %v1780_v0 = vpop.permute.xlu1 %1779 }
 0x126   :  { %1972 = vst.msk [vmem:[#allocation2] sm:$0xf] %vm1971_vm8, %v1780_v0  ;;  %v1230_v30 = vpop.permute.xlu0 %1229  ;;  %v1743_v0 = vsel %vm9295_vm7, %v1741_v17, %v1742_v52  ;;  %v7450_v17 = vld [vmem:[%s13887_s0 + $0x10] sm:$0xf] }
 0x127   :  { %1359 = vst.msk [vmem:[#allocation2 + $0xfc] sm:$0xf] %vm1295_vm4, %v1230_v30  ;;  %v1729_v30 = vsel %vm9295_vm7, %v1727_v5, %v1728_v53  ;;  %v7453_v5 = vld [vmem:[%s13887_s0 + $0x24] sm:$0xf] }
 0x128   :  { %1859 = vrot.lane.b32.xlu2 %v1698_v56, %s8452_s18  ;;  %v1760_v56 = vrot.slane %v1448_v18, 5  ;;  %v7455_v18 = vld [vmem:[%s13887_s0 + $0x30] sm:$0xf] }
 0x12a   :  { %v1794_v43 = vpop.permute.xlu2 %1793 }
 0x12b   :  { %1869 = vrot.lane.b32.xlu1 %v1715_v23, %s8452_s18  ;;  %1979 = vst.msk [vmem:[#allocation2 + $0x1c] sm:$0xf] %vm1971_vm8, %v1794_v43  ;;  %v1756_v23 = vrot.slane %v1446_v1, 5  ;;  %v1455_v43 = vld [vmem:[%s13887_s0 + $0x194] sm:$0x1] }
 0x12c   :  { %1867 = vrot.lane.b32.xlu0 %v1712_v36, %s8452_s18  ;;  %v1450_v36 = vld [vmem:[%s13887_s0 + $0x180] sm:$0xe] }
 0x12d   :  { %v1786_v39 = vpop.permute.xlu1 %1785  ;;  %v1757_v14 = vsel %vm9295_vm7, %v1755_v25, %v1756_v23  ;;  %v7447_v2 = vrot.slane %v1450_v36, 9  ;;  %v7457_v25 = vld [vmem:[%s13887_s0 + $0x3c] sm:$0xf] }
 0x12e   :  { %1975 = vst.msk [vmem:[#allocation2 + $0xc] sm:$0xf] %vm1971_vm8, %v1786_v39  ;;  %v1784_v46 = vpop.permute.xlu0 %1783 }
 0x12f   :  { %1974 = vst.msk [vmem:[#allocation2 + $0x8] sm:$0xf] %vm1971_vm8, %v1784_v46  ;;  %v1768_v59 = vsel %vm9295_vm7, %v7447_v2, %v1767_v37  ;;  %v1762_v46 = vrot.slane %v1760_v56, 4 }
 0x130   :  { %1865 = vrot.lane.b32.xlu2 %v1708_v16, %s8452_s18  ;;  %v1776_v16 = vrot.slane %v1774_v28, 4 }
 0x132   :  { %v1800_v55 = vpop.permute.xlu2 %1799 }
 0x133   :  { %1875 = vrot.lane.b32.xlu1 %v1726_v58, %s8452_s18  ;;  %1982 = vst.msk [vmem:[#allocation2 + $0x28] sm:$0xf] %vm1971_vm8, %v1800_v55  ;;  %v1775_v55 = vsel %vm9295_vm7, %v7448_v63, %v1774_v28  ;;  %v7468_v28 = vld [vmem:[%s13887_s0 + $0x7c] sm:$0xf] }
 0x134   :  { %1873 = vrot.lane.b32.xlu0 %v1722_v27, %s8452_s18 }
 0x135   :  { %v1792_v60 = vpop.permute.xlu1 %1791 }
 0x136   :  { %1978 = vst.msk [vmem:[#allocation2 + $0x18] sm:$0xf] %vm1971_vm8, %v1792_v60  ;;  %v1790_v45 = vpop.permute.xlu0 %1789  ;;  %v1764_v60 = vsel %vm9295_vm7, %v1762_v46, %v1763_v20  ;;  %v7461_v46 = vld [vmem:[%s13887_s0 + $0x54] sm:$0xf]  ;;  %v7469_v20 = vld [vmem:[%s13887_s0 + $0x84] sm:$0xf] }
 0x137   :  { %1977 = vst.msk [vmem:[#allocation2 + $0x14] sm:$0xf] %vm1971_vm8, %v1790_v45  ;;  %v1750_v45 = vsel %vm9295_vm7, %v1748_v48, %v1749_v4  ;;  %v7464_v48 = vld [vmem:[%s13887_s0 + $0x64] sm:$0xf]  ;;  %v7472_v4 = vld [vmem:[%s13887_s0 + $0x94] sm:$0xf] }
 0x138   :  { %1871 = vrot.lane.b32.xlu2 %v1719_v11, %s8452_s18  ;;  %v1769_v11 = vrot.slane %v1767_v37, 4 }
 0x13a   :  { %v1806_v8 = vpop.permute.xlu2 %1805 }
 0x13b   :  { %1881 = vrot.lane.b32.xlu1 %v1736_v47, %s8452_s18  ;;  %1985 = vst.msk [vmem:[#allocation2 + $0x34] sm:$0xf] %vm1971_vm8, %v1806_v8  ;;  %v1777_v47 = vrot.slane %v1455_v43, 5  ;;  %v7449_v8 = vld [vmem:[%s13887_s0 + $0xc] sm:$0xf] }
 0x13c   :  { %1879 = vrot.lane.b32.xlu0 %v1733_v29, %s8452_s18  ;;  %v7446_v29 = vrot.slane %v1447_v3, 9 }
 0x13d   :  { %v1798_v38 = vpop.permute.xlu1 %1797  ;;  %v1778_v41 = vsel %vm9295_vm7, %v1776_v16, %v1777_v47 }
 0x13e   :  { %1981 = vst.msk [vmem:[#allocation2 + $0x24] sm:$0xf] %vm1971_vm8, %v1798_v38  ;;  %v1796_v12 = vpop.permute.xlu0 %1795  ;;  %v1761_v10 = vsel %vm9295_vm7, %v7446_v29, %v1760_v56  ;;  %v7451_v38 = vld [vmem:[%s13887_s0 + $0x18] sm:$0xf]  ;;  %v7458_v56 = vld [vmem:[%s13887_s0 + $0x40] sm:$0xf] }
 0x13f   :  { %1980 = vst.msk [vmem:[#allocation2 + $0x20] sm:$0xf] %vm1971_vm8, %v1796_v12  ;;  %v7454_v12 = vld [vmem:[%s13887_s0 + $0x28] sm:$0xf]  ;;  %v7478_v29 = vld [vmem:[%s13887_s0 + $0xb8] sm:$0xf] }
 0x140   :  { %1877 = vrot.lane.b32.xlu2 %v1729_v30, %s8452_s18 }
 0x142   :  { %v1812_v39 = vpop.permute.xlu2 %1811 }
 0x143   :  { %1887 = vrot.lane.b32.xlu1 %v1747_v13, %s8452_s18  ;;  %1988 = vst.msk [vmem:[#allocation2 + $0x40] sm:$0xf] %vm1971_vm8, %v1812_v39  ;;  %v1770_v13 = vrot.slane %v1452_v51, 5  ;;  %v7462_v39 = vld [vmem:[%s13887_s0 + $0x58] sm:$0xf] }
 0x144   :  { %1885 = vrot.lane.b32.xlu0 %v1743_v0, %s8452_s18  ;;  %v7481_v51 = vld [vmem:[%s13887_s0 + $0xe4] sm:$0xf] }
 0x145   :  { %v1804_v9 = vpop.permute.xlu1 %1803  ;;  %v1771_v49 = vsel %vm9295_vm7, %v1769_v11, %v1770_v13  ;;  %v7480_v11 = vld [vmem:[%s13887_s0 + $0xc4] sm:$0xf] }
 0x146   :  { %1984 = vst.msk [vmem:[#allocation2 + $0x30] sm:$0xf] %vm1971_vm8, %v1804_v9  ;;  %v1802_v19 = vpop.permute.xlu0 %1801  ;;  %v7456_v9 = vld [vmem:[%s13887_s0 + $0x34] sm:$0xf] }
 0x147   :  { %1983 = vst.msk [vmem:[#allocation2 + $0x2c] sm:$0xf] %vm1971_vm8, %v1802_v19  ;;  %v7459_v19 = vld [vmem:[%s13887_s0 + $0x48] sm:$0xf] }
 0x148   :  { %1883 = vrot.lane.b32.xlu2 %v1740_v44, %s8452_s18 }
 0x14a   :  { %v1818_v61 = vpop.permute.xlu2 %1817 }
 0x14b   :  { %1893 = vrot.lane.b32.xlu1 %v1757_v14, %s8452_s18  ;;  %1991 = vst.msk [vmem:[#allocation2 + $0x4c] sm:$0xf] %vm1971_vm8, %v1818_v61  ;;  %v7452_v14 = vld [vmem:[%s13887_s0 + $0x1c] sm:$0xf]  ;;  %v7471_v61 = vld [vmem:[%s13887_s0 + $0x90] sm:$0xf] }
 0x14c   :  { %1891 = vrot.lane.b32.xlu0 %v1754_v35, %s8452_s18 }
 0x14d   :  { %v1810_v58 = vpop.permute.xlu1 %1809 }
 0x14e   :  { %1987 = vst.msk [vmem:[#allocation2 + $0x3c] sm:$0xf] %vm1971_vm8, %v1810_v58  ;;  %v1808_v27 = vpop.permute.xlu0 %1807  ;;  %v7466_v58 = vld [vmem:[%s13887_s0 + $0x70] sm:$0xf] }
 0x14f   :  { %1986 = vst.msk [vmem:[#allocation2 + $0x38] sm:$0xf] %vm1971_vm8, %v1808_v27 }
 0x150   :  { %1889 = vrot.lane.b32.xlu2 %v1750_v45, %s8452_s18 }
 0x152   :  { %v1824_v6 = vpop.permute.xlu2 %1823 }
 0x153   :  { %1899 = vrot.lane.b32.xlu1 %v1768_v59, %s8452_s18  ;;  %1994 = vst.msk [vmem:[#allocation2 + $0x58] sm:$0xf] %vm1971_vm8, %v1824_v6  ;;  %v7477_v6 = vld [vmem:[%s13887_s0 + $0xb4] sm:$0xf] }
 0x154   :  { %1897 = vrot.lane.b32.xlu0 %v1764_v60, %s8452_s18 }
 0x155   :  { %v1816_v33 = vpop.permute.xlu1 %1815 }
 0x156   :  { %1990 = vst.msk [vmem:[#allocation2 + $0x48] sm:$0xf] %vm1971_vm8, %v1816_v33  ;;  %v1814_v54 = vpop.permute.xlu0 %1813  ;;  %v7467_v33 = vld [vmem:[%s13887_s0 + $0x78] sm:$0xf] }
 0x157   :  { %1989 = vst.msk [vmem:[#allocation2 + $0x44] sm:$0xf] %vm1971_vm8, %v1814_v54  ;;  %v7470_v54 = vld [vmem:[%s13887_s0 + $0x88] sm:$0xf] }
 0x158   :  { %1895 = vrot.lane.b32.xlu2 %v1761_v10, %s8452_s18 }
 0x15a   :  { %v1830_v52 = vpop.permute.xlu2 %1829 }
 0x15b   :  { %1905 = vrot.lane.b32.xlu1 %v1778_v41, %s8452_s18  ;;  %1997 = vst.msk [vmem:[#allocation2 + $0x64] sm:$0xf] %vm1971_vm8, %v1830_v52  ;;  %v7474_v41 = vld [vmem:[%s13887_s0 + $0xa0] sm:$0xf]  ;;  %v7476_v52 = vld [vmem:[%s13887_s0 + $0xac] sm:$0xf] }
 0x15c   :  { %1903 = vrot.lane.b32.xlu0 %v1775_v55, %s8452_s18 }
 0x15d   :  { %v1822_v7 = vpop.permute.xlu1 %1821 }
 0x15e   :  { %1993 = vst.msk [vmem:[#allocation2 + $0x54] sm:$0xf] %vm1971_vm8, %v1822_v7  ;;  %v1820_v57 = vpop.permute.xlu0 %1819 }
 0x15f   :  { %1992 = vst.msk [vmem:[#allocation2 + $0x50] sm:$0xf] %vm1971_vm8, %v1820_v57 }
 0x160   :  { %1901 = vrot.lane.b32.xlu2 %v1771_v49, %s8452_s18 }
 0x162   :  { %v1836_v53 = vpop.permute.xlu2 %1835 }
 0x163   :  { %2169 = vrot.lane.b32.xlu1 %v7451_v38, %s8453_s27  ;;  %2000 = vst.msk [vmem:[#allocation2 + $0x70] sm:$0xf] %vm1971_vm8, %v1836_v53  ;;  %v7473_v38 = vld [vmem:[%s13887_s0 + $0x9c] sm:$0xf]  ;;  %v7479_v53 = vld [vmem:[%s13887_s0 + $0xc0] sm:$0xf] }
 0x164   :  { %2167 = vrot.lane.b32.xlu0 %v7450_v17, %s8453_s27 }
 0x165   :  { %v1828_v15 = vpop.permute.xlu1 %1827 }
 0x166   :  { %1996 = vst.msk [vmem:[#allocation2 + $0x60] sm:$0xf] %vm1971_vm8, %v1828_v15  ;;  %v1826_v1 = vpop.permute.xlu0 %1825  ;;  %v7484_v15 = vld [vmem:[%s13887_s0 + $0xf4] sm:$0xf] }
 0x167   :  { %1995 = vst.msk [vmem:[#allocation2 + $0x5c] sm:$0xf] %vm1971_vm8, %v1826_v1 }
 0x168   :  { %2165 = vrot.lane.b32.xlu2 %v7449_v8, %s8453_s27 }
 0x16a   :  { %v1842_v26 = vpop.permute.xlu2 %1841 }
 0x16b   :  { %2175 = vrot.lane.b32.xlu1 %v7454_v12, %s8453_s27  ;;  %2003 = vst.msk [vmem:[#allocation2 + $0x7c] sm:$0xf] %vm1971_vm8, %v1842_v26  ;;  %v7483_v12 = vld [vmem:[%s13887_s0 + $0xf0] sm:$0xf]  ;;  %v7482_v26 = vld [vmem:[%s13887_s0 + $0xe8] sm:$0xf] }
 0x16c   :  { %2173 = vrot.lane.b32.xlu0 %v7453_v5, %s8453_s27 }
 0x16d   :  { %v1834_v0 = vpop.permute.xlu1 %1833 }
 0x16e   :  { %1999 = vst.msk [vmem:[#allocation2 + $0x6c] sm:$0xf] %vm1971_vm8, %v1834_v0  ;;  %v1832_v23 = vpop.permute.xlu0 %1831  ;;  %v7487_v0 = vld [vmem:[%s13887_s0 + $0x108] sm:$0xf] }
 0x16f   :  { %1998 = vst.msk [vmem:[#allocation2 + $0x68] sm:$0xf] %vm1971_vm8, %v1832_v23 }
 0x170   :  { %2171 = vrot.lane.b32.xlu2 %v7452_v14, %s8453_s27 }
 0x172   :  { %v1848_v36 = vpop.permute.xlu2 %1847 }
 0x173   :  { %2181 = vrot.lane.b32.xlu1 %v7457_v25, %s8453_s27  ;;  %2006 = vst.msk [vmem:[#allocation2 + $0x88] sm:$0xf] %vm1971_vm8, %v1848_v36  ;;  %v7486_v25 = vld [vmem:[%s13887_s0 + $0x100] sm:$0xf]  ;;  %v7485_v36 = vld [vmem:[%s13887_s0 + $0xfc] sm:$0xf] }
 0x174   :  { %2179 = vrot.lane.b32.xlu0 %v7456_v9, %s8453_s27 }
 0x175   :  { %v1840_v30 = vpop.permute.xlu1 %1839 }
 0x176   :  { %2002 = vst.msk [vmem:[#allocation2 + $0x78] sm:$0xf] %vm1971_vm8, %v1840_v30  ;;  %v1838_v32 = vpop.permute.xlu0 %1837  ;;  %v7490_v30 = vld [vmem:[%s13887_s0 + $0x118] sm:$0xf] }
 0x177   :  { %2001 = vst.msk [vmem:[#allocation2 + $0x74] sm:$0xf] %vm1971_vm8, %v1838_v32 }
 0x178   :  { %2177 = vrot.lane.b32.xlu2 %v7455_v18, %s8453_s27 }
 0x17a   :  { %v1854_v2 = vpop.permute.xlu2 %1853 }
 0x17b   :  { %2187 = vrot.lane.b32.xlu1 %v7460_v31, %s8453_s27  ;;  %2009 = vst.msk [vmem:[#allocation2 + $0x94] sm:$0xf] %vm1971_vm8, %v1854_v2  ;;  %v7489_v31 = vld [vmem:[%s13887_s0 + $0x114] sm:$0xf]  ;;  %v7488_v2 = vld [vmem:[%s13887_s0 + $0x10c] sm:$0xf] }
 0x17c   :  { %2185 = vrot.lane.b32.xlu0 %v7459_v19, %s8453_s27 }
 0x17d   :  { %v1846_v34 = vpop.permute.xlu1 %1845 }
 0x17e   :  { %2005 = vst.msk [vmem:[#allocation2 + $0x84] sm:$0xf] %vm1971_vm8, %v1846_v34  ;;  %v1844_v35 = vpop.permute.xlu0 %1843  ;;  %v7493_v34 = vld [vmem:[%s13887_s0 + $0x12c] sm:$0xf] }
 0x17f   :  { %2004 = vst.msk [vmem:[#allocation2 + $0x80] sm:$0xf] %vm1971_vm8, %v1844_v35 }
 0x180   :  { %2183 = vrot.lane.b32.xlu2 %v7458_v56, %s8453_s27 }
 0x182   :  { %v1860_v44 = vpop.permute.xlu2 %1859 }
 0x183   :  { %2193 = vrot.lane.b32.xlu1 %v7463_v22, %s8453_s27  ;;  %2012 = vst.msk [vmem:[#allocation2 + $0xa0] sm:$0xf] %vm1971_vm8, %v1860_v44  ;;  %v7492_v22 = vld [vmem:[%s13887_s0 + $0x124] sm:$0xf]  ;;  %v7491_v44 = vld [vmem:[%s13887_s0 + $0x120] sm:$0xf] }
 0x184   :  { %2191 = vrot.lane.b32.xlu0 %v7462_v39, %s8453_s27 }
 0x185   :  { %v1852_v37 = vpop.permute.xlu1 %1851 }
 0x186   :  { %2008 = vst.msk [vmem:[#allocation2 + $0x90] sm:$0xf] %vm1971_vm8, %v1852_v37  ;;  %v1850_v42 = vpop.permute.xlu0 %1849  ;;  %v7496_v37 = vld [vmem:[%s13887_s0 + $0x13c] sm:$0xf] }
 0x187   :  { %2007 = vst.msk [vmem:[#allocation2 + $0x8c] sm:$0xf] %vm1971_vm8, %v1850_v42 }
 0x188   :  { %2189 = vrot.lane.b32.xlu2 %v7461_v46, %s8453_s27 }
 0x18a   :  { %v1866_v27 = vpop.permute.xlu2 %1865 }
 0x18b   :  { %2199 = vrot.lane.b32.xlu1 %v7466_v58, %s8453_s27  ;;  %2015 = vst.msk [vmem:[#allocation2 + $0xac] sm:$0xf] %vm1971_vm8, %v1866_v27  ;;  %v7495_v58 = vld [vmem:[%s13887_s0 + $0x138] sm:$0xf]  ;;  %v7494_v27 = vld [vmem:[%s13887_s0 + $0x130] sm:$0xf] }
 0x18c   :  { %2197 = vrot.lane.b32.xlu0 %v7465_v40, %s8453_s27 }
 0x18d   :  { %v1858_v59 = vpop.permute.xlu1 %1857 }
 0x18e   :  { %2011 = vst.msk [vmem:[#allocation2 + $0x9c] sm:$0xf] %vm1971_vm8, %v1858_v59  ;;  %v1856_v50 = vpop.permute.xlu0 %1855  ;;  %v7499_v59 = vld [vmem:[%s13887_s0 + $0x150] sm:$0xf] }
 0x18f   :  { %2010 = vst.msk [vmem:[#allocation2 + $0x98] sm:$0xf] %vm1971_vm8, %v1856_v50 }
 0x190   :  { %2195 = vrot.lane.b32.xlu2 %v7464_v48, %s8453_s27 }
 0x192   :  { %v1872_v16 = vpop.permute.xlu2 %1871 }
 0x193   :  { %2205 = vrot.lane.b32.xlu1 %v7469_v20, %s8453_s27  ;;  %2018 = vst.msk [vmem:[#allocation2 + $0xb8] sm:$0xf] %vm1971_vm8, %v1872_v16  ;;  %v7498_v20 = vld [vmem:[%s13887_s0 + $0x148] sm:$0xf]  ;;  %v7497_v16 = vld [vmem:[%s13887_s0 + $0x144] sm:$0xf] }
 0x194   :  { %2203 = vrot.lane.b32.xlu0 %v7468_v28, %s8453_s27 }
 0x195   :  { %v1864_v43 = vpop.permute.xlu1 %1863 }
 0x196   :  { %2014 = vst.msk [vmem:[#allocation2 + $0xa8] sm:$0xf] %vm1971_vm8, %v1864_v43  ;;  %v1862_v60 = vpop.permute.xlu0 %1861  ;;  %v7502_v43 = vld [vmem:[%s13887_s0 + $0x160] sm:$0xf] }
 0x197   :  { %2013 = vst.msk [vmem:[#allocation2 + $0xa4] sm:$0xf] %vm1971_vm8, %v1862_v60 }
 0x198   :  { %2201 = vrot.lane.b32.xlu2 %v7467_v33, %s8453_s27 }
 0x19a   :  { %v1878_v63 = vpop.permute.xlu2 %1877 }
 0x19b   :  { %2211 = vrot.lane.b32.xlu1 %v7472_v4, %s8453_s27  ;;  %2021 = vst.msk [vmem:[#allocation2 + $0xc4] sm:$0xf] %vm1971_vm8, %v1878_v63  ;;  %v7501_v4 = vld [vmem:[%s13887_s0 + $0x15c] sm:$0xf]  ;;  %v7514_v63 = vld [vmem:[%s13887_s0 + $0x10] sm:$0xf] }
 0x19c   :  { %2209 = vrot.lane.b32.xlu0 %v7471_v61, %s8453_s27 }
 0x19d   :  { %v1870_v47 = vpop.permute.xlu1 %1869 }
 0x19e   :  { %2017 = vst.msk [vmem:[#allocation2 + $0xb4] sm:$0xf] %vm1971_vm8, %v1870_v47  ;;  %v1868_v45 = vpop.permute.xlu0 %1867  ;;  %v7505_v47 = vld [vmem:[%s13887_s0 + $0x174] sm:$0xf] }
 0x19f   :  { %2016 = vst.msk [vmem:[#allocation2 + $0xb0] sm:$0xf] %vm1971_vm8, %v1868_v45 }
 0x1a0   :  { %2207 = vrot.lane.b32.xlu2 %v7470_v54, %s8453_s27  ;;  %v7508_v54 = vld [vmem:[%s13887_s0 + $0x184] sm:$0xf] }
 0x1a2   :  { %v1884_v7 = vpop.permute.xlu2 %1883 }
 0x1a3   :  { %2217 = vrot.lane.b32.xlu1 %v7475_v62, %s8453_s27  ;;  %2024 = vst.msk [vmem:[#allocation2 + $0xd0] sm:$0xf] %vm1971_vm8, %v1884_v7  ;;  %v7504_v62 = vld [vmem:[%s13887_s0 + $0x16c] sm:$0xf] }
 0x1a4   :  { %2215 = vrot.lane.b32.xlu0 %v7474_v41, %s8453_s27  ;;  %v7513_v7 = vld [vmem:[%s13887_s0 + $0xc] sm:$0xf] }
 0x1a5   :  { %v1876_v3 = vpop.permute.xlu1 %1875 }
 0x1a6   :  { %2020 = vst.msk [vmem:[#allocation2 + $0xc0] sm:$0xf] %vm1971_vm8, %v1876_v3  ;;  %v1874_v55 = vpop.permute.xlu0 %1873  ;;  %v7500_v3 = vld [vmem:[%s13887_s0 + $0x154] sm:$0xf] }
 0x1a7   :  { %2019 = vst.msk [vmem:[#allocation2 + $0xbc] sm:$0xf] %vm1971_vm8, %v1874_v55  ;;  %v2532_v55 = vshrl.u32 %v7514_v63, 16 }
 0x1a8   :  { %2213 = vrot.lane.b32.xlu2 %v7473_v38, %s8453_s27 }
 0x1aa   :  { %v1890_v13 = vpop.permute.xlu2 %1889 }
 0x1ab   :  { %2223 = vrot.lane.b32.xlu1 %v7478_v29, %s8453_s27  ;;  %2027 = vst.msk [vmem:[#allocation2 + $0xdc] sm:$0xf] %vm1971_vm8, %v1890_v13  ;;  %v2528_v29 = vshll.u32 %v7514_v63, 16  ;;  %v2522_v13 = vshll.u32 %v7513_v7, 16  ;;  %v7509_v63 = vld [vmem:[%s13887_s0 + $0x18c] sm:$0xf] }
 0x1ac   :  { %2221 = vrot.lane.b32.xlu0 %v7477_v6, %s8453_s27 }
 0x1ad   :  { %v1882_v10 = vpop.permute.xlu1 %1881 }
 0x1ae   :  { %2023 = vst.msk [vmem:[#allocation2 + $0xcc] sm:$0xf] %vm1971_vm8, %v1882_v10  ;;  %v1880_v57 = vpop.permute.xlu0 %1879  ;;  %v7507_v10 = vld [vmem:[%s13887_s0 + $0x180] sm:$0xf] }
 0x1af   :  { %2022 = vst.msk [vmem:[#allocation2 + $0xc8] sm:$0xf] %vm1971_vm8, %v1880_v57  ;;  %v2534_v57 = vrot.slane %v2532_v55, 4 }
 0x1b0   :  { %2219 = vrot.lane.b32.xlu2 %v7476_v52, %s8453_s27 }
 0x1b2   :  { %v1896_v1 = vpop.permute.xlu2 %1895 }
 0x1b3   :  { %2229 = vrot.lane.b32.xlu1 %v7481_v51, %s8453_s27  ;;  %2030 = vst.msk [vmem:[#allocation2 + $0xe8] sm:$0xf] %vm1971_vm8, %v1896_v1  ;;  %v10497_v51 = vrot.slane %v2528_v29, 5 }
 0x1b4   :  { %2227 = vrot.lane.b32.xlu0 %v7480_v11, %s8453_s27  ;;  %v2519_v11 = vshrl.u32 %v7513_v7, 16 }
 0x1b5   :  { %v1888_v17 = vpop.permute.xlu1 %1887 }
 0x1b6   :  { %2026 = vst.msk [vmem:[#allocation2 + $0xd8] sm:$0xf] %vm1971_vm8, %v1888_v17  ;;  %v1886_v49 = vpop.permute.xlu0 %1885  ;;  %v7519_v17 = vld [vmem:[%s13887_s0 + $0x24] sm:$0xf] }
 0x1b7   :  { %2025 = vst.msk [vmem:[#allocation2 + $0xd4] sm:$0xf] %vm1971_vm8, %v1886_v49  ;;  %v7503_v49 = vld [vmem:[%s13887_s0 + $0x168] sm:$0xf]  ;;  %v2567_v1 = vshrl.u32 %v7519_v17, 16 }
 0x1b8   :  { %2225 = vrot.lane.b32.xlu2 %v7479_v53, %s8453_s27  ;;  %v2535_v53 = vor.u32 %v2534_v57, %v10497_v51  ;;  %v7526_v57 = vld [vmem:[%s13887_s0 + $0x40] sm:$0xf] }
 0x1ba   :  { %v1902_v23 = vpop.permute.xlu2 %1901 }
 0x1bb   :  { %2235 = vrot.lane.b32.xlu1 %v7484_v15, %s8453_s27  ;;  %2033 = vst.msk [vmem:[#allocation2 + $0xf4] sm:$0xf] %vm1971_vm8, %v1902_v23  ;;  %v7515_v15 = vld [vmem:[%s13887_s0 + $0x14] sm:$0x1]  ;;  %v7517_v23 = vld [vmem:[%s13887_s0 + $0x1c] sm:$0xf] }
 0x1bc   :  { %2233 = vrot.lane.b32.xlu0 %v7483_v12, %s8453_s27  ;;  %v7511_v12 = vld [vmem:[%s13887_s0 + $0x198] sm:$0xf] }
 0x1bd   :  { %v1894_v5 = vpop.permute.xlu1 %1893 }
 0x1be   :  { %2029 = vst.msk [vmem:[#allocation2 + $0xe4] sm:$0xf] %vm1971_vm8, %v1894_v5  ;;  %v1892_v8 = vpop.permute.xlu0 %1891  ;;  %v2570_v5 = vshll.u32 %v7519_v17, 16 }
 0x1bf   :  { %2028 = vst.msk [vmem:[#allocation2 + $0xe0] sm:$0xf] %vm1971_vm8, %v1892_v8  ;;  %v2521_v8 = vrot.slane %v2519_v11, 4 }
 0x1c0   :  { %2231 = vrot.lane.b32.xlu2 %v7482_v26, %s8453_s27  ;;  %v10524_v26 = vld [vmem:[%s13887_s0 + $0x28] sm:$0xf] }
 0x1c2   :  { %v2166_v32 = vpop.permute.xlu2 %2165 }
 0x1c3   :  { %2241 = vrot.lane.b32.xlu1 %v7487_v0, %s8453_s27  ;;  %2358 = vst.msk [vmem:[#allocation2] sm:$0xf] %vm2357_vm9, %v2166_v32  ;;  %v2538_v0 = vshll.u32 %v7515_v15, 16  ;;  %v2556_v32 = vshrl.u32 %v7517_v23, 16 }
 0x1c4   :  { %2239 = vrot.lane.b32.xlu0 %v7486_v25, %s8453_s27  ;;  %v2524_v25 = vrot.slane %v2522_v13, 5 }
 0x1c5   :  { %v1900_v9 = vpop.permute.xlu1 %1899 }
 0x1c6   :  { %2032 = vst.msk [vmem:[#allocation2 + $0xf0] sm:$0xf] %vm1971_vm8, %v1900_v9  ;;  %v1898_v14 = vpop.permute.xlu0 %1897 }
 0x1c7   :  { %2031 = vst.msk [vmem:[#allocation2 + $0xec] sm:$0xf] %vm1971_vm8, %v1898_v14  ;;  %v2572_v14 = vrot.slane %v2570_v5, 5  ;;  %v2628_v5 = vshrl.u32 %v7526_v57, 16 }
 0x1c8   :  { %2237 = vrot.lane.b32.xlu2 %v7485_v36, %s8453_s27 }
 0x1ca   :  { %v2172_v35 = vpop.permute.xlu2 %2171 }
 0x1cb   :  { %2247 = vrot.lane.b32.xlu1 %v7490_v30, %s8453_s27  ;;  %2361 = vst.msk [vmem:[#allocation2 + $0xc] sm:$0xf] %vm2357_vm9, %v2172_v35  ;;  %v2569_v30 = vrot.slane %v2567_v1, 4  ;;  %v2624_v1 = vshll.u32 %v7526_v57, 16 }
 0x1cc   :  { %2245 = vrot.lane.b32.xlu0 %v7489_v31, %s8453_s27  ;;  %v2552_v31 = vshll.u32 %v7517_v23, 16 }
 0x1cd   :  { %v1906_v19 = vpop.permute.xlu1 %1905 }
 0x1ce   :  { %2035 = vst.msk [vmem:[#allocation2 + $0xfc] sm:$0xf] %vm1971_vm8, %v1906_v19  ;;  %v1904_v18 = vpop.permute.xlu0 %1903  ;;  %v7510_v19 = vld [vmem:[%s13887_s0 + $0x190] sm:$0xf] }
 0x1cf   :  { %2034 = vst.msk [vmem:[#allocation2 + $0xf8] sm:$0xf] %vm1971_vm8, %v1904_v18  ;;  %v2540_v18 = vrot.slane %v2538_v0, 5 }
 0x1d0   :  { %2243 = vrot.lane.b32.xlu2 %v7488_v2, %s8453_s27  ;;  %v2576_v2 = vshll.u32 %v10524_v26, 16 }
 0x1d2   :  { %v2178_v42 = vpop.permute.xlu2 %2177 }
 0x1d3   :  { %2253 = vrot.lane.b32.xlu1 %v7493_v34, %s8453_s27  ;;  %2364 = vst.msk [vmem:[#allocation2 + $0x18] sm:$0xf] %vm2357_vm9, %v2178_v42  ;;  %v2536_v34 = vrot.slane %v2535_v53, 4  ;;  %v10542_v42 = vrot.slane %v2552_v31, 5 }
 0x1d4   :  { %2251 = vrot.lane.b32.xlu0 %v7492_v22, %s8453_s27  ;;  %v2525_v22 = vor.u32 %v2524_v25, %v2521_v8 }
 0x1d5   :  { %v2170_v39 = vpop.permute.xlu1 %2169 }
 0x1d6   :  { %2360 = vst.msk [vmem:[#allocation2 + $0x8] sm:$0xf] %vm2357_vm9, %v2170_v39  ;;  %v2168_v56 = vpop.permute.xlu0 %2167  ;;  %v7523_v39 = vld [vmem:[%s13887_s0 + $0x34] sm:$0xf] }
 0x1d7   :  { %2359 = vst.msk [vmem:[#allocation2 + $0x4] sm:$0xf] %vm2357_vm9, %v2168_v56  ;;  %v2573_v56 = vor.u32 %v2572_v14, %v2569_v30  ;;  %v7532_v14 = vld [vmem:[%s13887_s0 + $0x58] sm:$0xf] }
 0x1d8   :  { %2249 = vrot.lane.b32.xlu2 %v7491_v44, %s8453_s27  ;;  %v2541_v44 = vsel %vm8551_vm2, %v2536_v34, %v2540_v18  ;;  %v10601_v18 = vrot.slane %v2624_v1, 5 }
 0x1da   :  { %v2184_v50 = vpop.permute.xlu2 %2183 }
 0x1db   :  { %2259 = vrot.lane.b32.xlu1 %v7496_v37, %s8453_s27  ;;  %2367 = vst.msk [vmem:[#allocation2 + $0x24] sm:$0xf] %vm2357_vm9, %v2184_v50  ;;  %v7506_v37 = vld [vmem:[%s13887_s0 + $0x178] sm:$0xf]  ;;  %v7522_v50 = vld [vmem:[%s13887_s0 + $0x30] sm:$0xf] }
 0x1dc   :  { %2257 = vrot.lane.b32.xlu0 %v7495_v58, %s8453_s27  ;;  %v7518_v58 = vld [vmem:[%s13887_s0 + $0x20] sm:$0x1] }
 0x1dd   :  { %v2176_v40 = vpop.permute.xlu1 %2175 }
 0x1de   :  { %2363 = vst.msk [vmem:[#allocation2 + $0x14] sm:$0xf] %vm2357_vm9, %v2176_v40  ;;  %v2174_v46 = vpop.permute.xlu0 %2173  ;;  %v2558_v40 = vrot.slane %v2556_v32, 4  ;;  %v10594_v32 = vld [vmem:[%s13887_s0 + $0x4c] sm:$0xf] }
 0x1df   :  { %2362 = vst.msk [vmem:[#allocation2 + $0x10] sm:$0xf] %vm2357_vm9, %v2174_v46  ;;  %v2600_v46 = vshll.u32 %v7523_v39, 16 }
 0x1e0   :  { %2255 = vrot.lane.b32.xlu2 %v7494_v27, %s8453_s27  ;;  %v10551_v27 = vrot.slane %v2576_v2, 5  ;;  %v2672_v2 = vshll.u32 %v7532_v14, 16 }
 0x1e2   :  { %v2190_v60 = vpop.permute.xlu2 %2189 }
 0x1e3   :  { %2265 = vrot.lane.b32.xlu1 %v7499_v59, %s8453_s27  ;;  %2370 = vst.msk [vmem:[#allocation2 + $0x30] sm:$0xf] %vm2357_vm9, %v2190_v60  ;;  %v2526_v59 = vrot.slane %v2525_v22, 4  ;;  %v2591_v60 = vshrl.u32 %v7522_v50, 16  ;;  %v2630_v22 = vrot.slane %v2628_v5, 4 }
 0x1e4   :  { %2263 = vrot.lane.b32.xlu0 %v7498_v20, %s8453_s27  ;;  %v2604_v20 = vshrl.u32 %v7523_v39, 16 }
 0x1e5   :  { %v2182_v28 = vpop.permute.xlu1 %2181 }
 0x1e6   :  { %2366 = vst.msk [vmem:[#allocation2 + $0x20] sm:$0xf] %vm2357_vm9, %v2182_v28  ;;  %v2180_v48 = vpop.permute.xlu0 %2179 }
 0x1e7   :  { %2365 = vst.msk [vmem:[#allocation2 + $0x1c] sm:$0xf] %vm2357_vm9, %v2180_v48  ;;  %v2574_v48 = vrot.slane %v2573_v56, 4 }
 0x1e8   :  { %2261 = vrot.lane.b32.xlu2 %v7497_v16, %s8453_s27  ;;  %v7516_v16 = vld [vmem:[%s13887_s0 + $0x18] sm:$0xf] }
 0x1e9   :  { %v2543_v55 = vshrl.u32 %v7516_v16, 16  ;;  %v2579_v7 = vsel %vm8551_vm2, %v2574_v48, %v10551_v27  ;;  %v7533_v48 = vld [vmem:[%s13887_s0 + $0x5c] sm:$0x1] }
 0x1ea   :  { %v2196_v45 = vpop.permute.xlu2 %2195 }
 0x1eb   :  { %2271 = vrot.lane.b32.xlu1 %v7502_v43, %s8453_s27  ;;  %2373 = vst.msk [vmem:[#allocation2 + $0x3c] sm:$0xf] %vm2357_vm9, %v2196_v45  ;;  %v2562_v43 = vshll.u32 %v7518_v58, 16  ;;  %v2606_v45 = vrot.slane %v2604_v20, 4 }
 0x1ec   :  { %2269 = vrot.lane.b32.xlu0 %v7501_v4, %s8453_s27  ;;  %v2559_v4 = vor.u32 %v2558_v40, %v10542_v42 }
 0x1ed   :  { %v2188_v61 = vpop.permute.xlu1 %2187  ;;  %v2564_v29 = vrot.slane %v2562_v43, 5  ;;  %v7525_v43 = vld [vmem:[%s13887_s0 + $0x3c] sm:$0xf] }
 0x1ee   :  { %2369 = vst.msk [vmem:[#allocation2 + $0x2c] sm:$0xf] %vm2357_vm9, %v2188_v61  ;;  %v2186_v33 = vpop.permute.xlu0 %2185  ;;  %v2594_v61 = vshll.u32 %v7522_v50, 16  ;;  %v2631_v50 = vor.u32 %v2630_v22, %v10601_v18  ;;  %v2652_v22 = vshrl.u32 %v10594_v32, 16 }
 0x1ef   :  { %2368 = vst.msk [vmem:[#allocation2 + $0x28] sm:$0xf] %vm2357_vm9, %v2186_v33 }
 0x1f0   :  { %2267 = vrot.lane.b32.xlu2 %v7500_v3, %s8453_s27  ;;  %v7524_v3 = vld [vmem:[%s13887_s0 + $0x38] sm:$0x1] }
 0x1f1   :  { %v2610_v13 = vshll.u32 %v7524_v3, 16 }
 0x1f2   :  { %v2202_v38 = vpop.permute.xlu2 %2201 }
 0x1f3   :  { %2277 = vrot.lane.b32.xlu1 %v7505_v47, %s8453_s27  ;;  %2376 = vst.msk [vmem:[#allocation2 + $0x48] sm:$0xf] %vm2357_vm9, %v2202_v38  ;;  %v2531_v47 = vsel %vm8551_vm2, %v2526_v59, %v10497_v51  ;;  %v2593_v38 = vrot.slane %v2591_v60, 4  ;;  %v2596_v51 = vrot.slane %v2594_v61, 5  ;;  %v2612_v23 = vrot.slane %v2610_v13, 5 }
 0x1f4   :  { %2275 = vrot.lane.b32.xlu0 %v7504_v62, %s8453_s27  ;;  %v10561_v62 = vrot.slane %v2600_v46, 5  ;;  %v7521_v46 = vld [vmem:[%s13887_s0 + $0x2c] sm:$0x1] }
 0x1f5   :  { %v2194_v41 = vpop.permute.xlu1 %2193  ;;  %v2597_v0 = vor.u32 %v2596_v51, %v2593_v38  ;;  %v2632_v38 = vrot.slane %v2631_v50, 4  ;;  %v7530_v50 = vld [vmem:[%s13887_s0 + $0x50] sm:$0x1] }
 0x1f6   :  { %2372 = vst.msk [vmem:[#allocation2 + $0x38] sm:$0xf] %vm2357_vm9, %v2194_v41  ;;  %v2192_v6 = vpop.permute.xlu0 %2191  ;;  %v2607_v11 = vor.u32 %v2606_v45, %v10561_v62 }
 0x1f7   :  { %2371 = vst.msk [vmem:[#allocation2 + $0x34] sm:$0xf] %vm2357_vm9, %v2192_v6  ;;  %v2546_v6 = vshll.u32 %v7516_v16, 16  ;;  %v2598_v39 = vrot.slane %v2597_v0, 4 }
 0x1f8   :  { %2273 = vrot.lane.b32.xlu2 %v7503_v49, %s8453_s27  ;;  %v2545_v49 = vrot.slane %v2543_v55, 4  ;;  %v2608_v25 = vrot.slane %v2607_v11, 4  ;;  %v7537_v55 = vld [vmem:[%s13887_s0 + $0x6c] sm:$0xf] }
 0x1fa   :  { %v2208_v36 = vpop.permute.xlu2 %2207  ;;  %v2613_v56 = vsel %vm8551_vm2, %v2608_v25, %v2612_v23 }
 0x1fb   :  { %2283 = vrot.lane.b32.xlu1 %v7508_v54, %s8453_s27  ;;  %2379 = vst.msk [vmem:[#allocation2 + $0x54] sm:$0xf] %vm2357_vm9, %v2208_v36  ;;  %v7528_v54 = vld [vmem:[%s13887_s0 + $0x48] sm:$0xf]  ;;  %v2580_v36 = vshrl.u32 %v10524_v26, 16  ;;  %v2648_v26 = vshll.u32 %v10594_v32, 16 }
 0x1fc   :  { %2281 = vrot.lane.b32.xlu0 %v7507_v10, %s8453_s27  ;;  %v2560_v10 = vrot.slane %v2559_v4, 4  ;;  %v2639_v17 = vshrl.u32 %v7528_v54, 16  ;;  %v10626_v4 = vrot.slane %v2672_v2, 5 }
 0x1fd   :  { %v2200_v52 = vpop.permute.xlu1 %2199 }
 0x1fe   :  { %2375 = vst.msk [vmem:[#allocation2 + $0x44] sm:$0xf] %vm2357_vm9, %v2200_v52  ;;  %v2198_v9 = vpop.permute.xlu0 %2197  ;;  %v2642_v52 = vshll.u32 %v7528_v54, 16  ;;  %v2565_v53 = vsel %vm8551_vm2, %v2560_v10, %v2564_v29  ;;  %v2615_v54 = vshrl.u32 %v7525_v43, 16  ;;  %v2618_v29 = vshll.u32 %v7525_v43, 16 }
 0x1ff   :  { %2374 = vst.msk [vmem:[#allocation2 + $0x40] sm:$0xf] %vm2357_vm9, %v2198_v9  ;;  %v2641_v9 = vrot.slane %v2639_v17, 4  ;;  %v2682_v10 = vshll.u32 %v7533_v48, 16  ;;  %v2711_v17 = vshrl.u32 %v7537_v55, 16 }
 0x200   :  { %2279 = vrot.lane.b32.xlu2 %v7506_v37, %s8453_s27  ;;  %v2644_v30 = vrot.slane %v2642_v52, 5  ;;  %v2676_v37 = vshrl.u32 %v7532_v14, 16  ;;  %v2714_v52 = vshll.u32 %v7537_v55, 16  ;;  %v7542_v43 = vld [vmem:[%s13887_s0 + $0x80] sm:$0x1] }
 0x201   :  { %v2684_v0 = vrot.slane %v2682_v10, 5  ;;  %v2713_v23 = vrot.slane %v2711_v17, 4  ;;  %v7546_v55 = vld [vmem:[%s13887_s0 + $0x90] sm:$0xf] }
 0x202   :  { %v2214_v33 = vpop.permute.xlu2 %2213  ;;  %v2645_v58 = vor.u32 %v2644_v30, %v2641_v9  ;;  %v2678_v60 = vrot.slane %v2676_v37, 4  ;;  %v2716_v9 = vrot.slane %v2714_v52, 5  ;;  %v2783_v17 = vshrl.u32 %v7546_v55, 16 }
 0x203   :  { %2289 = vrot.lane.b32.xlu1 %v7511_v12, %s8453_s27  ;;  %2382 = vst.msk [vmem:[#allocation2 + $0x60] sm:$0xf] %vm2357_vm9, %v2214_v33  ;;  %v2548_v12 = vrot.slane %v2546_v6, 5  ;;  %v2786_v52 = vshll.u32 %v7546_v55, 16 }
 0x204   :  { %2287 = vrot.lane.b32.xlu0 %v7510_v19, %s8453_s27  ;;  %v7527_v19 = vld [vmem:[%s13887_s0 + $0x44] sm:$0x1]  ;;  %v2646_v45 = vrot.slane %v2645_v58, 4  ;;  %v2679_v51 = vor.u32 %v2678_v60, %v10626_v4  ;;  %v7540_v58 = vld [vmem:[%s13887_s0 + $0x78] sm:$0xf] }
 0x205   :  { %v2206_v35 = vpop.permute.xlu1 %2205  ;;  %v2549_v34 = vor.u32 %v2548_v12, %v2545_v49  ;;  %v2634_v40 = vshll.u32 %v7527_v19, 16  ;;  %v2617_v49 = vrot.slane %v2615_v54, 4  ;;  %v2735_v48 = vshrl.u32 %v7540_v58, 16 }
 0x206   :  { %2378 = vst.msk [vmem:[#allocation2 + $0x50] sm:$0xf] %vm2357_vm9, %v2206_v35  ;;  %v2204_v28 = vpop.permute.xlu0 %2203  ;;  %v7512_v35 = vld [vmem:[%s13887_s0 + $0x19c] sm:$0xf] }
 0x207   :  { %2377 = vst.msk [vmem:[#allocation2 + $0x4c] sm:$0xf] %vm2357_vm9, %v2204_v28  ;;  %v2550_v20 = vrot.slane %v2549_v34, 4  ;;  %v2582_v28 = vrot.slane %v2580_v36, 4  ;;  %v10662_v34 = vld [vmem:[%s13887_s0 + $0x70] sm:$0xf] }
 0x208   :  { %2285 = vrot.lane.b32.xlu2 %v7509_v63, %s8453_s27  ;;  %v2636_v63 = vrot.slane %v2634_v40, 5  ;;  %v2720_v32 = vshll.u32 %v10662_v34, 16 }
 0x209   :  { %v2583_v6 = vor.u32 %v2582_v28, %v10551_v27  ;;  %v7535_v27 = vld [vmem:[%s13887_s0 + $0x64] sm:$0xf]  ;;  %v2654_v28 = vrot.slane %v2652_v22, 4  ;;  %v7550_v22 = vld [vmem:[%s13887_s0 + $0xa0] sm:$0xf] }
 0x20a   :  { %v2220_v8 = vpop.permute.xlu2 %2219  ;;  %v2637_v5 = vsel %vm8551_vm2, %v2632_v38, %v2636_v63  ;;  %v2696_v30 = vshll.u32 %v7535_v27, 16  ;;  %v2700_v14 = vshrl.u32 %v7535_v27, 16  ;;  %v2737_v38 = vrot.slane %v2735_v48, 4 }
 0x20b   :  { %3288 = vrot.lane.b32.xlu1 %v2541_v44, %s8454_s14  ;;  %2385 = vst.msk [vmem:[#allocation2 + $0x6c] sm:$0xf] %vm2357_vm9, %v2220_v8  ;;  %v7531_v44 = vld [vmem:[%s13887_s0 + $0x54] sm:$0xf]  ;;  %v2584_v12 = vrot.slane %v2583_v6, 4  ;;  %v2658_v6 = vshll.u32 %v7530_v50, 16 }
 0x20c   :  { %3286 = vrot.lane.b32.xlu0 %v2531_v47, %s8454_s14  ;;  %v2663_v61 = vshrl.u32 %v7531_v44, 16  ;;  %v2666_v16 = vshll.u32 %v7531_v44, 16  ;;  %v2603_v47 = vsel %vm8551_vm2, %v2598_v39, %v10561_v62  ;;  %v2555_v62 = vsel %vm8551_vm2, %v2550_v20, %v10542_v42  ;;  %v7536_v20 = vld [vmem:[%s13887_s0 + $0x68] sm:$0x1] }
 0x20d   :  { %v2212_v41 = vpop.permute.xlu1 %2211  ;;  %v2620_v42 = vrot.slane %v2618_v29, 5  ;;  %v10675_v40 = vrot.slane %v2696_v30, 5  ;;  %v2702_v44 = vrot.slane %v2700_v14, 4  ;;  %v2706_v29 = vshll.u32 %v7536_v20, 16  ;;  %v10725_v14 = vld [vmem:[%s13887_s0 + $0x94] sm:$0xf] }
 0x20e   :  { %2381 = vst.msk [vmem:[#allocation2 + $0x5c] sm:$0xf] %vm2357_vm9, %v2212_v41  ;;  %v2210_v15 = vpop.permute.xlu0 %2209  ;;  %v10631_v41 = vrot.slane %v2648_v26, 5  ;;  %v2665_v57 = vrot.slane %v2663_v61, 4  ;;  %v2668_v11 = vrot.slane %v2666_v16, 5  ;;  %v2717_v26 = vor.u32 %v2716_v9, %v2713_v23 }
 0x20f   :  { %2380 = vst.msk [vmem:[#allocation2 + $0x58] sm:$0xf] %vm2357_vm9, %v2210_v15  ;;  %v2621_v36 = vor.u32 %v2620_v42, %v2617_v49  ;;  %v2703_v54 = vor.u32 %v2702_v44, %v10675_v40  ;;  %v2708_v49 = vrot.slane %v2706_v29, 5  ;;  %v2660_v27 = vrot.slane %v2658_v6, 5  ;;  %v7549_v20 = vld [vmem:[%s13887_s0 + $0x9c] sm:$0xf] }
 0x210   :  { %2291 = vrot.lane.b32.xlu2 %v7512_v35, %s8453_s27  ;;  %v2651_v13 = vsel %vm8551_vm2, %v2646_v45, %v10631_v41  ;;  %v2669_v8 = vor.u32 %v2668_v11, %v2665_v57  ;;  %v2718_v63 = vrot.slane %v2717_v26, 4  ;;  %v2655_v10 = vor.u32 %v2654_v28, %v10631_v41  ;;  %v7544_v41 = vld [vmem:[%s13887_s0 + $0x88] sm:$0xf]  ;;  %v7551_v6 = vld [vmem:[%s13887_s0 + $0xa4] sm:$0x1]  ;;  %s8456_s27 = smov 20  }
 0x211   :  { %v2788_v23 = vrot.slane %v2786_v52, 5  ;;  %v2792_v26 = vshll.u32 %v10725_v14, 16 }
 0x212   :  { %v2226_v33 = vpop.permute.xlu2 %2225  ;;  %v2670_v2 = vrot.slane %v2669_v8, 4 }
 0x213   :  { %3294 = vrot.lane.b32.xlu1 %v2579_v7, %s8454_s14  ;;  %2388 = vst.msk [vmem:[#allocation2 + $0x78] sm:$0xf] %vm2357_vm9, %v2226_v33  ;;  %v2586_v7 = vshll.u32 %v7521_v46, 16  ;;  %v2622_v46 = vrot.slane %v2621_v36, 4  ;;  %v7534_v33 = vld [vmem:[%s13887_s0 + $0x60] sm:$0xf] }
 0x214   :  { %3292 = vrot.lane.b32.xlu0 %v2565_v53, %s8454_s14  ;;  %v2680_v53 = vrot.slane %v2679_v51, 4  ;;  %v2675_v60 = vsel %vm8551_vm2, %v2670_v2, %v10626_v4  ;;  %v2687_v51 = vshrl.u32 %v7534_v33, 16  ;;  %v2690_v57 = vshll.u32 %v7534_v33, 16 }
 0x215   :  { %v2218_v31 = vpop.permute.xlu1 %2217  ;;  %v2588_v1 = vrot.slane %v2586_v7, 5  ;;  %v2754_v7 = vshll.u32 %v7542_v43, 16  ;;  %v2807_v33 = vshrl.u32 %v7549_v20, 16 }
 0x216   :  { %2384 = vst.msk [vmem:[#allocation2 + $0x68] sm:$0xf] %vm2357_vm9, %v2218_v31  ;;  %v2216_v59 = vpop.permute.xlu0 %2215  ;;  %v7541_v31 = vld [vmem:[%s13887_s0 + $0x7c] sm:$0xf]  ;;  %v2685_v39 = vsel %vm8551_vm2, %v2680_v53, %v2684_v0  ;;  %v2692_v53 = vrot.slane %v2690_v57, 5 }
 0x217   :  { %2383 = vst.msk [vmem:[#allocation2 + $0x64] sm:$0xf] %vm2357_vm9, %v2216_v59  ;;  %v2589_v35 = vsel %vm8551_vm2, %v2584_v12, %v2588_v1  ;;  %v2744_v37 = vshll.u32 %v7541_v31, 16  ;;  %v2656_v12 = vrot.slane %v2655_v10, 4  ;;  %v2756_v1 = vrot.slane %v2754_v7, 5 }
 0x218   :  { %3290 = vrot.lane.b32.xlu2 %v2555_v62, %s8454_s14  ;;  %v2627_v62 = vsel %vm8551_vm2, %v2622_v46, %v10601_v18  ;;  %v2820_v46 = vshrl.u32 %v7550_v22, 16  ;;  %v2809_v57 = vrot.slane %v2807_v33, 4 }
 0x219   :  { %v10692_v61 = vrot.slane %v2744_v37, 5 }
 0x21a   :  { %v2232_v25 = vpop.permute.xlu2 %2231 }
 0x21b   :  { %3300 = vrot.lane.b32.xlu1 %v2613_v56, %s8454_s14  ;;  %2391 = vst.msk [vmem:[#allocation2 + $0x84] sm:$0xf] %vm2357_vm9, %v2232_v25  ;;  %v2748_v56 = vshrl.u32 %v7541_v31, 16  ;;  %v2785_v25 = vrot.slane %v2783_v17, 4  ;;  %v2768_v31 = vshll.u32 %v7544_v41, 16 }
 0x21c   :  { %3298 = vrot.lane.b32.xlu0 %v2603_v47, %s8454_s14  ;;  %v2738_v47 = vshll.u32 %v7540_v58, 16 }
 0x21d   :  { %v2224_v3 = vpop.permute.xlu1 %2223  ;;  %v2750_v16 = vrot.slane %v2748_v56, 4  ;;  %v2789_v58 = vor.u32 %v2788_v23, %v2785_v25  ;;  %v7829_v25 = vld [vmem:[%s13887_s0 + $0x88] sm:$0xf]  ;;  %v2796_v23 = vshrl.u32 %v10725_v14, 16  ;;  %v7828_v14 = vld [vmem:[%s13887_s0 + $0x84] sm:$0xf] }
 0x21e   :  { %2387 = vst.msk [vmem:[#allocation2 + $0x74] sm:$0xf] %vm2357_vm9, %v2224_v3  ;;  %v2222_v15 = vpop.permute.xlu0 %2221  ;;  %v10697_v3 = vrot.slane %v2720_v32, 5  ;;  %v7545_v32 = vld [vmem:[%s13887_s0 + $0x8c] sm:$0x1] }
 0x21f   :  { %2386 = vst.msk [vmem:[#allocation2 + $0x70] sm:$0xf] %vm2357_vm9, %v2222_v15  ;;  %v2751_v11 = vor.u32 %v2750_v16, %v10692_v61  ;;  %v2704_v15 = vrot.slane %v2703_v54, 4  ;;  %v2778_v43 = vshll.u32 %v7545_v32, 16  ;;  %v10753_v16 = vrot.slane %v2792_v26, 5 }
 0x220   :  { %3296 = vrot.lane.b32.xlu2 %v2589_v35, %s8454_s14  ;;  %v2723_v18 = vsel %vm8551_vm2, %v2718_v63, %v10697_v3  ;;  %v2724_v35 = vshrl.u32 %v10662_v34, 16  ;;  %v10742_v34 = vrot.slane %v2768_v31, 5  ;;  %v2790_v54 = vrot.slane %v2789_v58, 4 }
 0x221   :  { %v2752_v0 = vrot.slane %v2751_v11, 4  ;;  %v2709_v9 = vsel %vm8551_vm2, %v2704_v15, %v2708_v49  ;;  %v2780_v10 = vrot.slane %v2778_v43, 5  ;;  %v2826_v49 = vshll.u32 %v7551_v6, 16  ;;  %v7830_v43 = vld [vmem:[%s13887_s0 + $0x8c] sm:$0x1] }
 0x222   :  { %v2238_v45 = vpop.permute.xlu2 %2237  ;;  %v2726_v48 = vrot.slane %v2724_v35, 4  ;;  %v2795_v52 = vsel %vm8551_vm2, %v2790_v54, %v10753_v16  ;;  %v4928_v35 = vshrl.u32 %v7829_v25, 16  ;;  %v2798_v26 = vrot.slane %v2796_v23, 4 }
 0x223   :  { %3306 = vrot.lane.b32.xlu1 %v2651_v13, %s8454_s14  ;;  %2394 = vst.msk [vmem:[#allocation2 + $0x90] sm:$0xf] %vm2357_vm9, %v2238_v45  ;;  %v2740_v13 = vrot.slane %v2738_v47, 5  ;;  %v2757_v37 = vsel %vm8551_vm2, %v2752_v0, %v2756_v1  ;;  %v7539_v47 = vld [vmem:[%s13887_s0 + $0x74] sm:$0x1]  ;;  %v2810_v45 = vshll.u32 %v7549_v20, 16 }
 0x224   :  { %3304 = vrot.lane.b32.xlu0 %v2637_v5, %s8454_s14  ;;  %v2689_v5 = vrot.slane %v2687_v51, 4  ;;  %v2730_v51 = vshll.u32 %v7539_v47, 16  ;;  %v2828_v0 = vrot.slane %v2826_v49, 5  ;;  %v4915_v20 = vshrl.u32 %v7828_v14, 16  ;;  %v10856_v49 = vld [vmem:[%s13887_s0 + $0x88] sm:$0xf] }
 0x225   :  { %v2230_v19 = vpop.permute.xlu1 %2229  ;;  %v2741_v8 = vor.u32 %v2740_v13, %v2737_v38  ;;  %v2727_v38 = vor.u32 %v2726_v48, %v10697_v3  ;;  %v2812_v11 = vrot.slane %v2810_v45, 5  ;;  %v2799_v33 = vor.u32 %v2798_v26, %v10753_v16  ;;  %v7924_v26 = vld [vmem:[%s13887_s0 + $0x84] sm:$0xe] }
 0x226   :  { %2390 = vst.msk [vmem:[#allocation2 + $0x80] sm:$0xf] %vm2357_vm9, %v2230_v19  ;;  %v2228_v59 = vpop.permute.xlu0 %2227  ;;  %v2772_v19 = vshrl.u32 %v7544_v41, 16  ;;  %v2693_v2 = vor.u32 %v2692_v53, %v2689_v5 }
 0x227   :  { %2389 = vst.msk [vmem:[#allocation2 + $0x7c] sm:$0xf] %vm2357_vm9, %v2228_v59  ;;  %v2742_v56 = vrot.slane %v2741_v8, 4  ;;  %v2816_v59 = vshll.u32 %v7550_v22, 16  ;;  %v2728_v3 = vrot.slane %v2727_v38, 4  ;;  %v4924_v22 = vshll.u32 %v7829_v25, 16 }
 0x228   :  { %3302 = vrot.lane.b32.xlu2 %v2627_v62, %s8454_s14  ;;  %v2774_v44 = vrot.slane %v2772_v19, 4  ;;  %v2694_v28 = vrot.slane %v2693_v2, 4  ;;  %v7543_v62 = vld [vmem:[%s13887_s0 + $0x84] sm:$0xf] }
 0x229   :  { %v10759_v55 = vrot.slane %v2816_v59, 5  ;;  %v2759_v13 = vshrl.u32 %v7543_v62, 16  ;;  %v2762_v17 = vshll.u32 %v7543_v62, 16  ;;  %v4926_v59 = vrot.slane %v4924_v22, 5 }
 0x22a   :  { %v2244_v30 = vpop.permute.xlu2 %2243  ;;  %v2775_v29 = vor.u32 %v2774_v44, %v10742_v34  ;;  %v2699_v7 = vsel %vm8551_vm2, %v2694_v28, %v10675_v40  ;;  %v2732_v40 = vrot.slane %v2730_v51, 5  ;;  %v7548_v44 = vld [vmem:[%s13887_s0 + $0x98] sm:$0x1] }
 0x22b   :  { %3312 = vrot.lane.b32.xlu1 %v2685_v39, %s8454_s14  ;;  %2397 = vst.msk [vmem:[#allocation2 + $0x9c] sm:$0xf] %vm2357_vm9, %v2244_v30  ;;  %v2661_v39 = vsel %vm8551_vm2, %v2656_v12, %v2660_v27  ;;  %v2813_v27 = vor.u32 %v2812_v11, %v2809_v57  ;;  %v2761_v41 = vrot.slane %v2759_v13, 4  ;;  %v2764_v12 = vrot.slane %v2762_v17, 5  ;;  %v7636_v17 = vld [vmem:[%s13887_s0 + $0x78] sm:$0xe] }
 0x22c   :  { %3310 = vrot.lane.b32.xlu0 %v2675_v60, %s8454_s14  ;;  %v2747_v60 = vsel %vm8551_vm2, %v2742_v56, %v10692_v61  ;;  %v7638_v56 = vld [vmem:[%s13887_s0 + $0x80] sm:$0x1]  ;;  %v2802_v45 = vshll.u32 %v7548_v44, 16 }
 0x22d   :  { %v2236_v4 = vpop.permute.xlu1 %2235  ;;  %v2814_v30 = vrot.slane %v2813_v27, 4  ;;  %v2765_v31 = vor.u32 %v2764_v12, %v2761_v41  ;;  %v3803_v48 = vrot.slane %v7638_v56, 5  ;;  %v5980_v12 = vrot.slane %v10856_v49, 5 }
 0x22e   :  { %2393 = vst.msk [vmem:[#allocation2 + $0x8c] sm:$0xf] %vm2357_vm9, %v2236_v4  ;;  %v2234_v42 = vpop.permute.xlu0 %2233  ;;  %v2822_v4 = vrot.slane %v2820_v46, 4  ;;  %v4930_v46 = vrot.slane %v4928_v35, 4 }
 0x22f   :  { %2392 = vst.msk [vmem:[#allocation2 + $0x88] sm:$0xf] %vm2357_vm9, %v2234_v42  ;;  %v2819_v2 = vsel %vm8551_vm2, %v2814_v30, %v10759_v55  ;;  %v5982_v25 = vrot.slane %v5980_v12, 4 }
 0x230   :  { %3308 = vrot.lane.b32.xlu2 %v2661_v39, %s8454_s14  ;;  %v2823_v15 = vor.u32 %v2822_v4, %v10759_v55  ;;  %v4931_v54 = vor.u32 %v4930_v46, %v4926_v59  ;;  %v4917_v55 = vrot.slane %v4915_v20, 4  ;;  %v7801_v46 = vld [vmem:[%s13887_s0 + $0x18] sm:$0xf] }
 0x232   :  { %v2250_v63 = vpop.permute.xlu2 %2249  ;;  %v2824_v53 = vrot.slane %v2823_v15, 4  ;;  %v10851_v15 = vld [vmem:[%s13887_s0 + $0x10] sm:$0xf] }
 0x233   :  { %3318 = vrot.lane.b32.xlu1 %v2723_v18, %s8454_s14  ;;  %2400 = vst.msk [vmem:[#allocation2 + $0xa8] sm:$0xf] %vm2357_vm9, %v2250_v63  ;;  %v2776_v18 = vrot.slane %v2775_v29, 4  ;;  %v7755_v63 = vld [vmem:[%s13887_s0 + $0x84] sm:$0xf]  ;;  %v4934_v29 = vshll.u32 %v7830_v43, 16 }
 0x234   :  { %3316 = vrot.lane.b32.xlu0 %v2709_v9, %s8454_s14  ;;  %v2733_v9 = vsel %vm8551_vm2, %v2728_v3, %v2732_v40  ;;  %v2829_v19 = vsel %vm8551_vm2, %v2824_v53, %v2828_v0  ;;  %v3737_v41 = vrot.slane %v10851_v15, 5  ;;  %v7640_v53 = vld [vmem:[%s13887_s0 + $0x88] sm:$0xf]  ;;  %v7803_v43 = vld [vmem:[%s13887_s0 + $0x20] sm:$0x1] }
 0x235   :  { %v2242_v36 = vpop.permute.xlu1 %2241  ;;  %v2781_v1 = vsel %vm8551_vm2, %v2776_v18, %v2780_v10  ;;  %v4936_v10 = vrot.slane %v4934_v29, 5  ;;  %v7609_v18 = vld [vmem:[%s13887_s0 + $0xc] sm:$0xe]  ;;  %v7757_v29 = vld [vmem:[%s13887_s0 + $0x90] sm:$0xf] }
 0x236   :  { %2396 = vst.msk [vmem:[#allocation2 + $0x98] sm:$0xf] %vm2357_vm9, %v2242_v36  ;;  %v2240_v50 = vpop.permute.xlu0 %2239  ;;  %v10797_v36 = vld [vmem:[%s13887_s0 + $0x7c] sm:$0xf]  ;;  %v7705_v27 = vrot.slane %v7609_v18, 9 }
 0x237   :  { %2395 = vst.msk [vmem:[#allocation2 + $0x94] sm:$0xf] %vm2357_vm9, %v2240_v50  ;;  %v3800_v58 = vrot.slane %v10797_v36, 5  ;;  %v4918_v50 = vshll.u32 %v7828_v14, 16 }
 0x238   :  { %3314 = vrot.lane.b32.xlu2 %v2699_v7, %s8454_s14  ;;  %v4932_v7 = vrot.slane %v4931_v54, 4  ;;  %v4718_v54 = vshll.u32 %v7803_v43, 16 }
 0x239   :  { %v3802_v47 = vrot.slane %v3800_v58, 4  ;;  %v4920_v4 = vrot.slane %v4918_v50, 5  ;;  %v8002_v50 = vrot.slane %v7924_v26, 9 }
 0x23a   :  { %v2256_v5 = vpop.permute.xlu2 %2255  ;;  %v4937_v11 = vsel %vm8551_vm2, %v4932_v7, %v4936_v10  ;;  %v4720_v10 = vrot.slane %v4718_v54, 5 }
 0x23b   :  { %3324 = vrot.lane.b32.xlu1 %v2757_v37, %s8454_s14  ;;  %2403 = vst.msk [vmem:[#allocation2 + $0xb4] sm:$0xf] %vm2357_vm9, %v2256_v5  ;;  %v2766_v37 = vrot.slane %v2765_v31, 4  ;;  %v3804_v16 = vsel %vm9295_vm7, %v3802_v47, %v3803_v48  ;;  %v4921_v38 = vor.u32 %v4920_v4, %v4917_v55  ;;  %v7926_v5 = vld [vmem:[%s13887_s0 + $0x8c] sm:$0x1]  ;;  %v4699_v47 = vshrl.u32 %v7801_v46, 16 }
 0x23c   :  { %3322 = vrot.lane.b32.xlu0 %v2747_v60, %s8454_s14  ;;  %v5983_v23 = vrot.slane %v7926_v5, 5  ;;  %v7641_v31 = vld [vmem:[%s13887_s0 + $0x8c] sm:$0x1]  ;;  %v7611_v55 = vld [vmem:[%s13887_s0 + $0x14] sm:$0x1] }
 0x23d   :  { %v2248_v61 = vpop.permute.xlu1 %2247  ;;  %v2771_v60 = vsel %vm8551_vm2, %v2766_v37, %v10742_v34  ;;  %v2800_v34 = vrot.slane %v2799_v33, 4  ;;  %v4922_v13 = vrot.slane %v4921_v38, 4  ;;  %v3810_v35 = vrot.slane %v7641_v31, 5  ;;  %v7756_v37 = vld [vmem:[%s13887_s0 + $0x88] sm:$0xf] }
 0x23e   :  { %2399 = vst.msk [vmem:[#allocation2 + $0xa4] sm:$0xf] %vm2357_vm9, %v2248_v61  ;;  %v2246_v42 = vpop.permute.xlu0 %2245  ;;  %v2804_v61 = vrot.slane %v2802_v45, 5  ;;  %v4702_v33 = vshll.u32 %v7801_v46, 16  ;;  %v3740_v7 = vrot.slane %v7611_v55, 5 }
 0x23f   :  { %2398 = vst.msk [vmem:[#allocation2 + $0xa0] sm:$0xf] %vm2357_vm9, %v2246_v42  ;;  %v7714_v42 = vrot.slane %v7636_v17, 9  ;;  %v4927_v40 = vsel %vm8551_vm2, %v4922_v13, %v4926_v59  ;;  %v7738_v38 = vld [vmem:[%s13887_s0 + $0x1c] sm:$0xf] }
 0x240   :  { %3320 = vrot.lane.b32.xlu2 %v2733_v9, %s8454_s14  ;;  %v2805_v57 = vsel %vm8551_vm2, %v2800_v34, %v2804_v61  ;;  %v3807_v9 = vrot.slane %v7640_v53, 5  ;;  %v4704_v34 = vrot.slane %v4702_v33, 5  ;;  %v7737_v31 = vld [vmem:[%s13887_s0 + $0x18] sm:$0xf]  ;;  %v11013_v55 = vld [vmem:[%s13887_s0 + $0xf4] sm:$0xf] }
 0x241   :  { %v3801_v0 = vsel %vm9295_vm7, %v7714_v42, %v3800_v58  ;;  %v7897_v42 = vld [vmem:[%s13887_s0 + $0x18] sm:$0xe] }
 0x242   :  { %v2262_v32 = vpop.permute.xlu2 %2261  ;;  %v3809_v22 = vrot.slane %v3807_v9, 4 }
 0x243   :  { %3330 = vrot.lane.b32.xlu1 %v2795_v52, %s8454_s14  ;;  %2406 = vst.msk [vmem:[#allocation2 + $0xc0] sm:$0xf] %vm2357_vm9, %v2262_v32 }
 0x244   :  { %3328 = vrot.lane.b32.xlu0 %v2781_v1, %s8454_s14  ;;  %v3811_v58 = vsel %vm9295_vm7, %v3809_v22, %v3810_v35 }
 0x245   :  { %v2254_v8 = vpop.permute.xlu1 %2253 }
 0x246   :  { %2402 = vst.msk [vmem:[#allocation2 + $0xb0] sm:$0xf] %vm2357_vm9, %v2254_v8  ;;  %v2252_v39 = vpop.permute.xlu0 %2251  ;;  %v3738_v8 = vsel %vm9295_vm7, %v7705_v27, %v3737_v41 }
 0x247   :  { %2401 = vst.msk [vmem:[#allocation2 + $0xac] sm:$0xf] %vm2357_vm9, %v2252_v39  ;;  %v7639_v39 = vld [vmem:[%s13887_s0 + $0x84] sm:$0xe] }
 0x248   :  { %3326 = vrot.lane.b32.xlu2 %v2771_v60, %s8454_s14  ;;  %v7715_v56 = vrot.slane %v7639_v39, 9 }
 0x24a   :  { %v2268_v6 = vpop.permute.xlu2 %2267  ;;  %v3808_v20 = vsel %vm9295_vm7, %v7715_v56, %v3807_v9  ;;  %v7565_v56 = vld [vmem:[%s13887_s0 + $0xf4] sm:$0xf] }
 0x24b   :  { %3336 = vrot.lane.b32.xlu1 %v2829_v19, %s8454_s14  ;;  %2409 = vst.msk [vmem:[#allocation2 + $0xcc] sm:$0xf] %vm2357_vm9, %v2268_v6  ;;  %v5984_v19 = vsel %vm9295_vm7, %v5982_v25, %v5983_v23  ;;  %v3739_v6 = vrot.slane %v3737_v41, 4  ;;  %v10955_v41 = vld [vmem:[%s13887_s0 + $0x1c] sm:$0xf] }
 0x24c   :  { %3334 = vrot.lane.b32.xlu0 %v2819_v2, %s8454_s14  ;;  %v7802_v2 = vld [vmem:[%s13887_s0 + $0x1c] sm:$0xf]  ;;  %v7831_v23 = vld [vmem:[%s13887_s0 + $0x90] sm:$0xf] }
 0x24d   :  { %v2260_v28 = vpop.permute.xlu1 %2259  ;;  %v4708_v32 = vshll.u32 %v7802_v2, 16  ;;  %v4712_v44 = vshrl.u32 %v7802_v2, 16  ;;  %v3741_v18 = vsel %vm9295_vm7, %v3739_v6, %v3740_v7  ;;  %v3856_v6 = vrot.slane %v11013_v55, 5 }
 0x24e   :  { %2405 = vst.msk [vmem:[#allocation2 + $0xbc] sm:$0xf] %vm2357_vm9, %v2260_v28  ;;  %v2258_v62 = vpop.permute.xlu0 %2257 }
 0x24f   :  { %2404 = vst.msk [vmem:[#allocation2 + $0xb8] sm:$0xf] %vm2357_vm9, %v2258_v62  ;;  %v4710_v48 = vrot.slane %v4708_v32, 5  ;;  %v4714_v60 = vrot.slane %v4712_v44, 4  ;;  %v4701_v62 = vrot.slane %v4699_v47, 4 }
 0x250   :  { %3332 = vrot.lane.b32.xlu2 %v2805_v57, %s8454_s14 }
 0x251   :  { %v4715_v4 = vor.u32 %v4714_v60, %v4710_v48 }
 0x252   :  { %v2274_v3 = vpop.permute.xlu2 %2273 }
 0x253   :  { %4381 = vrot.lane.b32.xlu1 %v7755_v63, %s8455_s24  ;;  %2412 = vst.msk [vmem:[#allocation2 + $0xd8] sm:$0xf] %vm2357_vm9, %v2274_v3  ;;  %v5981_v63 = vsel %vm9295_vm7, %v8002_v50, %v5980_v12  ;;  %v4716_v57 = vrot.slane %v4715_v4, 4  ;;  %v7833_v12 = vld [vmem:[%s13887_s0 + $0x98] sm:$0x1]  ;;  %v2936_v50 = vshll.u32 %v7565_v56, 16 }
 0x254   :  { %3997 = vrot.lane.b32.xlu0 %v3804_v16, %s8456_s27  ;;  %v7832_v16 = vld [vmem:[%s13887_s0 + $0x94] sm:$0xf]  ;;  %v4958_v25 = vshll.u32 %v7833_v12, 16  ;;  %v7566_v4 = vld [vmem:[%s13887_s0 + $0xf8] sm:$0x1] }
 0x255   :  { %v2266_v51 = vpop.permute.xlu1 %2265  ;;  %v4948_v13 = vshll.u32 %v7832_v16, 16  ;;  %v4952_v17 = vshrl.u32 %v7832_v16, 16  ;;  %v4721_v15 = vsel %vm8551_vm2, %v4716_v57, %v4720_v10  ;;  %v2946_v10 = vshll.u32 %v7566_v4, 16 }
 0x256   :  { %2408 = vst.msk [vmem:[#allocation2 + $0xc8] sm:$0xf] %vm2357_vm9, %v2266_v51  ;;  %v2264_v52 = vpop.permute.xlu0 %2263  ;;  %v4960_v39 = vrot.slane %v4958_v25, 5 }
 0x257   :  { %2407 = vst.msk [vmem:[#allocation2 + $0xc4] sm:$0xf] %vm2357_vm9, %v2264_v52  ;;  %v4954_v3 = vrot.slane %v4952_v17, 4 }
 0x258   :  { %3995 = vrot.lane.b32.xlu2 %v3801_v0, %s8456_s27  ;;  %v5917_v0 = vrot.slane %v10955_v41, 5 }
 0x25a   :  { %v2280_v36 = vpop.permute.xlu2 %2279 }
 0x25b   :  { %5504 = vrot.lane.b32.xlu1 %v4937_v11, %s8457_s17  ;;  %2415 = vst.msk [vmem:[#allocation2 + $0xe4] sm:$0xf] %vm2357_vm9, %v2280_v36  ;;  %v4705_v11 = vor.u32 %v4704_v34, %v4701_v62  ;;  %v4942_v36 = vshll.u32 %v7831_v23, 16 }
 0x25c   :  { %5502 = vrot.lane.b32.xlu0 %v4927_v40, %s8457_s17  ;;  %v10950_v40 = vrot.slane %v4948_v13, 5 }
 0x25d   :  { %v2272_v1 = vpop.permute.xlu1 %2271  ;;  %v4706_v49 = vrot.slane %v4705_v11, 4  ;;  %v4944_v32 = vrot.slane %v4942_v36, 5  ;;  %v11067_v36 = vld [vmem:[%s13887_s0 + $0x100] sm:$0xf] }
 0x25e   :  { %2411 = vst.msk [vmem:[#allocation2 + $0xd4] sm:$0xf] %vm2357_vm9, %v2272_v1  ;;  %v2270_v30 = vpop.permute.xlu0 %2269  ;;  %v7993_v1 = vrot.slane %v7897_v42, 9  ;;  %v7853_v42 = vld [vmem:[%s13887_s0 + $0x100] sm:$0xf] }
 0x25f   :  { %2410 = vst.msk [vmem:[#allocation2 + $0xd0] sm:$0xf] %vm2357_vm9, %v2270_v30  ;;  %v4711_v5 = vsel %vm8551_vm2, %v4706_v49, %v4710_v48  ;;  %v7928_v30 = vld [vmem:[%s13887_s0 + $0x94] sm:$0xf] }
 0x260   :  { %4383 = vrot.lane.b32.xlu2 %v7756_v37, %s8455_s24  ;;  %v5918_v22 = vsel %vm9295_vm7, %v7993_v1, %v5917_v0  ;;  %v5987_v2 = vrot.slane %v7928_v30, 5  ;;  %v7758_v48 = vld [vmem:[%s13887_s0 + $0x94] sm:$0xf] }
 0x262   :  { %v2286_v28 = vpop.permute.xlu2 %2285  ;;  %v5989_v46 = vrot.slane %v5987_v2, 4 }
 0x263   :  { %3959 = vrot.lane.b32.xlu1 %v3738_v8, %s8456_s27  ;;  %2418 = vst.msk [vmem:[#allocation2 + $0xf0] sm:$0xf] %vm2357_vm9, %v2286_v28  ;;  %v4955_v8 = vor.u32 %v4954_v3, %v10950_v40  ;;  %v2940_v28 = vshrl.u32 %v7565_v56, 16 }
 0x264   :  { %6177 = vrot.lane.b32.xlu0 %v5984_v19, %s8458_s30  ;;  %v4939_v19 = vshrl.u32 %v7831_v23, 16  ;;  %v7772_v23 = vld [vmem:[%s13887_s0 + $0x100] sm:$0xf] }
 0x265   :  { %v2278_v14 = vpop.permute.xlu1 %2277  ;;  %v4956_v35 = vrot.slane %v4955_v8, 4  ;;  %v5120_v8 = vshrl.u32 %v7853_v42, 16 }
 0x266   :  { %2414 = vst.msk [vmem:[#allocation2 + $0xe0] sm:$0xf] %vm2357_vm9, %v2278_v14  ;;  %v2276_v59 = vpop.permute.xlu0 %2275  ;;  %v7929_v14 = vld [vmem:[%s13887_s0 + $0x98] sm:$0x1]  ;;  %v4941_v26 = vrot.slane %v4939_v19, 4 }
 0x267   :  { %2413 = vst.msk [vmem:[#allocation2 + $0xdc] sm:$0xf] %vm2357_vm9, %v2276_v59  ;;  %v4961_v44 = vsel %vm8551_vm2, %v4956_v35, %v4960_v39  ;;  %v5122_v30 = vrot.slane %v5120_v8, 4  ;;  %v7948_v19 = vld [vmem:[%s13887_s0 + $0xfc] sm:$0xe] }
 0x268   :  { %6175 = vrot.lane.b32.xlu2 %v5981_v63, %s8458_s30  ;;  %v4945_v47 = vor.u32 %v4944_v32, %v4941_v26  ;;  %v2942_v63 = vrot.slane %v2940_v28, 4  ;;  %v7771_v35 = vld [vmem:[%s13887_s0 + $0xfc] sm:$0xf]  ;;  %v7950_v8 = vld [vmem:[%s13887_s0 + $0x104] sm:$0x1] }
 0x269   :  { %v7852_v26 = vld [vmem:[%s13887_s0 + $0xfc] sm:$0xf] }
 0x26a   :  { %v2292_v51 = vpop.permute.xlu2 %2291  ;;  %v4946_v34 = vrot.slane %v4945_v47, 4 }
 0x26b   :  { %4001 = vrot.lane.b32.xlu1 %v3811_v58, %s8456_s27  ;;  %2421 = vst.msk [vmem:[#allocation2 + $0xfc] sm:$0xf] %vm2357_vm9, %v2292_v51  ;;  %v5990_v58 = vrot.slane %v7929_v14, 5 }
 0x26c   :  { %3999 = vrot.lane.b32.xlu0 %v3808_v20, %s8456_s27  ;;  %v7927_v20 = vld [vmem:[%s13887_s0 + $0x90] sm:$0xe]  ;;  %v4951_v57 = vsel %vm8551_vm2, %v4946_v34, %v10950_v40  ;;  %v5919_v40 = vrot.slane %v5917_v0, 4 }
 0x26d   :  { %v2284_v45 = vpop.permute.xlu1 %2283  ;;  %v8003_v60 = vrot.slane %v7927_v20, 9  ;;  %v5991_v33 = vsel %vm9295_vm7, %v5989_v46, %v5990_v58  ;;  %v5107_v46 = vshrl.u32 %v7852_v26, 16  ;;  %v5110_v20 = vshll.u32 %v7852_v26, 16 }
 0x26e   :  { %2417 = vst.msk [vmem:[#allocation2 + $0xec] sm:$0xf] %vm2357_vm9, %v2284_v45  ;;  %v2282_v61 = vpop.permute.xlu0 %2281  ;;  %v11005_v45 = vrot.slane %v2936_v50, 5 }
 0x26f   :  { %2416 = vst.msk [vmem:[#allocation2 + $0xe8] sm:$0xf] %vm2357_vm9, %v2282_v61  ;;  %v5988_v62 = vsel %vm9295_vm7, %v8003_v60, %v5987_v2  ;;  %v8010_v2 = vrot.slane %v7948_v19, 9  ;;  %v5112_v4 = vrot.slane %v5110_v20, 5 }
 0x270   :  { %3961 = vrot.lane.b32.xlu2 %v3741_v18, %s8456_s27  ;;  %v2943_v7 = vor.u32 %v2942_v63, %v11005_v45  ;;  %v2948_v18 = vrot.slane %v2946_v10, 5  ;;  %v3858_v63 = vrot.slane %v3856_v6, 4  ;;  %v7612_v10 = vld [vmem:[%s13887_s0 + $0x18] sm:$0xe] }
 0x272   :  { %v3291_v53 = vpop.permute.xlu2 %3290 }
 0x273   :  { %4385 = vrot.lane.b32.xlu1 %v7757_v29, %s8455_s24  ;;  %3481 = vst.msk [vmem:[#allocation2 + $0x8] sm:$0xf] %vm3478_vm10, %v3291_v53  ;;  %v7660_v29 = vld [vmem:[%s13887_s0 + $0xf0] sm:$0xe]  ;;  %v5116_v53 = vshll.u32 %v7853_v42, 16 }
 0x274   :  { %4347 = vrot.lane.b32.xlu0 %v7738_v38, %s8455_s24  ;;  %v7722_v16 = vrot.slane %v7660_v29, 9  ;;  %v7564_v38 = vld [vmem:[%s13887_s0 + $0xf0] sm:$0xf]  ;;  %v5109_v29 = vrot.slane %v5107_v46, 4  ;;  %v7644_v42 = vld [vmem:[%s13887_s0 + $0x98] sm:$0x1] }
 0x275   :  { %v2290_v52 = vpop.permute.xlu1 %2289  ;;  %v2927_v11 = vshrl.u32 %v7564_v38, 16  ;;  %v2930_v13 = vshll.u32 %v7564_v38, 16  ;;  %v8319_v38 = vld [vmem:[%s13888_s1 + $0x30] sm:$0xff] }
 0x276   :  { %2420 = vst.msk [vmem:[#allocation2 + $0xf8] sm:$0xf] %vm2357_vm9, %v2290_v52  ;;  %v2288_v27 = vpop.permute.xlu0 %2287  ;;  %v3857_v17 = vsel %vm9295_vm7, %v7722_v16, %v3856_v6  ;;  %v2944_v52 = vrot.slane %v2943_v7, 4  ;;  %v5113_v6 = vor.u32 %v5112_v4, %v5109_v29  ;;  %v7804_v29 = vld [vmem:[%s13887_s0 + $0x24] sm:$0xf] }
 0x277   :  { %2419 = vst.msk [vmem:[#allocation2 + $0xf4] sm:$0xf] %vm2357_vm9, %v2288_v27  ;;  %v2929_v27 = vrot.slane %v2927_v11, 4  ;;  %v2932_v12 = vrot.slane %v2930_v13, 5  ;;  %v11128_v11 = vld [vmem:[%s13887_s0 + $0x94] sm:$0xf] }
 0x278   :  { %4345 = vrot.lane.b32.xlu2 %v7737_v31, %s8455_s24  ;;  %v2949_v1 = vsel %vm8551_vm2, %v2944_v52, %v2948_v18  ;;  %v3814_v52 = vrot.slane %v11128_v11, 5  ;;  %v8318_v18 = vld [vmem:[%s13888_s1 + $0x28] sm:$0xff] }
 0x279   :  { %v2933_v0 = vor.u32 %v2932_v12, %v2929_v27  ;;  %v7739_v12 = vld [vmem:[%s13887_s0 + $0x24] sm:$0xf] }
 0x27a   :  { %v3297_v59 = vpop.permute.xlu2 %3296 }
 0x27b   :  { %5468 = vrot.lane.b32.xlu1 %v4721_v15, %s8457_s17  ;;  %3484 = vst.msk [vmem:[#allocation2 + $0x14] sm:$0xf] %vm3478_vm10, %v3297_v59  ;;  %v7899_v15 = vld [vmem:[%s13887_s0 + $0x20] sm:$0x1]  ;;  %v2934_v39 = vrot.slane %v2933_v0, 4 }
 0x27c   :  { %5466 = vrot.lane.b32.xlu0 %v4711_v5, %s8457_s17  ;;  %v5920_v3 = vrot.slane %v7899_v15, 5  ;;  %v7805_v0 = vld [vmem:[%s13887_s0 + $0x28] sm:$0xf] }
 0x27d   :  { %v3289_v9 = vpop.permute.xlu1 %3288  ;;  %v2939_v59 = vsel %vm8551_vm2, %v2934_v39, %v11005_v45  ;;  %v8320_v45 = vld [vmem:[%s13888_s1 + $0x38] sm:$0xff]  ;;  %v4736_v19 = vshrl.u32 %v7805_v0, 16 }
 0x27e   :  { %3480 = vst.msk [vmem:[#allocation2 + $0x4] sm:$0xf] %vm3478_vm10, %v3289_v9  ;;  %v3287_v37 = vpop.permute.xlu0 %3286  ;;  %v5921_v41 = vsel %vm9295_vm7, %v5919_v40, %v5920_v3  ;;  %v11059_v9 = vrot.slane %v5116_v53, 5  ;;  %8345 = vmatpush.bf16.msra.mxu1 %v8320_v45  ;;  %6720 = vmatpush.bf16.msra.mxu0 %v8320_v45  ;;  %v7834_v3 = vld [vmem:[%s13887_s0 + $0x9c] sm:$0xf]  ;;  %v8317_v53 = vld [vmem:[%s13888_s1 + $0x20] sm:$0xff] }
 0x27f   :  { %3479 = vst.msk [vmem:[#allocation2] sm:$0xf] %vm3478_vm10, %v3287_v37  ;;  %v6036_v37 = vrot.slane %v11067_v36, 5  ;;  %8346 = vmatpush.bf16.msra.mxu2 %v8320_v45  ;;  %8347 = vmatpush.bf16.msra.mxu3 %v8320_v45  ;;  %v11179_v36 = vld [vmem:[%s13887_s0 + $0xa0] sm:$0xf] }
 0x280   :  { %4387 = vrot.lane.b32.xlu2 %v7758_v48, %s8455_s24  ;;  %v5123_v56 = vor.u32 %v5122_v30, %v11059_v9  ;;  %v7662_v48 = vld [vmem:[%s13887_s0 + $0xf8] sm:$0x1]  ;;  %v6039_v30 = vrot.slane %v7950_v8, 5  ;;  %v4972_v20 = vshll.u32 %v11179_v36, 16  ;;  %v7740_v8 = vld [vmem:[%s13887_s0 + $0x28] sm:$0xf] }
 0x281   :  { %v6037_v50 = vsel %vm9295_vm7, %v8010_v2, %v6036_v37 }
 0x282   :  { %v3303_v61 = vpop.permute.xlu2 %3302  ;;  %v5124_v28 = vrot.slane %v5123_v56, 4  ;;  %8348 = vmatpush.bf16.msra.mxu1 %v8319_v38  ;;  %6721 = vmatpush.bf16.msra.mxu0 %v8319_v38 }
 0x283   :  { %6139 = vrot.lane.b32.xlu1 %v5918_v22, %s8458_s30  ;;  %3487 = vst.msk [vmem:[#allocation2 + $0x20] sm:$0xf] %vm3478_vm10, %v3303_v61  ;;  %v7854_v22 = vld [vmem:[%s13887_s0 + $0x104] sm:$0x1]  ;;  %8349 = vmatpush.bf16.msra.mxu2 %v8319_v38 }
 0x284   :  { %5508 = vrot.lane.b32.xlu0 %v4961_v44, %s8457_s17  ;;  %v5126_v58 = vshll.u32 %v7854_v22, 16  ;;  %v7613_v44 = vld [vmem:[%s13887_s0 + $0x1c] sm:$0xf]  ;;  %8350 = vmatpush.bf16.msra.mxu3 %v8319_v38 }
 0x285   :  { %v3295_v43 = vpop.permute.xlu1 %3294  ;;  %v3744_v60 = vrot.slane %v7613_v44, 5  ;;  %v8316_v22 = vld [vmem:[%s13888_s1 + $0x18] sm:$0xff]  ;;  %v8315_v44 = vld [vmem:[%s13888_s1 + $0x10] sm:$0xff] }
 0x286   :  { %3483 = vst.msk [vmem:[#allocation2 + $0x10] sm:$0xf] %vm3478_vm10, %v3295_v43  ;;  %v3293_v54 = vpop.permute.xlu0 %3292  ;;  %v5128_v43 = vrot.slane %v5126_v58, 5  ;;  %8351 = vmatpush.bf16.msra.mxu1 %v8318_v18  ;;  %6722 = vmatpush.bf16.msra.mxu0 %v8318_v18  ;;  %v7642_v58 = vld [vmem:[%s13887_s0 + $0x90] sm:$0xe] }
 0x287   :  { %3482 = vst.msk [vmem:[#allocation2 + $0xc] sm:$0xf] %vm3478_vm10, %v3293_v54  ;;  %v3859_v54 = vrot.slane %v7662_v48, 5  ;;  %v3746_v61 = vrot.slane %v3744_v60, 4  ;;  %8352 = vmatpush.bf16.msra.mxu2 %v8318_v18  ;;  %v8314_v48 = vld [vmem:[%s13888_s1 + $0x8] sm:$0xff] }
 0x288   :  { %5506 = vrot.lane.b32.xlu2 %v4951_v57, %s8457_s17  ;;  %v7706_v57 = vrot.slane %v7612_v10, 9  ;;  %8353 = vmatpush.bf16.msra.mxu3 %v8318_v18  ;;  %v4723_v10 = vshrl.u32 %v7804_v29, 16 }
 0x289   :  { %v3860_v55 = vsel %vm9295_vm7, %v3858_v63, %v3859_v54  ;;  %v11210_v54 = vrot.slane %v4972_v20, 5 }
 0x28a   :  { %v3309_v5 = vpop.permute.xlu2 %3308  ;;  %v3745_v15 = vsel %vm9295_vm7, %v7706_v57, %v3744_v60  ;;  %8354 = vmatpush.bf16.msra.mxu1 %v8317_v53  ;;  %6723 = vmatpush.bf16.msra.mxu0 %v8317_v53  ;;  %v4725_v18 = vrot.slane %v4723_v10, 4  ;;  %v7856_v10 = vld [vmem:[%s13887_s0 + $0x10c] sm:$0xf] }
 0x28b   :  { %6181 = vrot.lane.b32.xlu1 %v5991_v33, %s8458_s30  ;;  %3490 = vst.msk [vmem:[#allocation2 + $0x2c] sm:$0xf] %vm3478_vm10, %v3309_v5  ;;  %v7614_v33 = vld [vmem:[%s13887_s0 + $0x20] sm:$0x1]  ;;  %v3817_v5 = vrot.slane %v7644_v42, 5  ;;  %8355 = vmatpush.bf16.msra.mxu2 %v8317_v53 }
 0x28c   :  { %6179 = vrot.lane.b32.xlu0 %v5988_v62, %s8458_s30  ;;  %v5129_v62 = vsel %vm8551_vm2, %v5124_v28, %v5128_v43  ;;  %v3747_v16 = vrot.slane %v7614_v33, 5  ;;  %8356 = vmatpush.bf16.msra.mxu3 %v8317_v53  ;;  %v7716_v43 = vrot.slane %v7642_v58, 9  ;;  %v7759_v33 = vld [vmem:[%s13887_s0 + $0x9c] sm:$0xf]  ;;  %v4976_v53 = vshrl.u32 %v11179_v36, 16 }
 0x28d   :  { %v3301_v51 = vpop.permute.xlu1 %3300 }
 0x28e   :  { %3486 = vst.msk [vmem:[#allocation2 + $0x1c] sm:$0xf] %vm3478_vm10, %v3301_v51  ;;  %v3299_v49 = vpop.permute.xlu0 %3298  ;;  %v3748_v51 = vsel %vm9295_vm7, %v3746_v61, %v3747_v16  ;;  %8357 = vmatpush.bf16.msra.mxu1 %v8316_v22  ;;  %6724 = vmatpush.bf16.msra.mxu0 %v8316_v22  ;;  %v3815_v61 = vsel %vm9295_vm7, %v7716_v43, %v3814_v52 }
 0x28f   :  { %3485 = vst.msk [vmem:[#allocation2 + $0x18] sm:$0xf] %vm3478_vm10, %v3299_v49  ;;  %8358 = vmatpush.bf16.msra.mxu2 %v8316_v22 }
 0x290   :  { %6141 = vrot.lane.b32.xlu2 %v5921_v41, %s8458_s30  ;;  %v4966_v41 = vshll.u32 %v7834_v3, 16  ;;  %8359 = vmatpush.bf16.msra.mxu3 %v8316_v22 }
 0x292   :  { %v3315_v14 = vpop.permute.xlu2 %3314  ;;  %v4968_v2 = vrot.slane %v4966_v41, 5  ;;  %8360 = vmatpush.bf16.msra.mxu1 %v8315_v44  ;;  %6725 = vmatpush.bf16.msra.mxu0 %v8315_v44 }
 0x293   :  { %4027 = vrot.lane.b32.xlu1 %v3857_v17, %s8456_s27  ;;  %3493 = vst.msk [vmem:[#allocation2 + $0x38] sm:$0xf] %vm3478_vm10, %v3315_v14  ;;  %v5114_v17 = vrot.slane %v5113_v6, 4  ;;  %8361 = vmatpush.bf16.msra.mxu2 %v8315_v44  ;;  %v8313_v6 = vld [vmem:[%s13888_s1] sm:$0xff]  ;;  %s7403_s1 = sshll.u32 %s13899_s12, 4  ;;  %s7404_s1 = int_to_ptr.hbm [resolvable:$true] %s7403_s1 }
 0x294   :  { %3356 = vrot.lane.b32.xlu0 %v2949_v1, %s8454_s14  ;;  %v3816_v1 = vrot.slane %v3814_v52, 4  ;;  %8362 = vmatpush.bf16.msra.mxu3 %v8315_v44  ;;  %v7855_v44 = vld [vmem:[%s13887_s0 + $0x108] sm:$0xf] }
 0x295   :  { %v3307_v25 = vpop.permute.xlu1 %3306  ;;  %v5119_v27 = vsel %vm8551_vm2, %v5114_v17, %v11059_v9  ;;  %v6038_v9 = vrot.slane %v6036_v37, 4  ;;  %v7902_v17 = vld [vmem:[%s13887_s0 + $0x2c] sm:$0x1] }
 0x296   :  { %3489 = vst.msk [vmem:[#allocation2 + $0x28] sm:$0xf] %vm3478_vm10, %v3307_v25  ;;  %v3305_v31 = vpop.permute.xlu0 %3304  ;;  %v4963_v25 = vshrl.u32 %v7834_v3, 16  ;;  %8363 = vmatpush.bf16.msra.mxu1 %v8314_v48  ;;  %6726 = vmatpush.bf16.msra.mxu0 %v8314_v48 }
 0x297   :  { %3488 = vst.msk [vmem:[#allocation2 + $0x24] sm:$0xf] %vm3478_vm10, %v3305_v31  ;;  %v4732_v31 = vshll.u32 %v7805_v0, 16  ;;  %v6040_v37 = vsel %vm9295_vm7, %v6038_v9, %v6039_v30  ;;  %8364 = vmatpush.bf16.msra.mxu2 %v8314_v48  ;;  %v11262_v30 = vld [vmem:[%s13887_s0 + $0xa0] sm:$0xf] }
 0x298   :  { %3354 = vrot.lane.b32.xlu2 %v2939_v59, %s8454_s14  ;;  %v4965_v14 = vrot.slane %v4963_v25, 4  ;;  %v7760_v59 = vld [vmem:[%s13887_s0 + $0xa0] sm:$0xf]  ;;  %8365 = vmatpush.bf16.msra.mxu3 %v8314_v48 }
 0x299   :  { %v11188_v26 = vrot.slane %v4732_v31, 5 }
 0x29a   :  { %v3321_v34 = vpop.permute.xlu2 %3320  ;;  %v4969_v46 = vor.u32 %v4968_v2, %v4965_v14  ;;  %8366 = vmatpush.bf16.msra.mxu1 %v8313_v6  ;;  %6727 = vmatpush.bf16.msra.mxu0 %v8313_v6 }
 0x29b   :  { %4415 = vrot.lane.b32.xlu1 %v7772_v23, %s8455_s24  ;;  %3496 = vst.msk [vmem:[#allocation2 + $0x44] sm:$0xf] %vm3478_vm10, %v3321_v34  ;;  %v7567_v34 = vld [vmem:[%s13887_s0 + $0xfc] sm:$0xf]  ;;  %8367 = vmatpush.bf16.msra.mxu2 %v8313_v6 }
 0x29c   :  { %4413 = vrot.lane.b32.xlu0 %v7771_v35, %s8455_s24  ;;  %v3818_v35 = vsel %vm9295_vm7, %v3816_v1, %v3817_v5  ;;  %v4970_v63 = vrot.slane %v4969_v46, 4  ;;  %v2951_v57 = vshrl.u32 %v7567_v34, 16  ;;  %v2954_v11 = vshll.u32 %v7567_v34, 16  ;;  %8368 = vmatpush.bf16.msra.mxu3 %v8313_v6  ;;  %v7900_v1 = vld [vmem:[%s13887_s0 + $0x24] sm:$0xe] }
 0x29d   :  { %v3313_v32 = vpop.permute.xlu1 %3312  ;;  %v11248_v5 = vld [vmem:[%s13887_s0 + $0x100] sm:$0xf]  ;;  %v7994_v0 = vrot.slane %v7900_v1, 9 }
 0x29e   :  { %3492 = vst.msk [vmem:[#allocation2 + $0x34] sm:$0xf] %vm3478_vm10, %v3313_v32  ;;  %v3311_v47 = vpop.permute.xlu0 %3310  ;;  %v4738_v32 = vrot.slane %v4736_v19, 4  ;;  %v4975_v38 = vsel %vm8551_vm2, %v4970_v63, %v11210_v54  ;;  %v2953_v3 = vrot.slane %v2951_v57, 4  ;;  %v2960_v9 = vshll.u32 %v11248_v5, 16 }
 0x29f   :  { %3491 = vst.msk [vmem:[#allocation2 + $0x30] sm:$0xf] %vm3478_vm10, %v3311_v47  ;;  %v7932_v19 = vld [vmem:[%s13887_s0 + $0xa4] sm:$0x1]  ;;  %v7930_v57 = vld [vmem:[%s13887_s0 + $0x9c] sm:$0xe] }
 0x2a0   :  { %4029 = vrot.lane.b32.xlu2 %v3860_v55, %s8456_s27  ;;  %v4739_v60 = vor.u32 %v4738_v32, %v11188_v26  ;;  %v4726_v55 = vshll.u32 %v7804_v29, 16  ;;  %v11274_v36 = vrot.slane %v2960_v9, 5  ;;  %v7664_v32 = vld [vmem:[%s13887_s0 + $0x100] sm:$0xf] }
 0x2a1   :  { %v3863_v48 = vrot.slane %v7664_v32, 5 }
 0x2a2   :  { %v3327_v49 = vpop.permute.xlu2 %3326  ;;  %v4740_v16 = vrot.slane %v4739_v60, 4  ;;  %v5131_v60 = vshrl.u32 %v7855_v44, 16 }
 0x2a3   :  { %6207 = vrot.lane.b32.xlu1 %v6037_v50, %s8458_s30  ;;  %3499 = vst.msk [vmem:[#allocation2 + $0x50] sm:$0xf] %vm3478_vm10, %v3327_v49  ;;  %v7806_v50 = vld [vmem:[%s13887_s0 + $0x2c] sm:$0x1] }
 0x2a4   :  { %5536 = vrot.lane.b32.xlu0 %v5129_v62, %s8457_s17  ;;  %v4742_v47 = vshll.u32 %v7806_v50, 16  ;;  %v7901_v62 = vld [vmem:[%s13887_s0 + $0x28] sm:$0xf]  ;;  %v5133_v34 = vrot.slane %v5131_v60, 4 }
 0x2a5   :  { %v3319_v7 = vpop.permute.xlu1 %3318 }
 0x2a6   :  { %3495 = vst.msk [vmem:[#allocation2 + $0x40] sm:$0xf] %vm3478_vm10, %v3319_v7  ;;  %v3317_v13 = vpop.permute.xlu0 %3316  ;;  %v4744_v7 = vrot.slane %v4742_v47, 5  ;;  %v5134_v47 = vshll.u32 %v7855_v44, 16  ;;  %v11371_v44 = vld [vmem:[%s13887_s0 + $0xa0] sm:$0xf] }
 0x2a7   :  { %3494 = vst.msk [vmem:[#allocation2 + $0x3c] sm:$0xf] %vm3478_vm10, %v3317_v13 }
 0x2a8   :  { %5534 = vrot.lane.b32.xlu2 %v5119_v27, %s8457_s17  ;;  %v4745_v52 = vsel %vm8551_vm2, %v4740_v16, %v4744_v7  ;;  %v2956_v27 = vrot.slane %v2954_v11, 5  ;;  %v7663_v7 = vld [vmem:[%s13887_s0 + $0xfc] sm:$0xe] }
 0x2aa   :  { %v3333_v39 = vpop.permute.xlu2 %3332 }
 0x2ab   :  { %3965 = vrot.lane.b32.xlu1 %v3748_v51, %s8456_s27  ;;  %3502 = vst.msk [vmem:[#allocation2 + $0x5c] sm:$0xf] %vm3478_vm10, %v3333_v39  ;;  %v5924_v51 = vrot.slane %v7901_v62, 5  ;;  %v4978_v39 = vrot.slane %v4976_v53, 4 }
 0x2ac   :  { %3963 = vrot.lane.b32.xlu0 %v3745_v15, %s8456_s27  ;;  %v4728_v15 = vrot.slane %v4726_v55, 5  ;;  %v2964_v55 = vshrl.u32 %v11248_v5, 16 }
 0x2ad   :  { %v3325_v40 = vpop.permute.xlu1 %3324  ;;  %v5926_v42 = vrot.slane %v5924_v51, 4  ;;  %v5925_v14 = vsel %vm9295_vm7, %v7994_v0, %v5924_v51  ;;  %v4979_v50 = vor.u32 %v4978_v39, %v11210_v54  ;;  %v7723_v51 = vrot.slane %v7663_v7, 9 }
 0x2ae   :  { %3498 = vst.msk [vmem:[#allocation2 + $0x4c] sm:$0xf] %vm3478_vm10, %v3325_v40  ;;  %v3323_v23 = vpop.permute.xlu0 %3322  ;;  %v5927_v40 = vrot.slane %v7902_v17, 5  ;;  %v4729_v25 = vor.u32 %v4728_v15, %v4725_v18  ;;  %v2966_v18 = vrot.slane %v2964_v55, 4 }
 0x2af   :  { %3497 = vst.msk [vmem:[#allocation2 + $0x48] sm:$0xf] %vm3478_vm10, %v3323_v23  ;;  %v2957_v23 = vor.u32 %v2956_v27, %v2953_v3  ;;  %v4980_v63 = vrot.slane %v4979_v50, 4  ;;  %v3864_v15 = vsel %vm9295_vm7, %v7723_v51, %v3863_v48  ;;  %v7569_v3 = vld [vmem:[%s13887_s0 + $0x104] sm:$0x1] }
 0x2b0   :  { %6209 = vrot.lane.b32.xlu2 %v6040_v37, %s8458_s30  ;;  %v5928_v41 = vsel %vm9295_vm7, %v5926_v42, %v5927_v40  ;;  %v4730_v22 = vrot.slane %v4729_v25, 4  ;;  %v7836_v37 = vld [vmem:[%s13887_s0 + $0xa4] sm:$0x1]  ;;  %v2967_v5 = vor.u32 %v2966_v18, %v11274_v36  ;;  %v2970_v53 = vshll.u32 %v7569_v3, 16  ;;  %v7615_v18 = vld [vmem:[%s13887_s0 + $0x24] sm:$0xe] }
 0x2b1   :  { %v7837_v3 = vld [vmem:[%s13887_s0 + $0xa8] sm:$0xf] }
 0x2b2   :  { %v3996_v45 = vpop.permute.xlu2 %3995  ;;  %v4735_v46 = vsel %vm8551_vm2, %v4730_v22, %v11188_v26  ;;  %v2968_v9 = vrot.slane %v2967_v5, 4  ;;  %v4990_v5 = vshll.u32 %v7837_v3, 16 }
 0x2b3   :  { %4349 = vrot.lane.b32.xlu1 %v7739_v12, %s8455_s24  ;;  %4170 = vst.msk [vmem:[#allocation2 + $0x48] sm:$0xf] %vm4151_vm11, %v3996_v45  ;;  %v7665_v45 = vld [vmem:[%s13887_s0 + $0x104] sm:$0x1] }
 0x2b4   :  { %4005 = vrot.lane.b32.xlu0 %v3818_v35, %s8456_s27  ;;  %v5994_v35 = vrot.slane %v11262_v30, 5  ;;  %v3866_v62 = vrot.slane %v7665_v45, 5  ;;  %v2972_v30 = vrot.slane %v2970_v53, 5  ;;  %v7807_v45 = vld [vmem:[%s13887_s0 + $0x30] sm:$0xf] }
 0x2b5   :  { %v3331_v56 = vpop.permute.xlu1 %3330  ;;  %v7741_v53 = vld [vmem:[%s13887_s0 + $0x30] sm:$0xf] }
 0x2b6   :  { %3501 = vst.msk [vmem:[#allocation2 + $0x58] sm:$0xf] %vm3478_vm10, %v3331_v56  ;;  %v3329_v28 = vpop.permute.xlu0 %3328  ;;  %v2958_v56 = vrot.slane %v2957_v23, 4  ;;  %v5996_v20 = vrot.slane %v5994_v35, 4  ;;  %v7953_v23 = vld [vmem:[%s13887_s0 + $0x110] sm:$0x1] }
 0x2b7   :  { %3500 = vst.msk [vmem:[#allocation2 + $0x54] sm:$0xf] %vm3478_vm10, %v3329_v28  ;;  %v4982_v28 = vshll.u32 %v7836_v37, 16 }
 0x2b8   :  { %4003 = vrot.lane.b32.xlu2 %v3815_v61, %s8456_s27  ;;  %v2963_v43 = vsel %vm8551_vm2, %v2958_v56, %v11274_v36  ;;  %v5136_v61 = vrot.slane %v5134_v47, 5  ;;  %v2973_v56 = vsel %vm8551_vm2, %v2968_v9, %v2972_v30  ;;  %v7857_v47 = vld [vmem:[%s13887_s0 + $0x110] sm:$0x1] }
 0x2b9   :  { %v4984_v54 = vrot.slane %v4982_v28, 5 }
 0x2ba   :  { %v4384_v49 = vpop.permute.xlu2 %4383  ;;  %v5137_v11 = vor.u32 %v5136_v61, %v5133_v34  ;;  %v4747_v34 = vshrl.u32 %v7807_v45, 16  ;;  %v4750_v61 = vshll.u32 %v7807_v45, 16 }
 0x2bb   :  { %4391 = vrot.lane.b32.xlu1 %v7760_v59, %s8455_s24  ;;  %v5997_v59 = vrot.slane %v7932_v19, 5  ;;  %v4985_v6 = vsel %vm8551_vm2, %v4980_v63, %v4984_v54 }
 0x2bc   :  { %4389 = vrot.lane.b32.xlu0 %v7759_v33, %s8455_s24  ;;  %v5138_v42 = vrot.slane %v5137_v11, 4  ;;  %v4752_v51 = vrot.slane %v4750_v61, 5  ;;  %v11414_v11 = vld [vmem:[%s13887_s0 + $0x34] sm:$0xf] }
 0x2bd   :  { %v3337_v4 = vpop.permute.xlu1 %3336  ;;  %v5998_v26 = vsel %vm9295_vm7, %v5996_v20, %v5997_v59  ;;  %v11376_v59 = vld [vmem:[%s13887_s0 + $0x28] sm:$0xf] }
 0x2be   :  { %3504 = vst.msk [vmem:[#allocation2 + $0x64] sm:$0xf] %vm3478_vm10, %v3337_v4  ;;  %v3335_v13 = vpop.permute.xlu0 %3334  ;;  %v3865_v4 = vrot.slane %v3863_v48, 4  ;;  %v7617_v48 = vld [vmem:[%s13887_s0 + $0x2c] sm:$0x1]  ;;  %v3751_v60 = vrot.slane %v11376_v59, 5 }
 0x2bf   :  { %3503 = vst.msk [vmem:[#allocation2 + $0x60] sm:$0xf] %vm3478_vm10, %v3335_v13  ;;  %v5140_v13 = vshll.u32 %v7856_v10, 16  ;;  %v3754_v63 = vrot.slane %v7617_v48, 5  ;;  %v7762_v59 = vld [vmem:[%s13887_s0 + $0xac] sm:$0xf] }
 0x2c0   :  { %4351 = vrot.lane.b32.xlu2 %v7740_v8, %s8455_s24  ;;  %v7571_v48 = vld [vmem:[%s13887_s0 + $0x10c] sm:$0xf] }
 0x2c1   :  { %v11327_v40 = vrot.slane %v5140_v13, 5  ;;  %v7838_v13 = vld [vmem:[%s13887_s0 + $0xac] sm:$0xf] }
 0x2c2   :  { %v6176_v2 = vpop.permute.xlu2 %6175 }
 0x2c3   :  { %5510 = vrot.lane.b32.xlu1 %v4975_v38, %s8457_s17  ;;  %v3867_v38 = vsel %vm9295_vm7, %v3865_v4, %v3866_v62  ;;  %v5143_v8 = vsel %vm8551_vm2, %v5138_v42, %v11327_v40  ;;  %v3753_v62 = vrot.slane %v3751_v60, 4  ;;  %v4996_v42 = vshll.u32 %v7838_v13, 16 }
 0x2c4   :  { %5472 = vrot.lane.b32.xlu0 %v4745_v52, %s8457_s17  ;;  %v8004_v52 = vrot.slane %v7930_v57, 9 }
 0x2c5   :  { %v4382_v12 = vpop.permute.xlu1 %4381  ;;  %v3755_v55 = vsel %vm9295_vm7, %v3753_v62, %v3754_v63  ;;  %v2984_v63 = vshll.u32 %v7571_v48, 16  ;;  %v7570_v62 = vld [vmem:[%s13887_s0 + $0x108] sm:$0xf] }
 0x2c6   :  { %4556 = vst.msk [vmem:[#allocation2 + $0x48] sm:$0xf] %vm4537_vm12, %v4382_v12  ;;  %v3998_v31 = vpop.permute.xlu0 %3997  ;;  %v7952_v12 = vld [vmem:[%s13887_s0 + $0x10c] sm:$0xf]  ;;  %v5995_v1 = vsel %vm9295_vm7, %v8004_v52, %v5994_v35  ;;  %v6046_v35 = vrot.slane %v7953_v23, 5 }
 0x2c7   :  { %4171 = vst.msk [vmem:[#allocation2 + $0x4c] sm:$0xf] %vm4151_vm11, %v3998_v31  ;;  %v6043_v25 = vrot.slane %v7952_v12, 5  ;;  %v7774_v31 = vld [vmem:[%s13887_s0 + $0x10c] sm:$0xf]  ;;  %v7707_v12 = vrot.slane %v7615_v18, 9 }
 0x2c8   :  { %4557 = vst.msk [vmem:[#allocation2 + $0x4c] sm:$0xf] %vm4537_vm12, %v4384_v49  ;;  %5470 = vrot.lane.b32.xlu2 %v4735_v46, %s8457_s17  ;;  %v7742_v52 = vld [vmem:[%s13887_s0 + $0x34] sm:$0xf] }
 0x2c9   :  { %v6045_v22 = vrot.slane %v6043_v25, 4 }
 0x2ca   :  { %v3962_v29 = vpop.permute.xlu2 %3961 }
 0x2cb   :  { %6145 = vrot.lane.b32.xlu1 %v5928_v41, %s8458_s30  ;;  %4153 = vst.msk [vmem:[#allocation2 + $0x4] sm:$0xf] %vm4151_vm11, %v3962_v29  ;;  %v6047_v36 = vsel %vm9295_vm7, %v6045_v22, %v6046_v35  ;;  %v5150_v29 = vshll.u32 %v7857_v47, 16  ;;  %v4992_v35 = vrot.slane %v4990_v5, 5  ;;  %v7933_v47 = vld [vmem:[%s13887_s0 + $0xa8] sm:$0xe] }
 0x2cc   :  { %6143 = vrot.lane.b32.xlu0 %v5925_v14, %s8458_s30  ;;  %v7951_v14 = vld [vmem:[%s13887_s0 + $0x108] sm:$0xe] }
 0x2cd   :  { %v5505_v58 = vpop.permute.xlu1 %5504  ;;  %v8011_v37 = vrot.slane %v7951_v14, 9  ;;  %v7647_v14 = vld [vmem:[%s13887_s0 + $0xa4] sm:$0x1] }
 0x2ce   :  { %5678 = vst.msk [vmem:[#allocation2 + $0x4c] sm:$0xf] %vm5658_vm13, %v5505_v58  ;;  %v5503_v33 = vpop.permute.xlu0 %5502  ;;  %v7645_v58 = vld [vmem:[%s13887_s0 + $0x9c] sm:$0xe] }
 0x2cf   :  { %5677 = vst.msk [vmem:[#allocation2 + $0x48] sm:$0xf] %vm5658_vm13, %v5503_v33  ;;  %v7717_v46 = vrot.slane %v7645_v58, 9  ;;  %v6044_v50 = vsel %vm9295_vm7, %v8011_v37, %v6043_v25  ;;  %v3824_v58 = vrot.slane %v7647_v14, 5 }
 0x2d0   :  { %6350 = vst.msk [vmem:[#allocation2 + $0x48] sm:$0xf] %vm6331_vm14, %v6176_v2  ;;  %5512 = vrot.lane.b32.xlu2 %v4985_v6, %s8457_s17  ;;  %v5144_v2 = vshrl.u32 %v7856_v10, 16  ;;  %v5152_v10 = vrot.slane %v5150_v29, 5 }
 0x2d2   :  { %v4346_v49 = vpop.permute.xlu2 %4345  ;;  %v5146_v20 = vrot.slane %v5144_v2, 4 }
 0x2d3   :  { %3358 = vrot.lane.b32.xlu1 %v2963_v43, %s8454_s14  ;;  %v3821_v43 = vrot.slane %v11371_v44, 5 }
 0x2d4   :  { %6185 = vrot.lane.b32.xlu0 %v5998_v26, %s8458_s30  ;;  %v7773_v26 = vld [vmem:[%s13887_s0 + $0x108] sm:$0xf]  ;;  %v5147_v54 = vor.u32 %v5146_v20, %v11327_v40  ;;  %v5000_v40 = vshrl.u32 %v7838_v13, 16  ;;  %v2978_v13 = vshll.u32 %v7570_v62, 16 }
 0x2d5   :  { %v3960_v16 = vpop.permute.xlu1 %3959  ;;  %v3822_v4 = vsel %vm9295_vm7, %v7717_v46, %v3821_v43  ;;  %v3823_v37 = vrot.slane %v3821_v43, 4 }
 0x2d6   :  { %4152 = vst.msk [vmem:[#allocation2] sm:$0xf] %vm4151_vm11, %v3960_v16  ;;  %v6178_v17 = vpop.permute.xlu0 %6177  ;;  %v5148_v7 = vrot.slane %v5147_v54, 4  ;;  %v5002_v23 = vrot.slane %v5000_v40, 4  ;;  %v2988_v54 = vshrl.u32 %v7571_v48, 16  ;;  %v2980_v5 = vrot.slane %v2978_v13, 5 }
 0x2d7   :  { %6351 = vst.msk [vmem:[#allocation2 + $0x4c] sm:$0xf] %vm6331_vm14, %v6178_v17  ;;  %v3825_v44 = vsel %vm9295_vm7, %v3823_v37, %v3824_v58  ;;  %v7858_v37 = vld [vmem:[%s13887_s0 + $0x114] sm:$0xf]  ;;  %v7860_v48 = vld [vmem:[%s13887_s0 + $0x11c] sm:$0x1] }
 0x2d8   :  { %4538 = vst.msk [vmem:[#allocation2] sm:$0xf] %vm4537_vm12, %v4346_v49  ;;  %6183 = vrot.lane.b32.xlu2 %v5995_v1, %s8458_s30  ;;  %v5153_v17 = vsel %vm8551_vm2, %v5148_v7, %v5152_v10  ;;  %v4756_v49 = vshll.u32 %v11414_v11, 16  ;;  %v4987_v1 = vshrl.u32 %v7837_v3, 16  ;;  %v7905_v7 = vld [vmem:[%s13887_s0 + $0x38] sm:$0x1] }
 0x2d9   :  { %v5934_v18 = vrot.slane %v7905_v7, 5 }
 0x2da   :  { %v4388_v19 = vpop.permute.xlu2 %4387  ;;  %v4989_v22 = vrot.slane %v4987_v1, 4 }
 0x2db   :  { %4033 = vrot.lane.b32.xlu1 %v3867_v38, %s8456_s27  ;;  %v4749_v38 = vrot.slane %v4747_v34, 4  ;;  %v8005_v34 = vrot.slane %v7933_v47, 9 }
 0x2dc   :  { %4031 = vrot.lane.b32.xlu0 %v3864_v15, %s8456_s27 }
 0x2dd   :  { %v4002_v27 = vpop.permute.xlu1 %4001  ;;  %v4753_v15 = vor.u32 %v4752_v51, %v4749_v38  ;;  %v7809_v38 = vld [vmem:[%s13887_s0 + $0x38] sm:$0x1]  ;;  %v2986_v51 = vrot.slane %v2984_v63, 5 }
 0x2de   :  { %4173 = vst.msk [vmem:[#allocation2 + $0x54] sm:$0xf] %vm4151_vm11, %v4002_v27  ;;  %v4000_v41 = vpop.permute.xlu0 %3999  ;;  %v8290_v0 = vld [vmem:[#allocation2 + $0x48] sm:$0xff]  ;;  %v4766_v3 = vshll.u32 %v7809_v38, 16 }
 0x2df   :  { %4172 = vst.msk [vmem:[#allocation2 + $0x50] sm:$0xf] %vm4151_vm11, %v4000_v41  ;;  %6773 = vmatmul.bf16.vlgmr.msra.gmra.mxu1 %v8290_v0  ;;  %v4754_v25 = vrot.slane %v4753_v15, 4  ;;  %v11439_v41 = vrot.slane %v4756_v49, 5  ;;  %v11441_v0 = vrot.slane %v4996_v42, 5 }
 0x2e0   :  { %4559 = vst.msk [vmem:[#allocation2 + $0x54] sm:$0xf] %vm4537_vm12, %v4388_v19  ;;  %3360 = vrot.lane.b32.xlu2 %v2973_v56, %s8454_s14  ;;  %v3752_v19 = vsel %vm9295_vm7, %v7707_v12, %v3751_v60  ;;  %v4760_v60 = vshrl.u32 %v11414_v11, 16  ;;  %v2975_v11 = vshrl.u32 %v7570_v62, 16  ;;  %v7761_v15 = vld [vmem:[%s13887_s0 + $0xa8] sm:$0xf] }
 0x2e1   :  { %v5003_v2 = vor.u32 %v5002_v23, %v11441_v0  ;;  %v5174_v62 = vshll.u32 %v7860_v48, 16  ;;  %v7954_v48 = vld [vmem:[%s13887_s0 + $0x114] sm:$0xe] }
 0x2e2   :  { %v5507_v28 = vpop.permute.xlu2 %5506  ;;  %v2977_v1 = vrot.slane %v2975_v11, 4 }
 0x2e3   :  { %5538 = vrot.lane.b32.xlu1 %v5143_v8, %s8457_s17  ;;  %v5004_v20 = vrot.slane %v5003_v2, 4  ;;  %v5176_v13 = vrot.slane %v5174_v62, 5  ;;  %v7554_v62 = vld [vmem:[%s13887_s0 + $0xb0] sm:$0x1] }
 0x2e4   :  { %4419 = vrot.lane.b32.xlu0 %v7774_v31, %s8455_s24  ;;  %v7839_v31 = vld [vmem:[%s13887_s0 + $0xb0] sm:$0x1] }
 0x2e5   :  { %v4386_v39 = vpop.permute.xlu1 %4385  ;;  %v5006_v56 = vshll.u32 %v7839_v31, 16 }
 0x2e6   :  { %4558 = vst.msk [vmem:[#allocation2 + $0x50] sm:$0xf] %vm4537_vm12, %v4386_v39  ;;  %v4348_v32 = vpop.permute.xlu0 %4347  ;;  %v4759_v39 = vsel %vm8551_vm2, %v4754_v25, %v11439_v41  ;;  %v4768_v25 = vrot.slane %v4766_v3, 5 }
 0x2e7   :  { %4539 = vst.msk [vmem:[#allocation2 + $0x4] sm:$0xf] %vm4537_vm12, %v4348_v32  ;;  %v4993_v32 = vor.u32 %v4992_v35, %v4989_v22  ;;  %v7903_v35 = vld [vmem:[%s13887_s0 + $0x30] sm:$0xe] }
 0x2e8   :  { %5679 = vst.msk [vmem:[#allocation2 + $0x50] sm:$0xf] %vm5658_vm13, %v5507_v28  ;;  %4417 = vrot.lane.b32.xlu2 %v7773_v26, %s8455_s24  ;;  %v11487_v26 = vld [vmem:[%s13887_s0 + $0x34] sm:$0xf] }
 0x2e9   :  { %v4994_v43 = vrot.slane %v4993_v32, 4  ;;  %v5931_v10 = vrot.slane %v11487_v26, 5  ;;  %v7995_v32 = vrot.slane %v7903_v35, 9 }
 0x2ea   :  { %v6142_v6 = vpop.permute.xlu2 %6141 }
 0x2eb   :  { %6213 = vrot.lane.b32.xlu1 %v6047_v36, %s8458_s30  ;;  %v5933_v42 = vrot.slane %v5931_v10, 4 }
 0x2ec   :  { %6211 = vrot.lane.b32.xlu0 %v6044_v50, %s8458_s30  ;;  %v5008_v50 = vrot.slane %v5006_v56, 5 }
 0x2ed   :  { %v5469_v33 = vpop.permute.xlu1 %5468 }
 0x2ee   :  { %5660 = vst.msk [vmem:[#allocation2 + $0x4] sm:$0xf] %vm5658_vm13, %v5469_v33  ;;  %v5467_v16 = vpop.permute.xlu0 %5466  ;;  %v11480_v33 = vld [vmem:[%s13887_s0 + $0xac] sm:$0xf]  ;;  %v5009_v45 = vsel %vm8551_vm2, %v5004_v20, %v5008_v50  ;;  %v5155_v20 = vshrl.u32 %v7858_v37, 16 }
 0x2ef   :  { %5659 = vst.msk [vmem:[#allocation2] sm:$0xf] %vm5658_vm13, %v5467_v16  ;;  %v6001_v61 = vrot.slane %v11480_v33, 5  ;;  %v4999_v16 = vsel %vm8551_vm2, %v4994_v43, %v11441_v0  ;;  %v5935_v0 = vsel %vm9295_vm7, %v5933_v42, %v5934_v18  ;;  %v5158_v43 = vshll.u32 %v7858_v37, 16  ;;  %v7620_v37 = vld [vmem:[%s13887_s0 + $0x38] sm:$0x1] }
 0x2f0   :  { %6333 = vst.msk [vmem:[#allocation2 + $0x4] sm:$0xf] %vm6331_vm14, %v6142_v6  ;;  %5540 = vrot.lane.b32.xlu2 %v5153_v17, %s8457_s17 }
 0x2f1   :  { %v6002_v49 = vsel %vm9295_vm7, %v8005_v34, %v6001_v61  ;;  %v5157_v34 = vrot.slane %v5155_v20, 4  ;;  %v7618_v20 = vld [vmem:[%s13887_s0 + $0x30] sm:$0xe] }
 0x2f2   :  { %v3355_v8 = vpop.permute.xlu2 %3354 }
 0x2f3   :  { %4007 = vrot.lane.b32.xlu1 %v3822_v4, %s8456_s27  ;;  %3513 = vst.msk [vmem:[#allocation2 + $0x88] sm:$0xf] %vm3478_vm10, %v3355_v8 }
 0x2f4   :  { %3969 = vrot.lane.b32.xlu0 %v3755_v55, %s8456_s27  ;;  %v4762_v55 = vrot.slane %v4760_v60, 4 }
 0x2f5   :  { %v6140_v57 = vpop.permute.xlu1 %6139 }
 0x2f6   :  { %6332 = vst.msk [vmem:[#allocation2] sm:$0xf] %vm6331_vm14, %v6140_v57  ;;  %v5509_v27 = vpop.permute.xlu0 %5508  ;;  %v2990_v57 = vrot.slane %v2988_v54, 4  ;;  %v4763_v40 = vor.u32 %v4762_v55, %v11439_v41  ;;  %v5932_v54 = vsel %vm9295_vm7, %v7995_v32, %v5931_v10  ;;  %v5160_v55 = vrot.slane %v5158_v43, 5 }
 0x2f7   :  { %5680 = vst.msk [vmem:[#allocation2 + $0x54] sm:$0xf] %vm5658_vm13, %v5509_v27 }
 0x2f8   :  { %3967 = vrot.lane.b32.xlu2 %v3752_v19, %s8456_s27  ;;  %v2991_v27 = vor.u32 %v2990_v57, %v2986_v51  ;;  %v4764_v8 = vrot.slane %v4763_v40, 4  ;;  %v7859_v19 = vld [vmem:[%s13887_s0 + $0x118] sm:$0xf]  ;;  %v6003_v57 = vrot.slane %v6001_v61, 4  ;;  %v5161_v18 = vor.u32 %v5160_v55, %v5157_v34  ;;  %v7553_v40 = vld [vmem:[%s13887_s0 + $0xac] sm:$0xf] }
 0x2f9   :  { %v5164_v56 = vshll.u32 %v7859_v19, 16  ;;  %v7840_v34 = vld [vmem:[%s13887_s0 + $0xb4] sm:$0xf] }
 0x2fa   :  { %v4030_v46 = vpop.permute.xlu2 %4029  ;;  %v2992_v23 = vrot.slane %v2991_v27, 4  ;;  %v4769_v22 = vsel %vm8551_vm2, %v4764_v8, %v4768_v25  ;;  %v5162_v3 = vrot.slane %v5161_v18, 4  ;;  %v7666_v27 = vld [vmem:[%s13887_s0 + $0x108] sm:$0xe] }
 0x2fb   :  { %4355 = vrot.lane.b32.xlu1 %v7742_v52, %s8455_s24  ;;  %v7572_v52 = vld [vmem:[%s13887_s0 + $0x110] sm:$0x1]  ;;  %v5166_v60 = vrot.slane %v5164_v56, 5  ;;  %v7724_v8 = vrot.slane %v7666_v27, 9 }
 0x2fc   :  { %4353 = vrot.lane.b32.xlu0 %v7741_v53, %s8455_s24  ;;  %v2994_v12 = vshll.u32 %v7572_v52, 16 }
 0x2fd   :  { %v6182_v9 = vpop.permute.xlu1 %6181  ;;  %v8281_v30 = vld [vmem:[#allocation2] sm:$0xff]  ;;  %v5167_v25 = vsel %vm8551_vm2, %v5162_v3, %v5166_v60 }
 0x2fe   :  { %6353 = vst.msk [vmem:[#allocation2 + $0x54] sm:$0xf] %vm6331_vm14, %v6182_v9  ;;  %6728 = vmatmul.bf16.vlgmr.msra.gmra.mxu0 %v8281_v30  ;;  %v6180_v36 = vpop.permute.xlu0 %6179  ;;  %v2996_v9 = vrot.slane %v2994_v12, 5  ;;  %v2981_v30 = vor.u32 %v2980_v5, %v2977_v1  ;;  %v2840_v1 = vshll.u32 %v7553_v40, 16 }
 0x2ff   :  { %6352 = vst.msk [vmem:[#allocation2 + $0x50] sm:$0xf] %vm6331_vm14, %v6180_v36  ;;  %v5168_v36 = vshrl.u32 %v7859_v19, 16  ;;  %v7619_v19 = vld [vmem:[%s13887_s0 + $0x34] sm:$0xf] }
 0x300   :  { %4009 = vrot.lane.b32.xlu2 %v3825_v44, %s8456_s27  ;;  %v2997_v14 = vsel %vm8551_vm2, %v2992_v23, %v2996_v9  ;;  %v2982_v2 = vrot.slane %v2981_v30, 4  ;;  %v2842_v23 = vrot.slane %v2840_v1, 5  ;;  %v3758_v56 = vrot.slane %v7619_v19, 5  ;;  %v7764_v1 = vld [vmem:[%s13887_s0 + $0xb8] sm:$0xf] }
 0x301   :  { %v5170_v44 = vrot.slane %v5168_v36, 4 }
 0x302   :  { %v5535_v6 = vpop.permute.xlu2 %5534  ;;  %v2987_v50 = vsel %vm8551_vm2, %v2982_v2, %v2986_v51  ;;  %v3760_v32 = vrot.slane %v3758_v56, 4 }
 0x303   :  { %5474 = vrot.lane.b32.xlu1 %v4759_v39, %s8457_s17  ;;  %v11541_v39 = vld [vmem:[%s13887_s0 + $0x10c] sm:$0xf]  ;;  %v5171_v7 = vor.u32 %v5170_v44, %v5166_v60  ;;  %v7708_v44 = vrot.slane %v7618_v20, 9 }
 0x304   :  { %4395 = vrot.lane.b32.xlu0 %v7762_v59, %s8455_s24  ;;  %v7668_v59 = vld [vmem:[%s13887_s0 + $0x110] sm:$0x1] }
 0x305   :  { %v4028_v28 = vpop.permute.xlu1 %4027  ;;  %v3873_v63 = vrot.slane %v7668_v59, 5  ;;  %v5172_v52 = vrot.slane %v5171_v7, 4  ;;  %v3761_v59 = vrot.slane %v7620_v37, 5  ;;  %v7650_v7 = vld [vmem:[%s13887_s0 + $0xb0] sm:$0x1] }
 0x306   :  { %4186 = vst.msk [vmem:[#allocation2 + $0x88] sm:$0xf] %vm4151_vm11, %v4028_v28  ;;  %v3357_v29 = vpop.permute.xlu0 %3356  ;;  %v8291_v4 = vld [vmem:[#allocation2 + $0x50] sm:$0xff]  ;;  %v7907_v37 = vld [vmem:[%s13887_s0 + $0x40] sm:$0xf] }
 0x307   :  { %3514 = vst.msk [vmem:[#allocation2 + $0x8c] sm:$0xf] %vm3478_vm10, %v3357_v29  ;;  %6778 = vmatmul.bf16.gmra.mxu1 %v8291_v4  ;;  %v7775_v29 = vld [vmem:[%s13887_s0 + $0x114] sm:$0xf]  ;;  %v5177_v61 = vsel %vm8551_vm2, %v5172_v52, %v5176_v13  ;;  %v3762_v60 = vsel %vm9295_vm7, %v3760_v32, %v3761_v59 }
 0x308   :  { %4187 = vst.msk [vmem:[#allocation2 + $0x8c] sm:$0xf] %vm4151_vm11, %v4030_v46  ;;  %4393 = vrot.lane.b32.xlu2 %v7761_v15, %s8455_s24  ;;  %v3870_v46 = vrot.slane %v11541_v39, 5 }
 0x30a   :  { %v6210_v41 = vpop.permute.xlu2 %6209  ;;  %v3872_v4 = vrot.slane %v3870_v46, 4 }
 0x30b   :  { %5516 = vrot.lane.b32.xlu1 %v5009_v45, %s8457_s17  ;;  %v7552_v45 = vld [vmem:[%s13887_s0 + $0xa8] sm:$0xf] }
 0x30c   :  { %5514 = vrot.lane.b32.xlu0 %v4999_v16, %s8457_s17  ;;  %v7935_v16 = vld [vmem:[%s13887_s0 + $0xb0] sm:$0x1]  ;;  %v2834_v26 = vshll.u32 %v7552_v45, 16  ;;  %v3874_v51 = vsel %vm9295_vm7, %v3872_v4, %v3873_v63 }
 0x30d   :  { %v4416_v17 = vpop.permute.xlu1 %4415  ;;  %v6004_v11 = vrot.slane %v7935_v16, 5 }
 0x30e   :  { %4573 = vst.msk [vmem:[#allocation2 + $0x8c] sm:$0xf] %vm4537_vm12, %v4416_v17  ;;  %v4414_v53 = vpop.permute.xlu0 %4413 }
 0x30f   :  { %4572 = vst.msk [vmem:[#allocation2 + $0x88] sm:$0xf] %vm4537_vm12, %v4414_v53  ;;  %v6005_v33 = vsel %vm9295_vm7, %v6003_v57, %v6004_v11  ;;  %v7955_v53 = vld [vmem:[%s13887_s0 + $0x118] sm:$0xf]  ;;  %v3831_v11 = vrot.slane %v7650_v7, 5 }
 0x310   :  { %5693 = vst.msk [vmem:[#allocation2 + $0x88] sm:$0xf] %vm5658_vm13, %v5535_v6  ;;  %5476 = vrot.lane.b32.xlu2 %v4769_v22, %s8457_s17  ;;  %v2831_v6 = vshrl.u32 %v7552_v45, 16  ;;  %v6050_v9 = vrot.slane %v7955_v53, 5  ;;  %v3871_v22 = vsel %vm9295_vm7, %v7724_v8, %v3870_v46  ;;  %v8012_v45 = vrot.slane %v7954_v48, 9 }
 0x311   :  { %v7648_v8 = vld [vmem:[%s13887_s0 + $0xa8] sm:$0xe]  ;;  %v5938_v48 = vrot.slane %v7907_v37, 5 }
 0x312   :  { %v4004_v28 = vpop.permute.xlu2 %4003  ;;  %v2833_v15 = vrot.slane %v2831_v6, 4  ;;  %v6051_v55 = vsel %vm9295_vm7, %v8012_v45, %v6050_v9 }
 0x313   :  { %6187 = vrot.lane.b32.xlu1 %v6002_v49, %s8458_s30  ;;  %4174 = vst.msk [vmem:[#allocation2 + $0x58] sm:$0xf] %vm4151_vm11, %v4004_v28  ;;  %v2836_v49 = vrot.slane %v2834_v26, 5  ;;  %v7776_v28 = vld [vmem:[%s13887_s0 + $0x118] sm:$0xf]  ;;  %v2850_v26 = vshll.u32 %v7554_v62, 16 }
 0x314   :  { %6149 = vrot.lane.b32.xlu0 %v5935_v0, %s8458_s30  ;;  %v5940_v62 = vrot.slane %v5938_v48, 4 }
 0x315   :  { %v6208_v31 = vpop.permute.xlu1 %6207  ;;  %v2837_v12 = vor.u32 %v2836_v49, %v2833_v15  ;;  %v2852_v18 = vrot.slane %v2850_v26, 5 }
 0x316   :  { %6366 = vst.msk [vmem:[#allocation2 + $0x88] sm:$0xf] %vm6331_vm14, %v6208_v31  ;;  %v5537_v58 = vpop.permute.xlu0 %5536  ;;  %v7956_v31 = vld [vmem:[%s13887_s0 + $0x11c] sm:$0x1] }
 0x317   :  { %5694 = vst.msk [vmem:[#allocation2 + $0x8c] sm:$0xf] %vm5658_vm13, %v5537_v58  ;;  %v6053_v2 = vrot.slane %v7956_v31, 5 }
 0x318   :  { %6367 = vst.msk [vmem:[#allocation2 + $0x8c] sm:$0xf] %vm6331_vm14, %v6210_v41  ;;  %6147 = vrot.lane.b32.xlu2 %v5932_v54, %s8458_s30  ;;  %v2838_v41 = vrot.slane %v2837_v12, 4  ;;  %v3759_v54 = vsel %vm9295_vm7, %v7708_v44, %v3758_v56 }
 0x31a   :  { %v4352_v17 = vpop.permute.xlu2 %4351  ;;  %v2843_v35 = vsel %vm8551_vm2, %v2838_v41, %v2842_v23 }
 0x31b   :  { %3364 = vrot.lane.b32.xlu1 %v2997_v14, %s8454_s14  ;;  %v6052_v14 = vrot.slane %v6050_v9, 4 }
 0x31c   :  { %3362 = vrot.lane.b32.xlu0 %v2987_v50, %s8454_s14  ;;  %v2844_v50 = vshrl.u32 %v7553_v40, 16 }
 0x31d   :  { %v3966_v47 = vpop.permute.xlu1 %3965  ;;  %v6054_v39 = vsel %vm9295_vm7, %v6052_v14, %v6053_v2  ;;  %v7763_v14 = vld [vmem:[%s13887_s0 + $0xb4] sm:$0xf] }
 0x31e   :  { %4155 = vst.msk [vmem:[#allocation2 + $0xc] sm:$0xf] %vm4151_vm11, %v3966_v47  ;;  %v3964_v38 = vpop.permute.xlu0 %3963  ;;  %v11647_v47 = vld [vmem:[%s13887_s0 + $0xac] sm:$0xf]  ;;  %v2846_v63 = vrot.slane %v2844_v50, 4 }
 0x31f   :  { %4154 = vst.msk [vmem:[#allocation2 + $0x8] sm:$0xf] %vm4151_vm11, %v3964_v38  ;;  %v8298_v10 = vld [vmem:[#allocation2 + $0x88] sm:$0xff]  ;;  %v3828_v4 = vrot.slane %v11647_v47, 5  ;;  %v5011_v38 = vshrl.u32 %v7840_v34, 16 }
 0x320   :  { %6813 = vmatmul.bf16.vlgmr.msra.gmra.mxu2 %v8298_v10  ;;  %4541 = vst.msk [vmem:[#allocation2 + $0xc] sm:$0xf] %vm4537_vm12, %v4352_v17  ;;  %6189 = vrot.lane.b32.xlu2 %v6005_v33, %s8458_s30  ;;  %v2847_v6 = vor.u32 %v2846_v63, %v2842_v23  ;;  %v5014_v10 = vshll.u32 %v7840_v34, 16  ;;  %v7811_v17 = vld [vmem:[%s13887_s0 + $0x40] sm:$0xf] }
 0x321   :  { %v3830_v57 = vrot.slane %v3828_v4, 4  ;;  %v5013_v15 = vrot.slane %v5011_v38, 4  ;;  %v11685_v33 = vld [vmem:[%s13887_s0 + $0xb8] sm:$0xf]  ;;  %v4784_v3 = vshrl.u32 %v7811_v17, 16 }
 0x322   :  { %v5471_v0 = vpop.permute.xlu2 %5470  ;;  %v2848_v52 = vrot.slane %v2847_v6, 4  ;;  %v5016_v49 = vrot.slane %v5014_v10, 5  ;;  %v5020_v53 = vshll.u32 %v11685_v33, 16  ;;  %v11743_v34 = vld [vmem:[%s13887_s0 + $0x154] sm:$0xf]  ;;  %v5024_v38 = vshrl.u32 %v11685_v33, 16 }
 0x323   :  { %4421 = vrot.lane.b32.xlu1 %v7775_v29, %s8455_s24  ;;  %v4786_v41 = vrot.slane %v4784_v3, 4  ;;  %v7906_v6 = vld [vmem:[%s13887_s0 + $0x3c] sm:$0xe]  ;;  %v7744_v10 = vld [vmem:[%s13887_s0 + $0x40] sm:$0xf] }
 0x324   :  { %4037 = vrot.lane.b32.xlu0 %v3874_v51, %s8456_s27  ;;  %v7743_v51 = vld [vmem:[%s13887_s0 + $0x3c] sm:$0xf]  ;;  %v2853_v12 = vsel %vm8551_vm2, %v2848_v52, %v2852_v18  ;;  %v11707_v19 = vrot.slane %v5020_v53, 5  ;;  %v11760_v52 = vld [vmem:[%s13887_s0 + $0xb8] sm:$0xf] }
 0x325   :  { %v4350_v42 = vpop.permute.xlu1 %4349  ;;  %v7842_v3 = vld [vmem:[%s13887_s0 + $0xbc] sm:$0x1] }
 0x326   :  { %4540 = vst.msk [vmem:[#allocation2 + $0x8] sm:$0xf] %vm4537_vm12, %v4350_v42  ;;  %v4006_v5 = vpop.permute.xlu0 %4005  ;;  %v3832_v42 = vsel %vm9295_vm7, %v3830_v57, %v3831_v11  ;;  %v7996_v11 = vrot.slane %v7906_v6, 9 }
 0x327   :  { %4175 = vst.msk [vmem:[#allocation2 + $0x5c] sm:$0xf] %vm4151_vm11, %v4006_v5  ;;  %v5017_v5 = vor.u32 %v5016_v49, %v5013_v15  ;;  %v5026_v49 = vrot.slane %v5024_v38, 4 }
 0x328   :  { %5661 = vst.msk [vmem:[#allocation2 + $0x8] sm:$0xf] %vm5658_vm13, %v5471_v0  ;;  %4035 = vrot.lane.b32.xlu2 %v3871_v22, %s8456_s27 }
 0x329   :  { %v5018_v31 = vrot.slane %v5017_v5, 4  ;;  %v7685_v5 = vld [vmem:[%s13887_s0 + $0x154] sm:$0xf] }
 0x32a   :  { %v5513_v58 = vpop.permute.xlu2 %5512 }
 0x32b   :  { %5544 = vrot.lane.b32.xlu1 %v5177_v61, %s8457_s17  ;;  %v4780_v61 = vshll.u32 %v7811_v17, 16 }
 0x32c   :  { %5542 = vrot.lane.b32.xlu0 %v5167_v25, %s8457_s17  ;;  %v7812_v25 = vld [vmem:[%s13887_s0 + $0x44] sm:$0x1] }
 0x32d   :  { %v4392_v30 = vpop.permute.xlu1 %4391  ;;  %v11702_v0 = vrot.slane %v4780_v61, 5  ;;  %v4790_v22 = vshll.u32 %v7812_v25, 16  ;;  %v6008_v61 = vrot.slane %v11760_v52, 5  ;;  %v5030_v25 = vshll.u32 %v7842_v3, 16 }
 0x32e   :  { %4561 = vst.msk [vmem:[#allocation2 + $0x5c] sm:$0xf] %vm4537_vm12, %v4392_v30  ;;  %v4390_v36 = vpop.permute.xlu0 %4389  ;;  %v7718_v30 = vrot.slane %v7648_v8, 9  ;;  %v5027_v8 = vor.u32 %v5026_v49, %v11707_v19 }
 0x32f   :  { %4560 = vst.msk [vmem:[#allocation2 + $0x58] sm:$0xf] %vm4537_vm12, %v4390_v36  ;;  %v4787_v56 = vor.u32 %v4786_v41, %v11702_v0  ;;  %v4792_v20 = vrot.slane %v4790_v22, 5  ;;  %v3912_v22 = vrot.slane %v7685_v5, 5 }
 0x330   :  { %5682 = vst.msk [vmem:[#allocation2 + $0x5c] sm:$0xf] %vm5658_vm13, %v5513_v58  ;;  %4423 = vrot.lane.b32.xlu2 %v7776_v28, %s8455_s24  ;;  %v3829_v59 = vsel %vm9295_vm7, %v7718_v30, %v3828_v4  ;;  %v7908_v28 = vld [vmem:[%s13887_s0 + $0x44] sm:$0x1]  ;;  %v6010_v30 = vrot.slane %v6008_v61, 4 }
 0x331   :  { %v4788_v50 = vrot.slane %v4787_v56, 4 }
 0x332   :  { %v6184_v29 = vpop.permute.xlu2 %6183 }
 0x333   :  { %3338 = vrot.lane.b32.xlu1 %v2843_v35, %s8454_s14  ;;  %v7810_v35 = vld [vmem:[%s13887_s0 + $0x3c] sm:$0xf] }
 0x334   :  { %6217 = vrot.lane.b32.xlu0 %v6054_v39, %s8458_s30  ;;  %v7588_v39 = vld [vmem:[%s13887_s0 + $0x150] sm:$0xf]  ;;  %v4771_v58 = vshrl.u32 %v7810_v35, 16  ;;  %v4774_v32 = vshll.u32 %v7810_v35, 16 }
 0x335   :  { %v5511_v46 = vpop.permute.xlu1 %5510  ;;  %v3122_v44 = vshll.u32 %v7588_v39, 16 }
 0x336   :  { %5681 = vst.msk [vmem:[#allocation2 + $0x58] sm:$0xf] %vm5658_vm13, %v5511_v46  ;;  %v5473_v43 = vpop.permute.xlu0 %5472  ;;  %v5023_v46 = vsel %vm8551_vm2, %v5018_v31, %v11707_v19  ;;  %v4773_v47 = vrot.slane %v4771_v58, 4  ;;  %v4776_v63 = vrot.slane %v4774_v32, 5  ;;  %v5028_v19 = vrot.slane %v5027_v8, 4 }
 0x337   :  { %5662 = vst.msk [vmem:[#allocation2 + $0xc] sm:$0xf] %vm5658_vm13, %v5473_v43  ;;  %v3124_v7 = vrot.slane %v3122_v44, 5  ;;  %v3914_v58 = vrot.slane %v3912_v22, 4 }
 0x338   :  { %6354 = vst.msk [vmem:[#allocation2 + $0x58] sm:$0xf] %vm6331_vm14, %v6184_v29  ;;  %6215 = vrot.lane.b32.xlu2 %v6051_v55, %s8458_s30  ;;  %v4793_v29 = vsel %vm8551_vm2, %v4788_v50, %v4792_v20  ;;  %v4777_v26 = vor.u32 %v4776_v63, %v4773_v47  ;;  %v7574_v20 = vld [vmem:[%s13887_s0 + $0x118] sm:$0xf] }
 0x339   :  { %v3008_v47 = vshll.u32 %v7574_v20, 16  ;;  %v3012_v63 = vshrl.u32 %v7574_v20, 16 }
 0x33a   :  { %v3361_v40 = vpop.permute.xlu2 %3360  ;;  %v4778_v18 = vrot.slane %v4777_v26, 4  ;;  %v7590_v26 = vld [vmem:[%s13887_s0 + $0x158] sm:$0x1] }
 0x33b   :  { %3973 = vrot.lane.b32.xlu1 %v3762_v60, %s8456_s27  ;;  %3516 = vst.msk [vmem:[#allocation2 + $0x94] sm:$0xf] %vm3478_vm10, %v3361_v40  ;;  %v3119_v60 = vshrl.u32 %v7588_v39, 16  ;;  %v3010_v38 = vrot.slane %v3008_v47, 5 }
 0x33c   :  { %3971 = vrot.lane.b32.xlu0 %v3759_v54, %s8456_s27  ;;  %v5941_v54 = vrot.slane %v7908_v28, 5  ;;  %v4783_v53 = vsel %vm8551_vm2, %v4778_v18, %v11702_v0  ;;  %v7686_v0 = vld [vmem:[%s13887_s0 + $0x158] sm:$0x1]  ;;  %v3132_v28 = vshrl.u32 %v11743_v34, 16 }
 0x33d   :  { %v6146_v16 = vpop.permute.xlu1 %6145  ;;  %v3915_v32 = vrot.slane %v7686_v0, 5  ;;  %v11878_v0 = vld [vmem:[%s13887_s0 + $0x160] sm:$0xf] }
 0x33e   :  { %6335 = vst.msk [vmem:[#allocation2 + $0xc] sm:$0xf] %vm6331_vm14, %v6146_v16  ;;  %v6144_v13 = vpop.permute.xlu0 %6143  ;;  %v3121_v16 = vrot.slane %v3119_v60, 4  ;;  %v5942_v57 = vsel %vm9295_vm7, %v5940_v62, %v5941_v54 }
 0x33f   :  { %6334 = vst.msk [vmem:[#allocation2 + $0x8] sm:$0xf] %vm6331_vm14, %v6144_v13 }
 0x340   :  { %3340 = vrot.lane.b32.xlu2 %v2853_v12, %s8454_s14  ;;  %v3125_v13 = vor.u32 %v3124_v7, %v3121_v16 }
 0x342   :  { %v4418_v2 = vpop.permute.xlu2 %4417  ;;  %v3126_v33 = vrot.slane %v3125_v13, 4  ;;  %v7575_v13 = vld [vmem:[%s13887_s0 + $0x11c] sm:$0x1] }
 0x343   :  { %4357 = vrot.lane.b32.xlu1 %v7743_v51, %s8455_s24  ;;  %v3128_v51 = vshll.u32 %v11743_v34, 16 }
 0x344   :  { %4013 = vrot.lane.b32.xlu0 %v3832_v42, %s8456_s27  ;;  %v5939_v42 = vsel %vm9295_vm7, %v7996_v11, %v5938_v48 }
 0x345   :  { %v3359_v27 = vpop.permute.xlu1 %3358  ;;  %v11766_v15 = vrot.slane %v3128_v51, 5 }
 0x346   :  { %3515 = vst.msk [vmem:[#allocation2 + $0x90] sm:$0xf] %vm3478_vm10, %v3359_v27  ;;  %v6186_v23 = vpop.permute.xlu0 %6185  ;;  %v8282_v9 = vld [vmem:[#allocation2 + $0x8] sm:$0xff]  ;;  %v7876_v27 = vld [vmem:[%s13887_s0 + $0x15c] sm:$0xf] }
 0x347   :  { %6355 = vst.msk [vmem:[#allocation2 + $0x5c] sm:$0xf] %vm6331_vm14, %v6186_v23  ;;  %6733 = vmatmul.bf16.gmra.mxu0 %v8282_v9  ;;  %v5299_v41 = vshrl.u32 %v7876_v27, 16  ;;  %v5302_v23 = vshll.u32 %v7876_v27, 16  ;;  %v3131_v9 = vsel %vm8551_vm2, %v3126_v33, %v11766_v15  ;;  %v3018_v33 = vshll.u32 %v7575_v13, 16 }
 0x348   :  { %4011 = vrot.lane.b32.xlu2 %v3829_v59, %s8456_s27  ;;  %v11809_v59 = vld [vmem:[%s13887_s0 + $0x160] sm:$0xf]  ;;  %v7555_v13 = vld [vmem:[%s13887_s0 + $0xb4] sm:$0xf] }
 0x349   :  { %v5301_v56 = vrot.slane %v5299_v41, 4  ;;  %v5308_v44 = vshll.u32 %v11809_v59, 16  ;;  %v5312_v41 = vshrl.u32 %v11809_v59, 16  ;;  %v7787_v59 = vld [vmem:[%s13887_s0 + $0x15c] sm:$0xf] }
 0x34a   :  { %v5541_v4 = vpop.permute.xlu2 %5540 }
 0x34b   :  { %4399 = vrot.lane.b32.xlu1 %v7764_v1, %s8455_s24  ;;  %v7938_v1 = vld [vmem:[%s13887_s0 + $0xbc] sm:$0x1]  ;;  %v11834_v7 = vrot.slane %v5308_v44, 5 }
 0x34c   :  { %4397 = vrot.lane.b32.xlu0 %v7763_v14, %s8455_s24  ;;  %v6011_v31 = vrot.slane %v7938_v1, 5  ;;  %v5032_v14 = vrot.slane %v5030_v25, 5  ;;  %v7788_v1 = vld [vmem:[%s13887_s0 + $0x160] sm:$0xf] }
 0x34d   :  { %v4034_v36 = vpop.permute.xlu1 %4033 }
 0x34e   :  { %4189 = vst.msk [vmem:[#allocation2 + $0x94] sm:$0xf] %vm4151_vm11, %v4034_v36  ;;  %v4032_v43 = vpop.permute.xlu0 %4031  ;;  %v8292_v45 = vld [vmem:[#allocation2 + $0x58] sm:$0xff]  ;;  %v5304_v36 = vrot.slane %v5302_v23, 5  ;;  %v6012_v37 = vsel %vm9295_vm7, %v6010_v30, %v6011_v31  ;;  %v5033_v48 = vsel %vm8551_vm2, %v5028_v19, %v5032_v14  ;;  %v5314_v19 = vrot.slane %v5312_v41, 4 }
 0x34f   :  { %4188 = vst.msk [vmem:[#allocation2 + $0x90] sm:$0xf] %vm4151_vm11, %v4032_v43  ;;  %6783 = vmatmul.bf16.gmra.mxu1 %v8292_v45  ;;  %v3916_v43 = vsel %vm9295_vm7, %v3914_v58, %v3915_v32  ;;  %v7936_v45 = vld [vmem:[%s13887_s0 + $0xb4] sm:$0xe]  ;;  %v7974_v32 = vld [vmem:[%s13887_s0 + $0x164] sm:$0x1] }
 0x350   :  { %4574 = vst.msk [vmem:[#allocation2 + $0x90] sm:$0xf] %vm4537_vm12, %v4418_v2  ;;  %4359 = vrot.lane.b32.xlu2 %v7744_v10, %s8455_s24  ;;  %v7684_v2 = vld [vmem:[%s13887_s0 + $0x150] sm:$0xe]  ;;  %v5305_v60 = vor.u32 %v5304_v36, %v5301_v56  ;;  %v8006_v34 = vrot.slane %v7936_v45, 9  ;;  %v3014_v10 = vrot.slane %v3012_v63, 4 }
 0x351   :  { %v7730_v50 = vrot.slane %v7684_v2, 9 }
 0x352   :  { %v3968_v40 = vpop.permute.xlu2 %3967  ;;  %v5306_v16 = vrot.slane %v5305_v60, 4  ;;  %v7862_v60 = vld [vmem:[%s13887_s0 + $0x124] sm:$0xf] }
 0x353   :  { %5518 = vrot.lane.b32.xlu1 %v5023_v46, %s8457_s17  ;;  %4156 = vst.msk [vmem:[#allocation2 + $0x10] sm:$0xf] %vm4151_vm11, %v3968_v40  ;;  %v3913_v62 = vsel %vm9295_vm7, %v7730_v50, %v3912_v22  ;;  %v3015_v40 = vor.u32 %v3014_v10, %v3010_v38  ;;  %v7669_v22 = vld [vmem:[%s13887_s0 + $0x114] sm:$0xe]  ;;  %v5188_v47 = vshll.u32 %v7862_v60, 16  ;;  %v5192_v63 = vshrl.u32 %v7862_v60, 16 }
 0x354   :  { %5480 = vrot.lane.b32.xlu0 %v4793_v29, %s8457_s17  ;;  %v5311_v18 = vsel %vm8551_vm2, %v5306_v16, %v11834_v7  ;;  %v7725_v56 = vrot.slane %v7669_v22, 9  ;;  %v7863_v10 = vld [vmem:[%s13887_s0 + $0x128] sm:$0x1] }
 0x355   :  { %v5539_v55 = vpop.permute.xlu1 %5538 }
 0x356   :  { %5695 = vst.msk [vmem:[#allocation2 + $0x90] sm:$0xf] %vm5658_vm13, %v5539_v55  ;;  %v4420_v17 = vpop.permute.xlu0 %4419  ;;  %v3134_v55 = vrot.slane %v3132_v28, 4 }
 0x357   :  { %4575 = vst.msk [vmem:[#allocation2 + $0x94] sm:$0xf] %vm4537_vm12, %v4420_v17  ;;  %v6009_v17 = vsel %vm9295_vm7, %v8006_v34, %v6008_v61  ;;  %v7972_v34 = vld [vmem:[%s13887_s0 + $0x15c] sm:$0xe] }
 0x358   :  { %5696 = vst.msk [vmem:[#allocation2 + $0x94] sm:$0xf] %vm5658_vm13, %v5541_v4  ;;  %5478 = vrot.lane.b32.xlu2 %v4783_v53, %s8457_s17  ;;  %v7573_v4 = vld [vmem:[%s13887_s0 + $0x114] sm:$0xf]  ;;  %v3135_v49 = vor.u32 %v3134_v55, %v11766_v15  ;;  %v3016_v15 = vrot.slane %v3015_v40, 4  ;;  %v3020_v53 = vrot.slane %v3018_v33, 5 }
 0x359   :  { %v2999_v51 = vshrl.u32 %v7573_v4, 16  ;;  %v11929_v55 = vld [vmem:[%s13887_s0 + $0x124] sm:$0xf]  ;;  %v5198_v33 = vshll.u32 %v7863_v10, 16 }
 0x35a   :  { %v4010_v39 = vpop.permute.xlu2 %4009  ;;  %v3136_v52 = vrot.slane %v3135_v49, 4  ;;  %v6057_v49 = vrot.slane %v11929_v55, 5  ;;  %v7844_v55 = vld [vmem:[%s13887_s0 + $0xc4] sm:$0xf] }
 0x35b   :  { %6153 = vrot.lane.b32.xlu1 %v5942_v57, %s8458_s30  ;;  %4177 = vst.msk [vmem:[#allocation2 + $0x64] sm:$0xf] %vm4151_vm11, %v4010_v39  ;;  %v3002_v57 = vshll.u32 %v7573_v4, 16  ;;  %v3001_v3 = vrot.slane %v2999_v51, 4  ;;  %v7878_v39 = vld [vmem:[%s13887_s0 + $0x164] sm:$0x1] }
 0x35c   :  { %6151 = vrot.lane.b32.xlu0 %v5939_v42, %s8458_s30  ;;  %v3138_v42 = vshll.u32 %v7590_v26, 16  ;;  %v5318_v20 = vshll.u32 %v7878_v39, 16  ;;  %v5194_v26 = vrot.slane %v5192_v63, 4  ;;  %v11995_v63 = vld [vmem:[%s13887_s0 + $0x40] sm:$0xf] }
 0x35d   :  { %v6214_v12 = vpop.permute.xlu1 %6213  ;;  %v3004_v27 = vrot.slane %v3002_v57, 5 }
 0x35e   :  { %6369 = vst.msk [vmem:[#allocation2 + $0x94] sm:$0xf] %vm6331_vm14, %v6214_v12  ;;  %v6212_v35 = vpop.permute.xlu0 %6211  ;;  %v3140_v61 = vrot.slane %v3138_v42, 5  ;;  %v5320_v45 = vrot.slane %v5318_v20, 5  ;;  %v7777_v42 = vld [vmem:[%s13887_s0 + $0x120] sm:$0xf] }
 0x35f   :  { %6368 = vst.msk [vmem:[#allocation2 + $0x90] sm:$0xf] %vm6331_vm14, %v6212_v35  ;;  %v3005_v8 = vor.u32 %v3004_v27, %v3001_v3  ;;  %v11873_v35 = vld [vmem:[%s13887_s0 + $0x118] sm:$0xf] }
 0x360   :  { %5520 = vrot.lane.b32.xlu2 %v5033_v48, %s8457_s17  ;;  %v3141_v23 = vsel %vm8551_vm2, %v3136_v52, %v3140_v61  ;;  %v3877_v36 = vrot.slane %v11873_v35, 5  ;;  %v6095_v48 = vrot.slane %v7974_v32, 5  ;;  %v2855_v52 = vshrl.u32 %v7555_v13, 16 }
 0x361   :  { %v3006_v30 = vrot.slane %v3005_v8, 4  ;;  %v2858_v61 = vshll.u32 %v7555_v13, 16 }
 0x362   :  { %v4394_v6 = vpop.permute.xlu2 %4393  ;;  %v3878_v50 = vsel %vm9295_vm7, %v7725_v56, %v3877_v36 }
 0x363   :  { %3386 = vrot.lane.b32.xlu1 %v3131_v9, %s8454_s14  ;;  %v3021_v9 = vsel %vm8551_vm2, %v3016_v15, %v3020_v53  ;;  %v3011_v14 = vsel %vm8551_vm2, %v3006_v30, %v3010_v38  ;;  %v7778_v38 = vld [vmem:[%s13887_s0 + $0x124] sm:$0xf]  ;;  %v7557_v53 = vld [vmem:[%s13887_s0 + $0xbc] sm:$0x1] }
 0x364   :  { %6193 = vrot.lane.b32.xlu0 %v6012_v37, %s8458_s30  ;;  %v6092_v37 = vrot.slane %v11878_v0, 5  ;;  %v2874_v0 = vshll.u32 %v7557_v53, 16  ;;  %v7621_v53 = vld [vmem:[%s13887_s0 + $0x3c] sm:$0xe] }
 0x365   :  { %v4008_v46 = vpop.permute.xlu1 %4007 }
 0x366   :  { %4176 = vst.msk [vmem:[#allocation2 + $0x60] sm:$0xf] %vm4151_vm11, %v4008_v46  ;;  %v3970_v54 = vpop.permute.xlu0 %3969  ;;  %v8299_v29 = vld [vmem:[#allocation2 + $0x90] sm:$0xff]  ;;  %v5315_v46 = vor.u32 %v5314_v19, %v11834_v7  ;;  %v6094_v28 = vrot.slane %v6092_v37, 4  ;;  %v7957_v7 = vld [vmem:[%s13887_s0 + $0x120] sm:$0xe] }
 0x367   :  { %4157 = vst.msk [vmem:[#allocation2 + $0x14] sm:$0xf] %vm4151_vm11, %v3970_v54  ;;  %6818 = vmatmul.bf16.gmra.mxu2 %v8299_v29  ;;  %v2857_v19 = vrot.slane %v2855_v52, 4  ;;  %v12035_v52 = vld [vmem:[%s13887_s0 + $0x4c] sm:$0xf] }
 0x368   :  { %4562 = vst.msk [vmem:[#allocation2 + $0x60] sm:$0xf] %vm4537_vm12, %v4394_v6  ;;  %6191 = vrot.lane.b32.xlu2 %v6009_v17, %s8458_s30  ;;  %v6096_v54 = vsel %vm9295_vm7, %v6094_v28, %v6095_v48  ;;  %v11931_v6 = vrot.slane %v5188_v47, 5  ;;  %v8018_v17 = vrot.slane %v7972_v34, 9  ;;  %v11990_v47 = vld [vmem:[%s13887_s0 + $0xb8] sm:$0xf] }
 0x369   :  { %v3835_v34 = vrot.slane %v11990_v47, 5  ;;  %v4808_v47 = vshrl.u32 %v12035_v52, 16 }
 0x36a   :  { %v5477_v5 = vpop.permute.xlu2 %5476  ;;  %v5195_v40 = vor.u32 %v5194_v26, %v11931_v6  ;;  %v6093_v8 = vsel %vm9295_vm7, %v8018_v17, %v6092_v37  ;;  %v3879_v37 = vrot.slane %v3877_v36, 4 }
 0x36b   :  { %4061 = vrot.lane.b32.xlu1 %v3916_v43, %s8456_s27  ;;  %v5316_v43 = vrot.slane %v5315_v46, 4 }
 0x36c   :  { %4059 = vrot.lane.b32.xlu0 %v3913_v62, %s8456_s27  ;;  %v7556_v62 = vld [vmem:[%s13887_s0 + $0xb8] sm:$0xf]  ;;  %v5196_v41 = vrot.slane %v5195_v40, 4 }
 0x36d   :  { %v4356_v11 = vpop.permute.xlu1 %4355  ;;  %v5321_v16 = vsel %vm8551_vm2, %v5316_v43, %v5320_v45  ;;  %v2864_v51 = vshll.u32 %v7556_v62, 16  ;;  %v2868_v57 = vshrl.u32 %v7556_v62, 16  ;;  %v7651_v45 = vld [vmem:[%s13887_s0 + $0xb4] sm:$0xe] }
 0x36e   :  { %4543 = vst.msk [vmem:[#allocation2 + $0x14] sm:$0xf] %vm4537_vm12, %v4356_v11  ;;  %v4354_v12 = vpop.permute.xlu0 %4353  ;;  %v7719_v62 = vrot.slane %v7651_v45, 9 }
 0x36f   :  { %4542 = vst.msk [vmem:[#allocation2 + $0x10] sm:$0xf] %vm4537_vm12, %v4354_v12  ;;  %v11950_v27 = vrot.slane %v2864_v51, 5  ;;  %v2870_v12 = vrot.slane %v2868_v57, 4 }
 0x370   :  { %5664 = vst.msk [vmem:[#allocation2 + $0x14] sm:$0xf] %vm5658_vm13, %v5477_v5  ;;  %3388 = vrot.lane.b32.xlu2 %v3141_v23, %s8454_s14  ;;  %v5200_v23 = vrot.slane %v5198_v33, 5 }
 0x371   :  { %v2871_v22 = vor.u32 %v2870_v12, %v11950_v27 }
 0x372   :  { %v6148_v2 = vpop.permute.xlu2 %6147 }
 0x373   :  { %5566 = vrot.lane.b32.xlu1 %v5311_v18, %s8457_s17  ;;  %v8013_v18 = vrot.slane %v7957_v7, 9  ;;  %v2872_v20 = vrot.slane %v2871_v22, 4  ;;  %v7813_v7 = vld [vmem:[%s13887_s0 + $0x48] sm:$0xf] }
 0x374   :  { %4447 = vrot.lane.b32.xlu0 %v7788_v1, %s8455_s24  ;;  %v7861_v1 = vld [vmem:[%s13887_s0 + $0x120] sm:$0xf]  ;;  %v4795_v51 = vshrl.u32 %v7813_v7, 16  ;;  %v4798_v57 = vshll.u32 %v7813_v7, 16  ;;  %v7745_v22 = vld [vmem:[%s13887_s0 + $0x48] sm:$0xf] }
 0x375   :  { %v5475_v25 = vpop.permute.xlu1 %5474  ;;  %v5182_v30 = vshll.u32 %v7861_v1, 16  ;;  %v12103_v7 = vld [vmem:[%s13887_s0 + $0xc4] sm:$0xf] }
 0x376   :  { %5663 = vst.msk [vmem:[#allocation2 + $0x10] sm:$0xf] %vm5658_vm13, %v5475_v25  ;;  %v4396_v31 = vpop.permute.xlu0 %4395  ;;  %v6058_v25 = vsel %vm9295_vm7, %v8013_v18, %v6057_v49  ;;  %v7959_v18 = vld [vmem:[%s13887_s0 + $0x128] sm:$0x1]  ;;  %v4797_v33 = vrot.slane %v4795_v51, 4 }
 0x377   :  { %4563 = vst.msk [vmem:[#allocation2 + $0x64] sm:$0xf] %vm4537_vm12, %v4396_v31  ;;  %v7671_v31 = vld [vmem:[%s13887_s0 + $0x11c] sm:$0x1]  ;;  %v5184_v32 = vrot.slane %v5182_v30, 5  ;;  %v6060_v40 = vrot.slane %v7959_v18, 5 }
 0x378   :  { %6336 = vst.msk [vmem:[#allocation2 + $0x10] sm:$0xf] %vm6331_vm14, %v6148_v2  ;;  %4445 = vrot.lane.b32.xlu2 %v7787_v59, %s8455_s24  ;;  %v3880_v39 = vrot.slane %v7671_v31, 5  ;;  %v5201_v59 = vsel %vm8551_vm2, %v5196_v41, %v5200_v23  ;;  %v7843_v23 = vld [vmem:[%s13887_s0 + $0xc0] sm:$0xf]  ;;  %v6015_v18 = vrot.slane %v12103_v7, 5 }
 0x37a   :  { %v6190_v29 = vpop.permute.xlu2 %6189  ;;  %v3881_v60 = vsel %vm9295_vm7, %v3879_v37, %v3880_v39  ;;  %v7845_v39 = vld [vmem:[%s13887_s0 + $0xc8] sm:$0x1] }
 0x37b   :  { %3368 = vrot.lane.b32.xlu1 %v3021_v9, %s8454_s14  ;;  %v5179_v9 = vshrl.u32 %v7861_v1, 16 }
 0x37c   :  { %3366 = vrot.lane.b32.xlu0 %v3011_v14, %s8454_s14  ;;  %v2860_v14 = vrot.slane %v2858_v61, 5 }
 0x37d   :  { %v5517_v58 = vpop.permute.xlu1 %5516 }
 0x37e   :  { %5684 = vst.msk [vmem:[#allocation2 + $0x64] sm:$0xf] %vm5658_vm13, %v5517_v58  ;;  %v5515_v44 = vpop.permute.xlu0 %5514  ;;  %v5181_v58 = vrot.slane %v5179_v9, 4  ;;  %v2861_v28 = vor.u32 %v2860_v14, %v2857_v19  ;;  %v7709_v9 = vrot.slane %v7621_v53, 9  ;;  %v7765_v53 = vld [vmem:[%s13887_s0 + $0xc0] sm:$0xf] }
 0x37f   :  { %5683 = vst.msk [vmem:[#allocation2 + $0x60] sm:$0xf] %vm5658_vm13, %v5515_v44 }
 0x380   :  { %6357 = vst.msk [vmem:[#allocation2 + $0x64] sm:$0xf] %vm6331_vm14, %v6190_v29  ;;  %5568 = vrot.lane.b32.xlu2 %v5321_v16, %s8457_s17  ;;  %v5185_v35 = vor.u32 %v5184_v32, %v5181_v58  ;;  %v2862_v44 = vrot.slane %v2861_v28, 4  ;;  %v3765_v16 = vrot.slane %v11995_v63, 5 }
 0x382   :  { %v4036_v3 = vpop.permute.xlu2 %4035  ;;  %v2867_v29 = vsel %vm8551_vm2, %v2862_v44, %v11950_v27  ;;  %v3767_v13 = vrot.slane %v3765_v16, 4  ;;  %v3766_v58 = vsel %vm9295_vm7, %v7709_v9, %v3765_v16  ;;  %v7766_v44 = vld [vmem:[%s13887_s0 + $0xc4] sm:$0xf]  ;;  %v7939_v16 = vld [vmem:[%s13887_s0 + $0xc0] sm:$0xe] }
 0x383   :  { %4039 = vrot.lane.b32.xlu1 %v3878_v50, %s8456_s27  ;;  %v2876_v50 = vrot.slane %v2874_v0, 5  ;;  %v12148_v9 = vld [vmem:[%s13889_s2] ss:$0 sm:$0xff] }
 0x384   :  { %6241 = vrot.lane.b32.xlu0 %v6096_v54, %s8458_s30  ;;  %v5186_v54 = vrot.slane %v5185_v35, 4  ;;  %v3837_v35 = vrot.slane %v3835_v34, 4 }
 0x385   :  { %v6188_v4 = vpop.permute.xlu1 %6187  ;;  %v2877_v36 = vsel %vm8551_vm2, %v2872_v20, %v2876_v50  ;;  %v5054_v20 = vshll.u32 %v7845_v39, 16 }
 0x386   :  { %6356 = vst.msk [vmem:[#allocation2 + $0x60] sm:$0xf] %vm6331_vm14, %v6188_v4  ;;  %v6150_v11 = vpop.permute.xlu0 %6149  ;;  %v5191_v10 = vsel %vm8551_vm2, %v5186_v54, %v11931_v6  ;;  %v6059_v6 = vrot.slane %v6057_v49, 4 }
 0x387   :  { %6337 = vst.msk [vmem:[#allocation2 + $0x14] sm:$0xf] %vm6331_vm14, %v6150_v11  ;;  %v3836_v11 = vsel %vm9295_vm7, %v7719_v62, %v3835_v34  ;;  %v5056_v63 = vrot.slane %v5054_v20, 5  ;;  %v7592_v62 = vld [vmem:[%s13887_s0 + $0x160] sm:$0xf] }
 0x388   :  { %6239 = vrot.lane.b32.xlu2 %v6093_v8, %s8458_s30  ;;  %v6061_v49 = vsel %vm9295_vm7, %v6059_v6, %v6060_v40  ;;  %v5044_v8 = vshll.u32 %v7844_v55, 16  ;;  %v3156_v51 = vshrl.u32 %v7592_v62, 16 }
 0x38a   :  { %v4424_v46 = vpop.permute.xlu2 %4423  ;;  %v12063_v19 = vrot.slane %v5044_v8, 5 }
 0x38b   :  { %4427 = vrot.lane.b32.xlu1 %v7778_v38, %s8455_s24  ;;  %v7623_v38 = vld [vmem:[%s13887_s0 + $0x44] sm:$0x1] }
 0x38c   :  { %4425 = vrot.lane.b32.xlu0 %v7777_v42, %s8455_s24  ;;  %v3768_v17 = vrot.slane %v7623_v38, 5 }
 0x38d   :  { %v3365_v5 = vpop.permute.xlu1 %3364  ;;  %v8293_v15 = vld [vmem:[#allocation2 + $0x60] sm:$0xff] }
 0x38e   :  { %3518 = vst.msk [vmem:[#allocation2 + $0x9c] sm:$0xf] %vm3478_vm10, %v3365_v5  ;;  %6788 = vmatmul.bf16.gmra.mxu1 %v8293_v15  ;;  %v3363_v2 = vpop.permute.xlu0 %3362  ;;  %v8283_v56 = vld [vmem:[#allocation2 + $0x10] sm:$0xff]  ;;  %v3769_v27 = vsel %vm9295_vm7, %v3767_v13, %v3768_v17  ;;  %v4804_v5 = vshll.u32 %v12035_v52, 16  ;;  %v7746_v15 = vld [vmem:[%s13887_s0 + $0x4c] sm:$0xf] }
 0x38f   :  { %3517 = vst.msk [vmem:[#allocation2 + $0x98] sm:$0xf] %vm3478_vm10, %v3363_v2  ;;  %6738 = vmatmul.bf16.gmra.mxu0 %v8283_v56  ;;  %v5035_v2 = vshrl.u32 %v7843_v23, 16  ;;  %v5038_v56 = vshll.u32 %v7843_v23, 16  ;;  %v12113_v13 = vld [vmem:[%s13887_s0 + $0x4c] sm:$0xf] }
 0x390   :  { %4190 = vst.msk [vmem:[#allocation2 + $0x98] sm:$0xf] %vm4151_vm11, %v4036_v3  ;;  %4041 = vrot.lane.b32.xlu2 %v3881_v60, %s8456_s27  ;;  %v4800_v3 = vrot.slane %v4798_v57, 5  ;;  %v12058_v31 = vrot.slane %v4804_v5, 5  ;;  %v7591_v57 = vld [vmem:[%s13887_s0 + $0x15c] sm:$0xf] }
 0x391   :  { %v5037_v50 = vrot.slane %v5035_v2, 4  ;;  %v5040_v28 = vrot.slane %v5038_v56, 5  ;;  %v8007_v17 = vrot.slane %v7939_v16, 9  ;;  %v3143_v6 = vshrl.u32 %v7591_v57, 16 }
 0x392   :  { %v6216_v4 = vpop.permute.xlu2 %6215  ;;  %v4801_v1 = vor.u32 %v4800_v3, %v4797_v33  ;;  %v3146_v40 = vshll.u32 %v7591_v57, 16  ;;  %v7881_v57 = vld [vmem:[%s13887_s0 + $0x170] sm:$0x1] }
 0x393   :  { %6219 = vrot.lane.b32.xlu1 %v6058_v25, %s8458_s30  ;;  %v5048_v25 = vshrl.u32 %v7844_v55, 16  ;;  %v5041_v54 = vor.u32 %v5040_v28, %v5037_v50  ;;  %v6016_v5 = vsel %vm9295_vm7, %v8007_v17, %v6015_v18  ;;  %v7880_v50 = vld [vmem:[%s13887_s0 + $0x16c] sm:$0xf] }
 0x394   :  { %5548 = vrot.lane.b32.xlu0 %v5201_v59, %s8457_s17  ;;  %v4802_v30 = vrot.slane %v4801_v1, 4  ;;  %v7653_v59 = vld [vmem:[%s13887_s0 + $0xbc] sm:$0x1]  ;;  %v7593_v1 = vld [vmem:[%s13887_s0 + $0x164] sm:$0x1]  ;;  %v3148_v23 = vrot.slane %v3146_v40, 5 }
 0x395   :  { %v4422_v48 = vpop.permute.xlu1 %4421  ;;  %v5050_v14 = vrot.slane %v5048_v25, 4  ;;  %v5042_v38 = vrot.slane %v5041_v54, 4  ;;  %v5336_v54 = vshrl.u32 %v7880_v50, 16 }
 0x396   :  { %4576 = vst.msk [vmem:[#allocation2 + $0x98] sm:$0xf] %vm4537_vm12, %v4422_v48  ;;  %v4038_v43 = vpop.permute.xlu0 %4037  ;;  %v4807_v32 = vsel %vm8551_vm2, %v4802_v30, %v12058_v31 }
 0x397   :  { %4191 = vst.msk [vmem:[#allocation2 + $0x9c] sm:$0xf] %vm4151_vm11, %v4038_v43  ;;  %v5047_v33 = vsel %vm8551_vm2, %v5042_v38, %v12063_v19  ;;  %v7689_v38 = vld [vmem:[%s13887_s0 + $0x164] sm:$0x1]  ;;  %v5338_v17 = vrot.slane %v5336_v54, 4 }
 0x398   :  { %4577 = vst.msk [vmem:[#allocation2 + $0x9c] sm:$0xf] %vm4537_vm12, %v4424_v46  ;;  %5546 = vrot.lane.b32.xlu2 %v5191_v10, %s8457_s17  ;;  %v5051_v46 = vor.u32 %v5050_v14, %v12063_v19  ;;  %v3152_v10 = vshll.u32 %v7592_v62, 16  ;;  %v3162_v19 = vshll.u32 %v7593_v1, 16  ;;  %v7879_v62 = vld [vmem:[%s13887_s0 + $0x168] sm:$0xf] }
 0x399   :  { %v7941_v1 = vld [vmem:[%s13887_s0 + $0xc8] sm:$0x1] }
 0x39a   :  { %v3341_v12 = vpop.permute.xlu2 %3340  ;;  %v5052_v45 = vrot.slane %v5051_v46, 4  ;;  %v12126_v52 = vrot.slane %v3152_v10, 5  ;;  %v3164_v46 = vrot.slane %v3162_v19, 5 }
 0x39b   :  { %3344 = vrot.lane.b32.xlu1 %v2877_v36, %s8454_s14  ;;  %3506 = vst.msk [vmem:[#allocation2 + $0x6c] sm:$0xf] %vm3478_vm10, %v3341_v12  ;;  %v3838_v36 = vrot.slane %v7653_v59, 5  ;;  %v7815_v12 = vld [vmem:[%s13887_s0 + $0x50] sm:$0x1] }
 0x39c   :  { %3342 = vrot.lane.b32.xlu0 %v2867_v29, %s8454_s14  ;;  %v6729_v29 = vpop.f32.mrf.mxu0  ;;  %v4814_v25 = vshll.u32 %v7815_v12, 16 }
 0x39d   :  { %v5545_v26 = vpop.permute.xlu1 %5544  ;;  %v3839_v34 = vsel %vm9295_vm7, %v3837_v35, %v3838_v36 }
 0x39e   :  { %5698 = vst.msk [vmem:[#allocation2 + $0x9c] sm:$0xf] %vm5658_vm13, %v5545_v26  ;;  %v5543_v42 = vpop.permute.xlu0 %5542  ;;  %v5057_v26 = vsel %vm8551_vm2, %v5052_v45, %v5056_v63  ;;  %v12176_v45 = vld [vmem:[%s13887_s0 + $0x160] sm:$0xf]  ;;  %v5332_v63 = vshll.u32 %v7880_v50, 16 }
 0x39f   :  { %5697 = vst.msk [vmem:[#allocation2 + $0x98] sm:$0xf] %vm5658_vm13, %v5543_v42  ;;  %v4810_v42 = vrot.slane %v4808_v47, 4  ;;  %v3919_v10 = vrot.slane %v12176_v45, 5 }
 0x3a0   :  { %6370 = vst.msk [vmem:[#allocation2 + $0x98] sm:$0xf] %vm6331_vm14, %v6216_v4  ;;  %6221 = vrot.lane.b32.xlu2 %v6061_v49, %s8458_s30  ;;  %v7911_v49 = vld [vmem:[%s13887_s0 + $0x50] sm:$0x1] }
 0x3a1   :  { %v4811_v8 = vor.u32 %v4810_v42, %v12058_v31  ;;  %v6730_v31 = vadd.f32 %v12148_v9, %v6729_v29  ;;  %v5323_v42 = vshrl.u32 %v7879_v62, 16  ;;  %v3921_v12 = vrot.slane %v3919_v10, 4 }
 0x3a2   :  { %v4012_v0 = vpop.permute.xlu2 %4011 }
 0x3a3   :  { %4015 = vrot.lane.b32.xlu1 %v3836_v11, %s8456_s27  ;;  %v4812_v56 = vrot.slane %v4811_v8, 4  ;;  %v7577_v8 = vld [vmem:[%s13887_s0 + $0x124] sm:$0xf] }
 0x3a4   :  { %3977 = vrot.lane.b32.xlu0 %v3769_v27, %s8456_s27  ;;  %v5945_v27 = vrot.slane %v12113_v13, 5  ;;  %v5325_v13 = vrot.slane %v5323_v42, 4 }
 0x3a5   :  { %v3339_v61 = vpop.permute.xlu1 %3338 }
 0x3a6   :  { %3505 = vst.msk [vmem:[#allocation2 + $0x68] sm:$0xf] %vm3478_vm10, %v3339_v61  ;;  %v6218_v41 = vpop.permute.xlu0 %6217  ;;  %v3158_v61 = vrot.slane %v3156_v51, 4  ;;  %v5947_v30 = vrot.slane %v5945_v27, 4 }
 0x3a7   :  { %6371 = vst.msk [vmem:[#allocation2 + $0x9c] sm:$0xf] %vm6331_vm14, %v6218_v41  ;;  %v3145_v41 = vrot.slane %v3143_v6, 4  ;;  %v5326_v6 = vshll.u32 %v7879_v62, 16  ;;  %v7673_v62 = vld [vmem:[%s13887_s0 + $0x124] sm:$0xf] }
 0x3a8   :  { %4178 = vst.msk [vmem:[#allocation2 + $0x68] sm:$0xf] %vm4151_vm11, %v4012_v0  ;;  %3975 = vrot.lane.b32.xlu2 %v3766_v58, %s8456_s27  ;;  %v3159_v0 = vor.u32 %v3158_v61, %v12126_v52  ;;  %v5342_v61 = vshll.u32 %v7881_v57, 16 }
 0x3a9   :  { %v3149_v39 = vor.u32 %v3148_v23, %v3145_v41 }
 0x3aa   :  { %v4360_v43 = vpop.permute.xlu2 %4359  ;;  %v3160_v59 = vrot.slane %v3159_v0, 4 }
 0x3ab   :  { %4363 = vrot.lane.b32.xlu1 %v7746_v15, %s8455_s24  ;;  %v6731_v15 = vpop.f32.mrf.mxu0  ;;  %v3150_v35 = vrot.slane %v3149_v39, 4  ;;  %v7975_v39 = vld [vmem:[%s13887_s0 + $0x168] sm:$0xe] }
 0x3ac   :  { %4361 = vrot.lane.b32.xlu0 %v7745_v22, %s8455_s24  ;;  %v5948_v22 = vrot.slane %v7911_v49, 5  ;;  %v6732_v2 = vadd.f32 %v12148_v9, %v6731_v15  ;;  %v7789_v49 = vld [vmem:[%s13887_s0 + $0x168] sm:$0xf]  ;;  %v5328_v15 = vrot.slane %v5326_v6, 5 }
 0x3ad   :  { %v3974_v37 = vpop.permute.xlu1 %3973  ;;  %v3155_v16 = vsel %vm8551_vm2, %v3150_v35, %v12126_v52  ;;  %v3922_v52 = vrot.slane %v7689_v38, 5  ;;  %v8019_v35 = vrot.slane %v7975_v39, 9 }
 0x3ae   :  { %4159 = vst.msk [vmem:[#allocation2 + $0x1c] sm:$0xf] %vm4151_vm11, %v3974_v37  ;;  %v3972_v48 = vpop.permute.xlu0 %3971  ;;  %v8300_v60 = vld [vmem:[#allocation2 + $0x98] sm:$0xff]  ;;  %v4816_v37 = vrot.slane %v4814_v25, 5  ;;  %v5949_v58 = vsel %vm9295_vm7, %v5947_v30, %v5948_v22  ;;  %v6890_v28 = vmax.f32 %v6732_v2, 0.0  ;;  %v6017_v25 = vrot.slane %v6015_v18, 4 }
 0x3af   :  { %4158 = vst.msk [vmem:[#allocation2 + $0x18] sm:$0xf] %vm4151_vm11, %v3972_v48  ;;  %6823 = vmatmul.bf16.gmra.mxu2 %v8300_v60  ;;  %v6889_v48 = vmax.f32 %v6730_v31, 0.0  ;;  %v3923_v23 = vsel %vm9295_vm7, %v3921_v12, %v3922_v52  ;;  %v6018_v30 = vrot.slane %v7941_v1, 5  ;;  %v5344_v22 = vrot.slane %v5342_v61, 5 }
 0x3b0   :  { %4545 = vst.msk [vmem:[#allocation2 + $0x1c] sm:$0xf] %vm4537_vm12, %v4360_v43  ;;  %4017 = vrot.lane.b32.xlu2 %v3839_v34, %s8456_s27  ;;  %v4817_v60 = vsel %vm8551_vm2, %v4812_v56, %v4816_v37  ;;  %v7909_v43 = vld [vmem:[%s13887_s0 + $0x48] sm:$0xe]  ;;  %v3032_v2 = vshll.u32 %v7577_v8, 16  ;;  %v3036_v31 = vshrl.u32 %v7577_v8, 16 }
 0x3b1   :  { %v6953_v47 = vadd.f32 %v6890_v28, %v6889_v48  ;;  %v6019_v7 = vsel %vm9295_vm7, %v6017_v25, %v6018_v30  ;;  %v7687_v18 = vld [vmem:[%s13887_s0 + $0x15c] sm:$0xe] }
 0x3b2   :  { %v5479_v3 = vpop.permute.xlu2 %5478  ;;  %v3038_v50 = vrot.slane %v3036_v31, 4  ;;  %v7961_v31 = vld [vmem:[%s13887_s0 + $0x130] sm:$0xf] }
 0x3b3   :  { %5482 = vrot.lane.b32.xlu1 %v4807_v32, %s8457_s17  ;;  %v6064_v39 = vrot.slane %v7961_v31, 5 }
 0x3b4   :  { %4403 = vrot.lane.b32.xlu0 %v7766_v44, %s8455_s24  ;;  %v3165_v44 = vsel %vm8551_vm2, %v3160_v59, %v3164_v46  ;;  %v7578_v46 = vld [vmem:[%s13887_s0 + $0x128] sm:$0x1] }
 0x3b5   :  { %v4358_v4 = vpop.permute.xlu1 %4357 }
 0x3b6   :  { %4544 = vst.msk [vmem:[#allocation2 + $0x18] sm:$0xf] %vm4537_vm12, %v4358_v4  ;;  %v4014_v11 = vpop.permute.xlu0 %4013 }
 0x3b7   :  { %4179 = vst.msk [vmem:[#allocation2 + $0x6c] sm:$0xf] %vm4151_vm11, %v4014_v11  ;;  %v12195_v11 = vrot.slane %v5332_v63, 5 }
 0x3b8   :  { %5665 = vst.msk [vmem:[#allocation2 + $0x18] sm:$0xf] %vm5658_vm13, %v5479_v3  ;;  %4401 = vrot.lane.b32.xlu2 %v7765_v53, %s8455_s24 }
 0x3ba   :  { %v5521_v32 = vpop.permute.xlu2 %5520 }
 0x3bb   :  { %5524 = vrot.lane.b32.xlu1 %v5057_v26, %s8457_s17  ;;  %v7997_v26 = vrot.slane %v7909_v43, 9 }
 0x3bc   :  { %5522 = vrot.lane.b32.xlu0 %v5047_v33, %s8457_s17 }
 0x3bd   :  { %v4400_v55 = vpop.permute.xlu1 %4399  ;;  %v5946_v3 = vsel %vm9295_vm7, %v7997_v26, %v5945_v27 }
 0x3be   :  { %4565 = vst.msk [vmem:[#allocation2 + $0x6c] sm:$0xf] %vm4537_vm12, %v4400_v55  ;;  %v4398_v14 = vpop.permute.xlu0 %4397 }
 0x3bf   :  { %4564 = vst.msk [vmem:[#allocation2 + $0x68] sm:$0xf] %vm4537_vm12, %v4398_v14  ;;  %v5329_v14 = vor.u32 %v5328_v15, %v5325_v13  ;;  %v7865_v13 = vld [vmem:[%s13887_s0 + $0x130] sm:$0xf]  ;;  %v7790_v15 = vld [vmem:[%s13887_s0 + $0x16c] sm:$0xf] }
 0x3c0   :  { %5686 = vst.msk [vmem:[#allocation2 + $0x6c] sm:$0xf] %vm5658_vm13, %v5521_v32  ;;  %5484 = vrot.lane.b32.xlu2 %v4817_v60, %s8457_s17  ;;  %v7731_v60 = vrot.slane %v7687_v18, 9  ;;  %v7977_v18 = vld [vmem:[%s13887_s0 + $0x170] sm:$0x1] }
 0x3c1   :  { %v5330_v59 = vrot.slane %v5329_v14, 4 }
 0x3c2   :  { %v6192_v51 = vpop.permute.xlu2 %6191 }
 0x3c3   :  { %6195 = vrot.lane.b32.xlu1 %v6016_v5, %s8458_s30  ;;  %v5339_v5 = vor.u32 %v5338_v17, %v12195_v11  ;;  %v5335_v43 = vsel %vm8551_vm2, %v5330_v59, %v12195_v11  ;;  %v7674_v11 = vld [vmem:[%s13887_s0 + $0x128] sm:$0x1]  ;;  %v3884_v17 = vrot.slane %v7673_v62, 5  ;;  %v7962_v59 = vld [vmem:[%s13887_s0 + $0x134] sm:$0x1] }
 0x3c4   :  { %6157 = vrot.lane.b32.xlu0 %v5949_v58, %s8458_s30  ;;  %v6734_v36 = vpop.f32.mrf.mxu0  ;;  %v12240_v58 = vld [vmem:[%s13887_s0 + $0x16c] sm:$0xf]  ;;  %v7624_v62 = vld [vmem:[%s13887_s0 + $0x48] sm:$0xe] }
 0x3c5   :  { %v5519_v20 = vpop.permute.xlu1 %5518  ;;  %v6735_v4 = vadd.f32 %v12148_v9, %v6734_v36  ;;  %v5340_v19 = vrot.slane %v5339_v5, 4  ;;  %v6099_v36 = vrot.slane %v12240_v58, 5  ;;  %v3886_v61 = vrot.slane %v3884_v17, 4  ;;  %v7672_v5 = vld [vmem:[%s13887_s0 + $0x120] sm:$0xe] }
 0x3c6   :  { %5685 = vst.msk [vmem:[#allocation2 + $0x68] sm:$0xf] %vm5658_vm13, %v5519_v20  ;;  %v5481_v29 = vpop.permute.xlu0 %5480  ;;  %v12247_v20 = vrot.slane %v3032_v2, 5  ;;  %v7726_v8 = vrot.slane %v7672_v5, 9  ;;  %v5216_v58 = vshrl.u32 %v7865_v13, 16 }
 0x3c7   :  { %5666 = vst.msk [vmem:[#allocation2 + $0x1c] sm:$0xf] %vm5658_vm13, %v5481_v29  ;;  %v6891_v34 = vmax.f32 %v6735_v4, 0.0  ;;  %v5345_v32 = vsel %vm8551_vm2, %v5340_v19, %v5344_v22  ;;  %v7576_v29 = vld [vmem:[%s13887_s0 + $0x120] sm:$0xf] }
 0x3c8   :  { %6358 = vst.msk [vmem:[#allocation2 + $0x68] sm:$0xf] %vm6331_vm14, %v6192_v51  ;;  %6155 = vrot.lane.b32.xlu2 %v5946_v3, %s8458_s30  ;;  %v3039_v54 = vor.u32 %v3038_v50, %v12247_v20  ;;  %v3023_v38 = vshrl.u32 %v7576_v29, 16  ;;  %v3026_v51 = vshll.u32 %v7576_v29, 16  ;;  %v3885_v22 = vsel %vm9295_vm7, %v7726_v8, %v3884_v17  ;;  %v7656_v8 = vld [vmem:[%s13887_s0 + $0xc8] sm:$0x1] }
 0x3c9   :  { %v6954_v40 = vadd.f32 %v6953_v47, %v6891_v34  ;;  %v7864_v47 = vld [vmem:[%s13887_s0 + $0x12c] sm:$0xf]  ;;  %v3920_v34 = vsel %vm9295_vm7, %v7731_v60, %v3919_v10  ;;  %v6102_v50 = vrot.slane %v7977_v18, 5  ;;  %v6066_v60 = vrot.slane %v6064_v39, 4 }
 0x3ca   :  { %v3389_v0 = vpop.permute.xlu2 %3388  ;;  %v3040_v57 = vrot.slane %v3039_v54, 4  ;;  %v5203_v45 = vshrl.u32 %v7864_v47, 16  ;;  %v5206_v42 = vshll.u32 %v7864_v47, 16  ;;  %v3028_v3 = vrot.slane %v3026_v51, 5  ;;  %v7960_v54 = vld [vmem:[%s13887_s0 + $0x12c] sm:$0xe] }
 0x3cb   :  { %3392 = vrot.lane.b32.xlu1 %v3165_v44, %s8454_s14  ;;  %3530 = vst.msk [vmem:[#allocation2 + $0xcc] sm:$0xf] %vm3478_vm10, %v3389_v0  ;;  %v3042_v44 = vshll.u32 %v7578_v46, 16  ;;  %v7559_v46 = vld [vmem:[%s13887_s0 + $0xc4] sm:$0xf]  ;;  %v7710_v51 = vrot.slane %v7624_v62, 9 }
 0x3cc   :  { %3390 = vrot.lane.b32.xlu0 %v3155_v16, %s8454_s14  ;;  %v6736_v55 = vpop.f32.mrf.mxu0  ;;  %v6100_v16 = vsel %vm9295_vm7, %v8019_v35, %v6099_v36  ;;  %v6067_v35 = vrot.slane %v7962_v59, 5  ;;  %v7767_v62 = vld [vmem:[%s13887_s0 + $0xcc] sm:$0xf] }
 0x3cd   :  { %v6154_v33 = vpop.permute.xlu1 %6153  ;;  %v6737_v27 = vadd.f32 %v12148_v9, %v6736_v55  ;;  %v3044_v26 = vrot.slane %v3042_v44, 5  ;;  %v5205_v55 = vrot.slane %v5203_v45, 4  ;;  %v2888_v44 = vshll.u32 %v7559_v46, 16 }
 0x3ce   :  { %6339 = vst.msk [vmem:[#allocation2 + $0x1c] sm:$0xf] %vm6331_vm14, %v6154_v33  ;;  %v6152_v53 = vpop.permute.xlu0 %6151  ;;  %v3025_v33 = vrot.slane %v3023_v38, 4  ;;  %v6068_v29 = vsel %vm9295_vm7, %v6066_v60, %v6067_v35  ;;  %v7560_v38 = vld [vmem:[%s13887_s0 + $0xc8] sm:$0x1] }
 0x3cf   :  { %6338 = vst.msk [vmem:[#allocation2 + $0x18] sm:$0xf] %vm6331_vm14, %v6152_v53  ;;  %v6892_v41 = vmax.f32 %v6737_v27, 0.0  ;;  %v3045_v12 = vsel %vm8551_vm2, %v3040_v57, %v3044_v26  ;;  %v12348_v47 = vrot.slane %v2888_v44, 5  ;;  %v12353_v26 = vld [vmem:[%s13887_s0 + $0x4c] sm:$0xf] }
 0x3d0   :  { %6197 = vrot.lane.b32.xlu2 %v6019_v7, %s8458_s30  ;;  %v3029_v53 = vor.u32 %v3028_v3, %v3025_v33  ;;  %v5218_v57 = vrot.slane %v5216_v58, 4  ;;  %v3772_v45 = vrot.slane %v12353_v26, 5  ;;  %v7655_v3 = vld [vmem:[%s13887_s0 + $0xc4] sm:$0xf]  ;;  %v7818_v35 = vld [vmem:[%s13887_s0 + $0x5c] sm:$0x1] }
 0x3d1   :  { %v12224_v56 = vadd.f32 %v6954_v40, %v6892_v41  ;;  %v3887_v40 = vrot.slane %v7674_v11, 5  ;;  %v5212_v41 = vshll.u32 %v7865_v13, 16 }
 0x3d2   :  { %v4446_v63 = vpop.permute.xlu2 %4445  ;;  %v3030_v30 = vrot.slane %v3029_v53, 4 }
 0x3d3   :  { %4449 = vrot.lane.b32.xlu1 %v7789_v49, %s8455_s24  ;;  %v5208_v49 = vrot.slane %v5206_v42, 5  ;;  %v3888_v27 = vsel %vm9295_vm7, %v3886_v61, %v3887_v40  ;;  %v12304_v14 = vrot.slane %v5212_v41, 5  ;;  %v7558_v40 = vld [vmem:[%s13887_s0 + $0xc0] sm:$0xf] }
 0x3d4   :  { %4065 = vrot.lane.b32.xlu0 %v3923_v23, %s8456_s27 }
 0x3d5   :  { %v3387_v37 = vpop.permute.xlu1 %3386  ;;  %v5209_v25 = vor.u32 %v5208_v49, %v5205_v55  ;;  %v2879_v55 = vshrl.u32 %v7558_v40, 16  ;;  %v2882_v49 = vshll.u32 %v7558_v40, 16 }
 0x3d6   :  { %3529 = vst.msk [vmem:[#allocation2 + $0xc8] sm:$0xf] %vm3478_vm10, %v3387_v37  ;;  %v6194_v28 = vpop.permute.xlu0 %6193  ;;  %v8284_v48 = vld [vmem:[#allocation2 + $0x18] sm:$0xff]  ;;  %v3035_v37 = vsel %vm8551_vm2, %v3030_v30, %v12247_v20  ;;  %v6101_v20 = vrot.slane %v6099_v36, 4 }
 0x3d7   :  { %6359 = vst.msk [vmem:[#allocation2 + $0x6c] sm:$0xf] %vm6331_vm14, %v6194_v28  ;;  %6743 = vmatmul.bf16.gmra.mxu0 %v8284_v48  ;;  %v5210_v19 = vrot.slane %v5209_v25, 4  ;;  %v7780_v28 = vld [vmem:[%s13887_s0 + $0x130] sm:$0xf]  ;;  %v2884_v30 = vrot.slane %v2882_v49, 5 }
 0x3d8   :  { %4063 = vrot.lane.b32.xlu2 %v3920_v34, %s8456_s27  ;;  %v6103_v36 = vsel %vm9295_vm7, %v6101_v20, %v6102_v50  ;;  %v7816_v50 = vld [vmem:[%s13887_s0 + $0x54] sm:$0xf] }
 0x3d9   :  { %v5215_v7 = vsel %vm8551_vm2, %v5210_v19, %v12304_v14 }
 0x3da   :  { %v5569_v52 = vpop.permute.xlu2 %5568 }
 0x3db   :  { %5572 = vrot.lane.b32.xlu1 %v5345_v32, %s8457_s17 }
 0x3dc   :  { %5570 = vrot.lane.b32.xlu0 %v5335_v43, %s8457_s17  ;;  %v2892_v43 = vshrl.u32 %v7559_v46, 16 }
 0x3dd   :  { %v4062_v4 = vpop.permute.xlu1 %4061 }
 0x3de   :  { %4203 = vst.msk [vmem:[#allocation2 + $0xcc] sm:$0xf] %vm4151_vm11, %v4062_v4  ;;  %v4060_v6 = vpop.permute.xlu0 %4059  ;;  %v8294_v10 = vld [vmem:[#allocation2 + $0x68] sm:$0xff]  ;;  %v8014_v4 = vrot.slane %v7960_v54, 9  ;;  %v2894_v34 = vrot.slane %v2892_v43, 4  ;;  %v4822_v54 = vshll.u32 %v7816_v50, 16 }
 0x3df   :  { %4202 = vst.msk [vmem:[#allocation2 + $0xc8] sm:$0xf] %vm4151_vm11, %v4060_v6  ;;  %6793 = vmatmul.bf16.gmra.mxu1 %v8294_v10  ;;  %v2898_v6 = vshll.u32 %v7560_v38, 16  ;;  %v7866_v10 = vld [vmem:[%s13887_s0 + $0x134] sm:$0x1] }
 0x3e0   :  { %4588 = vst.msk [vmem:[#allocation2 + $0xc8] sm:$0xf] %vm4537_vm12, %v4446_v63  ;;  %4451 = vrot.lane.b32.xlu2 %v7790_v15, %s8455_s24  ;;  %v6065_v11 = vsel %vm9295_vm7, %v8014_v4, %v6064_v39  ;;  %v2895_v42 = vor.u32 %v2894_v34, %v12348_v47  ;;  %v5222_v61 = vshll.u32 %v7866_v10, 16  ;;  %v3842_v15 = vrot.slane %v7655_v3, 5  ;;  %v7626_v34 = vld [vmem:[%s13887_s0 + $0x50] sm:$0x1] }
 0x3e1   :  { %v2900_v13 = vrot.slane %v2898_v6, 5  ;;  %v3774_v6 = vrot.slane %v3772_v45, 4  ;;  %v3775_v10 = vrot.slane %v7626_v34, 5  ;;  %v7768_v34 = vld [vmem:[%s13887_s0 + $0xd0] sm:$0xf] }
 0x3e2   :  { %v6240_v0 = vpop.permute.xlu2 %6239  ;;  %v2896_v5 = vrot.slane %v2895_v42, 4  ;;  %v5224_v41 = vrot.slane %v5222_v61, 5  ;;  %v3844_v19 = vrot.slane %v3842_v15, 4 }
 0x3e3   :  { %6243 = vrot.lane.b32.xlu1 %v6100_v16, %s8458_s30  ;;  %v3776_v26 = vsel %vm9295_vm7, %v3774_v6, %v3775_v10  ;;  %v12525_v6 = vld [vmem:[%s13887_s0 + $0x16c] sm:$0xf] }
 0x3e4   :  { %3372 = vrot.lane.b32.xlu0 %v3045_v12, %s8454_s14  ;;  %v7779_v12 = vld [vmem:[%s13887_s0 + $0x12c] sm:$0xf] }
 0x3e5   :  { %v5567_v1 = vpop.permute.xlu1 %5566 }
 0x3e6   :  { %5709 = vst.msk [vmem:[#allocation2 + $0xc8] sm:$0xf] %vm5658_vm13, %v5567_v1  ;;  %v4448_v23 = vpop.permute.xlu0 %4447  ;;  %v3773_v1 = vsel %vm9295_vm7, %v7710_v51, %v3772_v45  ;;  %v4824_v51 = vrot.slane %v4822_v54, 5 }
 0x3e7   :  { %4589 = vst.msk [vmem:[#allocation2 + $0xcc] sm:$0xf] %vm4537_vm12, %v4448_v23  ;;  %v2881_v23 = vrot.slane %v2879_v55, 4 }
 0x3e8   :  { %5710 = vst.msk [vmem:[#allocation2 + $0xcc] sm:$0xf] %vm5658_vm13, %v5569_v52  ;;  %3370 = vrot.lane.b32.xlu2 %v3035_v37, %s8454_s14  ;;  %v5219_v52 = vor.u32 %v5218_v57, %v12304_v14  ;;  %v3845_v14 = vrot.slane %v7656_v8, 5  ;;  %v7817_v37 = vld [vmem:[%s13887_s0 + $0x58] sm:$0xf] }
 0x3e9   :  { %6382 = vst.msk [vmem:[#allocation2 + $0xc8] sm:$0xf] %vm6331_vm14, %v6240_v0  ;;  %v2885_v39 = vor.u32 %v2884_v30, %v2881_v23  ;;  %v4828_v59 = vshll.u32 %v7817_v37, 16  ;;  %v4832_v46 = vshrl.u32 %v7817_v37, 16 }
 0x3ea   :  { %v4042_v48 = vpop.permute.xlu2 %4041  ;;  %v5220_v25 = vrot.slane %v5219_v52, 4 }
 0x3eb   :  { %4045 = vrot.lane.b32.xlu1 %v3888_v27, %s8456_s27  ;;  %v12417_v44 = vrot.slane %v4828_v59, 5  ;;  %v4834_v43 = vrot.slane %v4832_v46, 4 }
 0x3ec   :  { %4043 = vrot.lane.b32.xlu0 %v3885_v22, %s8456_s27  ;;  %v2901_v22 = vsel %vm8551_vm2, %v2896_v5, %v2900_v13 }
 0x3ed   :  { %v3369_v2 = vpop.permute.xlu1 %3368 }
 0x3ee   :  { %3520 = vst.msk [vmem:[#allocation2 + $0xa4] sm:$0xf] %vm3478_vm10, %v3369_v2  ;;  %v3367_v32 = vpop.permute.xlu0 %3366  ;;  %v7654_v2 = vld [vmem:[%s13887_s0 + $0xc0] sm:$0xe] }
 0x3ef   :  { %3519 = vst.msk [vmem:[#allocation2 + $0xa0] sm:$0xf] %vm3478_vm10, %v3367_v32  ;;  %v7720_v18 = vrot.slane %v7654_v2, 9  ;;  %v3846_v32 = vsel %vm9295_vm7, %v3844_v19, %v3845_v14  ;;  %v7846_v2 = vld [vmem:[%s13887_s0 + $0xcc] sm:$0xf] }
 0x3f0   :  { %4193 = vst.msk [vmem:[#allocation2 + $0xa4] sm:$0xf] %vm4151_vm11, %v4042_v48  ;;  %6245 = vrot.lane.b32.xlu2 %v6103_v36, %s8458_s30  ;;  %v2886_v48 = vrot.slane %v2885_v39, 4  ;;  %v5059_v39 = vshrl.u32 %v7846_v2, 16 }
 0x3f2   :  { %v5547_v17 = vpop.permute.xlu2 %5546  ;;  %v2891_v36 = vsel %vm8551_vm2, %v2886_v48, %v12348_v47  ;;  %v7847_v47 = vld [vmem:[%s13887_s0 + $0xd0] sm:$0xf] }
 0x3f3   :  { %5550 = vrot.lane.b32.xlu1 %v5215_v7, %s8457_s17  ;;  %v5225_v7 = vsel %vm8551_vm2, %v5220_v25, %v5224_v41  ;;  %v5068_v61 = vshll.u32 %v7847_v47, 16  ;;  %v5072_v55 = vshrl.u32 %v7847_v47, 16  ;;  %v12461_v25 = vld [vmem:[%s13887_s0 + $0x58] sm:$0xf]  ;;  %v7848_v41 = vld [vmem:[%s13887_s0 + $0xd4] sm:$0x1] }
 0x3f4   :  { %4431 = vrot.lane.b32.xlu0 %v7780_v28, %s8455_s24  ;;  %v3843_v28 = vsel %vm9295_vm7, %v7720_v18, %v3842_v15  ;;  %v7912_v15 = vld [vmem:[%s13887_s0 + $0x54] sm:$0xe]  ;;  %v5078_v14 = vshll.u32 %v7848_v41, 16 }
 0x3f5   :  { %v4040_v63 = vpop.permute.xlu1 %4039  ;;  %v7998_v30 = vrot.slane %v7912_v15, 9  ;;  %v7747_v18 = vld [vmem:[%s13887_s0 + $0x54] sm:$0xf] }
 0x3f6   :  { %4192 = vst.msk [vmem:[#allocation2 + $0xa0] sm:$0xf] %vm4151_vm11, %v4040_v63  ;;  %v6242_v16 = vpop.permute.xlu0 %6241  ;;  %v4819_v63 = vshrl.u32 %v7816_v50, 16 }
 0x3f7   :  { %6383 = vst.msk [vmem:[#allocation2 + $0xcc] sm:$0xf] %vm6331_vm14, %v6242_v16  ;;  %v4835_v16 = vor.u32 %v4834_v43, %v12417_v44 }
 0x3f8   :  { %4429 = vrot.lane.b32.xlu2 %v7779_v12, %s8455_s24  ;;  %v4821_v38 = vrot.slane %v4819_v63, 4 }
 0x3f9   :  { %v4836_v12 = vrot.slane %v4835_v16, 4 }
 0x3fa   :  { %v6222_v0 = vpop.permute.xlu2 %6221  ;;  %v4825_v52 = vor.u32 %v4824_v51, %v4821_v38  ;;  %v7596_v38 = vld [vmem:[%s13887_s0 + $0x170] sm:$0x1] }
 0x3fb   :  { %6225 = vrot.lane.b32.xlu1 %v6068_v29, %s8458_s30  ;;  %v4838_v29 = vshll.u32 %v7818_v35, 16  ;;  %v5061_v35 = vrot.slane %v5059_v39, 4  ;;  %v3186_v10 = vshll.u32 %v7596_v38, 16 }
 0x3fc   :  { %6223 = vrot.lane.b32.xlu0 %v6065_v11, %s8458_s30  ;;  %v4826_v13 = vrot.slane %v4825_v52, 4 }
 0x3fd   :  { %v4428_v33 = vpop.permute.xlu1 %4427  ;;  %v4840_v40 = vrot.slane %v4838_v29, 5 }
 0x3fe   :  { %4579 = vst.msk [vmem:[#allocation2 + $0xa4] sm:$0xf] %vm4537_vm12, %v4428_v33  ;;  %v4426_v53 = vpop.permute.xlu0 %4425  ;;  %v8306_v27 = vld [vmem:[#allocation2 + $0xc8] sm:$0xff]  ;;  %v7748_v33 = vld [vmem:[%s13887_s0 + $0x58] sm:$0xf] }
 0x3ff   :  { %4578 = vst.msk [vmem:[#allocation2 + $0xa0] sm:$0xf] %vm4537_vm12, %v4426_v53  ;;  %6853 = vmatmul.bf16.vlgmr.msra.gmra.mxu3 %v8306_v27  ;;  %v4841_v5 = vsel %vm8551_vm2, %v4836_v12, %v4840_v40  ;;  %v5074_v53 = vrot.slane %v5072_v55, 4  ;;  %v7594_v55 = vld [vmem:[%s13887_s0 + $0x168] sm:$0xf] }
 0x400   :  { %5699 = vst.msk [vmem:[#allocation2 + $0xa0] sm:$0xf] %vm5658_vm13, %v5547_v17  ;;  %5552 = vrot.lane.b32.xlu2 %v5225_v7, %s8457_s17  ;;  %v7943_v7 = vld [vmem:[%s13887_s0 + $0xd0] sm:$0xf]  ;;  %v3170_v15 = vshll.u32 %v7594_v55, 16 }
 0x401   :  { %v6022_v50 = vrot.slane %v7943_v7, 5 }
 0x402   :  { %v3976_v60 = vpop.permute.xlu2 %3975 }
 0x403   :  { %3979 = vrot.lane.b32.xlu1 %v3773_v1, %s8456_s27  ;;  %4160 = vst.msk [vmem:[#allocation2 + $0x20] sm:$0xf] %vm4151_vm11, %v3976_v60  ;;  %v7944_v60 = vld [vmem:[%s13887_s0 + $0xd4] sm:$0x1] }
 0x404   :  { %3348 = vrot.lane.b32.xlu0 %v2901_v22, %s8454_s14  ;;  %v6025_v29 = vrot.slane %v7944_v60, 5 }
 0x405   :  { %v6220_v31 = vpop.permute.xlu1 %6219 }
 0x406   :  { %6372 = vst.msk [vmem:[#allocation2 + $0xa0] sm:$0xf] %vm6331_vm14, %v6220_v31  ;;  %v5549_v20 = vpop.permute.xlu0 %5548 }
 0x407   :  { %5700 = vst.msk [vmem:[#allocation2 + $0xa4] sm:$0xf] %vm5658_vm13, %v5549_v20  ;;  %v5080_v20 = vrot.slane %v5078_v14, 5  ;;  %v3172_v14 = vrot.slane %v3170_v15, 5 }
 0x408   :  { %6373 = vst.msk [vmem:[#allocation2 + $0xa4] sm:$0xf] %vm6331_vm14, %v6222_v0  ;;  %3346 = vrot.lane.b32.xlu2 %v2891_v36, %s8454_s14  ;;  %v5952_v0 = vrot.slane %v12461_v25, 5  ;;  %v6024_v36 = vrot.slane %v6022_v50, 4  ;;  %v12567_v25 = vld [vmem:[%s13887_s0 + $0x130] sm:$0xf] }
 0x40a   :  { %v4018_v3 = vpop.permute.xlu2 %4017  ;;  %v5953_v59 = vsel %vm9295_vm7, %v7998_v30, %v5952_v0  ;;  %v7883_v30 = vld [vmem:[%s13887_s0 + $0x178] sm:$0xf] }
 0x40b   :  { %4021 = vrot.lane.b32.xlu1 %v3846_v32, %s8456_s27  ;;  %v5062_v32 = vshll.u32 %v7846_v2, 16  ;;  %v5360_v39 = vshrl.u32 %v7883_v30, 16 }
 0x40c   :  { %4019 = vrot.lane.b32.xlu0 %v3843_v28, %s8456_s27  ;;  %v6739_v4 = vpop.f32.mrf.mxu0  ;;  %v7595_v28 = vld [vmem:[%s13887_s0 + $0x16c] sm:$0xf] }
 0x40d   :  { %v3345_v58 = vpop.permute.xlu1 %3344  ;;  %v6740_v11 = vadd.f32 %v12148_v9, %v6739_v4  ;;  %v3176_v43 = vshll.u32 %v7595_v28, 16  ;;  %v3180_v63 = vshrl.u32 %v7595_v28, 16 }
 0x40e   :  { %3508 = vst.msk [vmem:[#allocation2 + $0x74] sm:$0xf] %vm3478_vm10, %v3345_v58  ;;  %v3343_v57 = vpop.permute.xlu0 %3342 }
 0x40f   :  { %3507 = vst.msk [vmem:[#allocation2 + $0x70] sm:$0xf] %vm3478_vm10, %v3343_v57  ;;  %v8301_v17 = vld [vmem:[#allocation2 + $0xa0] sm:$0xff]  ;;  %v6893_v42 = vmax.f32 %v6740_v11, 0.0  ;;  %v12515_v51 = vrot.slane %v3176_v43, 5  ;;  %v3182_v57 = vrot.slane %v3180_v63, 4  ;;  %v6026_v11 = vsel %vm9295_vm7, %v6024_v36, %v6025_v29 }
 0x410   :  { %6828 = vmatmul.bf16.gmra.mxu2 %v8301_v17  ;;  %4181 = vst.msk [vmem:[#allocation2 + $0x74] sm:$0xf] %vm4151_vm11, %v4018_v3  ;;  %3981 = vrot.lane.b32.xlu2 %v3776_v26, %s8456_s27  ;;  %v3188_v26 = vrot.slane %v3186_v10, 5 }
 0x411   :  { %v6956_v49 = vadd.f32 %v12224_v56, %v6893_v42  ;;  %v12455_v56 = vrot.slane %v5068_v61, 5  ;;  %v7690_v42 = vld [vmem:[%s13887_s0 + $0x168] sm:$0xe]  ;;  %v3926_v61 = vrot.slane %v12525_v6, 5  ;;  %v3060_v6 = vshrl.u32 %v12567_v25, 16 }
 0x412   :  { %v4402_v22 = vpop.permute.xlu2 %4401  ;;  %v7732_v52 = vrot.slane %v7690_v42, 9 }
 0x413   :  { %4405 = vrot.lane.b32.xlu1 %v7767_v62, %s8455_s24  ;;  %v5075_v19 = vor.u32 %v5074_v53, %v12455_v56  ;;  %v7942_v62 = vld [vmem:[%s13887_s0 + $0xcc] sm:$0xe] }
 0x414   :  { %4367 = vrot.lane.b32.xlu0 %v7748_v33, %s8455_s24  ;;  %v6741_v45 = vpop.f32.mrf.mxu0  ;;  %v8008_v47 = vrot.slane %v7942_v62, 9  ;;  %v3183_v33 = vor.u32 %v3182_v57, %v12515_v51  ;;  %v3927_v53 = vsel %vm9295_vm7, %v7732_v52, %v3926_v61 }
 0x415   :  { %v4016_v1 = vpop.permute.xlu1 %4015  ;;  %v6742_v8 = vadd.f32 %v12148_v9, %v6741_v45  ;;  %v4831_v9 = vsel %vm8551_vm2, %v4826_v13, %v12417_v44  ;;  %v5076_v46 = vrot.slane %v5075_v19, 4  ;;  %v5064_v44 = vrot.slane %v5062_v32, 5 }
 0x416   :  { %4180 = vst.msk [vmem:[#allocation2 + $0x70] sm:$0xf] %vm4151_vm11, %v4016_v1  ;;  %v3978_v27 = vpop.permute.xlu0 %3977  ;;  %v6023_v3 = vsel %vm9295_vm7, %v8008_v47, %v6022_v50  ;;  %v7579_v1 = vld [vmem:[%s13887_s0 + $0x12c] sm:$0xf]  ;;  %v3167_v13 = vshrl.u32 %v7594_v55, 16  ;;  %v3056_v50 = vshll.u32 %v12567_v25, 16 }
 0x417   :  { %4161 = vst.msk [vmem:[#allocation2 + $0x24] sm:$0xf] %vm4151_vm11, %v3978_v27  ;;  %v6894_v23 = vmax.f32 %v6742_v8, 0.0  ;;  %v5081_v54 = vsel %vm8551_vm2, %v5076_v46, %v5080_v20  ;;  %v5065_v16 = vor.u32 %v5064_v44, %v5061_v35  ;;  %v7914_v27 = vld [vmem:[%s13887_s0 + $0x5c] sm:$0x1]  ;;  %v3047_v8 = vshrl.u32 %v7579_v1, 16 }
 0x418   :  { %4566 = vst.msk [vmem:[#allocation2 + $0x70] sm:$0xf] %vm4537_vm12, %v4402_v22  ;;  %4365 = vrot.lane.b32.xlu2 %v7747_v18, %s8455_s24  ;;  %v3050_v41 = vshll.u32 %v7579_v1, 16  ;;  %v5955_v22 = vrot.slane %v7914_v27, 5  ;;  %v3169_v19 = vrot.slane %v3167_v13, 4  ;;  %v5356_v18 = vshll.u32 %v7883_v30, 16 }
 0x419   :  { %v12477_v31 = vadd.f32 %v6956_v49, %v6894_v23  ;;  %v5066_v40 = vrot.slane %v5065_v16, 4  ;;  %v7792_v46 = vld [vmem:[%s13887_s0 + $0x178] sm:$0xf]  ;;  %v7884_v35 = vld [vmem:[%s13887_s0 + $0x17c] sm:$0x1] }
 0x41a   :  { %v5485_v58 = vpop.permute.xlu2 %5484  ;;  %v3052_v7 = vrot.slane %v3050_v41, 5  ;;  %v12577_v28 = vrot.slane %v5356_v18, 5  ;;  %v7791_v44 = vld [vmem:[%s13887_s0 + $0x174] sm:$0xf]  ;;  %v5366_v29 = vshll.u32 %v7884_v35, 16 }
 0x41b   :  { %5488 = vrot.lane.b32.xlu1 %v4841_v5, %s8457_s17  ;;  %v5071_v45 = vsel %vm8551_vm2, %v5066_v40, %v12455_v56  ;;  %v3184_v5 = vrot.slane %v3183_v33, 4  ;;  %v5954_v56 = vrot.slane %v5952_v0, 4  ;;  %v7979_v16 = vld [vmem:[%s13887_s0 + $0x178] sm:$0xf]  ;;  %v7692_v40 = vld [vmem:[%s13887_s0 + $0x170] sm:$0x1] }
 0x41c   :  { %5486 = vrot.lane.b32.xlu0 %v4831_v9, %s8457_s17  ;;  %v5368_v42 = vrot.slane %v5366_v29, 5  ;;  %v6106_v10 = vrot.slane %v7979_v16, 5  ;;  %v3929_v52 = vrot.slane %v7692_v40, 5  ;;  %v7868_v13 = vld [vmem:[%s13887_s0 + $0x13c] sm:$0xf] }
 0x41d   :  { %v4364_v37 = vpop.permute.xlu1 %4363  ;;  %v3189_v9 = vsel %vm8551_vm2, %v3184_v5, %v3188_v26  ;;  %v5956_v0 = vsel %vm9295_vm7, %v5954_v56, %v5955_v22  ;;  %v12633_v27 = vld [vmem:[%s13887_s0 + $0x130] sm:$0xf]  ;;  %v5236_v41 = vshll.u32 %v7868_v13, 16  ;;  %v7677_v22 = vld [vmem:[%s13887_s0 + $0x134] sm:$0x1] }
 0x41e   :  { %4547 = vst.msk [vmem:[#allocation2 + $0x24] sm:$0xf] %vm4537_vm12, %v4364_v37  ;;  %v4362_v48 = vpop.permute.xlu0 %4361  ;;  %v3049_v37 = vrot.slane %v3047_v8, 4 }
 0x41f   :  { %4546 = vst.msk [vmem:[#allocation2 + $0x20] sm:$0xf] %vm4537_vm12, %v4362_v48  ;;  %v5362_v48 = vrot.slane %v5360_v39, 4  ;;  %v3062_v39 = vrot.slane %v3060_v6, 4 }
 0x420   :  { %5668 = vst.msk [vmem:[#allocation2 + $0x24] sm:$0xf] %vm5658_vm13, %v5485_v58  ;;  %4407 = vrot.lane.b32.xlu2 %v7768_v34, %s8455_s24  ;;  %v3053_v20 = vor.u32 %v3052_v7, %v3049_v37  ;;  %v12588_v58 = vrot.slane %v3056_v50, 5  ;;  %v12651_v7 = vrot.slane %v5236_v41, 5  ;;  %v7561_v50 = vld [vmem:[%s13887_s0 + $0xe4] sm:$0xf] }
 0x421   :  { %v5363_v36 = vor.u32 %v5362_v48, %v12577_v28 }
 0x422   :  { %v6156_v12 = vpop.permute.xlu2 %6155 }
 0x423   :  { %6159 = vrot.lane.b32.xlu1 %v5953_v59, %s8458_s30  ;;  %v3173_v59 = vor.u32 %v3172_v14, %v3169_v19  ;;  %v7867_v19 = vld [vmem:[%s13887_s0 + $0x138] sm:$0xf]  ;;  %v3891_v14 = vrot.slane %v12633_v27, 5 }
 0x424   :  { %5528 = vrot.lane.b32.xlu0 %v5081_v54, %s8457_s17  ;;  %v3054_v54 = vrot.slane %v3053_v20, 4 }
 0x425   :  { %v5483_v4 = vpop.permute.xlu1 %5482  ;;  %v3174_v43 = vrot.slane %v3173_v59, 4  ;;  %v5230_v59 = vshll.u32 %v7867_v19, 16  ;;  %v3893_v48 = vrot.slane %v3891_v14, 4 }
 0x426   :  { %5667 = vst.msk [vmem:[#allocation2 + $0x20] sm:$0xf] %vm5658_vm13, %v5483_v4  ;;  %v4404_v17 = vpop.permute.xlu0 %4403  ;;  %v7882_v4 = vld [vmem:[%s13887_s0 + $0x174] sm:$0xf]  ;;  %v3059_v47 = vsel %vm8551_vm2, %v3054_v54, %v12588_v58 }
 0x427   :  { %4567 = vst.msk [vmem:[#allocation2 + $0x74] sm:$0xf] %vm4537_vm12, %v4404_v17  ;;  %v3179_v38 = vsel %vm8551_vm2, %v3174_v43, %v12515_v51  ;;  %v5347_v57 = vshrl.u32 %v7882_v4, 16  ;;  %v5364_v17 = vrot.slane %v5363_v36, 4  ;;  %v3928_v51 = vrot.slane %v3926_v61, 4 }
 0x428   :  { %6340 = vst.msk [vmem:[#allocation2 + $0x20] sm:$0xf] %vm6331_vm14, %v6156_v12  ;;  %5526 = vrot.lane.b32.xlu2 %v5071_v45, %s8457_s17  ;;  %v7980_v12 = vld [vmem:[%s13887_s0 + $0x17c] sm:$0x1]  ;;  %v6108_v45 = vrot.slane %v6106_v10, 4 }
 0x429   :  { %v5349_v55 = vrot.slane %v5347_v57, 4  ;;  %v5369_v1 = vsel %vm8551_vm2, %v5364_v17, %v5368_v42  ;;  %v6109_v5 = vrot.slane %v7980_v12, 5  ;;  %v3930_v61 = vsel %vm9295_vm7, %v3928_v51, %v3929_v52  ;;  %v7781_v36 = vld [vmem:[%s13887_s0 + $0x138] sm:$0xf] }
 0x42a   :  { %v6198_v2 = vpop.permute.xlu2 %6197 }
 0x42b   :  { %6201 = vrot.lane.b32.xlu1 %v6026_v11, %s8458_s30  ;;  %v5350_v11 = vshll.u32 %v7882_v4, 16  ;;  %v6110_v30 = vsel %vm9295_vm7, %v6108_v45, %v6109_v5  ;;  %v5232_v4 = vrot.slane %v5230_v59, 5  ;;  %v8396_v45 = vld [vmem:[%s13889_s2] ss:$0 sm:$0xff] }
 0x42c   :  { %6199 = vrot.lane.b32.xlu0 %v6023_v3, %s8458_s30 }
 0x42d   :  { %v5525_v49 = vpop.permute.xlu1 %5524 }
 0x42e   :  { %5688 = vst.msk [vmem:[#allocation2 + $0x74] sm:$0xf] %vm5658_vm13, %v5525_v49  ;;  %v5523_v23 = vpop.permute.xlu0 %5522  ;;  %v5352_v49 = vrot.slane %v5350_v11, 5 }
 0x42f   :  { %5687 = vst.msk [vmem:[#allocation2 + $0x70] sm:$0xf] %vm5658_vm13, %v5523_v23  ;;  %v5240_v23 = vshrl.u32 %v7868_v13, 16  ;;  %v12701_v13 = vld [vmem:[%s13887_s0 + $0x13c] sm:$0xf] }
 0x430   :  { %6361 = vst.msk [vmem:[#allocation2 + $0x74] sm:$0xf] %vm6331_vm14, %v6198_v2  ;;  %6161 = vrot.lane.b32.xlu2 %v5956_v0, %s8458_s30  ;;  %v5353_v8 = vor.u32 %v5352_v49, %v5349_v55  ;;  %v7869_v2 = vld [vmem:[%s13887_s0 + $0x140] sm:$0x1]  ;;  %v5227_v0 = vshrl.u32 %v7867_v19, 16 }
 0x431   :  { %v5242_v18 = vrot.slane %v5240_v23, 4  ;;  %v5246_v35 = vshll.u32 %v7869_v2, 16  ;;  %v6071_v23 = vrot.slane %v12701_v13, 5  ;;  %v7628_v19 = vld [vmem:[%s13887_s0 + $0x58] sm:$0xf] }
 0x432   :  { %v4064_v63 = vpop.permute.xlu2 %4063  ;;  %v5354_v37 = vrot.slane %v5353_v8, 4  ;;  %v5229_v29 = vrot.slane %v5227_v0, 4  ;;  %v7770_v13 = vld [vmem:[%s13887_s0 + $0xf4] sm:$0xf] }
 0x433   :  { %4067 = vrot.lane.b32.xlu1 %v3927_v53, %s8456_s27  ;;  %v7978_v53 = vld [vmem:[%s13887_s0 + $0x174] sm:$0xe]  ;;  %v5243_v43 = vor.u32 %v5242_v18, %v12651_v7  ;;  %v3779_v18 = vrot.slane %v7628_v19, 5 }
 0x434   :  { %3396 = vrot.lane.b32.xlu0 %v3189_v9, %s8454_s14  ;;  %v8020_v56 = vrot.slane %v7978_v53, 9  ;;  %v5233_v17 = vor.u32 %v5232_v4, %v5229_v29 }
 0x435   :  { %v6196_v32 = vpop.permute.xlu1 %6195 }
 0x436   :  { %6360 = vst.msk [vmem:[#allocation2 + $0x70] sm:$0xf] %vm6331_vm14, %v6196_v32  ;;  %v6158_v60 = vpop.permute.xlu0 %6157  ;;  %v6107_v32 = vsel %vm9295_vm7, %v8020_v56, %v6106_v10  ;;  %v5234_v52 = vrot.slane %v5233_v17, 4  ;;  %v7749_v17 = vld [vmem:[%s13887_s0 + $0x60] sm:$0xf] }
 0x437   :  { %6341 = vst.msk [vmem:[#allocation2 + $0x24] sm:$0xf] %vm6331_vm14, %v6158_v60  ;;  %v3894_v60 = vrot.slane %v7677_v22, 5  ;;  %v7965_v22 = vld [vmem:[%s13887_s0 + $0x140] sm:$0x1] }
 0x438   :  { %3394 = vrot.lane.b32.xlu2 %v3179_v38, %s8454_s14  ;;  %v5239_v6 = vsel %vm8551_vm2, %v5234_v52, %v12651_v7  ;;  %v6074_v7 = vrot.slane %v7965_v22, 5 }
 0x43a   :  { %v4452_v26 = vpop.permute.xlu2 %4451 }
 0x43b   :  { %4455 = vrot.lane.b32.xlu1 %v7792_v46, %s8455_s24  ;;  %v7581_v46 = vld [vmem:[%s13887_s0 + $0x134] sm:$0x1] }
 0x43c   :  { %4453 = vrot.lane.b32.xlu0 %v7791_v44, %s8455_s24  ;;  %v5359_v44 = vsel %vm8551_vm2, %v5354_v37, %v12577_v28  ;;  %v3066_v54 = vshll.u32 %v7581_v46, 16  ;;  %v3895_v28 = vsel %vm9295_vm7, %v3893_v48, %v3894_v60  ;;  %v6073_v37 = vrot.slane %v6071_v23, 4  ;;  %v7627_v46 = vld [vmem:[%s13887_s0 + $0x54] sm:$0xe] }
 0x43d   :  { %v3393_v62 = vpop.permute.xlu1 %3392  ;;  %v8295_v34 = vld [vmem:[#allocation2 + $0x70] sm:$0xff]  ;;  %v7711_v60 = vrot.slane %v7627_v46, 9 }
 0x43e   :  { %3532 = vst.msk [vmem:[#allocation2 + $0xd4] sm:$0xf] %vm3478_vm10, %v3393_v62  ;;  %6798 = vmatmul.bf16.gmra.mxu1 %v8295_v34  ;;  %v3391_v33 = vpop.permute.xlu0 %3390  ;;  %v8285_v3 = vld [vmem:[#allocation2 + $0x20] sm:$0xff]  ;;  %v2903_v62 = vshrl.u32 %v7561_v50, 16  ;;  %v2906_v34 = vshll.u32 %v7561_v50, 16  ;;  %v3068_v57 = vrot.slane %v3066_v54, 5  ;;  %v6075_v27 = vsel %vm9295_vm7, %v6073_v37, %v6074_v7 }
 0x43f   :  { %3531 = vst.msk [vmem:[#allocation2 + $0xd0] sm:$0xf] %vm3478_vm10, %v3391_v33  ;;  %6748 = vmatmul.bf16.gmra.mxu0 %v8285_v3  ;;  %v12683_v33 = vld [vmem:[%s13887_s0 + $0xe8] sm:$0xf]  ;;  %v7782_v50 = vld [vmem:[%s13887_s0 + $0x13c] sm:$0xf]  ;;  %v3780_v4 = vsel %vm9295_vm7, %v7711_v60, %v3779_v18 }
 0x440   :  { %4204 = vst.msk [vmem:[#allocation2 + $0xd0] sm:$0xf] %vm4151_vm11, %v4064_v63  ;;  %4069 = vrot.lane.b32.xlu2 %v3930_v61, %s8456_s27  ;;  %v3063_v63 = vor.u32 %v3062_v39, %v12588_v58  ;;  %v5248_v58 = vrot.slane %v5246_v35, 5  ;;  %v2905_v42 = vrot.slane %v2903_v62, 4  ;;  %v2908_v10 = vrot.slane %v2906_v34, 5 }
 0x441   :  { %v2912_v49 = vshll.u32 %v12683_v33, 16  ;;  %v12753_v35 = vld [vmem:[%s13887_s0 + $0xe8] sm:$0xf]  ;;  %v7563_v34 = vld [vmem:[%s13887_s0 + $0xec] sm:$0x1] }
 0x442   :  { %v3371_v25 = vpop.permute.xlu2 %3370  ;;  %v3064_v38 = vrot.slane %v3063_v63, 4  ;;  %v2909_v55 = vor.u32 %v2908_v10, %v2905_v42  ;;  %v7659_v63 = vld [vmem:[%s13887_s0 + $0xec] sm:$0x1]  ;;  %v3849_v54 = vrot.slane %v12753_v35, 5  ;;  %v7917_v60 = vld [vmem:[%s13887_s0 + $0x68] sm:$0x1] }
 0x443   :  { %3374 = vrot.lane.b32.xlu1 %v3059_v47, %s8454_s14  ;;  %3521 = vst.msk [vmem:[#allocation2 + $0xa8] sm:$0xf] %vm3478_vm10, %v3371_v25  ;;  %v5244_v47 = vrot.slane %v5243_v43, 4  ;;  %v12709_v41 = vrot.slane %v2912_v49, 5  ;;  %v3781_v25 = vrot.slane %v3779_v18, 4 }
 0x444   :  { %5576 = vrot.lane.b32.xlu0 %v5369_v1, %s8457_s17  ;;  %v3069_v3 = vsel %vm8551_vm2, %v3064_v38, %v3068_v57  ;;  %v7675_v1 = vld [vmem:[%s13887_s0 + $0x12c] sm:$0xe]  ;;  %v2910_v8 = vrot.slane %v2909_v55, 4  ;;  %v3851_v38 = vrot.slane %v3849_v54, 4  ;;  %v12796_v55 = vld [vmem:[%s13887_s0 + $0xf4] sm:$0xf] }
 0x445   :  { %v4450_v15 = vpop.permute.xlu1 %4449  ;;  %v5249_v51 = vsel %vm8551_vm2, %v5244_v47, %v5248_v58  ;;  %v7727_v53 = vrot.slane %v7675_v1, 9  ;;  %v3852_v58 = vrot.slane %v7659_v63, 5  ;;  %v2922_v47 = vshll.u32 %v7563_v34, 16 }
 0x446   :  { %4590 = vst.msk [vmem:[#allocation2 + $0xd0] sm:$0xf] %vm4537_vm12, %v4450_v15  ;;  %v4066_v9 = vpop.permute.xlu0 %4065  ;;  %v2915_v2 = vsel %vm8551_vm2, %v2910_v8, %v12709_v41 }
 0x447   :  { %4205 = vst.msk [vmem:[#allocation2 + $0xd4] sm:$0xf] %vm4151_vm11, %v4066_v9 }
 0x448   :  { %4591 = vst.msk [vmem:[#allocation2 + $0xd4] sm:$0xf] %vm4537_vm12, %v4452_v26  ;;  %5574 = vrot.lane.b32.xlu2 %v5359_v44, %s8457_s17  ;;  %v7963_v44 = vld [vmem:[%s13887_s0 + $0x138] sm:$0xe] }
 0x44a   :  { %v6246_v11 = vpop.permute.xlu2 %6245 }
 0x44b   :  { %6249 = vrot.lane.b32.xlu1 %v6110_v30, %s8458_s30 }
 0x44c   :  { %6247 = vrot.lane.b32.xlu0 %v6107_v32, %s8458_s30  ;;  %v7629_v32 = vld [vmem:[%s13887_s0 + $0x5c] sm:$0x1] }
 0x44d   :  { %v5573_v20 = vpop.permute.xlu1 %5572  ;;  %v3782_v0 = vrot.slane %v7629_v32, 5  ;;  %v7916_v32 = vld [vmem:[%s13887_s0 + $0x64] sm:$0xf] }
 0x44e   :  { %5712 = vst.msk [vmem:[#allocation2 + $0xd4] sm:$0xf] %vm5658_vm13, %v5573_v20  ;;  %v5571_v16 = vpop.permute.xlu0 %5570  ;;  %v2916_v20 = vshrl.u32 %v12683_v33, 16  ;;  %v7820_v33 = vld [vmem:[%s13887_s0 + $0x64] sm:$0xf] }
 0x44f   :  { %5711 = vst.msk [vmem:[#allocation2 + $0xd0] sm:$0xf] %vm5658_vm13, %v5571_v16  ;;  %v3783_v48 = vsel %vm9295_vm7, %v3781_v25, %v3782_v0 }
 0x450   :  { %6385 = vst.msk [vmem:[#allocation2 + $0xd4] sm:$0xf] %vm6331_vm14, %v6246_v11  ;;  %3376 = vrot.lane.b32.xlu2 %v3069_v3, %s8454_s14  ;;  %v2918_v29 = vrot.slane %v2916_v20, 4  ;;  %v3853_v3 = vsel %vm9295_vm7, %v3851_v38, %v3852_v58  ;;  %v5959_v20 = vrot.slane %v7916_v32, 5  ;;  %v7915_v58 = vld [vmem:[%s13887_s0 + $0x60] sm:$0xe] }
 0x451   :  { %v12858_v38 = vld [vmem:[%s13887_s0 + $0x178] sm:$0xf] }
 0x452   :  { %v4430_v61 = vpop.permute.xlu2 %4429  ;;  %v2919_v11 = vor.u32 %v2918_v29, %v12709_v41 }
 0x453   :  { %4433 = vrot.lane.b32.xlu1 %v7781_v36, %s8455_s24  ;;  %v8015_v36 = vrot.slane %v7963_v44, 9 }
 0x454   :  { %4049 = vrot.lane.b32.xlu0 %v3895_v28, %s8456_s27  ;;  %v6744_v12 = vpop.f32.mrf.mxu0  ;;  %v7849_v28 = vld [vmem:[%s13887_s0 + $0xf0] sm:$0xf] }
 0x455   :  { %v6244_v40 = vpop.permute.xlu1 %6243  ;;  %v6745_v5 = vadd.f32 %v8396_v45, %v6744_v12  ;;  %v6072_v57 = vsel %vm9295_vm7, %v8015_v36, %v6071_v23  ;;  %v5083_v42 = vshrl.u32 %v7849_v28, 16  ;;  %v5086_v10 = vshll.u32 %v7849_v28, 16  ;;  %v7657_v23 = vld [vmem:[%s13887_s0 + $0xe4] sm:$0xe] }
 0x456   :  { %6384 = vst.msk [vmem:[#allocation2 + $0xd0] sm:$0xf] %vm6331_vm14, %v6244_v40  ;;  %v3373_v26 = vpop.permute.xlu0 %3372  ;;  %v2920_v12 = vrot.slane %v2919_v11, 4  ;;  %v4856_v45 = vshrl.u32 %v7820_v33, 16  ;;  %v7721_v19 = vrot.slane %v7657_v23, 9  ;;  %v5096_v11 = vshrl.u32 %v12796_v55, 16 }
 0x457   :  { %3522 = vst.msk [vmem:[#allocation2 + $0xac] sm:$0xf] %vm3478_vm10, %v3373_v26  ;;  %v6895_v15 = vmax.f32 %v6745_v5, 0.0  ;;  %v5085_v49 = vrot.slane %v5083_v42, 4  ;;  %v5088_v1 = vrot.slane %v5086_v10, 5  ;;  %v4852_v26 = vshll.u32 %v7820_v33, 16 }
 0x458   :  { %v4858_v41 = vrot.slane %v4856_v45, 4  ;;  %v3850_v46 = vsel %vm9295_vm7, %v7721_v19, %v3849_v54  ;;  %v5962_v54 = vrot.slane %v7917_v60, 5  ;;  %v7999_v42 = vrot.slane %v7915_v58, 9  ;;  %v12872_v33 = vld [vmem:[%s13887_s0 + $0xf4] sm:$0xf] }
 0x459   :  { %v12713_v30 = vadd.f32 %v12477_v31, %v6895_v15  ;;  %v3892_v31 = vsel %vm9295_vm7, %v7727_v53, %v3891_v14  ;;  %v5092_v53 = vshll.u32 %v12796_v55, 16  ;;  %v12810_v8 = vrot.slane %v4852_v26, 5  ;;  %v7851_v45 = vld [vmem:[%s13887_s0 + $0xf8] sm:$0x1] }
 0x45a   :  { %4047 = vrot.lane.b32.xlu2 %v3892_v31, %s8456_s27  ;;  %v5553_v14 = vpop.permute.xlu2 %5552  ;;  %v7819_v31 = vld [vmem:[%s13887_s0 + $0x60] sm:$0xf]  ;;  %v5960_v55 = vsel %vm9295_vm7, %v7999_v42, %v5959_v20  ;;  %v7599_v42 = vld [vmem:[%s13887_s0 + $0x17c] sm:$0x1] }
 0x45b   :  { %5556 = vrot.lane.b32.xlu1 %v5249_v51, %s8457_s17  ;;  %v2924_v51 = vrot.slane %v2922_v47, 5  ;;  %v12824_v18 = vrot.slane %v5092_v53, 5  ;;  %v4843_v25 = vshrl.u32 %v7819_v31, 16  ;;  %v4846_v0 = vshll.u32 %v7819_v31, 16  ;;  %v7750_v47 = vld [vmem:[%s13887_s0 + $0x64] sm:$0xf] }
 0x45c   :  { %5554 = vrot.lane.b32.xlu0 %v5239_v6, %s8457_s17  ;;  %v5089_v6 = vor.u32 %v5088_v1, %v5085_v49  ;;  %v7694_v53 = vld [vmem:[%s13887_s0 + $0x178] sm:$0xf] }
 0x45d   :  { %v4046_v56 = vpop.permute.xlu1 %4045  ;;  %v8307_v9 = vld [vmem:[#allocation2 + $0xd0] sm:$0xff]  ;;  %v2925_v15 = vsel %vm8551_vm2, %v2920_v12, %v2924_v51  ;;  %v4845_v35 = vrot.slane %v4843_v25, 4  ;;  %v4848_v36 = vrot.slane %v4846_v0, 5  ;;  %v6029_v51 = vrot.slane %v12872_v33, 5  ;;  %v7794_v33 = vld [vmem:[%s13887_s0 + $0x184] sm:$0xf] }
 0x45e   :  { %4195 = vst.msk [vmem:[#allocation2 + $0xac] sm:$0xf] %vm4151_vm11, %v4046_v56  ;;  %6858 = vmatmul.bf16.gmra.mxu3 %v8307_v9  ;;  %v4044_v39 = vpop.permute.xlu0 %4043  ;;  %v5090_v7 = vrot.slane %v5089_v6, 4  ;;  %v3933_v31 = vrot.slane %v7694_v53, 5 }
 0x45f   :  { %4194 = vst.msk [vmem:[#allocation2 + $0xa8] sm:$0xf] %vm4151_vm11, %v4044_v39  ;;  %v4859_v39 = vor.u32 %v4858_v41, %v12810_v8  ;;  %v5102_v41 = vshll.u32 %v7851_v45, 16 }
 0x460   :  { %4580 = vst.msk [vmem:[#allocation2 + $0xa8] sm:$0xf] %vm4537_vm12, %v4430_v61  ;;  %v7821_v61 = vld [vmem:[%s13887_s0 + $0x68] sm:$0x1]  ;;  %v3935_v25 = vrot.slane %v3933_v31, 4 }
 0x461   :  { %v4862_v22 = vshll.u32 %v7821_v61, 16 }
 0x462   :  { %4435 = vrot.lane.b32.xlu2 %v7782_v50, %s8455_s24  ;;  %v3347_v62 = vpop.permute.xlu2 %3346  ;;  %v5095_v50 = vsel %vm8551_vm2, %v5090_v7, %v12824_v18 }
 0x463   :  { %3350 = vrot.lane.b32.xlu1 %v2915_v2, %s8454_s14  ;;  %3509 = vst.msk [vmem:[#allocation2 + $0x78] sm:$0xf] %vm3478_vm10, %v3347_v62  ;;  %v7769_v2 = vld [vmem:[%s13887_s0 + $0xf0] sm:$0xf]  ;;  %v5961_v62 = vrot.slane %v5959_v20, 4 }
 0x464   :  { %6229 = vrot.lane.b32.xlu0 %v6075_v27, %s8458_s30  ;;  %v7583_v20 = vld [vmem:[%s13887_s0 + $0x13c] sm:$0xf] }
 0x465   :  { %v5551_v59 = vpop.permute.xlu1 %5550 }
 0x466   :  { %5701 = vst.msk [vmem:[#allocation2 + $0xa8] sm:$0xf] %vm5658_vm13, %v5551_v59  ;;  %v4432_v43 = vpop.permute.xlu0 %4431  ;;  %v4864_v59 = vrot.slane %v4862_v22, 5  ;;  %v6031_v22 = vrot.slane %v6029_v51, 4 }
 0x467   :  { %4581 = vst.msk [vmem:[#allocation2 + $0xac] sm:$0xf] %vm4537_vm12, %v4432_v43 }
 0x468   :  { %5702 = vst.msk [vmem:[#allocation2 + $0xac] sm:$0xf] %vm5658_vm13, %v5553_v14  ;;  %v7597_v14 = vld [vmem:[%s13887_s0 + $0x174] sm:$0xf] }
 0x469   :  { %v3191_v44 = vshrl.u32 %v7597_v14, 16  ;;  %v3194_v43 = vshll.u32 %v7597_v14, 16 }
 0x46a   :  { %6227 = vrot.lane.b32.xlu2 %v6072_v57, %s8458_s30  ;;  %v3982_v52 = vpop.permute.xlu2 %3981  ;;  %v4849_v57 = vor.u32 %v4848_v36, %v4845_v35  ;;  %v7945_v35 = vld [vmem:[%s13887_s0 + $0xf0] sm:$0xe]  ;;  %v3080_v36 = vshll.u32 %v7583_v20, 16 }
 0x46b   :  { %3985 = vrot.lane.b32.xlu1 %v3783_v48, %s8456_s27  ;;  %4163 = vst.msk [vmem:[#allocation2 + $0x2c] sm:$0xf] %vm4151_vm11, %v3982_v52  ;;  %v4860_v48 = vrot.slane %v4859_v39, 4  ;;  %v3193_v34 = vrot.slane %v3191_v44, 4  ;;  %v5098_v52 = vrot.slane %v5096_v11, 4 }
 0x46c   :  { %3983 = vrot.lane.b32.xlu0 %v3780_v4, %s8456_s27  ;;  %v4850_v12 = vrot.slane %v4849_v57, 4  ;;  %v3082_v57 = vrot.slane %v3080_v36, 5 }
 0x46d   :  { %v6226_v16 = vpop.permute.xlu1 %6225  ;;  %v4865_v29 = vsel %vm8551_vm2, %v4860_v48, %v4864_v59  ;;  %v5099_v61 = vor.u32 %v5098_v52, %v12824_v18  ;;  %v5104_v18 = vrot.slane %v5102_v41, 5  ;;  %v12920_v59 = vld [vmem:[%s13887_s0 + $0x184] sm:$0xf]  ;;  %v3204_v48 = vshrl.u32 %v12858_v38, 16 }
 0x46e   :  { %6375 = vst.msk [vmem:[#allocation2 + $0xac] sm:$0xf] %vm6331_vm14, %v6226_v16  ;;  %v6224_v40 = vpop.permute.xlu0 %6223  ;;  %v3196_v16 = vrot.slane %v3194_v43, 5  ;;  %v4855_v6 = vsel %vm8551_vm2, %v4850_v12, %v12810_v8  ;;  %v7695_v8 = vld [vmem:[%s13887_s0 + $0x17c] sm:$0x1]  ;;  %v5380_v43 = vshll.u32 %v12920_v59, 16 }
 0x46f   :  { %6374 = vst.msk [vmem:[#allocation2 + $0xa8] sm:$0xf] %vm6331_vm14, %v6224_v40  ;;  %v3200_v40 = vshll.u32 %v12858_v38, 16  ;;  %v5100_v7 = vrot.slane %v5099_v61, 4  ;;  %v3936_v0 = vrot.slane %v7695_v8, 5  ;;  %v3206_v58 = vrot.slane %v3204_v48, 4 }
 0x470   :  { %v3197_v10 = vor.u32 %v3196_v16, %v3193_v34  ;;  %v12945_v16 = vrot.slane %v5380_v43, 5 }
 0x471   :  { %v12880_v26 = vrot.slane %v3200_v40, 5  ;;  %v5105_v60 = vsel %vm8551_vm2, %v5100_v7, %v5104_v18  ;;  %v12988_v7 = vld [vmem:[%s13887_s0 + $0x184] sm:$0xf] }
 0x472   :  { %3352 = vrot.lane.b32.xlu2 %v2925_v15, %s8454_s14  ;;  %v4366_v37 = vpop.permute.xlu2 %4365  ;;  %v3198_v1 = vrot.slane %v3197_v10, 4  ;;  %v7947_v15 = vld [vmem:[%s13887_s0 + $0xf8] sm:$0x1] }
 0x473   :  { %4369 = vrot.lane.b32.xlu1 %v7749_v17, %s8455_s24  ;;  %v5963_v17 = vsel %vm9295_vm7, %v5961_v62, %v5962_v54  ;;  %v6032_v19 = vrot.slane %v7947_v15, 5  ;;  %v3084_v54 = vshrl.u32 %v7583_v20, 16  ;;  %v7793_v20 = vld [vmem:[%s13887_s0 + $0x180] sm:$0xf] }
 0x474   :  { %4025 = vrot.lane.b32.xlu0 %v3853_v3, %s8456_s27 }
 0x475   :  { %v3980_v5 = vpop.permute.xlu1 %3979  ;;  %v3086_v11 = vrot.slane %v3084_v54, 4 }
 0x476   :  { %4162 = vst.msk [vmem:[#allocation2 + $0x28] sm:$0xf] %vm4151_vm11, %v3980_v5  ;;  %v3349_v56 = vpop.permute.xlu0 %3348  ;;  %v8302_v9 = vld [vmem:[#allocation2 + $0xa8] sm:$0xff]  ;;  %v7885_v5 = vld [vmem:[%s13887_s0 + $0x180] sm:$0xf] }
 0x477   :  { %3510 = vst.msk [vmem:[#allocation2 + $0x7c] sm:$0xf] %vm3478_vm10, %v3349_v56  ;;  %6833 = vmatmul.bf16.gmra.mxu2 %v8302_v9  ;;  %v5371_v23 = vshrl.u32 %v7885_v5, 16  ;;  %v5374_v56 = vshll.u32 %v7885_v5, 16  ;;  %v3203_v9 = vsel %vm8551_vm2, %v3198_v1, %v12880_v26  ;;  %v3087_v1 = vor.u32 %v3086_v11, %v3082_v57  ;;  %v7872_v11 = vld [vmem:[%s13887_s0 + $0x14c] sm:$0x1] }
 0x478   :  { %4548 = vst.msk [vmem:[#allocation2 + $0x28] sm:$0xf] %vm4537_vm12, %v4366_v37  ;;  %v7693_v37 = vld [vmem:[%s13887_s0 + $0x174] sm:$0xe] }
 0x479   :  { %v5373_v39 = vrot.slane %v5371_v23, 4  ;;  %v5376_v32 = vrot.slane %v5374_v56, 5  ;;  %v5384_v56 = vshrl.u32 %v12920_v59, 16 }
 0x47a   :  { %4023 = vrot.lane.b32.xlu2 %v3850_v46, %s8456_s27  ;;  %v4408_v4 = vpop.permute.xlu2 %4407 }
 0x47b   :  { %4411 = vrot.lane.b32.xlu1 %v7770_v13, %s8455_s24  ;;  %v5377_v44 = vor.u32 %v5376_v32, %v5373_v39  ;;  %v5386_v18 = vrot.slane %v5384_v56, 4  ;;  %v7680_v56 = vld [vmem:[%s13887_s0 + $0x140] sm:$0x1] }
 0x47c   :  { %4409 = vrot.lane.b32.xlu0 %v7769_v2, %s8455_s24 }
 0x47d   :  { %v4022_v27 = vpop.permute.xlu1 %4021  ;;  %v5378_v34 = vrot.slane %v5377_v44, 4 }
 0x47e   :  { %4183 = vst.msk [vmem:[#allocation2 + $0x7c] sm:$0xf] %vm4151_vm11, %v4022_v27  ;;  %v4020_v63 = vpop.permute.xlu0 %4019  ;;  %v6033_v27 = vsel %vm9295_vm7, %v6031_v22, %v6032_v19 }
 0x47f   :  { %4182 = vst.msk [vmem:[#allocation2 + $0x78] sm:$0xf] %vm4151_vm11, %v4020_v63  ;;  %v3937_v63 = vsel %vm9295_vm7, %v3935_v25, %v3936_v0  ;;  %v5383_v12 = vsel %vm8551_vm2, %v5378_v34, %v12945_v16  ;;  %v6113_v25 = vrot.slane %v12988_v7, 5  ;;  %v7887_v0 = vld [vmem:[%s13887_s0 + $0x188] sm:$0x1] }
 0x480   :  { %4569 = vst.msk [vmem:[#allocation2 + $0x7c] sm:$0xf] %vm4537_vm12, %v4408_v4  ;;  %v7582_v4 = vld [vmem:[%s13887_s0 + $0x138] sm:$0xf]  ;;  %v5390_v48 = vshll.u32 %v7887_v0, 16 }
 0x481   :  { %v6115_v44 = vrot.slane %v6113_v25, 4 }
 0x482   :  { %4371 = vrot.lane.b32.xlu2 %v7750_v47, %s8455_s24  ;;  %v5527_v49 = vpop.permute.xlu2 %5526  ;;  %v3071_v47 = vshrl.u32 %v7582_v4, 16  ;;  %v5392_v54 = vrot.slane %v5390_v48, 5 }
 0x483   :  { %5530 = vrot.lane.b32.xlu1 %v5095_v50, %s8457_s17  ;;  %v7733_v50 = vrot.slane %v7693_v37, 9  ;;  %v12983_v37 = vld [vmem:[%s13887_s0 + $0x13c] sm:$0xf] }
 0x484   :  { %5492 = vrot.lane.b32.xlu0 %v4865_v29, %s8457_s17  ;;  %v3073_v5 = vrot.slane %v3071_v47, 4 }
 0x485   :  { %v4406_v28 = vpop.permute.xlu1 %4405  ;;  %v3934_v62 = vsel %vm9295_vm7, %v7733_v50, %v3933_v31  ;;  %v7678_v31 = vld [vmem:[%s13887_s0 + $0x138] sm:$0xe]  ;;  %v5387_v50 = vor.u32 %v5386_v18, %v12945_v16 }
 0x486   :  { %4568 = vst.msk [vmem:[#allocation2 + $0x78] sm:$0xf] %vm4537_vm12, %v4406_v28  ;;  %v4368_v3 = vpop.permute.xlu0 %4367  ;;  %v8009_v28 = vrot.slane %v7945_v35, 9  ;;  %v7871_v35 = vld [vmem:[%s13887_s0 + $0x148] sm:$0xf] }
 0x487   :  { %4549 = vst.msk [vmem:[#allocation2 + $0x2c] sm:$0xf] %vm4537_vm12, %v4368_v3  ;;  %v7584_v3 = vld [vmem:[%s13887_s0 + $0x140] sm:$0x1]  ;;  %v5388_v36 = vrot.slane %v5387_v50, 4  ;;  %v5264_v34 = vshrl.u32 %v7871_v35, 16 }
 0x488   :  { %5689 = vst.msk [vmem:[#allocation2 + $0x78] sm:$0xf] %vm5658_vm13, %v5527_v49  ;;  %v6030_v52 = vsel %vm9295_vm7, %v8009_v28, %v6029_v51  ;;  %v3210_v49 = vshll.u32 %v7599_v42, 16  ;;  %v3090_v45 = vshll.u32 %v7584_v3, 16  ;;  %v7784_v28 = vld [vmem:[%s13887_s0 + $0x148] sm:$0xf] }
 0x489   :  { %v7981_v42 = vld [vmem:[%s13887_s0 + $0x180] sm:$0xe] }
 0x48a   :  { %5490 = vrot.lane.b32.xlu2 %v4855_v6, %s8457_s17  ;;  %v6162_v14 = vpop.permute.xlu2 %6161  ;;  %v3212_v6 = vrot.slane %v3210_v49, 5  ;;  %v3092_v61 = vrot.slane %v3090_v45, 5  ;;  %v7870_v45 = vld [vmem:[%s13887_s0 + $0x144] sm:$0xf] }
 0x48b   :  { %6165 = vrot.lane.b32.xlu1 %v5963_v17, %s8458_s30  ;;  %v3074_v17 = vshll.u32 %v7582_v4, 16 }
 0x48c   :  { %6163 = vrot.lane.b32.xlu0 %v5960_v55, %s8458_s30  ;;  %v3207_v55 = vor.u32 %v3206_v58, %v12880_v26  ;;  %v3088_v26 = vrot.slane %v3087_v1, 4  ;;  %v5393_v58 = vsel %vm8551_vm2, %v5388_v36, %v5392_v54 }
 0x48d   :  { %v5489_v13 = vpop.permute.xlu1 %5488 }
 0x48e   :  { %5670 = vst.msk [vmem:[#allocation2 + $0x2c] sm:$0xf] %vm5658_vm13, %v5489_v13  ;;  %v5487_v2 = vpop.permute.xlu0 %5486  ;;  %v3076_v13 = vrot.slane %v3074_v17, 5  ;;  %v3208_v53 = vrot.slane %v3207_v55, 4  ;;  %v3093_v22 = vsel %vm8551_vm2, %v3088_v26, %v3092_v61  ;;  %v5266_v17 = vrot.slane %v5264_v34, 4 }
 0x48f   :  { %5669 = vst.msk [vmem:[#allocation2 + $0x28] sm:$0xf] %vm5658_vm13, %v5487_v2  ;;  %v7783_v55 = vld [vmem:[%s13887_s0 + $0x144] sm:$0xf]  ;;  %v5251_v26 = vshrl.u32 %v7870_v45, 16  ;;  %v5254_v61 = vshll.u32 %v7870_v45, 16 }
 0x490   :  { %6343 = vst.msk [vmem:[#allocation2 + $0x2c] sm:$0xf] %vm6331_vm14, %v6162_v14  ;;  %v3077_v41 = vor.u32 %v3076_v13, %v3073_v5  ;;  %v3898_v14 = vrot.slane %v12983_v37, 5  ;;  %v7631_v13 = vld [vmem:[%s13887_s0 + $0x64] sm:$0xf] }
 0x491   :  { %v5253_v7 = vrot.slane %v5251_v26, 4  ;;  %v5256_v18 = vrot.slane %v5254_v61, 5  ;;  %v13092_v37 = vld [vmem:[%s13887_s0 + $0x70] sm:$0xf]  ;;  %v7696_v26 = vld [vmem:[%s13887_s0 + $0x180] sm:$0xe] }
 0x492   :  { %5532 = vrot.lane.b32.xlu2 %v5105_v60, %s8457_s17  ;;  %v3395_v38 = vpop.permute.xlu2 %3394  ;;  %v3078_v19 = vrot.slane %v3077_v41, 4  ;;  %v7919_v34 = vld [vmem:[%s13887_s0 + $0x70] sm:$0xf]  ;;  %v13160_v61 = vld [vmem:[%s13887_s0 + $0x184] sm:$0xf] }
 0x493   :  { %3398 = vrot.lane.b32.xlu1 %v3203_v9, %s8454_s14  ;;  %3533 = vst.msk [vmem:[#allocation2 + $0xd8] sm:$0xf] %vm3478_vm10, %v3395_v38  ;;  %v3213_v9 = vsel %vm8551_vm2, %v3208_v53, %v3212_v6  ;;  %v7966_v38 = vld [vmem:[%s13887_s0 + $0x144] sm:$0xe] }
 0x494   :  { %6205 = vrot.lane.b32.xlu0 %v6033_v27, %s8458_s30  ;;  %v3083_v39 = vsel %vm8551_vm2, %v3078_v19, %v3082_v57  ;;  %v7728_v27 = vrot.slane %v7678_v31, 9  ;;  %v13037_v57 = vld [vmem:[%s13887_s0 + $0x148] sm:$0xf] }
 0x495   :  { %v6160_v46 = vpop.permute.xlu1 %6159  ;;  %v6078_v3 = vrot.slane %v13037_v57, 5 }
 0x496   :  { %6342 = vst.msk [vmem:[#allocation2 + $0x28] sm:$0xf] %vm6331_vm14, %v6160_v46  ;;  %v5529_v29 = vpop.permute.xlu0 %5528  ;;  %v7983_v46 = vld [vmem:[%s13887_s0 + $0x188] sm:$0x1]  ;;  %v3899_v60 = vsel %vm9295_vm7, %v7728_v27, %v3898_v14 }
 0x497   :  { %5690 = vst.msk [vmem:[#allocation2 + $0x7c] sm:$0xf] %vm5658_vm13, %v5529_v29  ;;  %v6116_v43 = vrot.slane %v7983_v46, 5  ;;  %v7630_v46 = vld [vmem:[%s13887_s0 + $0x60] sm:$0xe] }
 0x498   :  { %v7712_v48 = vrot.slane %v7630_v46, 9 }
 0x499   :  { %v6117_v29 = vsel %vm9295_vm7, %v6115_v44, %v6116_v43  ;;  %v4876_v44 = vshll.u32 %v13092_v37, 16 }
 0x49a   :  { %6203 = vrot.lane.b32.xlu2 %v6030_v52, %s8458_s30  ;;  %v4070_v51 = vpop.permute.xlu2 %4069  ;;  %v8021_v52 = vrot.slane %v7981_v42, 9  ;;  %v7920_v42 = vld [vmem:[%s13887_s0 + $0x74] sm:$0x1] }
 0x49b   :  { %4073 = vrot.lane.b32.xlu1 %v3937_v63, %s8456_s27 }
 0x49c   :  { %4071 = vrot.lane.b32.xlu0 %v3934_v62, %s8456_s27  ;;  %v5260_v62 = vshll.u32 %v7871_v35, 16 }
 0x49d   :  { %v6202_v10 = vpop.permute.xlu1 %6201  ;;  %v8286_v40 = vld [vmem:[#allocation2 + $0x28] sm:$0xff] }
 0x49e   :  { %6363 = vst.msk [vmem:[#allocation2 + $0x7c] sm:$0xf] %vm6331_vm14, %v6202_v10  ;;  %6753 = vmatmul.bf16.gmra.mxu0 %v8286_v40  ;;  %v6200_v15 = vpop.permute.xlu0 %6199  ;;  %v13042_v47 = vrot.slane %v5260_v62, 5  ;;  %v8016_v40 = vrot.slane %v7966_v38, 9  ;;  %v5966_v38 = vrot.slane %v7919_v34, 5 }
 0x49f   :  { %6362 = vst.msk [vmem:[#allocation2 + $0x78] sm:$0xf] %vm6331_vm14, %v6200_v15  ;;  %v7822_v15 = vld [vmem:[%s13887_s0 + $0x6c] sm:$0xf] }
 0x4a0   :  { %v5267_v1 = vor.u32 %v5266_v17, %v13042_v47  ;;  %v6079_v53 = vsel %vm9295_vm7, %v8016_v40, %v6078_v3  ;;  %v6080_v40 = vrot.slane %v6078_v3, 4  ;;  %v4880_v3 = vshrl.u32 %v13092_v37, 16 }
 0x4a2   :  { %3400 = vrot.lane.b32.xlu2 %v3213_v9, %s8454_s14  ;;  %v5575_v32 = vpop.permute.xlu2 %5574  ;;  %v5268_v41 = vrot.slane %v5267_v1, 4  ;;  %v4867_v9 = vshrl.u32 %v7822_v15, 16  ;;  %v5969_v1 = vrot.slane %v7920_v42, 5 }
 0x4a3   :  { %5578 = vrot.lane.b32.xlu1 %v5383_v12, %s8457_s17  ;;  %v5270_v12 = vshll.u32 %v7872_v11, 16  ;;  %v7968_v11 = vld [vmem:[%s13887_s0 + $0x14c] sm:$0x1] }
 0x4a4   :  { %4459 = vrot.lane.b32.xlu0 %v7794_v33, %s8455_s24  ;;  %v6114_v33 = vsel %vm9295_vm7, %v8021_v52, %v6113_v25  ;;  %v4869_v25 = vrot.slane %v4867_v9, 4  ;;  %v7752_v52 = vld [vmem:[%s13887_s0 + $0x70] sm:$0xf] }
 0x4a5   :  { %v4068_v23 = vpop.permute.xlu1 %4067  ;;  %v5272_v6 = vrot.slane %v5270_v12, 5  ;;  %v6081_v12 = vrot.slane %v7968_v11, 5  ;;  %v7796_v11 = vld [vmem:[%s13887_s0 + $0x190] sm:$0xf] }
 0x4a6   :  { %4206 = vst.msk [vmem:[#allocation2 + $0xd8] sm:$0xf] %vm4151_vm11, %v4068_v23  ;;  %v3397_v2 = vpop.permute.xlu0 %3396  ;;  %v8296_v8 = vld [vmem:[#allocation2 + $0x78] sm:$0xff]  ;;  %v3786_v23 = vrot.slane %v7631_v13, 5 }
 0x4a7   :  { %3534 = vst.msk [vmem:[#allocation2 + $0xdc] sm:$0xf] %vm3478_vm10, %v3397_v2  ;;  %6803 = vmatmul.bf16.gmra.mxu1 %v8296_v8  ;;  %v3900_v2 = vrot.slane %v3898_v14, 4  ;;  %v3901_v8 = vrot.slane %v7680_v56, 5  ;;  %v4882_v56 = vrot.slane %v4880_v3, 4 }
 0x4a8   :  { %4207 = vst.msk [vmem:[#allocation2 + $0xdc] sm:$0xf] %vm4151_vm11, %v4070_v51  ;;  %v7632_v51 = vld [vmem:[%s13887_s0 + $0x68] sm:$0x1]  ;;  %v3788_v27 = vrot.slane %v3786_v23, 4  ;;  %v3787_v36 = vsel %vm9295_vm7, %v7712_v48, %v3786_v23 }
 0x4a9   :  { %v3789_v31 = vrot.slane %v7632_v51, 5  ;;  %v3902_v14 = vsel %vm9295_vm7, %v3900_v2, %v3901_v8  ;;  %v7824_v2 = vld [vmem:[%s13887_s0 + $0x74] sm:$0x1]  ;;  %v7600_v8 = vld [vmem:[%s13887_s0 + $0x180] sm:$0xf] }
 0x4aa   :  { %4457 = vrot.lane.b32.xlu2 %v7793_v20, %s8455_s24  ;;  %v3377_v4 = vpop.permute.xlu2 %3376  ;;  %v5257_v20 = vor.u32 %v5256_v18, %v5253_v7  ;;  %v7585_v18 = vld [vmem:[%s13887_s0 + $0x144] sm:$0xf]  ;;  %v3218_v46 = vshll.u32 %v7600_v8, 16  ;;  %v7888_v3 = vld [vmem:[%s13887_s0 + $0x18c] sm:$0xf] }
 0x4ab   :  { %3380 = vrot.lane.b32.xlu1 %v3093_v22, %s8454_s14  ;;  %3524 = vst.msk [vmem:[#allocation2 + $0xb4] sm:$0xf] %vm3478_vm10, %v3377_v4  ;;  %v4870_v22 = vshll.u32 %v7822_v15, 16  ;;  %v3790_v50 = vsel %vm9295_vm7, %v3788_v27, %v3789_v31  ;;  %v13107_v4 = vrot.slane %v4876_v44, 5  ;;  %v6082_v15 = vsel %vm9295_vm7, %v6080_v40, %v6081_v12  ;;  %v7751_v27 = vld [vmem:[%s13887_s0 + $0x6c] sm:$0xf] }
 0x4ac   :  { %3378 = vrot.lane.b32.xlu0 %v3083_v39, %s8454_s14  ;;  %v5273_v39 = vsel %vm8551_vm2, %v5268_v41, %v5272_v6  ;;  %v5258_v35 = vrot.slane %v5257_v20, 4  ;;  %v3940_v31 = vrot.slane %v13160_v61, 5  ;;  %v3098_v20 = vshll.u32 %v7585_v18, 16  ;;  %v7890_v12 = vld [vmem:[%s13887_s0 + $0x194] sm:$0x1] }
 0x4ad   :  { %v4456_v59 = vpop.permute.xlu1 %4455  ;;  %v4872_v0 = vrot.slane %v4870_v22, 5  ;;  %v7874_v61 = vld [vmem:[%s13887_s0 + $0x154] sm:$0xf] }
 0x4ae   :  { %4593 = vst.msk [vmem:[#allocation2 + $0xdc] sm:$0xf] %vm4537_vm12, %v4456_v59  ;;  %v4454_v63 = vpop.permute.xlu0 %4453 }
 0x4af   :  { %4592 = vst.msk [vmem:[#allocation2 + $0xd8] sm:$0xf] %vm4537_vm12, %v4454_v63 }
 0x4b0   :  { %5713 = vst.msk [vmem:[#allocation2 + $0xd8] sm:$0xf] %vm5658_vm13, %v5575_v32 }
 0x4b2   :  { %5580 = vrot.lane.b32.xlu2 %v5393_v58, %s8457_s17 }
 0x4b3   :  { %4051 = vrot.lane.b32.xlu1 %v3899_v60, %s8456_s27  ;;  %v4873_v60 = vor.u32 %v4872_v0, %v4869_v25  ;;  %v4883_v25 = vor.u32 %v4882_v56, %v13107_v4  ;;  %v4886_v0 = vshll.u32 %v7824_v2, 16 }
 0x4b4   :  { %6253 = vrot.lane.b32.xlu0 %v6117_v29, %s8458_s30  ;;  %v4048_v49 = vpop.permute.xlu2 %4047 }
 0x4b5   :  { %v3375_v16 = vpop.permute.xlu1 %3374  ;;  %v4874_v29 = vrot.slane %v4873_v60, 4  ;;  %v7889_v60 = vld [vmem:[%s13887_s0 + $0x190] sm:$0xf] }
 0x4b6   :  { %3523 = vst.msk [vmem:[#allocation2 + $0xb0] sm:$0xf] %vm3478_vm10, %v3375_v16  ;;  %v5577_v10 = vpop.permute.xlu0 %5576  ;;  %v5263_v16 = vsel %vm8551_vm2, %v5258_v35, %v13042_v47  ;;  %v5408_v34 = vshrl.u32 %v7889_v60, 16 }
 0x4b7   :  { %5714 = vst.msk [vmem:[#allocation2 + $0xdc] sm:$0xf] %vm5658_vm13, %v5577_v10  ;;  %v4879_v58 = vsel %vm8551_vm2, %v4874_v29, %v13107_v4  ;;  %v3100_v4 = vrot.slane %v3098_v20, 5  ;;  %v13270_v20 = vld [vmem:[%s13887_s0 + $0x148] sm:$0xf] }
 0x4b8   :  { %4196 = vst.msk [vmem:[#allocation2 + $0xb0] sm:$0xf] %vm4151_vm11, %v4048_v49  ;;  %v5968_v49 = vrot.slane %v5966_v38, 4 }
 0x4ba   :  { %6251 = vrot.lane.b32.xlu2 %v6114_v33, %s8458_s30  ;;  %v5970_v6 = vsel %vm9295_vm7, %v5968_v49, %v5969_v1 }
 0x4bb   :  { %4439 = vrot.lane.b32.xlu1 %v7784_v28, %s8455_s24  ;;  %v7601_v28 = vld [vmem:[%s13887_s0 + $0x184] sm:$0xf] }
 0x4bc   :  { %4437 = vrot.lane.b32.xlu0 %v7783_v55, %s8455_s24  ;;  %v4436_v32 = vpop.permute.xlu2 %4435  ;;  %v3224_v47 = vshll.u32 %v7601_v28, 16  ;;  %v3228_v10 = vshrl.u32 %v7601_v28, 16  ;;  %v13201_v28 = vld [vmem:[%s13887_s0 + $0x148] sm:$0xf] }
 0x4bd   :  { %v6250_v5 = vpop.permute.xlu1 %6249  ;;  %v3104_v42 = vshll.u32 %v13201_v28, 16 }
 0x4be   :  { %6387 = vst.msk [vmem:[#allocation2 + $0xdc] sm:$0xf] %vm6331_vm14, %v6250_v5  ;;  %v6248_v19 = vpop.permute.xlu0 %6247  ;;  %v7918_v5 = vld [vmem:[%s13887_s0 + $0x6c] sm:$0xe]  ;;  %v13143_v13 = vrot.slane %v3224_v47, 5  ;;  %v3230_v57 = vrot.slane %v3228_v10, 4 }
 0x4bf   :  { %6386 = vst.msk [vmem:[#allocation2 + $0xd8] sm:$0xf] %vm6331_vm14, %v6248_v19  ;;  %v8000_v33 = vrot.slane %v7918_v5, 9  ;;  %v7734_v19 = vrot.slane %v7696_v26, 9  ;;  %v5410_v10 = vrot.slane %v5408_v34, 4 }
 0x4c0   :  { %v3231_v41 = vor.u32 %v3230_v57, %v13143_v13  ;;  %v5414_v57 = vshll.u32 %v7890_v12, 16  ;;  %v7785_v12 = vld [vmem:[%s13887_s0 + $0x150] sm:$0xf] }
 0x4c1   :  { %v5967_v9 = vsel %vm9295_vm7, %v8000_v33, %v5966_v38  ;;  %v3941_v37 = vsel %vm9295_vm7, %v7734_v19, %v3940_v31  ;;  %v5395_v33 = vshrl.u32 %v7888_v3, 16  ;;  %v7986_v19 = vld [vmem:[%s13887_s0 + $0x194] sm:$0x1] }
 0x4c2   :  { %4053 = vrot.lane.b32.xlu2 %v3902_v14, %s8456_s27  ;;  %v3095_v14 = vshrl.u32 %v7585_v18, 16 }
 0x4c3   :  { %6231 = vrot.lane.b32.xlu1 %v6079_v53, %s8458_s30  ;;  %v7602_v53 = vld [vmem:[%s13887_s0 + $0x188] sm:$0x1] }
 0x4c4   :  { %5560 = vrot.lane.b32.xlu0 %v5273_v39, %s8457_s17  ;;  %v6228_v54 = vpop.permute.xlu2 %6227  ;;  %v3234_v23 = vshll.u32 %v7602_v53, 16  ;;  %v3232_v39 = vrot.slane %v3231_v41, 4  ;;  %v3097_v29 = vrot.slane %v3095_v14, 4  ;;  %v7985_v53 = vld [vmem:[%s13887_s0 + $0x190] sm:$0xf] }
 0x4c5   :  { %v4434_v59 = vpop.permute.xlu1 %4433  ;;  %v6120_v56 = vrot.slane %v7985_v53, 5 }
 0x4c6   :  { %4582 = vst.msk [vmem:[#allocation2 + $0xb0] sm:$0xf] %vm4537_vm12, %v4434_v59  ;;  %v4050_v43 = vpop.permute.xlu0 %4049  ;;  %v8308_v63 = vld [vmem:[#allocation2 + $0xd8] sm:$0xff]  ;;  %v3215_v59 = vshrl.u32 %v7600_v8, 16  ;;  %v5397_v8 = vrot.slane %v5395_v33, 4 }
 0x4c7   :  { %4197 = vst.msk [vmem:[#allocation2 + $0xb4] sm:$0xf] %vm4151_vm11, %v4050_v43  ;;  %6863 = vmatmul.bf16.gmra.mxu3 %v8308_v63  ;;  %v4884_v43 = vrot.slane %v4883_v25, 4  ;;  %v4888_v63 = vrot.slane %v4886_v0, 5  ;;  %v7984_v25 = vld [vmem:[%s13887_s0 + $0x18c] sm:$0xe] }
 0x4c8   :  { %4583 = vst.msk [vmem:[#allocation2 + $0xb4] sm:$0xf] %vm4537_vm12, %v4436_v32  ;;  %v3236_v32 = vrot.slane %v3234_v23, 5  ;;  %v3217_v35 = vrot.slane %v3215_v59, 4  ;;  %v5416_v23 = vrot.slane %v5414_v57, 5  ;;  %v8022_v59 = vrot.slane %v7984_v25, 9 }
 0x4c9   :  { %v7971_v25 = vld [vmem:[%s13887_s0 + $0x158] sm:$0x1] }
 0x4ca   :  { %5558 = vrot.lane.b32.xlu2 %v5263_v16, %s8457_s17  ;;  %v3237_v44 = vsel %vm8551_vm2, %v3232_v39, %v3236_v32  ;;  %v6122_v32 = vrot.slane %v6120_v56, 4 }
 0x4cb   :  { %3989 = vrot.lane.b32.xlu1 %v3790_v50, %s8456_s27 }
 0x4cc   :  { %3987 = vrot.lane.b32.xlu0 %v3787_v36, %s8456_s27  ;;  %v3353_v55 = vpop.permute.xlu2 %3352  ;;  %v3220_v36 = vrot.slane %v3218_v46, 5 }
 0x4cd   :  { %v5557_v62 = vpop.permute.xlu1 %5556  ;;  %3512 = vst.msk [vmem:[#allocation2 + $0x84] sm:$0xf] %vm3478_vm10, %v3353_v55 }
 0x4ce   :  { %5704 = vst.msk [vmem:[#allocation2 + $0xb4] sm:$0xf] %vm5658_vm13, %v5557_v62  ;;  %v5555_v17 = vpop.permute.xlu0 %5554  ;;  %v5404_v62 = vshll.u32 %v7889_v60, 16  ;;  %v3221_v38 = vor.u32 %v3220_v36, %v3217_v35  ;;  %v3905_v35 = vrot.slane %v13270_v20, 5 }
 0x4cf   :  { %5703 = vst.msk [vmem:[#allocation2 + $0xb0] sm:$0xf] %vm5658_vm13, %v5555_v17  ;;  %v3101_v17 = vor.u32 %v3100_v4, %v3097_v29 }
 0x4d0   :  { %6376 = vst.msk [vmem:[#allocation2 + $0xb0] sm:$0xf] %vm6331_vm14, %v6228_v54  ;;  %v13211_v47 = vrot.slane %v5404_v62, 5  ;;  %v3222_v55 = vrot.slane %v3221_v38, 4  ;;  %v7875_v38 = vld [vmem:[%s13887_s0 + $0x158] sm:$0x1] }
 0x4d1   :  { %v3102_v1 = vrot.slane %v3101_v17, 4  ;;  %v3907_v17 = vrot.slane %v3905_v35, 4 }
 0x4d2   :  { %6233 = vrot.lane.b32.xlu2 %v6082_v15, %s8458_s30  ;;  %v5411_v5 = vor.u32 %v5410_v10, %v13211_v47 }
 0x4d3   :  { %5494 = vrot.lane.b32.xlu1 %v4879_v58, %s8457_s17  ;;  %v4889_v58 = vsel %vm8551_vm2, %v4884_v43, %v4888_v63  ;;  %v6121_v43 = vsel %vm9295_vm7, %v8022_v59, %v6120_v56  ;;  %v7683_v63 = vld [vmem:[%s13887_s0 + $0x14c] sm:$0x1]  ;;  %v7681_v56 = vld [vmem:[%s13887_s0 + $0x144] sm:$0xe]  ;;  %v6088_v59 = vrot.slane %v7971_v25, 5 }
 0x4d4   :  { %4375 = vrot.lane.b32.xlu0 %v7752_v52, %s8455_s24  ;;  %v4024_v22 = vpop.permute.xlu2 %4023  ;;  %v7795_v52 = vld [vmem:[%s13887_s0 + $0x18c] sm:$0xf]  ;;  %v5412_v41 = vrot.slane %v5411_v5, 4 }
 0x4d5   :  { %v3351_v45 = vpop.permute.xlu1 %3350 }
 0x4d6   :  { %3511 = vst.msk [vmem:[#allocation2 + $0x80] sm:$0xf] %vm3478_vm10, %v3351_v45  ;;  %v6230_v51 = vpop.permute.xlu0 %6229  ;;  %v13222_v45 = vrot.slane %v3104_v42, 5  ;;  %v5417_v18 = vsel %vm8551_vm2, %v5412_v41, %v5416_v23  ;;  %v7633_v23 = vld [vmem:[%s13887_s0 + $0x6c] sm:$0xe] }
 0x4d7   :  { %6377 = vst.msk [vmem:[#allocation2 + $0xb4] sm:$0xf] %vm6331_vm14, %v6230_v51  ;;  %v5398_v51 = vshll.u32 %v7888_v3, 16 }
 0x4d8   :  { %4184 = vst.msk [vmem:[#allocation2 + $0x80] sm:$0xf] %vm4151_vm11, %v4024_v22  ;;  %v3107_v26 = vsel %vm8551_vm2, %v3102_v1, %v13222_v45 }
 0x4da   :  { %4373 = vrot.lane.b32.xlu2 %v7751_v27, %s8455_s24  ;;  %v6123_v27 = vrot.slane %v7986_v19, 5  ;;  %v13323_v19 = vld [vmem:[%s13887_s0 + $0x70] sm:$0xf] }
 0x4db   :  { %6169 = vrot.lane.b32.xlu1 %v5970_v6, %s8458_s30  ;;  %v3227_v6 = vsel %vm8551_vm2, %v3222_v55, %v13143_v13  ;;  %v3942_v13 = vrot.slane %v3940_v31, 4  ;;  %v3108_v31 = vshrl.u32 %v13201_v28, 16  ;;  %v7587_v28 = vld [vmem:[%s13887_s0 + $0x14c] sm:$0x1]  ;;  %v5294_v55 = vshll.u32 %v7875_v38, 16 }
 0x4dc   :  { %6167 = vrot.lane.b32.xlu0 %v5967_v9, %s8458_s30  ;;  %v4372_v54 = vpop.permute.xlu2 %4371  ;;  %v7698_v9 = vld [vmem:[%s13887_s0 + $0x188] sm:$0x1]  ;;  %v6124_v14 = vsel %vm9295_vm7, %v6122_v32, %v6123_v27 }
 0x4dd   :  { %v3986_v7 = vpop.permute.xlu1 %3985  ;;  %v3943_v2 = vrot.slane %v7698_v9, 5  ;;  %v5296_v53 = vrot.slane %v5294_v55, 5 }
 0x4de   :  { %4165 = vst.msk [vmem:[#allocation2 + $0x34] sm:$0xf] %vm4151_vm11, %v3986_v7  ;;  %v3984_v50 = vpop.permute.xlu0 %3983  ;;  %v8303_v48 = vld [vmem:[#allocation2 + $0xb0] sm:$0xff]  ;;  %v5400_v7 = vrot.slane %v5398_v51, 5 }
 0x4df   :  { %4164 = vst.msk [vmem:[#allocation2 + $0x30] sm:$0xf] %vm4151_vm11, %v3984_v50  ;;  %6838 = vmatmul.bf16.gmra.mxu2 %v8303_v48  ;;  %v3944_v46 = vsel %vm9295_vm7, %v3942_v13, %v3943_v2  ;;  %v5284_v50 = vshll.u32 %v7874_v61, 16  ;;  %v5288_v48 = vshrl.u32 %v7874_v61, 16  ;;  %v13328_v13 = vld [vmem:[%s13887_s0 + $0x154] sm:$0xf] }
 0x4e0   :  { %4551 = vst.msk [vmem:[#allocation2 + $0x34] sm:$0xf] %vm4537_vm12, %v4372_v54  ;;  %v3110_v54 = vrot.slane %v3108_v31, 4  ;;  %v7729_v2 = vrot.slane %v7681_v56, 9  ;;  %v6085_v32 = vrot.slane %v13328_v13, 5 }
 0x4e1   :  { %v5286_v4 = vrot.slane %v5284_v50, 5  ;;  %v5290_v62 = vrot.slane %v5288_v48, 4  ;;  %v13353_v50 = vpop.f32.mrf.mxu1  ;;  %v7635_v13 = vld [vmem:[%s13887_s0 + $0x74] sm:$0x1] }
 0x4e2   :  { %5496 = vrot.lane.b32.xlu2 %v4889_v58, %s8457_s17  ;;  %v3111_v10 = vor.u32 %v3110_v54, %v13222_v45  ;;  %v6087_v31 = vrot.slane %v6085_v32, 4  ;;  %v7921_v54 = vld [vmem:[%s13887_s0 + $0x78] sm:$0xe] }
 0x4e3   :  { %4075 = vrot.lane.b32.xlu1 %v3941_v37, %s8456_s27  ;;  %v5401_v37 = vor.u32 %v5400_v7, %v5397_v8 }
 0x4e4   :  { %3404 = vrot.lane.b32.xlu0 %v3237_v44, %s8454_s14  ;;  %v5491_v49 = vpop.permute.xlu2 %5490  ;;  %v7873_v44 = vld [vmem:[%s13887_s0 + $0x150] sm:$0xf]  ;;  %v3112_v57 = vrot.slane %v3111_v10, 4  ;;  %v6089_v20 = vsel %vm9295_vm7, %v6087_v31, %v6088_v59 }
 0x4e5   :  { %v4370_v16 = vpop.permute.xlu1 %4369  ;;  %v5402_v36 = vrot.slane %v5401_v37, 4  ;;  %v5275_v34 = vshrl.u32 %v7873_v44, 16 }
 0x4e6   :  { %4550 = vst.msk [vmem:[#allocation2 + $0x30] sm:$0xf] %vm4537_vm12, %v4370_v16  ;;  %v4026_v40 = vpop.permute.xlu0 %4025  ;;  %v5278_v16 = vshll.u32 %v7873_v44, 16 }
 0x4e7   :  { %4185 = vst.msk [vmem:[#allocation2 + $0x84] sm:$0xf] %vm4151_vm11, %v4026_v40  ;;  %v5407_v42 = vsel %vm8551_vm2, %v5402_v36, %v13211_v47  ;;  %v3114_v40 = vshll.u32 %v7587_v28, 16  ;;  %v7786_v36 = vld [vmem:[%s13887_s0 + $0x154] sm:$0xf] }
 0x4e8   :  { %5671 = vst.msk [vmem:[#allocation2 + $0x30] sm:$0xf] %vm5658_vm13, %v5491_v49  ;;  %v5277_v49 = vrot.slane %v5275_v34, 4  ;;  %v5280_v1 = vrot.slane %v5278_v16, 5 }
 0x4e9   :  { %v3116_v47 = vrot.slane %v3114_v40, 5  ;;  %v7753_v40 = vld [vmem:[%s13887_s0 + $0x78] sm:$0xf]  ;;  %v13399_v55 = vpop.f32.mrf.mxu1 }
 0x4ea   :  { %3402 = vrot.lane.b32.xlu2 %v3227_v6, %s8454_s14  ;;  %v5281_v6 = vor.u32 %v5280_v1, %v5277_v49 }
 0x4eb   :  { %4463 = vrot.lane.b32.xlu1 %v7796_v11, %s8455_s24  ;;  %v3908_v11 = vrot.slane %v7683_v63, 5  ;;  %v3117_v51 = vsel %vm8551_vm2, %v3112_v57, %v3116_v47  ;;  %v7604_v63 = vld [vmem:[%s13887_s0 + $0x190] sm:$0xf] }
 0x4ec   :  { %4461 = vrot.lane.b32.xlu0 %v7795_v52, %s8455_s24  ;;  %v5533_v39 = vpop.permute.xlu2 %5532  ;;  %v5291_v52 = vor.u32 %v5290_v62, %v5286_v4  ;;  %v5282_v41 = vrot.slane %v5281_v6, 4  ;;  %v3248_v16 = vshll.u32 %v7604_v63, 16  ;;  %v3252_v28 = vshrl.u32 %v7604_v63, 16 }
 0x4ed   :  { %v4412_v15 = vpop.permute.xlu1 %4411  ;;  %v3909_v45 = vsel %vm9295_vm7, %v3907_v17, %v3908_v11  ;;  %v7827_v11 = vld [vmem:[%s13887_s0 + $0x80] sm:$0x1]  ;;  %v8001_v17 = vrot.slane %v7921_v54, 9 }
 0x4ee   :  { %4571 = vst.msk [vmem:[#allocation2 + $0x84] sm:$0xf] %vm4537_vm12, %v4412_v15  ;;  %v4410_v22 = vpop.permute.xlu0 %4409  ;;  %v5292_v15 = vrot.slane %v5291_v52, 4  ;;  %v5287_v8 = vsel %vm8551_vm2, %v5282_v41, %v5286_v4  ;;  %v7969_v4 = vld [vmem:[%s13887_s0 + $0x150] sm:$0xe]  ;;  %v13402_v57 = vrot.slane %v3248_v16, 5 }
 0x4ef   :  { %4570 = vst.msk [vmem:[#allocation2 + $0x80] sm:$0xf] %vm4537_vm12, %v4410_v22  ;;  %v8017_v10 = vrot.slane %v7969_v4, 9  ;;  %v3254_v47 = vrot.slane %v3252_v28, 4  ;;  %v7893_v28 = vld [vmem:[%s13887_s0 + $0x1a0] sm:$0x1] }
 0x4f0   :  { %5692 = vst.msk [vmem:[#allocation2 + $0x84] sm:$0xf] %vm5658_vm13, %v5533_v39  ;;  %v3793_v39 = vrot.slane %v13323_v19, 5  ;;  %v7892_v19 = vld [vmem:[%s13887_s0 + $0x19c] sm:$0xf] }
 0x4f1   :  { %v6086_v6 = vsel %vm9295_vm7, %v8017_v10, %v6085_v32  ;;  %v13428_v25 = vpop.f32.mrf.mxu1  ;;  %v7606_v10 = vld [vmem:[%s13887_s0 + $0x198] sm:$0xf] }
 0x4f2   :  { %4077 = vrot.lane.b32.xlu2 %v3944_v46, %s8456_s27 }
 0x4f3   :  { %3382 = vrot.lane.b32.xlu1 %v3107_v26, %s8454_s14  ;;  %v5297_v26 = vsel %vm8551_vm2, %v5292_v15, %v5296_v53  ;;  %v7605_v15 = vld [vmem:[%s13887_s0 + $0x194] sm:$0x1] }
 0x4f4   :  { %5584 = vrot.lane.b32.xlu0 %v5417_v18, %s8457_s17  ;;  %v6204_v29 = vpop.permute.xlu2 %6203  ;;  %v7713_v18 = vrot.slane %v7633_v23, 9 }
 0x4f5   :  { %v5531_v0 = vpop.permute.xlu1 %5530 }
 0x4f6   :  { %5691 = vst.msk [vmem:[#allocation2 + $0x80] sm:$0xf] %vm5658_vm13, %v5531_v0  ;;  %v5493_v60 = vpop.permute.xlu0 %5492  ;;  %v3906_v0 = vsel %vm9295_vm7, %v7729_v2, %v3905_v35  ;;  %v3794_v61 = vsel %vm9295_vm7, %v7713_v18, %v3793_v39  ;;  %v7754_v35 = vld [vmem:[%s13887_s0 + $0x7c] sm:$0xf]  ;;  %v3796_v18 = vrot.slane %v7635_v13, 5 }
 0x4f7   :  { %5672 = vst.msk [vmem:[#allocation2 + $0x34] sm:$0xf] %vm5658_vm13, %v5493_v60 }
 0x4f8   :  { %6364 = vst.msk [vmem:[#allocation2 + $0x80] sm:$0xf] %vm6331_vm14, %v6204_v29  ;;  %v13378_v29 = vld [vmem:[%s13887_s0 + $0x7c] sm:$0xf] }
 0x4fa   :  { %5582 = vrot.lane.b32.xlu2 %v5407_v42, %s8457_s17  ;;  %v5973_v42 = vrot.slane %v13378_v29, 5 }
 0x4fb   :  { %6257 = vrot.lane.b32.xlu1 %v6124_v14, %s8458_s30  ;;  %v7826_v14 = vld [vmem:[%s13887_s0 + $0x7c] sm:$0xf] }
 0x4fc   :  { %6255 = vrot.lane.b32.xlu0 %v6121_v43, %s8458_s30  ;;  %v3401_v3 = vpop.permute.xlu2 %3400  ;;  %v4900_v60 = vshll.u32 %v7826_v14, 16  ;;  %v4904_v44 = vshrl.u32 %v7826_v14, 16  ;;  %v5974_v53 = vsel %vm9295_vm7, %v8001_v17, %v5973_v42 }
 0x4fd   :  { %v6166_v58 = vpop.permute.xlu1 %6165  ;;  %3536 = vst.msk [vmem:[#allocation2 + $0xe4] sm:$0xf] %vm3478_vm10, %v3401_v3 }
 0x4fe   :  { %6345 = vst.msk [vmem:[#allocation2 + $0x34] sm:$0xf] %vm6331_vm14, %v6166_v58  ;;  %v6164_v5 = vpop.permute.xlu0 %6163  ;;  %v13383_v62 = vrot.slane %v4900_v60, 5  ;;  %v4906_v34 = vrot.slane %v4904_v44, 4  ;;  %v7603_v58 = vld [vmem:[%s13887_s0 + $0x18c] sm:$0xf] }
 0x4ff   :  { %6344 = vst.msk [vmem:[#allocation2 + $0x30] sm:$0xf] %vm6331_vm14, %v6164_v5  ;;  %v3242_v52 = vshll.u32 %v7603_v58, 16  ;;  %v4910_v5 = vshll.u32 %v7827_v11, 16  ;;  %v5428_v60 = vshll.u32 %v7892_v19, 16  ;;  %v5432_v44 = vshrl.u32 %v7892_v19, 16 }
 0x500   :  { %v4907_v1 = vor.u32 %v4906_v34, %v13383_v62 }
 0x501   :  { %v4912_v56 = vrot.slane %v4910_v5, 5  ;;  %v5438_v5 = vshll.u32 %v7893_v28, 16 }
 0x502   :  { %3384 = vrot.lane.b32.xlu2 %v3117_v51, %s8454_s14  ;;  %v3244_v51 = vrot.slane %v3242_v52, 5  ;;  %v4908_v23 = vrot.slane %v4907_v1, 4  ;;  %v7797_v52 = vld [vmem:[%s13887_s0 + $0x198] sm:$0xf] }
 0x503   :  { %4441 = vrot.lane.b32.xlu1 %v7785_v12, %s8455_s24  ;;  %v3239_v12 = vshrl.u32 %v7603_v58, 16  ;;  %v13463_v58 = vrot.slane %v5428_v60, 5 }
 0x504   :  { %4057 = vrot.lane.b32.xlu0 %v3909_v45, %s8456_s27  ;;  %v4458_v7 = vpop.permute.xlu2 %4457  ;;  %v7825_v45 = vld [vmem:[%s13887_s0 + $0x78] sm:$0xf] }
 0x505   :  { %v3399_v33 = vpop.permute.xlu1 %3398  ;;  %v4894_v41 = vshll.u32 %v7825_v45, 16 }
 0x506   :  { %3535 = vst.msk [vmem:[#allocation2 + $0xe0] sm:$0xf] %vm3478_vm10, %v3399_v33  ;;  %v6206_v9 = vpop.permute.xlu0 %6205  ;;  %v8287_v22 = vld [vmem:[#allocation2 + $0x30] sm:$0xff]  ;;  %v3241_v33 = vrot.slane %v3239_v12, 4 }
 0x507   :  { %6365 = vst.msk [vmem:[#allocation2 + $0x84] sm:$0xf] %vm6331_vm14, %v6206_v9  ;;  %6758 = vmatmul.bf16.gmra.mxu0 %v8287_v22  ;;  %v3255_v9 = vor.u32 %v3254_v47, %v13402_v57  ;;  %v3258_v22 = vshll.u32 %v7605_v15, 16  ;;  %v3263_v15 = vshrl.u32 %v7606_v10, 16 }
 0x509   :  { %v3256_v31 = vrot.slane %v3255_v9, 4  ;;  %v3260_v59 = vrot.slane %v3258_v22, 5  ;;  %v3265_v22 = vrot.slane %v3263_v15, 4 }
 0x50a   :  { %4055 = vrot.lane.b32.xlu2 %v3906_v0, %s8456_s27  ;;  %v4913_v0 = vsel %vm8551_vm2, %v4908_v23, %v4912_v56 }
 0x50b   :  { %5564 = vrot.lane.b32.xlu1 %v5297_v26, %s8457_s17  ;;  %v4891_v26 = vshrl.u32 %v7825_v45, 16 }
 0x50c   :  { %5562 = vrot.lane.b32.xlu0 %v5287_v8, %s8457_s17  ;;  %v5581_v48 = vpop.permute.xlu2 %5580  ;;  %v3795_v8 = vrot.slane %v3793_v39, 4 }
 0x50d   :  { %v4074_v27 = vpop.permute.xlu1 %4073  ;;  %v4893_v32 = vrot.slane %v4891_v26, 4  ;;  %v5975_v26 = vrot.slane %v5973_v42, 4 }
 0x50e   :  { %4209 = vst.msk [vmem:[#allocation2 + $0xe4] sm:$0xf] %vm4151_vm11, %v4074_v27  ;;  %v4072_v46 = vpop.permute.xlu0 %4071  ;;  %v8297_v37 = vld [vmem:[#allocation2 + $0x80] sm:$0xff]  ;;  %v4896_v27 = vrot.slane %v4894_v41, 5 }
 0x50f   :  { %4208 = vst.msk [vmem:[#allocation2 + $0xe0] sm:$0xf] %vm4151_vm11, %v4072_v46  ;;  %6808 = vmatmul.bf16.gmra.mxu1 %v8297_v37  ;;  %v3797_v37 = vsel %vm9295_vm7, %v3795_v8, %v3796_v18  ;;  %v13495_v8 = vld [vmem:[%s13887_s0 + $0x19c] sm:$0xf] }
 0x510   :  { %4594 = vst.msk [vmem:[#allocation2 + $0xe0] sm:$0xf] %vm4537_vm12, %v4458_v7  ;;  %v3245_v7 = vor.u32 %v3244_v51, %v3241_v33  ;;  %v4897_v14 = vor.u32 %v4896_v27, %v4893_v32  ;;  %v5440_v51 = vrot.slane %v5438_v5, 5  ;;  %v3272_v27 = vshll.u32 %v13495_v8, 16  ;;  %v7702_v5 = vld [vmem:[%s13887_s0 + $0x198] sm:$0xe] }
 0x512   :  { %4443 = vrot.lane.b32.xlu2 %v7786_v36, %s8455_s24  ;;  %v3246_v39 = vrot.slane %v3245_v7, 4  ;;  %v4898_v54 = vrot.slane %v4897_v14, 4  ;;  %v13522_v14 = vrot.slane %v3272_v27, 5 }
 0x513   :  { %3991 = vrot.lane.b32.xlu1 %v3794_v61, %s8456_s27 }
 0x514   :  { %6237 = vrot.lane.b32.xlu0 %v6089_v20, %s8458_s30  ;;  %v6252_v49 = vpop.permute.xlu2 %6251  ;;  %v3261_v20 = vsel %vm8551_vm2, %v3256_v31, %v3260_v59  ;;  %v3251_v34 = vsel %vm8551_vm2, %v3246_v39, %v13402_v57  ;;  %v4903_v1 = vsel %vm8551_vm2, %v4898_v54, %v13383_v62 }
 0x515   :  { %v5579_v43 = vpop.permute.xlu1 %5578 }
 0x516   :  { %5715 = vst.msk [vmem:[#allocation2 + $0xe0] sm:$0xf] %vm5658_vm13, %v5579_v43  ;;  %v4460_v38 = vpop.permute.xlu0 %4459  ;;  %v7891_v43 = vld [vmem:[%s13887_s0 + $0x198] sm:$0xf] }
 0x517   :  { %4595 = vst.msk [vmem:[#allocation2 + $0xe4] sm:$0xf] %vm4537_vm12, %v4460_v38  ;;  %v5419_v4 = vshrl.u32 %v7891_v43, 16  ;;  %v5434_v38 = vrot.slane %v5432_v44, 4  ;;  %v5422_v11 = vshll.u32 %v7891_v43, 16 }
 0x518   :  { %5716 = vst.msk [vmem:[#allocation2 + $0xe4] sm:$0xf] %vm5658_vm13, %v5581_v48  ;;  %v13445_v48 = vld [vmem:[%s13887_s0 + $0x190] sm:$0xf]  ;;  %v7703_v44 = vld [vmem:[%s13887_s0 + $0x19c] sm:$0xf] }
 0x519   :  { %6388 = vst.msk [vmem:[#allocation2 + $0xe0] sm:$0xf] %vm6331_vm14, %v6252_v49  ;;  %v3947_v36 = vrot.slane %v13445_v48, 5  ;;  %v5421_v57 = vrot.slane %v5419_v4, 4  ;;  %v5435_v47 = vor.u32 %v5434_v38, %v13463_v58  ;;  %v5424_v45 = vrot.slane %v5422_v11, 5 }
 0x51a   :  { %6235 = vrot.lane.b32.xlu2 %v6086_v6, %s8458_s30  ;;  %v7894_v43 = vld [vmem:[%s13887_s0 + $0x1a4] sm:$0xf]  ;;  %v7704_v11 = vld [vmem:[%s13887_s0 + $0x1a0] sm:$0x1] }
 0x51b   :  { %4379 = vrot.lane.b32.xlu1 %v7754_v35, %s8455_s24  ;;  %v7701_v35 = vld [vmem:[%s13887_s0 + $0x194] sm:$0x1]  ;;  %v3949_v49 = vrot.slane %v3947_v36, 4  ;;  %v5436_v56 = vrot.slane %v5435_v47, 4  ;;  %v5425_v9 = vor.u32 %v5424_v45, %v5421_v57  ;;  %v5443_v28 = vshrl.u32 %v7894_v43, 16 }
 0x51c   :  { %4377 = vrot.lane.b32.xlu0 %v7753_v40, %s8455_s24  ;;  %v4054_v61 = vpop.permute.xlu2 %4053  ;;  %v13468_v40 = vpop.f32.mrf.mxu1  ;;  %v3950_v12 = vrot.slane %v7701_v35, 5  ;;  %v7895_v57 = vld [vmem:[%s13887_s0 + $0x1a8] sm:$0xf]  ;;  %v3276_v47 = vshrl.u32 %v13495_v8, 16  ;;  %v7798_v45 = vld [vmem:[%s13887_s0 + $0x19c] sm:$0xf] }
 0x51d   :  { %v3381_v3 = vpop.permute.xlu1 %3380  ;;  %v5441_v42 = vsel %vm8551_vm2, %v5436_v56, %v5440_v51  ;;  %v5426_v18 = vrot.slane %v5425_v9, 4  ;;  %v7991_v8 = vld [vmem:[%s13887_s0 + $0x1a8] sm:$0xf] }
 0x51e   :  { %3526 = vst.msk [vmem:[#allocation2 + $0xbc] sm:$0xf] %vm3478_vm10, %v3381_v3  ;;  %v3379_v2 = vpop.permute.xlu0 %3378  ;;  %v7923_v3 = vld [vmem:[%s13887_s0 + $0x80] sm:$0x1]  ;;  %v3951_v62 = vsel %vm9295_vm7, %v3949_v49, %v3950_v12  ;;  %v3957_v12 = vrot.slane %v7704_v11, 5  ;;  %v6134_v27 = vrot.slane %v7991_v8, 5 }
 0x51f   :  { %3525 = vst.msk [vmem:[#allocation2 + $0xb8] sm:$0xf] %vm3478_vm10, %v3379_v2  ;;  %v5976_v41 = vrot.slane %v7923_v3, 5  ;;  %v5431_v19 = vsel %vm8551_vm2, %v5426_v18, %v13463_v58  ;;  %v5446_v58 = vshll.u32 %v7894_v43, 16  ;;  %v7896_v11 = vld [vmem:[%s13887_s0 + $0x1ac] sm:$0x1] }
 0x520   :  { %4199 = vst.msk [vmem:[#allocation2 + $0xbc] sm:$0xf] %vm4151_vm11, %v4054_v61  ;;  %v7699_v61 = vld [vmem:[%s13887_s0 + $0x18c] sm:$0xe] }
 0x521   :  { %v5977_v29 = vsel %vm9295_vm7, %v5975_v26, %v5976_v41  ;;  %v5448_v49 = vrot.slane %v5446_v58, 5  ;;  %v3278_v41 = vrot.slane %v3276_v47, 4 }
 0x522   :  { %3993 = vrot.lane.b32.xlu2 %v3797_v37, %s8456_s27 }
 0x523   :  { %6171 = vrot.lane.b32.xlu1 %v5974_v53, %s8458_s30  ;;  %v3266_v53 = vshll.u32 %v7606_v10, 16 }
 0x524   :  { %5500 = vrot.lane.b32.xlu0 %v4913_v0, %s8457_s17  ;;  %v5559_v16 = vpop.permute.xlu2 %5558  ;;  %v13497_v7 = vpop.f32.mrf.mxu1  ;;  %v13509_v0 = vld [vmem:[%s13887_s0 + $0x19c] sm:$0xf] }
 0x525   :  { %v4052_v46 = vpop.permute.xlu1 %4051  ;;  %v3268_v13 = vrot.slane %v3266_v53, 5  ;;  %v6127_v59 = vrot.slane %v13509_v0, 5  ;;  %v7736_v53 = vrot.slane %v7702_v5, 9 }
 0x526   :  { %4198 = vst.msk [vmem:[#allocation2 + $0xb8] sm:$0xf] %vm4151_vm11, %v4052_v46  ;;  %v6254_v63 = vpop.permute.xlu0 %6253  ;;  %v7735_v46 = vrot.slane %v7699_v61, 9 }
 0x527   :  { %6389 = vst.msk [vmem:[#allocation2 + $0xe4] sm:$0xf] %vm6331_vm14, %v6254_v63  ;;  %v3269_v32 = vor.u32 %v3268_v13, %v3265_v22  ;;  %v6129_v63 = vrot.slane %v6127_v59, 4  ;;  %v7608_v13 = vld [vmem:[%s13887_s0 + $0x1a0] sm:$0x1] }
 0x528   :  { %v3948_v54 = vsel %vm9295_vm7, %v7735_v46, %v3947_v36  ;;  %v3282_v18 = vshll.u32 %v7608_v13, 16 }
 0x529   :  { %v3270_v37 = vrot.slane %v3269_v32, 4 }
 0x52a   :  { %5498 = vrot.lane.b32.xlu2 %v4903_v1, %s8457_s17 }
 0x52b   :  { %3408 = vrot.lane.b32.xlu1 %v3261_v20, %s8454_s14  ;;  %v7989_v20 = vld [vmem:[%s13887_s0 + $0x1a0] sm:$0x1] }
 0x52c   :  { %3406 = vrot.lane.b32.xlu0 %v3251_v34, %s8454_s14  ;;  %v6234_v23 = vpop.permute.xlu2 %6233  ;;  %v6130_v35 = vrot.slane %v7989_v20, 5  ;;  %v13541_v4 = vpop.f32.mrf.mxu1  ;;  %v3275_v34 = vsel %vm8551_vm2, %v3270_v37, %v13522_v14  ;;  %v6136_v37 = vrot.slane %v6134_v27, 4 }
 0x52d   :  { %v4440_v17 = vpop.permute.xlu1 %4439 }
 0x52e   :  { %4585 = vst.msk [vmem:[#allocation2 + $0xbc] sm:$0xf] %vm4537_vm12, %v4440_v17  ;;  %v4438_v6 = vpop.permute.xlu0 %4437  ;;  %v8309_v33 = vld [vmem:[#allocation2 + $0xe0] sm:$0xff]  ;;  %v6131_v36 = vsel %vm9295_vm7, %v6129_v63, %v6130_v35 }
 0x52f   :  { %4584 = vst.msk [vmem:[#allocation2 + $0xb8] sm:$0xf] %vm4537_vm12, %v4438_v6  ;;  %6868 = vmatmul.bf16.gmra.mxu3 %v8309_v33  ;;  %v5452_v33 = vshll.u32 %v7895_v57, 16 }
 0x530   :  { %5705 = vst.msk [vmem:[#allocation2 + $0xb8] sm:$0xf] %vm5658_vm13, %v5559_v16  ;;  %v3954_v16 = vrot.slane %v7703_v44, 5  ;;  %v5456_v44 = vshrl.u32 %v7895_v57, 16 }
 0x531   :  { %v5454_v22 = vrot.slane %v5452_v33, 5 }
 0x532   :  { %6173 = vrot.lane.b32.xlu2 %v5977_v29, %s8458_s30  ;;  %v3956_v10 = vrot.slane %v3954_v16, 4 }
 0x533   :  { %4465 = vrot.lane.b32.xlu1 %v7797_v52, %s8455_s24  ;;  %v5445_v52 = vrot.slane %v5443_v28, 4  ;;  %v5458_v28 = vrot.slane %v5456_v44, 4 }
 0x534   :  { %4081 = vrot.lane.b32.xlu0 %v3951_v62, %s8456_s27  ;;  %v4374_v39 = vpop.permute.xlu2 %4373  ;;  %v13567_v3 = vpop.f32.mrf.mxu1  ;;  %v3958_v15 = vsel %vm9295_vm7, %v3956_v10, %v3957_v12  ;;  %v7987_v62 = vld [vmem:[%s13887_s0 + $0x198] sm:$0xe]  ;;  %v5462_v10 = vshll.u32 %v7896_v11, 16 }
 0x535   :  { %v6232_v2 = vpop.permute.xlu1 %6231  ;;  %v5449_v6 = vor.u32 %v5448_v49, %v5445_v52  ;;  %v8023_v26 = vrot.slane %v7987_v62, 9 }
 0x536   :  { %6378 = vst.msk [vmem:[#allocation2 + $0xb8] sm:$0xf] %vm6331_vm14, %v6232_v2  ;;  %v5561_v31 = vpop.permute.xlu0 %5560  ;;  %v5464_v52 = vrot.slane %v5462_v10, 5 }
 0x537   :  { %5706 = vst.msk [vmem:[#allocation2 + $0xbc] sm:$0xf] %vm5658_vm13, %v5561_v31  ;;  %v5450_v9 = vrot.slane %v5449_v6, 4  ;;  %v6128_v29 = vsel %vm9295_vm7, %v8023_v26, %v6127_v59  ;;  %v7992_v31 = vld [vmem:[%s13887_s0 + $0x1ac] sm:$0x1]  ;;  %v3284_v59 = vrot.slane %v3282_v18, 5 }
 0x538   :  { %6379 = vst.msk [vmem:[#allocation2 + $0xbc] sm:$0xf] %vm6331_vm14, %v6234_v23  ;;  %v3955_v23 = vsel %vm9295_vm7, %v7736_v53, %v3954_v16 }
 0x539   :  { %v5455_v32 = vsel %vm8551_vm2, %v5450_v9, %v5454_v22 }
 0x53a   :  { %4079 = vrot.lane.b32.xlu2 %v3948_v54, %s8456_s27 }
 0x53b   :  { %5588 = vrot.lane.b32.xlu1 %v5441_v42, %s8457_s17  ;;  %v3279_v42 = vor.u32 %v3278_v41, %v13522_v14  ;;  %v6137_v14 = vrot.slane %v7992_v31, 5  ;;  %v6814_v41 = vpop.f32.mrf.mxu2 }
 0x53c   :  { %5586 = vrot.lane.b32.xlu0 %v5431_v19, %s8457_s17  ;;  %v5497_v17 = vpop.permute.xlu2 %5496  ;;  %v13599_v46 = vpop.f32.mrf.mxu1  ;;  %v7800_v19 = vld [vmem:[%s13887_s0 + $0x1a8] sm:$0xf] }
 0x53d   :  { %v3990_v60 = vpop.permute.xlu1 %3989  ;;  %v3280_v0 = vrot.slane %v3279_v42, 4  ;;  %v6138_v63 = vsel %vm9295_vm7, %v6136_v37, %v6137_v14  ;;  %v13670_v37 = vld [vmem:[%s13889_s2] ss:$0 sm:$0xff] }
 0x53e   :  { %4167 = vst.msk [vmem:[#allocation2 + $0x3c] sm:$0xf] %vm4151_vm11, %v3990_v60  ;;  %v3988_v38 = vpop.permute.xlu0 %3987  ;;  %v7990_v60 = vld [vmem:[%s13887_s0 + $0x1a4] sm:$0xe] }
 0x53f   :  { %4166 = vst.msk [vmem:[#allocation2 + $0x38] sm:$0xf] %vm4151_vm11, %v3988_v38  ;;  %v8304_v48 = vld [vmem:[#allocation2 + $0xb8] sm:$0xff]  ;;  %v3285_v43 = vsel %vm8551_vm2, %v3280_v0, %v3284_v59  ;;  %v8024_v35 = vrot.slane %v7990_v60, 9  ;;  %v6815_v60 = vadd.f32 %v13670_v37, %v6814_v41 }
 0x540   :  { %4552 = vst.msk [vmem:[#allocation2 + $0x38] sm:$0xf] %vm4537_vm12, %v4374_v39  ;;  %6843 = vmatmul.bf16.gmra.mxu2 %v8304_v48 }
 0x541   :  { %v6135_v58 = vsel %vm9295_vm7, %v8024_v35, %v6134_v27 }
 0x542   :  { %4467 = vrot.lane.b32.xlu2 %v7798_v45, %s8455_s24 }
 0x543   :  { %3410 = vrot.lane.b32.xlu1 %v3275_v34, %s8454_s14  ;;  %v6816_v13 = vpop.f32.mrf.mxu2 }
 0x544   :  { %6261 = vrot.lane.b32.xlu0 %v6131_v36, %s8458_s30  ;;  %v3403_v56 = vpop.permute.xlu2 %3402  ;;  %v13616_v16 = vpop.f32.mrf.mxu1  ;;  %v7799_v36 = vld [vmem:[%s13887_s0 + $0x1a4] sm:$0xf] }
 0x545   :  { %v5495_v1 = vpop.permute.xlu1 %5494  ;;  %3537 = vst.msk [vmem:[#allocation2 + $0xe8] sm:$0xf] %vm3478_vm10, %v3403_v56 }
 0x546   :  { %5673 = vst.msk [vmem:[#allocation2 + $0x38] sm:$0xf] %vm5658_vm13, %v5495_v1  ;;  %v4376_v51 = vpop.permute.xlu0 %4375 }
 0x547   :  { %4553 = vst.msk [vmem:[#allocation2 + $0x3c] sm:$0xf] %vm4537_vm12, %v4376_v51 }
 0x548   :  { %5674 = vst.msk [vmem:[#allocation2 + $0x3c] sm:$0xf] %vm5658_vm13, %v5497_v17  ;;  %v5459_v17 = vor.u32 %v5458_v28, %v5454_v22  ;;  %v6923_v28 = vmax.f32 %v6815_v60, 0.0 }
 0x54a   :  { %6259 = vrot.lane.b32.xlu2 %v6128_v29, %s8458_s30  ;;  %v5460_v24 = vrot.slane %v5459_v17, 4 }
 0x54b   :  { %4085 = vrot.lane.b32.xlu1 %v3958_v15, %s8456_s27  ;;  %v6819_v18 = vpop.f32.mrf.mxu2 }
 0x54c   :  { %4083 = vrot.lane.b32.xlu0 %v3955_v23, %s8456_s27  ;;  %v4078_v39 = vpop.permute.xlu2 %4077  ;;  %v13635_v49 = vpop.f32.mrf.mxu1  ;;  %v5465_v57 = vsel %vm8551_vm2, %v5460_v24, %v5464_v52 }
 0x54d   :  { %v6170_v2 = vpop.permute.xlu1 %6169 }
 0x54e   :  { %6347 = vst.msk [vmem:[#allocation2 + $0x3c] sm:$0xf] %vm6331_vm14, %v6170_v2  ;;  %v6168_v61 = vpop.permute.xlu0 %6167 }
 0x54f   :  { %6346 = vst.msk [vmem:[#allocation2 + $0x38] sm:$0xf] %vm6331_vm14, %v6168_v61 }
 0x552   :  { %3412 = vrot.lane.b32.xlu2 %v3285_v43, %s8454_s14 }
 0x553   :  { %5590 = vrot.lane.b32.xlu1 %v5455_v32, %s8457_s17 }
 0x554   :  { %4471 = vrot.lane.b32.xlu0 %v7800_v19, %s8455_s24  ;;  %v5583_v38 = vpop.permute.xlu2 %5582  ;;  %v13643_v45 = vpop.f32.mrf.mxu1 }
 0x555   :  { %v4076_v20 = vpop.permute.xlu1 %4075 }
 0x556   :  { %4210 = vst.msk [vmem:[#allocation2 + $0xe8] sm:$0xf] %vm4151_vm11, %v4076_v20  ;;  %v3405_v54 = vpop.permute.xlu0 %3404  ;;  %v8288_v34 = vld [vmem:[#allocation2 + $0x38] sm:$0xff] }
 0x557   :  { %3538 = vst.msk [vmem:[#allocation2 + $0xec] sm:$0xf] %vm3478_vm10, %v3405_v54  ;;  %6763 = vmatmul.bf16.gmra.mxu0 %v8288_v34 }
 0x558   :  { %4211 = vst.msk [vmem:[#allocation2 + $0xec] sm:$0xf] %vm4151_vm11, %v4078_v39  ;;  %v6821_v39 = vpop.f32.mrf.mxu2 }
 0x559   :  { %v6822_v17 = vadd.f32 %v13670_v37, %v6821_v39 }
 0x55a   :  { %4469 = vrot.lane.b32.xlu2 %v7799_v36, %s8455_s24 }
 0x55b   :  { %6265 = vrot.lane.b32.xlu1 %v6138_v63, %s8458_s30  ;;  %v6817_v63 = vadd.f32 %v13670_v37, %v6816_v13 }
 0x55c   :  { %6263 = vrot.lane.b32.xlu0 %v6135_v58, %s8458_s30  ;;  %v3385_v1 = vpop.permute.xlu2 %3384  ;;  %v13648_v21 = vpop.f32.mrf.mxu1  ;;  %v6820_v58 = vadd.f32 %v13670_v37, %v6819_v18 }
 0x55d   :  { %v4464_v48 = vpop.permute.xlu1 %4463  ;;  %3528 = vst.msk [vmem:[#allocation2 + $0xc4] sm:$0xf] %vm3478_vm10, %v3385_v1  ;;  %v6924_v36 = vmax.f32 %v6817_v63, 0.0 }
 0x55e   :  { %4597 = vst.msk [vmem:[#allocation2 + $0xec] sm:$0xf] %vm4537_vm12, %v4464_v48  ;;  %v4462_v12 = vpop.permute.xlu0 %4461 }
 0x55f   :  { %4596 = vst.msk [vmem:[#allocation2 + $0xe8] sm:$0xf] %vm4537_vm12, %v4462_v12  ;;  %v6925_v12 = vmax.f32 %v6820_v58, 0.0 }
 0x560   :  { %5717 = vst.msk [vmem:[#allocation2 + $0xe8] sm:$0xf] %vm5658_vm13, %v5583_v38  ;;  %v6824_v48 = vpop.f32.mrf.mxu2 }
 0x561   :  { %v6825_v24 = vadd.f32 %v13670_v37, %v6824_v48 }
 0x562   :  { %5592 = vrot.lane.b32.xlu2 %v5465_v57, %s8457_s17  ;;  %v6926_v57 = vmax.f32 %v6822_v17, 0.0 }
 0x564   :  { %v4056_v15 = vpop.permute.xlu2 %4055  ;;  %v13653_v9 = vpop.f32.mrf.mxu1 }
 0x565   :  { %v3383_v5 = vpop.permute.xlu1 %3382 }
 0x566   :  { %3527 = vst.msk [vmem:[#allocation2 + $0xc0] sm:$0xf] %vm3478_vm10, %v3383_v5  ;;  %v5585_v47 = vpop.permute.xlu0 %5584 }
 0x567   :  { %5718 = vst.msk [vmem:[#allocation2 + $0xec] sm:$0xf] %vm5658_vm13, %v5585_v47 }
 0x568   :  { %4200 = vst.msk [vmem:[#allocation2 + $0xc0] sm:$0xf] %vm4151_vm11, %v4056_v15 }
 0x56c   :  { %v4444_v33 = vpop.permute.xlu2 %4443  ;;  %v13660_v29 = vpop.f32.mrf.mxu1 }
 0x56d   :  { %v6258_v53 = vpop.permute.xlu1 %6257 }
 0x56e   :  { %6391 = vst.msk [vmem:[#allocation2 + $0xec] sm:$0xf] %vm6331_vm14, %v6258_v53  ;;  %v6256_v6 = vpop.permute.xlu0 %6255  ;;  %v6927_v53 = vmax.f32 %v6825_v24, 0.0 }
 0x56f   :  { %6390 = vst.msk [vmem:[#allocation2 + $0xe8] sm:$0xf] %vm6331_vm14, %v6256_v6 }
 0x574   :  { %v6236_v23 = vpop.permute.xlu2 %6235 }
 0x575   :  { %v4442_v62 = vpop.permute.xlu1 %4441 }
 0x576   :  { %4586 = vst.msk [vmem:[#allocation2 + $0xc0] sm:$0xf] %vm4537_vm12, %v4442_v62  ;;  %v4058_v51 = vpop.permute.xlu0 %4057  ;;  %v8310_v26 = vld [vmem:[#allocation2 + $0xe8] sm:$0xff] }
 0x577   :  { %4201 = vst.msk [vmem:[#allocation2 + $0xc4] sm:$0xf] %vm4151_vm11, %v4058_v51  ;;  %6873 = vmatmul.bf16.gmra.mxu3 %v8310_v26 }
 0x578   :  { %4587 = vst.msk [vmem:[#allocation2 + $0xc4] sm:$0xf] %vm4537_vm12, %v4444_v33 }
 0x57c   :  { %v3994_v2 = vpop.permute.xlu2 %3993 }
 0x57d   :  { %v5565_v56 = vpop.permute.xlu1 %5564  ;;  %4169 = vst.msk [vmem:[#allocation2 + $0x44] sm:$0xf] %vm4151_vm11, %v3994_v2 }
 0x57e   :  { %5708 = vst.msk [vmem:[#allocation2 + $0xc4] sm:$0xf] %vm5658_vm13, %v5565_v56  ;;  %v5563_v22 = vpop.permute.xlu0 %5562 }
 0x57f   :  { %5707 = vst.msk [vmem:[#allocation2 + $0xc0] sm:$0xf] %vm5658_vm13, %v5563_v22 }
 0x580   :  { %6380 = vst.msk [vmem:[#allocation2 + $0xc0] sm:$0xf] %vm6331_vm14, %v6236_v23 }
 0x584   :  { %v5499_v32 = vpop.permute.xlu2 %5498 }
 0x585   :  { %v3992_v8 = vpop.permute.xlu1 %3991 }
 0x586   :  { %4168 = vst.msk [vmem:[#allocation2 + $0x40] sm:$0xf] %vm4151_vm11, %v3992_v8  ;;  %v6238_v42 = vpop.permute.xlu0 %6237 }
 0x587   :  { %6381 = vst.msk [vmem:[#allocation2 + $0xc4] sm:$0xf] %vm6331_vm14, %v6238_v42 }
 0x58c   :  { %v6809_v61 = vpop.f32.mrf.mxu1  ;;  %v6174_v59 = vpop.permute.xlu2 %6173 }
 0x58d   :  { %v4380_v27 = vpop.permute.xlu1 %4379  ;;  %v6810_v14 = vadd.f32 %v13670_v37, %v6809_v61 }
 0x58e   :  { %4555 = vst.msk [vmem:[#allocation2 + $0x44] sm:$0xf] %vm4537_vm12, %v4380_v27  ;;  %v4378_v31 = vpop.permute.xlu0 %4377  ;;  %v8305_v0 = vld [vmem:[#allocation2 + $0xc0] sm:$0xff]  ;;  %v6826_v27 = vpop.f32.mrf.mxu2 }
 0x58f   :  { %4554 = vst.msk [vmem:[#allocation2 + $0x40] sm:$0xf] %vm4537_vm12, %v4378_v31  ;;  %6848 = vmatmul.bf16.gmra.mxu2 %v8305_v0  ;;  %v6921_v35 = vmax.f32 %v6810_v14, 0.0 }
 0x590   :  { %5675 = vst.msk [vmem:[#allocation2 + $0x40] sm:$0xf] %vm5658_vm13, %v5499_v32 }
 0x594   :  { %v6811_v20 = vpop.f32.mrf.mxu1  ;;  %v4080_v34 = vpop.permute.xlu2 %4079 }
 0x595   :  { %v6172_v19 = vpop.permute.xlu1 %6171  ;;  %v6812_v43 = vadd.f32 %v13670_v37, %v6811_v20 }
 0x596   :  { %6348 = vst.msk [vmem:[#allocation2 + $0x40] sm:$0xf] %vm6331_vm14, %v6172_v19  ;;  %v5501_v44 = vpop.permute.xlu0 %5500  ;;  %v6746_v19 = vpop.f32.mrf.mxu0 }
 0x597   :  { %5676 = vst.msk [vmem:[#allocation2 + $0x44] sm:$0xf] %vm5658_vm13, %v5501_v44  ;;  %v6922_v54 = vmax.f32 %v6812_v43, 0.0  ;;  %v8328_v43 = vld [vmem:[%s13890_s3 + $0x38] sm:$0xff] }
 0x598   :  { %6349 = vst.msk [vmem:[#allocation2 + $0x44] sm:$0xf] %vm6331_vm14, %v6174_v59  ;;  %v6829_v59 = vpop.f32.mrf.mxu2  ;;  %7115 = vmatpush.bf16.msrb.mxu1 %v8328_v43 }
 0x599   :  { %v6990_v38 = vadd.f32 %v6922_v54, %v6921_v35  ;;  %v8327_v35 = vld [vmem:[%s13890_s3 + $0x30] sm:$0xff] }
 0x59b   :  { %v6991_v10 = vadd.f32 %v6990_v38, %v6923_v28  ;;  %v6854_v28 = vpop.f32.mrf.mxu3 }
 0x59c   :  { %v4468_v15 = vpop.permute.xlu2 %4467  ;;  %7116 = vmatpush.bf16.msrb.mxu1 %v8327_v35 }
 0x59d   :  { %v3409_v11 = vpop.permute.xlu1 %3408  ;;  %v6992_v52 = vadd.f32 %v6991_v10, %v6924_v36  ;;  %v6827_v36 = vadd.f32 %v13670_v37, %v6826_v27 }
 0x59e   :  { %3540 = vst.msk [vmem:[#allocation2 + $0xf4] sm:$0xf] %vm3478_vm10, %v3409_v11  ;;  %v3407_v1 = vpop.permute.xlu0 %3406  ;;  %v6749_v20 = vpop.f32.mrf.mxu0 }
 0x59f   :  { %3539 = vst.msk [vmem:[#allocation2 + $0xf0] sm:$0xf] %vm3478_vm10, %v3407_v1  ;;  %v8289_v5 = vld [vmem:[#allocation2 + $0x40] sm:$0xff]  ;;  %v6993_v47 = vadd.f32 %v6992_v52, %v6925_v12  ;;  %v6928_v10 = vmax.f32 %v6827_v36, 0.0  ;;  %v6830_v12 = vadd.f32 %v13670_v37, %v6829_v59 }
 0x5a0   :  { %4212 = vst.msk [vmem:[#allocation2 + $0xf0] sm:$0xf] %vm4151_vm11, %v4080_v34  ;;  %6768 = vmatmul.bf16.gmra.mxu0 %v8289_v5  ;;  %v6831_v14 = vpop.f32.mrf.mxu2 }
 0x5a1   :  { %v6994_v6 = vadd.f32 %v6993_v47, %v6926_v57  ;;  %v6929_v5 = vmax.f32 %v6830_v12, 0.0  ;;  %v6832_v57 = vadd.f32 %v13670_v37, %v6831_v14 }
 0x5a3   :  { %v6995_v62 = vadd.f32 %v6994_v6, %v6927_v53  ;;  %v13707_v11 = vpop.f32.mrf.mxu3  ;;  %v6930_v53 = vmax.f32 %v6832_v57, 0.0 }
 0x5a4   :  { %v6260_v26 = vpop.permute.xlu2 %6259 }
 0x5a5   :  { %v4466_v33 = vpop.permute.xlu1 %4465  ;;  %v6996_v24 = vadd.f32 %v6995_v62, %v6928_v10 }
 0x5a6   :  { %4598 = vst.msk [vmem:[#allocation2 + $0xf0] sm:$0xf] %vm4537_vm12, %v4466_v33  ;;  %v4082_v51 = vpop.permute.xlu0 %4081  ;;  %v6751_v63 = vpop.f32.mrf.mxu0 }
 0x5a7   :  { %4213 = vst.msk [vmem:[#allocation2 + $0xf4] sm:$0xf] %vm4151_vm11, %v4082_v51 }
 0x5a8   :  { %4599 = vst.msk [vmem:[#allocation2 + $0xf4] sm:$0xf] %vm4537_vm12, %v4468_v15  ;;  %v6834_v44 = vpop.f32.mrf.mxu2  ;;  %v6997_v15 = vadd.f32 %v6996_v24, %v6929_v5 }
 0x5a9   :  { %v6835_v6 = vadd.f32 %v13670_v37, %v6834_v44 }
 0x5aa   :  { %v6998_v33 = vadd.f32 %v6997_v15, %v6930_v53 }
 0x5ab   :  { %v13711_v52 = vpop.f32.mrf.mxu3  ;;  %v6931_v51 = vmax.f32 %v6835_v6, 0.0 }
 0x5ac   :  { %v3413_v56 = vpop.permute.xlu2 %3412 }
 0x5ad   :  { %v5589_v41 = vpop.permute.xlu1 %5588  ;;  %3542 = vst.msk [vmem:[#allocation2 + $0xfc] sm:$0xf] %vm3478_vm10, %v3413_v56  ;;  %v6999_v56 = vadd.f32 %v6998_v33, %v6931_v51  ;;  %v6855_v33 = vadd.f32 %v13670_v37, %v6854_v28 }
 0x5ae   :  { %5720 = vst.msk [vmem:[#allocation2 + $0xf4] sm:$0xf] %vm5658_vm13, %v5589_v41  ;;  %v5587_v23 = vpop.permute.xlu0 %5586  ;;  %v6754_v34 = vpop.f32.mrf.mxu0  ;;  %v8326_v41 = vld [vmem:[%s13890_s3 + $0x28] sm:$0xff] }
 0x5af   :  { %5719 = vst.msk [vmem:[#allocation2 + $0xf0] sm:$0xf] %vm5658_vm13, %v5587_v23  ;;  %7117 = vmatpush.bf16.msrb.mxu1 %v8326_v41  ;;  %v6939_v28 = vmax.f32 %v6855_v33, 0.0 }
 0x5b0   :  { %6392 = vst.msk [vmem:[#allocation2 + $0xf0] sm:$0xf] %vm6331_vm14, %v6260_v26  ;;  %v6836_v54 = vpop.f32.mrf.mxu2 }
 0x5b1   :  { %v6837_v26 = vadd.f32 %v13670_v37, %v6836_v54 }
 0x5b3   :  { %v13719_v62 = vpop.f32.mrf.mxu3 }
 0x5b4   :  { %v4470_v8 = vpop.permute.xlu2 %4469 }
 0x5b5   :  { %v3411_v22 = vpop.permute.xlu1 %3410 }
 0x5b6   :  { %3541 = vst.msk [vmem:[#allocation2 + $0xf8] sm:$0xf] %vm3478_vm10, %v3411_v22  ;;  %v6262_v13 = vpop.permute.xlu0 %6261  ;;  %v6756_v38 = vpop.f32.mrf.mxu0 }
 0x5b7   :  { %6393 = vst.msk [vmem:[#allocation2 + $0xf4] sm:$0xf] %vm6331_vm14, %v6262_v13  ;;  %v6932_v13 = vmax.f32 %v6837_v26, 0.0  ;;  %v6757_v36 = vadd.f32 %v13670_v37, %v6756_v38 }
 0x5b8   :  { %v6839_v58 = vpop.f32.mrf.mxu2 }
 0x5bb   :  { %v13727_v59 = vpop.f32.mrf.mxu3 }
 0x5bc   :  { %v5593_v61 = vpop.permute.xlu2 %5592 }
 0x5bd   :  { %v4086_v2 = vpop.permute.xlu1 %4085 }
 0x5be   :  { %4215 = vst.msk [vmem:[#allocation2 + $0xfc] sm:$0xf] %vm4151_vm11, %v4086_v2  ;;  %v4084_v42 = vpop.permute.xlu0 %4083  ;;  %v8311_v18 = vld [vmem:[#allocation2 + $0xf0] sm:$0xff]  ;;  %v6759_v17 = vpop.f32.mrf.mxu0  ;;  %v6840_v2 = vadd.f32 %v13670_v37, %v6839_v58 }
 0x5bf   :  { %4214 = vst.msk [vmem:[#allocation2 + $0xf8] sm:$0xf] %vm4151_vm11, %v4084_v42  ;;  %6878 = vmatmul.bf16.gmra.mxu3 %v8311_v18  ;;  %v7000_v42 = vadd.f32 %v6999_v56, %v6932_v13  ;;  %v6750_v18 = vadd.f32 %v13670_v37, %v6749_v20 }
 0x5c0   :  { %4600 = vst.msk [vmem:[#allocation2 + $0xf8] sm:$0xf] %vm4537_vm12, %v4470_v8  ;;  %v6841_v48 = vpop.f32.mrf.mxu2  ;;  %v6747_v8 = vadd.f32 %v13670_v37, %v6746_v19  ;;  %v6755_v19 = vadd.f32 %v13670_v37, %v6754_v34  ;;  %v6900_v34 = vmax.f32 %v6757_v36, 0.0 }
 0x5c1   :  { %v6842_v27 = vadd.f32 %v13670_v37, %v6841_v48  ;;  %v6897_v44 = vmax.f32 %v6750_v18, 0.0  ;;  %v6860_v18 = vadd.f32 %v13670_v37, %v13711_v52 }
 0x5c2   :  { %v6899_v24 = vmax.f32 %v6755_v19, 0.0 }
 0x5c3   :  { %v6934_v43 = vmax.f32 %v6842_v27, 0.0  ;;  %v13738_v38 = vpop.f32.mrf.mxu3 }
 0x5c5   :  { %v5591_v32 = vpop.permute.xlu1 %5590 }
 0x5c6   :  { %5721 = vst.msk [vmem:[#allocation2 + $0xf8] sm:$0xf] %vm5658_vm13, %v5591_v32  ;;  %v4472_v31 = vpop.permute.xlu0 %4471  ;;  %v6761_v47 = vpop.f32.mrf.mxu0  ;;  %v6933_v32 = vmax.f32 %v6840_v2, 0.0 }
 0x5c7   :  { %4601 = vst.msk [vmem:[#allocation2 + $0xfc] sm:$0xf] %vm4537_vm12, %v4472_v31  ;;  %v6896_v31 = vmax.f32 %v6747_v8, 0.0  ;;  %v6762_v53 = vadd.f32 %v13670_v37, %v6761_v47 }
 0x5c8   :  { %5722 = vst.msk [vmem:[#allocation2 + $0xfc] sm:$0xf] %vm5658_vm13, %v5593_v61  ;;  %v6844_v1 = vpop.f32.mrf.mxu2  ;;  %v7001_v14 = vadd.f32 %v7000_v42, %v6933_v32 }
 0x5c9   :  { %v6845_v61 = vadd.f32 %v13670_v37, %v6844_v1  ;;  %v6959_v58 = vadd.f32 %v12713_v30, %v6896_v31  ;;  %v6760_v1 = vadd.f32 %v13670_v37, %v6759_v17  ;;  %v6857_v17 = vadd.f32 %v13670_v37, %v13707_v11  ;;  %v8325_v11 = vld [vmem:[%s13890_s3 + $0x20] sm:$0xff] }
 0x5ca   :  { %v6902_v47 = vmax.f32 %v6762_v53, 0.0  ;;  %7118 = vmatpush.bf16.msrb.mxu1 %v8325_v11  ;;  %v6785_v53 = vadd.f32 %v13670_v37, %v13497_v7  ;;  %v6792_v7 = vadd.f32 %v13670_v37, %v13599_v46  ;;  %v6802_v46 = vadd.f32 %v13670_v37, %v13648_v21 }
 0x5cb   :  { %v6935_v35 = vmax.f32 %v6845_v61, 0.0  ;;  %v6960_v12 = vadd.f32 %v6959_v58, %v6897_v44  ;;  %v6901_v41 = vmax.f32 %v6760_v1, 0.0  ;;  %v6941_v44 = vmax.f32 %v6860_v18, 0.0  ;;  %v13753_v19 = vpop.f32.mrf.mxu3 }
 0x5cc   :  { %v6775_v58 = vadd.f32 %v13670_v37, %v13353_v50  ;;  %v6780_v1 = vadd.f32 %v13670_v37, %v13428_v25  ;;  %v6787_v25 = vadd.f32 %v13670_v37, %v13541_v4  ;;  %v6797_v4 = vadd.f32 %v13670_v37, %v13635_v49  ;;  %v8322_v49 = vld [vmem:[%s13890_s3 + $0x8] sm:$0xff] }
 0x5cd   :  { %v6266_v0 = vpop.permute.xlu1 %6265  ;;  %v6918_v11 = vmax.f32 %v6802_v46, 0.0 }
 0x5ce   :  { %6395 = vst.msk [vmem:[#allocation2 + $0xfc] sm:$0xf] %vm6331_vm14, %v6266_v0  ;;  %v6264_v39 = vpop.permute.xlu0 %6263  ;;  %v6752_v0 = vadd.f32 %v13670_v37, %v6751_v63  ;;  %v7002_v63 = vadd.f32 %v7001_v14, %v6934_v43  ;;  %v6909_v50 = vmax.f32 %v6780_v1, 0.0 }
 0x5cf   :  { %6394 = vst.msk [vmem:[#allocation2 + $0xf8] sm:$0xf] %vm6331_vm14, %v6264_v39 }
 0x5d0   :  { %v6846_v23 = vpop.f32.mrf.mxu2  ;;  %v6898_v48 = vmax.f32 %v6752_v0, 0.0  ;;  %v7003_v5 = vadd.f32 %v7002_v63, %v6935_v35  ;;  %v6777_v63 = vadd.f32 %v13670_v37, %v13399_v55  ;;  %v8323_v55 = vld [vmem:[%s13890_s3 + $0x10] sm:$0xff] }
 0x5d2   :  { %v6961_v15 = vadd.f32 %v6960_v12, %v6898_v48 }
 0x5d4   :  { %v6764_v22 = vpop.f32.mrf.mxu0  ;;  %v6962_v26 = vadd.f32 %v6961_v15, %v6899_v24  ;;  %v6907_v24 = vmax.f32 %v6775_v58, 0.0  ;;  %v6782_v15 = vadd.f32 %v13670_v37, %v13468_v40  ;;  %v6790_v40 = vadd.f32 %v13670_v37, %v13567_v3 }
 0x5d5   :  { %v6800_v3 = vadd.f32 %v13670_v37, %v13643_v45  ;;  %v6862_v45 = vadd.f32 %v13670_v37, %v13719_v62  ;;  %v6807_v62 = vadd.f32 %v13670_v37, %v13660_v29 }
 0x5d6   :  { %v8312_v60 = vld [vmem:[#allocation2 + $0xf8] sm:$0xff]  ;;  %v6963_v8 = vadd.f32 %v6962_v26, %v6900_v34  ;;  %v6911_v26 = vmax.f32 %v6785_v53, 0.0 }
 0x5d7   :  { %6883 = vmatmul.bf16.gmra.mxu3 %v8312_v60  ;;  %v6847_v60 = vadd.f32 %v13670_v37, %v6846_v23  ;;  %v6765_v23 = vadd.f32 %v13670_v37, %v6764_v22  ;;  %v6940_v22 = vmax.f32 %v6857_v17, 0.0 }
 0x5d8   :  { %v6964_v27 = vadd.f32 %v6963_v8, %v6901_v41 }
 0x5d9   :  { %v6936_v10 = vmax.f32 %v6847_v60, 0.0  ;;  %v6903_v61 = vmax.f32 %v6765_v23, 0.0  ;;  %v8324_v60 = vld [vmem:[%s13890_s3 + $0x18] sm:$0xff]  ;;  %v6912_v23 = vmax.f32 %v6787_v25, 0.0 }
 0x5da   :  { %7119 = vmatpush.bf16.msrb.mxu1 %v8324_v60  ;;  %v6942_v60 = vmax.f32 %v6862_v45, 0.0 }
 0x5db   :  { %v7004_v51 = vadd.f32 %v7003_v5, %v6936_v10 }
 0x5dc   :  { %v6766_v20 = vpop.f32.mrf.mxu0 }
 0x5dd   :  { %v6767_v42 = vadd.f32 %v13670_v37, %v6766_v20 }
 0x5de   :  { %7120 = vmatpush.bf16.msrb.mxu1 %v8323_v55 }
 0x5df   :  { %v6904_v14 = vmax.f32 %v6767_v42, 0.0 }
 0x5e2   :  { %7121 = vmatpush.bf16.msrb.mxu1 %v8322_v49 }
 0x612   :  { %v6849_v39 = vpop.f32.mrf.mxu2 }
 0x613   :  { %v6850_v54 = vadd.f32 %v13670_v37, %v6849_v39  ;;  %v6965_v39 = vadd.f32 %v6964_v27, %v6902_v47  ;;  %v6914_v47 = vmax.f32 %v6792_v7, 0.0 }
 0x615   :  { %v6937_v57 = vmax.f32 %v6850_v54, 0.0  ;;  %v6966_v43 = vadd.f32 %v6965_v39, %v6903_v61  ;;  %v6917_v61 = vmax.f32 %v6800_v3, 0.0 }
 0x617   :  { %v7005_v56 = vadd.f32 %v7004_v51, %v6937_v57  ;;  %v6967_v48 = vadd.f32 %v6966_v43, %v6904_v14  ;;  %v6908_v57 = vmax.f32 %v6777_v63, 0.0  ;;  %v6910_v51 = vmax.f32 %v6782_v15, 0.0 }
 0x61a   :  { %v6851_v6 = vpop.f32.mrf.mxu2 }
 0x61b   :  { %v6852_v30 = vadd.f32 %v13670_v37, %v6851_v6  ;;  %v6871_v6 = vpop.f32.mrf.mxu3 }
 0x61d   :  { %v6938_v13 = vmax.f32 %v6852_v30, 0.0  ;;  %v6769_v2 = vpop.f32.mrf.mxu0 }
 0x61e   :  { %v6770_v31 = vadd.f32 %v13670_v37, %v6769_v2 }
 0x61f   :  { %v7006_v32 = vadd.f32 %v7005_v56, %v6938_v13  ;;  %v6913_v56 = vmax.f32 %v6790_v40, 0.0  ;;  %v6795_v13 = vadd.f32 %v13670_v37, %v13616_v16  ;;  %v6805_v16 = vadd.f32 %v13670_v37, %v13653_v9 }
 0x620   :  { %v6905_v35 = vmax.f32 %v6770_v31, 0.0 }
 0x621   :  { %v7007_v0 = vadd.f32 %v7006_v32, %v6939_v28  ;;  %v6915_v28 = vmax.f32 %v6795_v13, 0.0  ;;  %v6916_v32 = vmax.f32 %v6797_v4, 0.0  ;;  %v6919_v39 = vmax.f32 %v6805_v16, 0.0 }
 0x622   :  { %v6968_v10 = vadd.f32 %v6967_v48, %v6905_v35  ;;  %v6867_v35 = vadd.f32 %v13670_v37, %v13738_v38  ;;  %v6870_v48 = vadd.f32 %v13670_v37, %v13753_v19  ;;  %v8321_v38 = vld [vmem:[%s13890_s3] sm:$0xff]  ;;  %s7392_s3 = sshll.u32 %s13898_s11, 4  ;;  %s7393_s3 = int_to_ptr.hbm [resolvable:$true] %s7392_s3 }
 0x623   :  { %v7008_v52 = vadd.f32 %v7007_v0, %v6940_v22  ;;  %v6874_v2 = vpop.f32.mrf.mxu3  ;;  %7122 = vmatpush.bf16.msrb.mxu1 %v8321_v38 }
 0x624   :  { %v6944_v58 = vmax.f32 %v6867_v35, 0.0  ;;  %v6945_v63 = vmax.f32 %v6870_v48, 0.0  ;;  %v6875_v1 = vadd.f32 %v13670_v37, %v6874_v2 }
 0x625   :  { %v7009_v20 = vadd.f32 %v7008_v52, %v6941_v44  ;;  %v6771_v54 = vpop.f32.mrf.mxu0  ;;  %v6865_v44 = vadd.f32 %v13670_v37, %v13727_v59  ;;  %v6920_v59 = vmax.f32 %v6807_v62, 0.0  ;;  %v8460_v62 = vmov 2.0  }
 0x626   :  { %v6772_v36 = vadd.f32 %v13670_v37, %v6771_v54  ;;  %v6947_v29 = vmax.f32 %v6875_v1, 0.0 }
 0x627   :  { %v7010_v9 = vadd.f32 %v7009_v20, %v6942_v60  ;;  %v6943_v43 = vmax.f32 %v6865_v44, 0.0 }
 0x628   :  { %v6906_v12 = vmax.f32 %v6772_v36, 0.0 }
 0x629   :  { %v7011_v54 = vadd.f32 %v7010_v9, %v6943_v43 }
 0x62a   :  { %v6969_v5 = vadd.f32 %v6968_v10, %v6906_v12  ;;  %v6872_v10 = vadd.f32 %v13670_v37, %v6871_v6 }
 0x62b   :  { %v6876_v22 = vpop.f32.mrf.mxu3  ;;  %v7012_v36 = vadd.f32 %v7011_v54, %v6944_v58 }
 0x62c   :  { %v6970_v34 = vadd.f32 %v6969_v5, %v6907_v24  ;;  %v6946_v24 = vmax.f32 %v6872_v10, 0.0  ;;  %v8459_v5 = vmov 256.0   ;;  %v6877_v15 = vadd.f32 %v13670_v37, %v6876_v22 }
 0x62d   :  { %v7013_v20 = vadd.f32 %v7012_v36, %v6945_v63  ;;  %8388 = vrcp.f32 %v8459_v5 }
 0x62e   :  { %v6971_v33 = vadd.f32 %v6970_v34, %v6908_v57  ;;  %8390 = vrcp.f32 %v8460_v62 }
 0x62f   :  { %v7014_v57 = vadd.f32 %v7013_v20, %v6946_v24 }
 0x630   :  { %v6972_v30 = vadd.f32 %v6971_v33, %v6909_v50 }
 0x631   :  { %v7015_v33 = vadd.f32 %v7014_v57, %v6947_v29 }
 0x632   :  { %v6973_v41 = vadd.f32 %v6972_v30, %v6910_v51  ;;  %v6948_v51 = vmax.f32 %v6877_v15, 0.0 }
 0x633   :  { %v8389_v6 = vpop.eup %8388 }
 0x634   :  { %v6974_v17 = vadd.f32 %v6973_v41, %v6911_v26  ;;  %v7028_v40 = vmul.f32 256.0, %v8389_v6  ;;  %v8336_v41 = vld [vmem:[%s13893_s6 + $0x38] sm:$0xff]  ;;  %vm7032_vm15 = vweird.f32 %v8389_v6  ;;  %v8391_v36 = vpop.eup %8390 }
 0x635   :  { %7245 = vmatpush.bf16.msrb.mxu2 %v8336_v41  ;;  %v7147_v63 = vmul.f32 2.0, %v8391_v36  ;;  %vm7151_vm2 = vweird.f32 %v8391_v36 }
 0x636   :  { %v6975_v8 = vadd.f32 %v6974_v17, %v6912_v23  ;;  %v7016_v23 = vadd.f32 %v7015_v33, %v6948_v51  ;;  %v8335_v17 = vld [vmem:[%s13893_s6 + $0x30] sm:$0xff] }
 0x637   :  { %v7148_v10 = vsub.f32 1.0, %v7147_v63 }
 0x638   :  { %v6976_v42 = vadd.f32 %v6975_v8, %v6913_v56 }
 0x639   :  { %7246 = vmatpush.bf16.msrb.mxu2 %v8335_v17  ;;  %v7149_v5 = vmul.f32 %v8391_v36, %v7148_v10  ;;  %v8329_v17 = vld [vmem:[%s13893_s6] sm:$0xff]  ;;  %v8339_v10 = vld [vmem:[%s13896_s9 + $0x10] sm:$0xff] }
 0x63a   :  { %v6977_v18 = vadd.f32 %v6976_v42, %v6914_v47  ;;  %v7029_v47 = vsub.f32 1.0, %v7028_v40 }
 0x63b   :  { %v7150_v15 = vadd.f32 %v8391_v36, %v7149_v5 }
 0x63c   :  { %v6978_v27 = vadd.f32 %v6977_v18, %v6915_v28  ;;  %v8334_v28 = vld [vmem:[%s13893_s6 + $0x28] sm:$0xff]  ;;  %v7030_v46 = vmul.f32 %v8389_v6, %v7029_v47  ;;  %v8343_v47 = vld [vmem:[%s13896_s9 + $0x30] sm:$0xff] }
 0x63d   :  { %7247 = vmatpush.bf16.msrb.mxu2 %v8334_v28  ;;  %v13828_v51 = vsel %vm7151_vm2, %v8391_v36, %v7150_v15  ;;  %v8341_v28 = vld [vmem:[%s13896_s9 + $0x20] sm:$0xff] }
 0x63e   :  { %v6979_v31 = vadd.f32 %v6978_v27, %v6916_v32  ;;  %v7031_v49 = vadd.f32 %v8389_v6, %v7030_v46 }
 0x640   :  { %v6980_v0 = vadd.f32 %v6979_v31, %v6917_v61  ;;  %v8333_v61 = vld [vmem:[%s13893_s6 + $0x20] sm:$0xff]  ;;  %v7033_v45 = vsel %vm7032_vm15, %v8389_v6, %v7031_v49 }
 0x641   :  { %7248 = vmatpush.bf16.msrb.mxu2 %v8333_v61 }
 0x642   :  { %v6981_v14 = vadd.f32 %v6980_v0, %v6918_v11  ;;  %v6879_v52 = vpop.f32.mrf.mxu3 }
 0x643   :  { %v6880_v34 = vadd.f32 %v13670_v37, %v6879_v52 }
 0x644   :  { %v6982_v21 = vadd.f32 %v6981_v14, %v6919_v39 }
 0x645   :  { %v6949_v25 = vmax.f32 %v6880_v34, 0.0 }
 0x646   :  { %v6983_v19 = vadd.f32 %v6982_v21, %v6920_v59 }
 0x647   :  { %v7017_v56 = vadd.f32 %v7016_v23, %v6949_v25 }
 0x648   :  { %v6984_v50 = vrot.slane %v6983_v19, 4 }
 0x64a   :  { %v6881_v12 = vpop.f32.mrf.mxu3  ;;  %v6985_v26 = vadd.f32 %v6984_v50, %v6983_v19 }
 0x64b   :  { %v6882_v55 = vadd.f32 %v13670_v37, %v6881_v12 }
 0x64c   :  { %v6986_v2 = vrot.slane %v6985_v26, 2 }
 0x64d   :  { %v6950_v7 = vmax.f32 %v6882_v55, 0.0  ;;  %v8331_v55 = vld [vmem:[%s13893_s6 + $0x10] sm:$0xff] }
 0x64e   :  { %v6987_v32 = vadd.f32 %v6986_v2, %v6985_v26  ;;  %v8330_v26 = vld [vmem:[%s13893_s6 + $0x8] sm:$0xff]  ;;  %v8344_v2 = vld [vmem:[%s13896_s9 + $0x38] sm:$0xff] }
 0x64f   :  { %v7018_v4 = vadd.f32 %v7017_v56, %v6950_v7  ;;  %7371 = vmatpush.bf16.msrb.mxu3 %v8344_v2 }
 0x650   :  { %v6988_v31 = vrot.slane %v6987_v32, 1 }
 0x652   :  { %v6989_v0 = vadd.f32 %v6988_v31, %v6987_v32  ;;  %v8340_v32 = vld [vmem:[%s13896_s9 + $0x18] sm:$0xff]  ;;  %v8383_v31 = vld [vmem:[%s13891_s4] ss:$0 sm:$0xff] }
 0x653   :  { %7372 = vmatpush.bf16.msrb.mxu3 %v8343_v47 }
 0x654   :  { %v7034_v21 = vmul.f32 %v7033_v45, %v6989_v0 }
 0x656   :  { %v7042_v9 = vpack.c.bf16 %v7034_v21, %v7034_v21 }
 0x658   :  { %v7062_v35 = vunpack.c.l.b16 %v7042_v9 }
 0x65a   :  { %v6884_v53 = vpop.f32.mrf.mxu3 }
 0x65b   :  { %v6885_v30 = vadd.f32 %v13670_v37, %v6884_v53 }
 0x65d   :  { %v6951_v13 = vmax.f32 %v6885_v30, 0.0 }
 0x65f   :  { %v7019_v3 = vadd.f32 %v7018_v4, %v6951_v13  ;;  %v8342_v4 = vld [vmem:[%s13896_s9 + $0x28] sm:$0xff] }
 0x660   :  { %7373 = vmatpush.bf16.msrb.mxu3 %v8342_v4 }
 0x662   :  { %v6886_v8 = vpop.f32.mrf.mxu3 }
 0x663   :  { %v6887_v42 = vadd.f32 %v13670_v37, %v6886_v8  ;;  %v8332_v37 = vld [vmem:[%s13893_s6 + $0x18] sm:$0xff] }
 0x664   :  { %7249 = vmatpush.bf16.msrb.mxu2 %v8332_v37  ;;  %7374 = vmatpush.bf16.msrb.mxu3 %v8341_v28  ;;  %v8384_v37 = vld [vmem:[%s13892_s5] ss:$0 sm:$0xff] }
 0x665   :  { %v6952_v18 = vmax.f32 %v6887_v42, 0.0 }
 0x667   :  { %v7020_v27 = vadd.f32 %v7019_v3, %v6952_v18 }
 0x668   :  { %7250 = vmatpush.bf16.msrb.mxu2 %v8331_v55  ;;  %7375 = vmatpush.bf16.msrb.mxu3 %v8340_v32 }
 0x669   :  { %v7021_v16 = vrot.slane %v7020_v27, 4 }
 0x66b   :  { %v7022_v11 = vadd.f32 %v7021_v16, %v7020_v27 }
 0x66c   :  { %7251 = vmatpush.bf16.msrb.mxu2 %v8330_v26  ;;  %7376 = vmatpush.bf16.msrb.mxu3 %v8339_v10 }
 0x66d   :  { %v7023_v22 = vrot.slane %v7022_v11, 2 }
 0x66f   :  { %v7024_v39 = vadd.f32 %v7023_v22, %v7022_v11 }
 0x670   :  { %7252 = vmatpush.bf16.msrb.mxu2 %v8329_v17 }
 0x671   :  { %v7025_v14 = vrot.slane %v7024_v39, 1 }
 0x673   :  { %v7026_v60 = vadd.f32 %v7025_v14, %v7024_v39 }
 0x675   :  { %v7035_v44 = vmul.f32 %v7033_v45, %v7026_v60 }
 0x677   :  { %v7043_v52 = vpack.c.bf16 %v7035_v44, %v7035_v44  ;;  %v7039_v43 = vsel %vm7038_vm0, %v7035_v44, %v7034_v21 }
 0x678   :  { %7041 = vst [vmem:[#allocation5] sm:$0x3] %v7039_v43 }
 0x679   :  { %v7063_v54 = vunpack.c.l.b16 %v7043_v52  ;;  %7406 = dma.vmem_to_hbm [thread:$0]  %s7402_s23, 32, %s7404_s1, [#allocation6]  }
 0x67b   :  { %v7064_v58 = vsel %vm7038_vm0, %v7063_v54, %v7062_v35 }
 0x67c   :  { %v7065_v48 = vpack.c.b16 %v7064_v58, %v7064_v58 }
 0x67e   :  { %7123 = vmatmul.bf16.vlgmr.msrb.gmra.mxu1 %v7065_v48 }
 0x6fb   :  { %v7124_v12 = vpop.f32.mrf.mxu1 }
 0x6fc   :  { %v7131_v59 = vsel %vm7130_vm1, %v7124_v12, 0.0  ;;  %v7138_v20 = vmul.f32 %v7124_v12, %v7124_v12 }
 0x6fd   :  { %v7132_v24 = vrot.slane %v7131_v59, 4 }
 0x6fe   :  { %v7139_v1 = vsel %vm7130_vm1, %v7138_v20, 0.0  ;;  %v8338_v20 = vld [vmem:[%s13896_s9 + $0x8] sm:$0xff] }
 0x6ff   :  { %v7133_v38 = vadd.f32 %v7132_v24, %v7131_v59  ;;  %v7140_v19 = vrot.slane %v7139_v1, 4  ;;  %7377 = vmatpush.bf16.msrb.mxu3 %v8338_v20 }
 0x701   :  { %v7134_v57 = vrot.slane %v7133_v38, 2  ;;  %v7141_v29 = vadd.f32 %v7140_v19, %v7139_v1  ;;  %v8337_v19 = vld [vmem:[%s13896_s9] sm:$0xff] }
 0x703   :  { %v7135_v34 = vadd.f32 %v7134_v57, %v7133_v38  ;;  %v7142_v50 = vrot.slane %v7141_v29, 2  ;;  %v7126_v53 = vpop.f32.mrf.mxu1  ;;  %7378 = vmatpush.bf16.msrb.mxu3 %v8337_v19 }
 0x705   :  { %v7136_v6 = vrot.slane %v7135_v34, 1  ;;  %v7143_v33 = vadd.f32 %v7142_v50, %v7141_v29 }
 0x707   :  { %v7137_v25 = vadd.f32 %v7136_v6, %v7135_v34  ;;  %v7144_v30 = vrot.slane %v7143_v33, 1 }
 0x709   :  { %v7145_v40 = vadd.f32 %v7144_v30, %v7143_v33  ;;  %v7153_v41 = vmul.f32 %v13828_v51, %v7137_v25  ;;  %v8385_v25 = vld [vmem:[%s13894_s7] ss:$0 sm:$0xff] }
 0x70b   :  { %v7154_v23 = vmul.f32 %v13828_v51, %v7145_v40  ;;  %v7155_v7 = vmul.f32 %v7153_v41, %v7153_v41  ;;  %v7158_v16 = vsub.f32 %v7124_v12, %v7153_v41  ;;  %v8386_v40 = vld [vmem:[%s13895_s8] ss:$0 sm:$0xff]  ;;  %s7390_s8 = sshll.u32 %s8462_s28, 4  ;;  %s7391_s8 = int_to_ptr.vmem [resolvable:$true] %s7390_s8 }
 0x70d   :  { %v7156_v56 = vsub.f32 %v7154_v23, %v7155_v7 }
 0x70f   :  { %v7157_v13 = vmax.f32 %v7156_v56, 0.0  ;;  %v8387_v56 = vld [vmem:[%s13897_s10] ss:$0 sm:$0xff] }
 0x711   :  { %v7159_v8 = vadd.f32 1e-05, %v7157_v13 }
 0x713   :  { %8392 = vrsqrt.f32 %v7159_v8  ;;  %vm7166_vm4 = vweird.f32 %v7159_v8 }
 0x719   :  { %v8393_v42 = vpop.eup %8392 }
 0x71a   :  { %v7161_v3 = vmul.f32 %v8393_v42, %v7159_v8  ;;  %vm7167_vm3 = vweird.f32 %v8393_v42 }
 0x71b   :  { %vm7168_vm5 = vmor %vm7166_vm4, %vm7167_vm3 }
 0x71c   :  { %v7162_v18 = vmul.f32 %v8393_v42, %v7161_v3 }
 0x71e   :  { %v7163_v46 = vmul.f32 0.5, %v7162_v18 }
 0x720   :  { %v7164_v27 = vsub.f32 1.5, %v7163_v46 }
 0x722   :  { %v7165_v61 = vmul.f32 %v8393_v42, %v7164_v27 }
 0x724   :  { %v7169_v49 = vsel %vm7168_vm5, %v8393_v42, %v7165_v61 }
 0x725   :  { %v7170_v11 = vmul.f32 %v7169_v49, %v7158_v16 }
 0x727   :  { %v7174_v22 = vmul.f32 %v8383_v31, %v7170_v11 }
 0x729   :  { %v7178_v0 = vadd.f32 %v8384_v37, %v7174_v22 }
 0x72b   :  { %v7179_v45 = vmax.f32 %v7178_v0, 0.0 }
 0x72d   :  { %v7180_v39 = vpack.c.bf16 %v7179_v45, %v7179_v45 }
 0x72f   :  { %7253 = vmatmul.bf16.vlgmr.msrb.gmra.mxu2 %v7180_v39 }
 0x7b2   :  { %v7254_v14 = vpop.f32.mrf.mxu2 }
 0x7b3   :  { %v7260_v21 = vsel %vm7130_vm1, %v7254_v14, 0.0  ;;  %v7267_v60 = vmul.f32 %v7254_v14, %v7254_v14 }
 0x7b4   :  { %v7261_v44 = vrot.slane %v7260_v21, 4 }
 0x7b5   :  { %v7268_v9 = vsel %vm7130_vm1, %v7267_v60, 0.0 }
 0x7b6   :  { %v7262_v52 = vadd.f32 %v7261_v44, %v7260_v21  ;;  %v7269_v43 = vrot.slane %v7268_v9, 4 }
 0x7b8   :  { %v7263_v35 = vrot.slane %v7262_v52, 2  ;;  %v7270_v54 = vadd.f32 %v7269_v43, %v7268_v9 }
 0x7ba   :  { %v7264_v58 = vadd.f32 %v7263_v35, %v7262_v52  ;;  %v7271_v48 = vrot.slane %v7270_v54, 2  ;;  %v7256_v62 = vpop.f32.mrf.mxu2 }
 0x7bc   :  { %v7265_v36 = vrot.slane %v7264_v58, 1  ;;  %v7272_v63 = vadd.f32 %v7271_v48, %v7270_v54 }
 0x7be   :  { %v7266_v12 = vadd.f32 %v7265_v36, %v7264_v58  ;;  %v7273_v59 = vrot.slane %v7272_v63, 1 }
 0x7c0   :  { %v7274_v24 = vadd.f32 %v7273_v59, %v7272_v63  ;;  %v7275_v1 = vmul.f32 %v7266_v12, %v13828_v51 }
 0x7c2   :  { %v7276_v5 = vmul.f32 %v7274_v24, %v13828_v51  ;;  %v7277_v38 = vmul.f32 %v7275_v1, %v7275_v1  ;;  %v7280_v51 = vsub.f32 %v7254_v14, %v7275_v1 }
 0x7c4   :  { %v7278_v57 = vsub.f32 %v7276_v5, %v7277_v38 }
 0x7c6   :  { %v7279_v29 = vmax.f32 %v7278_v57, 0.0 }
 0x7c8   :  { %v7281_v15 = vadd.f32 1e-05, %v7279_v29 }
 0x7ca   :  { %8394 = vrsqrt.f32 %v7281_v15  ;;  %vm7288_vm7 = vweird.f32 %v7281_v15 }
 0x7d0   :  { %v8395_v34 = vpop.eup %8394 }
 0x7d1   :  { %v7283_v50 = vmul.f32 %v8395_v34, %v7281_v15  ;;  %vm7289_vm6 = vweird.f32 %v8395_v34 }
 0x7d2   :  { %vm7290_vm8 = vmor %vm7288_vm7, %vm7289_vm6 }
 0x7d3   :  { %v7284_v53 = vmul.f32 %v8395_v34, %v7283_v50 }
 0x7d5   :  { %v7285_v6 = vmul.f32 0.5, %v7284_v53 }
 0x7d7   :  { %v7286_v33 = vsub.f32 1.5, %v7285_v6 }
 0x7d9   :  { %v7287_v55 = vmul.f32 %v8395_v34, %v7286_v33 }
 0x7db   :  { %v7291_v30 = vsel %vm7290_vm8, %v8395_v34, %v7287_v55 }
 0x7dc   :  { %v7292_v26 = vmul.f32 %v7291_v30, %v7280_v51 }
 0x7de   :  { %v7296_v41 = vmul.f32 %v8385_v25, %v7292_v26 }
 0x7e0   :  { %v7300_v23 = vadd.f32 %v8386_v40, %v7296_v41 }
 0x7e2   :  { %v7301_v7 = vmax.f32 %v7300_v23, 0.0 }
 0x7e4   :  { %v7302_v17 = vpack.c.bf16 %v7301_v7, %v7301_v7 }
 0x7e6   :  { %7379 = vmatmul.bf16.vlgmr.msrb.gmra.mxu3 %v7302_v17 }
 0x869   :  { %v7380_v13 = vpop.f32.mrf.mxu3 }
 0x86a   :  { %v7381_v2 = vadd.f32 %v8387_v56, %v7380_v13 }
 0x86c   :  { %7384 = vst [vmem:[#allocation3] sm:$0x3] %v7381_v2 }
 0x86d   :  { %7395 = dma.vmem_to_hbm [thread:$0]  %s7391_s8, 32, %s7393_s3, [#allocation4]  }
 0x871   :  { %v7382_v8 = vpop.f32.mrf.mxu3 }
 0x872   :  { %8446 = dma.done.wait [#allocation4], 32  }
 0x873   :  { %8447 = vsyncadd [#allocation4], 4294967264 }
 0x874   :  { %8448 = dma.done.wait [#allocation6], 32  }
 0x875   :  { %8449 = vsyncadd [#allocation6], 4294967264 }
 0x876   :  { %7415 = vsyncpa [#allocation4], 1 }
 0x877   :  { %7416 = vsyncpa [#allocation6], 1 }

</bundles_post_ra>
